<compile_context>
chip_gen: v5e
topology: v5e:2x2
jax: 0.10.0
libtpu: 0.0.40
codegen_flags: <defaults>
</compile_context>

<pallas_src>
import jax
import jax.numpy as jnp
from jax import lax
from jax.experimental import pallas as pl
from jax.experimental.pallas import tpu as pltpu


# ------------------------------- fused kernel --------------------------------

def _make_seq2seq_kernel(T_enc, T_dec, Bp, Hp):
    """Builds the fused encoder-biLSTM + decoder-LSTM + FC kernel (static sizes)."""

    def gate_step(xp, h, c, whh):
        # xp already holds x @ W_ih + (b_ih + b_hh); gate blocks are Hp-aligned,
        # so every slice below is a full 128-lane tile (no masked relayouts).
        gates = xp + jnp.dot(h, whh, preferred_element_type=jnp.float32)
        i = jax.nn.sigmoid(gates[:, 0 * Hp:1 * Hp])
        f = jax.nn.sigmoid(gates[:, 1 * Hp:2 * Hp])
        g = jnp.tanh(gates[:, 2 * Hp:3 * Hp])
        o = jax.nn.sigmoid(gates[:, 3 * Hp:4 * Hp])
        c_new = f * c + i * g
        h_new = o * jnp.tanh(c_new)
        return h_new, c_new

    def kernel(enc_x_ref, dec_x_ref,                       # (T*Bp, E) each
               wih_f_ref, whh_f_ref, b_f_ref,              # (E,4Hp) (Hp,4Hp) (1,4Hp)
               wih_b_ref, whh_b_ref, b_b_ref,
               wih_d_ref, whh_d_ref, b_d_ref,
               wfc_ref, bfc_ref,                           # (Hp,Vp) (1,Vp)
               out_ref,                                    # (T_dec*Bp, Vp)
               xp_f_ref, xp_b_ref, xp_d_ref, hs_ref):      # VMEM scratch
        # ---- hoisted input projections: one batched matmul per stream -------
        enc_x = enc_x_ref[...]
        dec_x = dec_x_ref[...]
        xp_f_ref[...] = jnp.dot(enc_x, wih_f_ref[...],
                                preferred_element_type=jnp.float32) + b_f_ref[...]
        xp_b_ref[...] = jnp.dot(enc_x, wih_b_ref[...],
                                preferred_element_type=jnp.float32) + b_b_ref[...]
        xp_d_ref[...] = jnp.dot(dec_x, wih_d_ref[...],
                                preferred_element_type=jnp.float32) + b_d_ref[...]

        whh_f = whh_f_ref[...]
        whh_b = whh_b_ref[...]
        whh_d = whh_d_ref[...]

        # ---- encoder: fwd + bwd directions interleaved, fully unrolled ------
        z = jnp.zeros((Bp, Hp), jnp.float32)
        h_f = z; c_f = z; h_b = z; c_b = z
        for t in range(T_enc):                  # static trip count -> unrolled
            tb = T_enc - 1 - t
            h_f, c_f = gate_step(xp_f_ref[t * Bp:(t + 1) * Bp, :],
                                 h_f, c_f, whh_f)
            h_b, c_b = gate_step(xp_b_ref[tb * Bp:(tb + 1) * Bp, :],
                                 h_b, c_b, whh_b)

        # h_n = h_n[0] + h_n[1] ; c_n = c_n[0] + c_n[1]
        h = h_f + h_b
        c = c_f + c_b

        # ---- decoder recurrence: stash h_t, FC happens once afterwards ------
        for t in range(T_dec):                  # static trip count -> unrolled
            h, c = gate_step(xp_d_ref[t * Bp:(t + 1) * Bp, :], h, c, whh_d)
            hs_ref[t * Bp:(t + 1) * Bp, :] = h

        # ---- fused Linear: single big matmul, one lane-dense store ----------
        out_ref[...] = (jnp.dot(hs_ref[...], wfc_ref[...],
                                preferred_element_type=jnp.float32)
                        + bfc_ref[...])

    return kernel


# --------------------------------- wrapper -----------------------------------

_VMEM = pl.BlockSpec(memory_space=pltpu.MemorySpace.VMEM)


def _round_up(x, m):
    return (x + m - 1) // m * m


def _pad_gate_cols(w, H, Hp):
    """(in, 4H) -> (in, 4Hp): gate k's H columns placed at [k*Hp, k*Hp + H)."""
    return jnp.concatenate(
        [jnp.pad(w[:, k * H:(k + 1) * H], ((0, 0), (0, Hp - H)))
         for k in range(4)], axis=1)


def seq2seq_add_forward(params, enc_X, dec_X):
    """Training-mode forward of Seq2SeqAdd. Returns (B, T_dec, dec_vocab)."""
    B, T_enc = enc_X.shape
    T_dec = dec_X.shape[1]
    E = params["enc_emb"].shape[1]
    H = params["whh_f"].shape[0]
    V = params["wfc"].shape[1]

    Bp = _round_up(B, 8)      # sublane tile
    Hp = _round_up(H, 128)    # lane tile: gate slices and h are full vregs
    Vp = _round_up(V, 128)    # lane-dense FC output (unmasked vst)

    # Embedding lookups + layout prep (glue; padding_idx=0 is a zeroed row).
    def prep(emb, idx):
        x = jnp.transpose(emb[idx], (1, 0, 2))            # (T, B, E) time-major
        x = jnp.pad(x, ((0, 0), (0, Bp - B), (0, 0)))     # pad batch -> 8 sublanes
        return x.reshape(-1, E)                           # (T*Bp, E)

    enc_x = prep(params["enc_emb"], enc_X)
    dec_x = prep(params["dec_emb"], dec_X)

    # Weights padded into Hp-aligned gate-block layout (zeros elsewhere, so the
    # padded hidden lanes stay exactly 0 through the recurrence).
    def pad_ih(w):   # (E, 4H)  -> (E, 4Hp)
        return _pad_gate_cols(w, H, Hp)

    def pad_hh(w):   # (H, 4H)  -> (Hp, 4Hp)
        return jnp.pad(_pad_gate_cols(w, H, Hp), ((0, Hp - H), (0, 0)))

    def pad_b(b):    # (1, 4H)  -> (1, 4Hp)
        return _pad_gate_cols(b, H, Hp)

    wfc = jnp.pad(params["wfc"], ((0, Hp - H), (0, Vp - V)))
    bfc = jnp.pad(params["bfc"], ((0, 0), (0, Vp - V)))

    kernel = _make_seq2seq_kernel(T_enc, T_dec, Bp, Hp)

    out_flat = pl.pallas_call(
        kernel,
        out_shape=jax.ShapeDtypeStruct((T_dec * Bp, Vp), jnp.float32),
        in_specs=[_VMEM] * 13,
        out_specs=_VMEM,
        scratch_shapes=[
            pltpu.VMEM((T_enc * Bp, 4 * Hp), jnp.float32),   # enc fwd x-proj
            pltpu.VMEM((T_enc * Bp, 4 * Hp), jnp.float32),   # enc bwd x-proj
            pltpu.VMEM((T_dec * Bp, 4 * Hp), jnp.float32),   # dec x-proj
            pltpu.VMEM((T_dec * Bp, Hp), jnp.float32),       # decoder h_t stash
        ],
    )(enc_x, dec_x,
      pad_ih(params["wih_f"]), pad_hh(params["whh_f"]), pad_b(params["b_f"]),
      pad_ih(params["wih_b"]), pad_hh(params["whh_b"]), pad_b(params["b_b"]),
      pad_ih(params["wih_d"]), pad_hh(params["whh_d"]), pad_b(params["b_d"]),
      wfc, bfc)

    out = out_flat.reshape(T_dec, Bp, Vp)[:, :B, :V]      # strip padding
    return jnp.transpose(out, (1, 0, 2))                  # batch_first (B,T,V)


# ------------------------------ pure-JAX reference ----------------------------

def _lstm_scan_ref(x_tbe, h0, c0, wih, whh, b):
    H = whh.shape[0]

    def step(carry, x):
        h, c = carry
        gates = x @ wih + h @ whh + b
        i = jax.nn.sigmoid(gates[:, 0 * H:1 * H])
        f = jax.nn.sigmoid(gates[:, 1 * H:2 * H])
        g = jnp.tanh(gates[:, 2 * H:3 * H])
        o = jax.nn.sigmoid(gates[:, 3 * H:4 * H])
        c_new = f * c + i * g
        h_new = o * jnp.tanh(c_new)
        return (h_new, c_new), h_new

    (hT, cT), hs = lax.scan(step, (h0, c0), x_tbe)
    return hT, cT, hs


def seq2seq_add_reference(params, enc_X, dec_X):
    B = enc_X.shape[0]
    H = params["whh_f"].shape[0]
    enc_x = jnp.transpose(params["enc_emb"][enc_X], (1, 0, 2))
    dec_x = jnp.transpose(params["dec_emb"][dec_X], (1, 0, 2))
    z = jnp.zeros((B, H), jnp.float32)
    h_f, c_f, _ = _lstm_scan_ref(enc_x, z, z,
                                 params["wih_f"], params["whh_f"], params["b_f"])
    h_b, c_b, _ = _lstm_scan_ref(enc_x[::-1], z, z,
                                 params["wih_b"], params["whh_b"], params["b_b"])
    h0, c0 = h_f + h_b, c_f + c_b
    _, _, hs = _lstm_scan_ref(dec_x, h0, c0,
                              params["wih_d"], params["whh_d"], params["b_d"])
    out = hs @ params["wfc"] + params["bfc"]
    return jnp.transpose(out, (1, 0, 2))


# ------------------------------ parameter init --------------------------------

def init_params(key, enc_vocab, dec_vocab, emb_dim, hidden):
    ks = jax.random.split(key, 12)
    k = 1.0 / jnp.sqrt(hidden)

    def u(kk, shape):
        return jax.random.uniform(kk, shape, jnp.float32, -k, k)

    enc_emb = 0.1 * jax.random.normal(ks[0], (enc_vocab, emb_dim), jnp.float32)
    dec_emb = 0.1 * jax.random.normal(ks[1], (dec_vocab, emb_dim), jnp.float32)
    # padding_idx=0 -> zero row
    enc_emb = enc_emb.at[0].set(0.0)
    dec_emb = dec_emb.at[0].set(0.0)

    params = dict(
        enc_emb=enc_emb, dec_emb=dec_emb,
        # encoder forward direction
        wih_f=u(ks[2], (emb_dim, 4 * hidden)),
        whh_f=u(ks[3], (hidden, 4 * hidden)),
        b_f=u(ks[4], (1, 4 * hidden)),          # b_ih + b_hh combined
        # encoder reverse direction
        wih_b=u(ks[5], (emb_dim, 4 * hidden)),
        whh_b=u(ks[6], (hidden, 4 * hidden)),
        b_b=u(ks[7], (1, 4 * hidden)),
        # decoder LSTM
        wih_d=u(ks[8], (emb_dim, 4 * hidden)),
        whh_d=u(ks[9], (hidden, 4 * hidden)),
        b_d=u(ks[10], (1, 4 * hidden)),
        # decoder Linear(hidden -> dec_vocab)
        wfc=u(ks[11], (hidden, dec_vocab)),
        bfc=jnp.zeros((1, dec_vocab), jnp.float32),
    )
    return params


# ----------------------------------- main --------------------------------------

if __name__ == "__main__":
    ENC_VOCAB, DEC_VOCAB = 20, 24
    EMB_DIM, HIDDEN = 32, 32
    B, T_ENC, T_DEC = 2, 8, 8

    root = jax.random.PRNGKey(0)
    k_in1, k_in2, k_par = jax.random.split(root, 3)

    enc_X = jax.random.randint(k_in1, (B, T_ENC), 0, ENC_VOCAB, dtype=jnp.int32)
    dec_X = jax.random.randint(k_in2, (B, T_DEC), 0, DEC_VOCAB, dtype=jnp.int32)
    # make sure padding_idx=0 appears
    enc_X = enc_X.at[0, -1].set(0)
    dec_X = dec_X.at[0, -1].set(0)

    params = init_params(k_par, ENC_VOCAB, DEC_VOCAB, EMB_DIM, HIDDEN)

    out = seq2seq_add_forward(params, enc_X, dec_X)
    out = jax.block_until_ready(out)

    ref = jax.block_until_ready(seq2seq_add_reference(params, enc_X, dec_X))
    assert out.shape == (B, T_DEC, DEC_VOCAB), out.shape
    assert jnp.allclose(out, ref, atol=1e-2, rtol=1e-2), \
        float(jnp.max(jnp.abs(out - ref)))

    # TODO(synk): eval-mode branch of the PyTorch module returns None; only the
    # training-mode path is implemented here.
    print("KERNEL_OK")
</pallas_src>

<mosaic_0001>
module attributes {stable_mosaic.version = 11 : i64} {
  func.func @kernel(%arg0: memref<64x32xf32, #tpu.memory_space<vmem>>, %arg1: memref<64x32xf32, #tpu.memory_space<vmem>>, %arg2: memref<32x512xf32, #tpu.memory_space<vmem>>, %arg3: memref<128x512xf32, #tpu.memory_space<vmem>>, %arg4: memref<1x512xf32, #tpu.memory_space<vmem>>, %arg5: memref<32x512xf32, #tpu.memory_space<vmem>>, %arg6: memref<128x512xf32, #tpu.memory_space<vmem>>, %arg7: memref<1x512xf32, #tpu.memory_space<vmem>>, %arg8: memref<32x512xf32, #tpu.memory_space<vmem>>, %arg9: memref<128x512xf32, #tpu.memory_space<vmem>>, %arg10: memref<1x512xf32, #tpu.memory_space<vmem>>, %arg11: memref<128x128xf32, #tpu.memory_space<vmem>>, %arg12: memref<1x128xf32, #tpu.memory_space<vmem>>, %arg13: memref<64x128xf32, #tpu.memory_space<vmem>>, %arg14: memref<64x512xf32, #tpu.memory_space<vmem>>, %arg15: memref<64x512xf32, #tpu.memory_space<vmem>>, %arg16: memref<64x512xf32, #tpu.memory_space<vmem>>, %arg17: memref<64x128xf32, #tpu.memory_space<vmem>>) attributes {dimension_semantics = [], scalar_prefetch = 0 : i64, scratch_operands = 4 : i64, tpu.core_type = #tpu.core_type<tc>} {
    %c0 = arith.constant 0 : index
    %c0_0 = arith.constant 0 : index
    %0 = vector.load %arg0[%c0, %c0_0] : memref<64x32xf32, #tpu.memory_space<vmem>>, vector<64x32xf32>
    %c0_1 = arith.constant 0 : index
    %c0_2 = arith.constant 0 : index
    %1 = vector.load %arg1[%c0_1, %c0_2] : memref<64x32xf32, #tpu.memory_space<vmem>>, vector<64x32xf32>
    %c0_3 = arith.constant 0 : index
    %c0_4 = arith.constant 0 : index
    %2 = vector.load %arg2[%c0_3, %c0_4] : memref<32x512xf32, #tpu.memory_space<vmem>>, vector<32x512xf32>
    %cst = arith.constant dense<0.000000e+00> : vector<64x512xf32>
    %3 = tpu.matmul %0, %2, %cst {dimension_numbers = #tpu.dot_dimension_numbers<[1], [0], [0], [1], [0, 0, 1, 1], [], []>} : vector<64x32xf32>, vector<32x512xf32>, vector<64x512xf32> -> vector<64x512xf32>
    %c0_5 = arith.constant 0 : index
    %c0_6 = arith.constant 0 : index
    %4 = vector.load %arg4[%c0_5, %c0_6] : memref<1x512xf32, #tpu.memory_space<vmem>>, vector<1x512xf32>
    %5 = vector.broadcast %4 : vector<1x512xf32> to vector<64x512xf32>
    %6 = arith.addf %3, %5 : vector<64x512xf32>
    %c0_7 = arith.constant 0 : index
    %c0_8 = arith.constant 0 : index
    %7 = vector.load %arg14[%c0_7, %c0_8] : memref<64x512xf32, #tpu.memory_space<vmem>>, vector<64x512xf32>
    tpu.vector_store %arg14[%c0_7, %c0_8], %6 {strides = array<i32>} : memref<64x512xf32, #tpu.memory_space<vmem>>, vector<64x512xf32>,
    %c0_9 = arith.constant 0 : index
    %c0_10 = arith.constant 0 : index
    %8 = vector.load %arg5[%c0_9, %c0_10] : memref<32x512xf32, #tpu.memory_space<vmem>>, vector<32x512xf32>
    %cst_11 = arith.constant dense<0.000000e+00> : vector<64x512xf32>
    %9 = tpu.matmul %0, %8, %cst_11 {dimension_numbers = #tpu.dot_dimension_numbers<[1], [0], [0], [1], [0, 0, 1, 1], [], []>} : vector<64x32xf32>, vector<32x512xf32>, vector<64x512xf32> -> vector<64x512xf32>
    %c0_12 = arith.constant 0 : index
    %c0_13 = arith.constant 0 : index
    %10 = vector.load %arg7[%c0_12, %c0_13] : memref<1x512xf32, #tpu.memory_space<vmem>>, vector<1x512xf32>
    %11 = vector.broadcast %10 : vector<1x512xf32> to vector<64x512xf32>
    %12 = arith.addf %9, %11 : vector<64x512xf32>
    %c0_14 = arith.constant 0 : index
    %c0_15 = arith.constant 0 : index
    %13 = vector.load %arg15[%c0_14, %c0_15] : memref<64x512xf32, #tpu.memory_space<vmem>>, vector<64x512xf32>
    tpu.vector_store %arg15[%c0_14, %c0_15], %12 {strides = array<i32>} : memref<64x512xf32, #tpu.memory_space<vmem>>, vector<64x512xf32>,
    %c0_16 = arith.constant 0 : index
    %c0_17 = arith.constant 0 : index
    %14 = vector.load %arg8[%c0_16, %c0_17] : memref<32x512xf32, #tpu.memory_space<vmem>>, vector<32x512xf32>
    %cst_18 = arith.constant dense<0.000000e+00> : vector<64x512xf32>
    %15 = tpu.matmul %1, %14, %cst_18 {dimension_numbers = #tpu.dot_dimension_numbers<[1], [0], [0], [1], [0, 0, 1, 1], [], []>} : vector<64x32xf32>, vector<32x512xf32>, vector<64x512xf32> -> vector<64x512xf32>
    %c0_19 = arith.constant 0 : index
    %c0_20 = arith.constant 0 : index
    %16 = vector.load %arg10[%c0_19, %c0_20] : memref<1x512xf32, #tpu.memory_space<vmem>>, vector<1x512xf32>
    %17 = vector.broadcast %16 : vector<1x512xf32> to vector<64x512xf32>
    %18 = arith.addf %15, %17 : vector<64x512xf32>
    %c0_21 = arith.constant 0 : index
    %c0_22 = arith.constant 0 : index
    %19 = vector.load %arg16[%c0_21, %c0_22] : memref<64x512xf32, #tpu.memory_space<vmem>>, vector<64x512xf32>
    tpu.vector_store %arg16[%c0_21, %c0_22], %18 {strides = array<i32>} : memref<64x512xf32, #tpu.memory_space<vmem>>, vector<64x512xf32>,
    %c0_23 = arith.constant 0 : index
    %c0_24 = arith.constant 0 : index
    %20 = vector.load %arg3[%c0_23, %c0_24] : memref<128x512xf32, #tpu.memory_space<vmem>>, vector<128x512xf32>
    %c0_25 = arith.constant 0 : index
    %c0_26 = arith.constant 0 : index
    %21 = vector.load %arg6[%c0_25, %c0_26] : memref<128x512xf32, #tpu.memory_space<vmem>>, vector<128x512xf32>
    %c0_27 = arith.constant 0 : index
    %c0_28 = arith.constant 0 : index
    %22 = vector.load %arg9[%c0_27, %c0_28] : memref<128x512xf32, #tpu.memory_space<vmem>>, vector<128x512xf32>
    %cst_29 = arith.constant 0.000000e+00 : f32
    %23 = vector.broadcast %cst_29 : f32 to vector<8x128xf32>
    %c0_30 = arith.constant 0 : index
    %c0_31 = arith.constant 0 : index
    %24 = vector.load %arg14[%c0_30, %c0_31] : memref<64x512xf32, #tpu.memory_space<vmem>>, vector<8x512xf32>
    %cst_32 = arith.constant dense<0.000000e+00> : vector<8x512xf32>
    %25 = tpu.matmul %23, %20, %cst_32 {dimension_numbers = #tpu.dot_dimension_numbers<[1], [0], [0], [1], [0, 0, 1, 1], [], []>} : vector<8x128xf32>, vector<128x512xf32>, vector<8x512xf32> -> vector<8x512xf32>
    %26 = arith.addf %24, %25 : vector<8x512xf32>
    %27 = vector.extract_strided_slice %26 {offsets = [0, 0], sizes = [8, 128], strides = [1, 1]} : vector<8x512xf32> to vector<8x128xf32>
    %28 = arith.negf %27 : vector<8x128xf32>
    %29 = math.exp %28 : vector<8x128xf32>
    %cst_33 = arith.constant 1.000000e+00 : f32
    %30 = vector.broadcast %cst_33 : f32 to vector<8x128xf32>
    %31 = arith.addf %30, %29 : vector<8x128xf32>
    %32 = arith.divf %30, %31 : vector<8x128xf32>
    %33 = vector.extract_strided_slice %26 {offsets = [0, 128], sizes = [8, 128], strides = [1, 1]} : vector<8x512xf32> to vector<8x128xf32>
    %34 = arith.negf %33 : vector<8x128xf32>
    %35 = math.exp %34 : vector<8x128xf32>
    %cst_34 = arith.constant 1.000000e+00 : f32
    %36 = vector.broadcast %cst_34 : f32 to vector<8x128xf32>
    %37 = arith.addf %36, %35 : vector<8x128xf32>
    %38 = arith.divf %36, %37 : vector<8x128xf32>
    %39 = vector.extract_strided_slice %26 {offsets = [0, 256], sizes = [8, 128], strides = [1, 1]} : vector<8x512xf32> to vector<8x128xf32>
    %40 = math.tanh %39 : vector<8x128xf32>
    %41 = vector.extract_strided_slice %26 {offsets = [0, 384], sizes = [8, 128], strides = [1, 1]} : vector<8x512xf32> to vector<8x128xf32>
    %42 = arith.negf %41 : vector<8x128xf32>
    %43 = math.exp %42 : vector<8x128xf32>
    %cst_35 = arith.constant 1.000000e+00 : f32
    %44 = vector.broadcast %cst_35 : f32 to vector<8x128xf32>
    %45 = arith.addf %44, %43 : vector<8x128xf32>
    %46 = arith.divf %44, %45 : vector<8x128xf32>
    %47 = arith.mulf %38, %23 : vector<8x128xf32>
    %48 = arith.mulf %32, %40 : vector<8x128xf32>
    %49 = arith.addf %47, %48 : vector<8x128xf32>
    %50 = math.tanh %49 : vector<8x128xf32>
    %51 = arith.mulf %46, %50 : vector<8x128xf32>
    %c56 = arith.constant 56 : index
    %c0_36 = arith.constant 0 : index
    %52 = vector.load %arg15[%c56, %c0_36] : memref<64x512xf32, #tpu.memory_space<vmem>>, vector<8x512xf32>
    %cst_37 = arith.constant dense<0.000000e+00> : vector<8x512xf32>
    %53 = tpu.matmul %23, %21, %cst_37 {dimension_numbers = #tpu.dot_dimension_numbers<[1], [0], [0], [1], [0, 0, 1, 1], [], []>} : vector<8x128xf32>, vector<128x512xf32>, vector<8x512xf32> -> vector<8x512xf32>
    %54 = arith.addf %52, %53 : vector<8x512xf32>
    %55 = vector.extract_strided_slice %54 {offsets = [0, 0], sizes = [8, 128], strides = [1, 1]} : vector<8x512xf32> to vector<8x128xf32>
    %56 = arith.negf %55 : vector<8x128xf32>
    %57 = math.exp %56 : vector<8x128xf32>
    %cst_38 = arith.constant 1.000000e+00 : f32
    %58 = vector.broadcast %cst_38 : f32 to vector<8x128xf32>
    %59 = arith.addf %58, %57 : vector<8x128xf32>
    %60 = arith.divf %58, %59 : vector<8x128xf32>
    %61 = vector.extract_strided_slice %54 {offsets = [0, 128], sizes = [8, 128], strides = [1, 1]} : vector<8x512xf32> to vector<8x128xf32>
    %62 = arith.negf %61 : vector<8x128xf32>
    %63 = math.exp %62 : vector<8x128xf32>
    %cst_39 = arith.constant 1.000000e+00 : f32
    %64 = vector.broadcast %cst_39 : f32 to vector<8x128xf32>
    %65 = arith.addf %64, %63 : vector<8x128xf32>
    %66 = arith.divf %64, %65 : vector<8x128xf32>
    %67 = vector.extract_strided_slice %54 {offsets = [0, 256], sizes = [8, 128], strides = [1, 1]} : vector<8x512xf32> to vector<8x128xf32>
    %68 = math.tanh %67 : vector<8x128xf32>
    %69 = vector.extract_strided_slice %54 {offsets = [0, 384], sizes = [8, 128], strides = [1, 1]} : vector<8x512xf32> to vector<8x128xf32>
    %70 = arith.negf %69 : vector<8x128xf32>
    %71 = math.exp %70 : vector<8x128xf32>
    %cst_40 = arith.constant 1.000000e+00 : f32
    %72 = vector.broadcast %cst_40 : f32 to vector<8x128xf32>
    %73 = arith.addf %72, %71 : vector<8x128xf32>
    %74 = arith.divf %72, %73 : vector<8x128xf32>
    %75 = arith.mulf %66, %23 : vector<8x128xf32>
    %76 = arith.mulf %60, %68 : vector<8x128xf32>
    %77 = arith.addf %75, %76 : vector<8x128xf32>
    %78 = math.tanh %77 : vector<8x128xf32>
    %79 = arith.mulf %74, %78 : vector<8x128xf32>
    %c8 = arith.constant 8 : index
    %c0_41 = arith.constant 0 : index
    %80 = vector.load %arg14[%c8, %c0_41] : memref<64x512xf32, #tpu.memory_space<vmem>>, vector<8x512xf32>
    %cst_42 = arith.constant dense<0.000000e+00> : vector<8x512xf32>
    %81 = tpu.matmul %51, %20, %cst_42 {dimension_numbers = #tpu.dot_dimension_numbers<[1], [0], [0], [1], [0, 0, 1, 1], [], []>} : vector<8x128xf32>, vector<128x512xf32>, vector<8x512xf32> -> vector<8x512xf32>
    %82 = arith.addf %80, %81 : vector<8x512xf32>
    %83 = vector.extract_strided_slice %82 {offsets = [0, 0], sizes = [8, 128], strides = [1, 1]} : vector<8x512xf32> to vector<8x128xf32>
    %84 = arith.negf %83 : vector<8x128xf32>
    %85 = math.exp %84 : vector<8x128xf32>
    %cst_43 = arith.constant 1.000000e+00 : f32
    %86 = vector.broadcast %cst_43 : f32 to vector<8x128xf32>
    %87 = arith.addf %86, %85 : vector<8x128xf32>
    %88 = arith.divf %86, %87 : vector<8x128xf32>
    %89 = vector.extract_strided_slice %82 {offsets = [0, 128], sizes = [8, 128], strides = [1, 1]} : vector<8x512xf32> to vector<8x128xf32>
    %90 = arith.negf %89 : vector<8x128xf32>
    %91 = math.exp %90 : vector<8x128xf32>
    %cst_44 = arith.constant 1.000000e+00 : f32
    %92 = vector.broadcast %cst_44 : f32 to vector<8x128xf32>
    %93 = arith.addf %92, %91 : vector<8x128xf32>
    %94 = arith.divf %92, %93 : vector<8x128xf32>
    %95 = vector.extract_strided_slice %82 {offsets = [0, 256], sizes = [8, 128], strides = [1, 1]} : vector<8x512xf32> to vector<8x128xf32>
    %96 = math.tanh %95 : vector<8x128xf32>
    %97 = vector.extract_strided_slice %82 {offsets = [0, 384], sizes = [8, 128], strides = [1, 1]} : vector<8x512xf32> to vector<8x128xf32>
    %98 = arith.negf %97 : vector<8x128xf32>
    %99 = math.exp %98 : vector<8x128xf32>
    %cst_45 = arith.constant 1.000000e+00 : f32
    %100 = vector.broadcast %cst_45 : f32 to vector<8x128xf32>
    %101 = arith.addf %100, %99 : vector<8x128xf32>
    %102 = arith.divf %100, %101 : vector<8x128xf32>
    %103 = arith.mulf %94, %49 : vector<8x128xf32>
    %104 = arith.mulf %88, %96 : vector<8x128xf32>
    %105 = arith.addf %103, %104 : vector<8x128xf32>
    %106 = math.tanh %105 : vector<8x128xf32>
    %107 = arith.mulf %102, %106 : vector<8x128xf32>
    %c48 = arith.constant 48 : index
    %c0_46 = arith.constant 0 : index
    %108 = vector.load %arg15[%c48, %c0_46] : memref<64x512xf32, #tpu.memory_space<vmem>>, vector<8x512xf32>
    %cst_47 = arith.constant dense<0.000000e+00> : vector<8x512xf32>
    %109 = tpu.matmul %79, %21, %cst_47 {dimension_numbers = #tpu.dot_dimension_numbers<[1], [0], [0], [1], [0, 0, 1, 1], [], []>} : vector<8x128xf32>, vector<128x512xf32>, vector<8x512xf32> -> vector<8x512xf32>
    %110 = arith.addf %108, %109 : vector<8x512xf32>
    %111 = vector.extract_strided_slice %110 {offsets = [0, 0], sizes = [8, 128], strides = [1, 1]} : vector<8x512xf32> to vector<8x128xf32>
    %112 = arith.negf %111 : vector<8x128xf32>
    %113 = math.exp %112 : vector<8x128xf32>
    %cst_48 = arith.constant 1.000000e+00 : f32
    %114 = vector.broadcast %cst_48 : f32 to vector<8x128xf32>
    %115 = arith.addf %114, %113 : vector<8x128xf32>
    %116 = arith.divf %114, %115 : vector<8x128xf32>
    %117 = vector.extract_strided_slice %110 {offsets = [0, 128], sizes = [8, 128], strides = [1, 1]} : vector<8x512xf32> to vector<8x128xf32>
    %118 = arith.negf %117 : vector<8x128xf32>
    %119 = math.exp %118 : vector<8x128xf32>
    %cst_49 = arith.constant 1.000000e+00 : f32
    %120 = vector.broadcast %cst_49 : f32 to vector<8x128xf32>
    %121 = arith.addf %120, %119 : vector<8x128xf32>
    %122 = arith.divf %120, %121 : vector<8x128xf32>
    %123 = vector.extract_strided_slice %110 {offsets = [0, 256], sizes = [8, 128], strides = [1, 1]} : vector<8x512xf32> to vector<8x128xf32>
    %124 = math.tanh %123 : vector<8x128xf32>
    %125 = vector.extract_strided_slice %110 {offsets = [0, 384], sizes = [8, 128], strides = [1, 1]} : vector<8x512xf32> to vector<8x128xf32>
    %126 = arith.negf %125 : vector<8x128xf32>
    %127 = math.exp %126 : vector<8x128xf32>
    %cst_50 = arith.constant 1.000000e+00 : f32
    %128 = vector.broadcast %cst_50 : f32 to vector<8x128xf32>
    %129 = arith.addf %128, %127 : vector<8x128xf32>
    %130 = arith.divf %128, %129 : vector<8x128xf32>
    %131 = arith.mulf %122, %77 : vector<8x128xf32>
    %132 = arith.mulf %116, %124 : vector<8x128xf32>
    %133 = arith.addf %131, %132 : vector<8x128xf32>
    %134 = math.tanh %133 : vector<8x128xf32>
    %135 = arith.mulf %130, %134 : vector<8x128xf32>
    %c16 = arith.constant 16 : index
    %c0_51 = arith.constant 0 : index
    %136 = vector.load %arg14[%c16, %c0_51] : memref<64x512xf32, #tpu.memory_space<vmem>>, vector<8x512xf32>
    %cst_52 = arith.constant dense<0.000000e+00> : vector<8x512xf32>
    %137 = tpu.matmul %107, %20, %cst_52 {dimension_numbers = #tpu.dot_dimension_numbers<[1], [0], [0], [1], [0, 0, 1, 1], [], []>} : vector<8x128xf32>, vector<128x512xf32>, vector<8x512xf32> -> vector<8x512xf32>
    %138 = arith.addf %136, %137 : vector<8x512xf32>
    %139 = vector.extract_strided_slice %138 {offsets = [0, 0], sizes = [8, 128], strides = [1, 1]} : vector<8x512xf32> to vector<8x128xf32>
    %140 = arith.negf %139 : vector<8x128xf32>
    %141 = math.exp %140 : vector<8x128xf32>
    %cst_53 = arith.constant 1.000000e+00 : f32
    %142 = vector.broadcast %cst_53 : f32 to vector<8x128xf32>
    %143 = arith.addf %142, %141 : vector<8x128xf32>
    %144 = arith.divf %142, %143 : vector<8x128xf32>
    %145 = vector.extract_strided_slice %138 {offsets = [0, 128], sizes = [8, 128], strides = [1, 1]} : vector<8x512xf32> to vector<8x128xf32>
    %146 = arith.negf %145 : vector<8x128xf32>
    %147 = math.exp %146 : vector<8x128xf32>
    %cst_54 = arith.constant 1.000000e+00 : f32
    %148 = vector.broadcast %cst_54 : f32 to vector<8x128xf32>
    %149 = arith.addf %148, %147 : vector<8x128xf32>
    %150 = arith.divf %148, %149 : vector<8x128xf32>
    %151 = vector.extract_strided_slice %138 {offsets = [0, 256], sizes = [8, 128], strides = [1, 1]} : vector<8x512xf32> to vector<8x128xf32>
    %152 = math.tanh %151 : vector<8x128xf32>
    %153 = vector.extract_strided_slice %138 {offsets = [0, 384], sizes = [8, 128], strides = [1, 1]} : vector<8x512xf32> to vector<8x128xf32>
    %154 = arith.negf %153 : vector<8x128xf32>
    %155 = math.exp %154 : vector<8x128xf32>
    %cst_55 = arith.constant 1.000000e+00 : f32
    %156 = vector.broadcast %cst_55 : f32 to vector<8x128xf32>
    %157 = arith.addf %156, %155 : vector<8x128xf32>
    %158 = arith.divf %156, %157 : vector<8x128xf32>
    %159 = arith.mulf %150, %105 : vector<8x128xf32>
    %160 = arith.mulf %144, %152 : vector<8x128xf32>
    %161 = arith.addf %159, %160 : vector<8x128xf32>
    %162 = math.tanh %161 : vector<8x128xf32>
    %163 = arith.mulf %158, %162 : vector<8x128xf32>
    %c40 = arith.constant 40 : index
    %c0_56 = arith.constant 0 : index
    %164 = vector.load %arg15[%c40, %c0_56] : memref<64x512xf32, #tpu.memory_space<vmem>>, vector<8x512xf32>
    %cst_57 = arith.constant dense<0.000000e+00> : vector<8x512xf32>
    %165 = tpu.matmul %135, %21, %cst_57 {dimension_numbers = #tpu.dot_dimension_numbers<[1], [0], [0], [1], [0, 0, 1, 1], [], []>} : vector<8x128xf32>, vector<128x512xf32>, vector<8x512xf32> -> vector<8x512xf32>
    %166 = arith.addf %164, %165 : vector<8x512xf32>
    %167 = vector.extract_strided_slice %166 {offsets = [0, 0], sizes = [8, 128], strides = [1, 1]} : vector<8x512xf32> to vector<8x128xf32>
    %168 = arith.negf %167 : vector<8x128xf32>
    %169 = math.exp %168 : vector<8x128xf32>
    %cst_58 = arith.constant 1.000000e+00 : f32
    %170 = vector.broadcast %cst_58 : f32 to vector<8x128xf32>
    %171 = arith.addf %170, %169 : vector<8x128xf32>
    %172 = arith.divf %170, %171 : vector<8x128xf32>
    %173 = vector.extract_strided_slice %166 {offsets = [0, 128], sizes = [8, 128], strides = [1, 1]} : vector<8x512xf32> to vector<8x128xf32>
    %174 = arith.negf %173 : vector<8x128xf32>
    %175 = math.exp %174 : vector<8x128xf32>
    %cst_59 = arith.constant 1.000000e+00 : f32
    %176 = vector.broadcast %cst_59 : f32 to vector<8x128xf32>
    %177 = arith.addf %176, %175 : vector<8x128xf32>
    %178 = arith.divf %176, %177 : vector<8x128xf32>
    %179 = vector.extract_strided_slice %166 {offsets = [0, 256], sizes = [8, 128], strides = [1, 1]} : vector<8x512xf32> to vector<8x128xf32>
    %180 = math.tanh %179 : vector<8x128xf32>
    %181 = vector.extract_strided_slice %166 {offsets = [0, 384], sizes = [8, 128], strides = [1, 1]} : vector<8x512xf32> to vector<8x128xf32>
    %182 = arith.negf %181 : vector<8x128xf32>
    %183 = math.exp %182 : vector<8x128xf32>
    %cst_60 = arith.constant 1.000000e+00 : f32
    %184 = vector.broadcast %cst_60 : f32 to vector<8x128xf32>
    %185 = arith.addf %184, %183 : vector<8x128xf32>
    %186 = arith.divf %184, %185 : vector<8x128xf32>
    %187 = arith.mulf %178, %133 : vector<8x128xf32>
    %188 = arith.mulf %172, %180 : vector<8x128xf32>
    %189 = arith.addf %187, %188 : vector<8x128xf32>
    %190 = math.tanh %189 : vector<8x128xf32>
    %191 = arith.mulf %186, %190 : vector<8x128xf32>
    %c24 = arith.constant 24 : index
    %c0_61 = arith.constant 0 : index
    %192 = vector.load %arg14[%c24, %c0_61] : memref<64x512xf32, #tpu.memory_space<vmem>>, vector<8x512xf32>
    %cst_62 = arith.constant dense<0.000000e+00> : vector<8x512xf32>
    %193 = tpu.matmul %163, %20, %cst_62 {dimension_numbers = #tpu.dot_dimension_numbers<[1], [0], [0], [1], [0, 0, 1, 1], [], []>} : vector<8x128xf32>, vector<128x512xf32>, vector<8x512xf32> -> vector<8x512xf32>
    %194 = arith.addf %192, %193 : vector<8x512xf32>
    %195 = vector.extract_strided_slice %194 {offsets = [0, 0], sizes = [8, 128], strides = [1, 1]} : vector<8x512xf32> to vector<8x128xf32>
    %196 = arith.negf %195 : vector<8x128xf32>
    %197 = math.exp %196 : vector<8x128xf32>
    %cst_63 = arith.constant 1.000000e+00 : f32
    %198 = vector.broadcast %cst_63 : f32 to vector<8x128xf32>
    %199 = arith.addf %198, %197 : vector<8x128xf32>
    %200 = arith.divf %198, %199 : vector<8x128xf32>
    %201 = vector.extract_strided_slice %194 {offsets = [0, 128], sizes = [8, 128], strides = [1, 1]} : vector<8x512xf32> to vector<8x128xf32>
    %202 = arith.negf %201 : vector<8x128xf32>
    %203 = math.exp %202 : vector<8x128xf32>
    %cst_64 = arith.constant 1.000000e+00 : f32
    %204 = vector.broadcast %cst_64 : f32 to vector<8x128xf32>
    %205 = arith.addf %204, %203 : vector<8x128xf32>
    %206 = arith.divf %204, %205 : vector<8x128xf32>
    %207 = vector.extract_strided_slice %194 {offsets = [0, 256], sizes = [8, 128], strides = [1, 1]} : vector<8x512xf32> to vector<8x128xf32>
    %208 = math.tanh %207 : vector<8x128xf32>
    %209 = vector.extract_strided_slice %194 {offsets = [0, 384], sizes = [8, 128], strides = [1, 1]} : vector<8x512xf32> to vector<8x128xf32>
    %210 = arith.negf %209 : vector<8x128xf32>
    %211 = math.exp %210 : vector<8x128xf32>
    %cst_65 = arith.constant 1.000000e+00 : f32
    %212 = vector.broadcast %cst_65 : f32 to vector<8x128xf32>
    %213 = arith.addf %212, %211 : vector<8x128xf32>
    %214 = arith.divf %212, %213 : vector<8x128xf32>
    %215 = arith.mulf %206, %161 : vector<8x128xf32>
    %216 = arith.mulf %200, %208 : vector<8x128xf32>
    %217 = arith.addf %215, %216 : vector<8x128xf32>
    %218 = math.tanh %217 : vector<8x128xf32>
    %219 = arith.mulf %214, %218 : vector<8x128xf32>
    %c32 = arith.constant 32 : index
    %c0_66 = arith.constant 0 : index
    %220 = vector.load %arg15[%c32, %c0_66] : memref<64x512xf32, #tpu.memory_space<vmem>>, vector<8x512xf32>
    %cst_67 = arith.constant dense<0.000000e+00> : vector<8x512xf32>
    %221 = tpu.matmul %191, %21, %cst_67 {dimension_numbers = #tpu.dot_dimension_numbers<[1], [0], [0], [1], [0, 0, 1, 1], [], []>} : vector<8x128xf32>, vector<128x512xf32>, vector<8x512xf32> -> vector<8x512xf32>
    %222 = arith.addf %220, %221 : vector<8x512xf32>
    %223 = vector.extract_strided_slice %222 {offsets = [0, 0], sizes = [8, 128], strides = [1, 1]} : vector<8x512xf32> to vector<8x128xf32>
    %224 = arith.negf %223 : vector<8x128xf32>
    %225 = math.exp %224 : vector<8x128xf32>
    %cst_68 = arith.constant 1.000000e+00 : f32
    %226 = vector.broadcast %cst_68 : f32 to vector<8x128xf32>
    %227 = arith.addf %226, %225 : vector<8x128xf32>
    %228 = arith.divf %226, %227 : vector<8x128xf32>
    %229 = vector.extract_strided_slice %222 {offsets = [0, 128], sizes = [8, 128], strides = [1, 1]} : vector<8x512xf32> to vector<8x128xf32>
    %230 = arith.negf %229 : vector<8x128xf32>
    %231 = math.exp %230 : vector<8x128xf32>
    %cst_69 = arith.constant 1.000000e+00 : f32
    %232 = vector.broadcast %cst_69 : f32 to vector<8x128xf32>
    %233 = arith.addf %232, %231 : vector<8x128xf32>
    %234 = arith.divf %232, %233 : vector<8x128xf32>
    %235 = vector.extract_strided_slice %222 {offsets = [0, 256], sizes = [8, 128], strides = [1, 1]} : vector<8x512xf32> to vector<8x128xf32>
    %236 = math.tanh %235 : vector<8x128xf32>
    %237 = vector.extract_strided_slice %222 {offsets = [0, 384], sizes = [8, 128], strides = [1, 1]} : vector<8x512xf32> to vector<8x128xf32>
    %238 = arith.negf %237 : vector<8x128xf32>
    %239 = math.exp %238 : vector<8x128xf32>
    %cst_70 = arith.constant 1.000000e+00 : f32
    %240 = vector.broadcast %cst_70 : f32 to vector<8x128xf32>
    %241 = arith.addf %240, %239 : vector<8x128xf32>
    %242 = arith.divf %240, %241 : vector<8x128xf32>
    %243 = arith.mulf %234, %189 : vector<8x128xf32>
    %244 = arith.mulf %228, %236 : vector<8x128xf32>
    %245 = arith.addf %243, %244 : vector<8x128xf32>
    %246 = math.tanh %245 : vector<8x128xf32>
    %247 = arith.mulf %242, %246 : vector<8x128xf32>
    %c32_71 = arith.constant 32 : index
    %c0_72 = arith.constant 0 : index
    %248 = vector.load %arg14[%c32_71, %c0_72] : memref<64x512xf32, #tpu.memory_space<vmem>>, vector<8x512xf32>
    %cst_73 = arith.constant dense<0.000000e+00> : vector<8x512xf32>
    %249 = tpu.matmul %219, %20, %cst_73 {dimension_numbers = #tpu.dot_dimension_numbers<[1], [0], [0], [1], [0, 0, 1, 1], [], []>} : vector<8x128xf32>, vector<128x512xf32>, vector<8x512xf32> -> vector<8x512xf32>
    %250 = arith.addf %248, %249 : vector<8x512xf32>
    %251 = vector.extract_strided_slice %250 {offsets = [0, 0], sizes = [8, 128], strides = [1, 1]} : vector<8x512xf32> to vector<8x128xf32>
    %252 = arith.negf %251 : vector<8x128xf32>
    %253 = math.exp %252 : vector<8x128xf32>
    %cst_74 = arith.constant 1.000000e+00 : f32
    %254 = vector.broadcast %cst_74 : f32 to vector<8x128xf32>
    %255 = arith.addf %254, %253 : vector<8x128xf32>
    %256 = arith.divf %254, %255 : vector<8x128xf32>
    %257 = vector.extract_strided_slice %250 {offsets = [0, 128], sizes = [8, 128], strides = [1, 1]} : vector<8x512xf32> to vector<8x128xf32>
    %258 = arith.negf %257 : vector<8x128xf32>
    %259 = math.exp %258 : vector<8x128xf32>
    %cst_75 = arith.constant 1.000000e+00 : f32
    %260 = vector.broadcast %cst_75 : f32 to vector<8x128xf32>
    %261 = arith.addf %260, %259 : vector<8x128xf32>
    %262 = arith.divf %260, %261 : vector<8x128xf32>
    %263 = vector.extract_strided_slice %250 {offsets = [0, 256], sizes = [8, 128], strides = [1, 1]} : vector<8x512xf32> to vector<8x128xf32>
    %264 = math.tanh %263 : vector<8x128xf32>
    %265 = vector.extract_strided_slice %250 {offsets = [0, 384], sizes = [8, 128], strides = [1, 1]} : vector<8x512xf32> to vector<8x128xf32>
    %266 = arith.negf %265 : vector<8x128xf32>
    %267 = math.exp %266 : vector<8x128xf32>
    %cst_76 = arith.constant 1.000000e+00 : f32
    %268 = vector.broadcast %cst_76 : f32 to vector<8x128xf32>
    %269 = arith.addf %268, %267 : vector<8x128xf32>
    %270 = arith.divf %268, %269 : vector<8x128xf32>
    %271 = arith.mulf %262, %217 : vector<8x128xf32>
    %272 = arith.mulf %256, %264 : vector<8x128xf32>
    %273 = arith.addf %271, %272 : vector<8x128xf32>
    %274 = math.tanh %273 : vector<8x128xf32>
    %275 = arith.mulf %270, %274 : vector<8x128xf32>
    %c24_77 = arith.constant 24 : index
    %c0_78 = arith.constant 0 : index
    %276 = vector.load %arg15[%c24_77, %c0_78] : memref<64x512xf32, #tpu.memory_space<vmem>>, vector<8x512xf32>
    %cst_79 = arith.constant dense<0.000000e+00> : vector<8x512xf32>
    %277 = tpu.matmul %247, %21, %cst_79 {dimension_numbers = #tpu.dot_dimension_numbers<[1], [0], [0], [1], [0, 0, 1, 1], [], []>} : vector<8x128xf32>, vector<128x512xf32>, vector<8x512xf32> -> vector<8x512xf32>
    %278 = arith.addf %276, %277 : vector<8x512xf32>
    %279 = vector.extract_strided_slice %278 {offsets = [0, 0], sizes = [8, 128], strides = [1, 1]} : vector<8x512xf32> to vector<8x128xf32>
    %280 = arith.negf %279 : vector<8x128xf32>
    %281 = math.exp %280 : vector<8x128xf32>
    %cst_80 = arith.constant 1.000000e+00 : f32
    %282 = vector.broadcast %cst_80 : f32 to vector<8x128xf32>
    %283 = arith.addf %282, %281 : vector<8x128xf32>
    %284 = arith.divf %282, %283 : vector<8x128xf32>
    %285 = vector.extract_strided_slice %278 {offsets = [0, 128], sizes = [8, 128], strides = [1, 1]} : vector<8x512xf32> to vector<8x128xf32>
    %286 = arith.negf %285 : vector<8x128xf32>
    %287 = math.exp %286 : vector<8x128xf32>
    %cst_81 = arith.constant 1.000000e+00 : f32
    %288 = vector.broadcast %cst_81 : f32 to vector<8x128xf32>
    %289 = arith.addf %288, %287 : vector<8x128xf32>
    %290 = arith.divf %288, %289 : vector<8x128xf32>
    %291 = vector.extract_strided_slice %278 {offsets = [0, 256], sizes = [8, 128], strides = [1, 1]} : vector<8x512xf32> to vector<8x128xf32>
    %292 = math.tanh %291 : vector<8x128xf32>
    %293 = vector.extract_strided_slice %278 {offsets = [0, 384], sizes = [8, 128], strides = [1, 1]} : vector<8x512xf32> to vector<8x128xf32>
    %294 = arith.negf %293 : vector<8x128xf32>
    %295 = math.exp %294 : vector<8x128xf32>
    %cst_82 = arith.constant 1.000000e+00 : f32
    %296 = vector.broadcast %cst_82 : f32 to vector<8x128xf32>
    %297 = arith.addf %296, %295 : vector<8x128xf32>
    %298 = arith.divf %296, %297 : vector<8x128xf32>
    %299 = arith.mulf %290, %245 : vector<8x128xf32>
    %300 = arith.mulf %284, %292 : vector<8x128xf32>
    %301 = arith.addf %299, %300 : vector<8x128xf32>
    %302 = math.tanh %301 : vector<8x128xf32>
    %303 = arith.mulf %298, %302 : vector<8x128xf32>
    %c40_83 = arith.constant 40 : index
    %c0_84 = arith.constant 0 : index
    %304 = vector.load %arg14[%c40_83, %c0_84] : memref<64x512xf32, #tpu.memory_space<vmem>>, vector<8x512xf32>
    %cst_85 = arith.constant dense<0.000000e+00> : vector<8x512xf32>
    %305 = tpu.matmul %275, %20, %cst_85 {dimension_numbers = #tpu.dot_dimension_numbers<[1], [0], [0], [1], [0, 0, 1, 1], [], []>} : vector<8x128xf32>, vector<128x512xf32>, vector<8x512xf32> -> vector<8x512xf32>
    %306 = arith.addf %304, %305 : vector<8x512xf32>
    %307 = vector.extract_strided_slice %306 {offsets = [0, 0], sizes = [8, 128], strides = [1, 1]} : vector<8x512xf32> to vector<8x128xf32>
    %308 = arith.negf %307 : vector<8x128xf32>
    %309 = math.exp %308 : vector<8x128xf32>
    %cst_86 = arith.constant 1.000000e+00 : f32
    %310 = vector.broadcast %cst_86 : f32 to vector<8x128xf32>
    %311 = arith.addf %310, %309 : vector<8x128xf32>
    %312 = arith.divf %310, %311 : vector<8x128xf32>
    %313 = vector.extract_strided_slice %306 {offsets = [0, 128], sizes = [8, 128], strides = [1, 1]} : vector<8x512xf32> to vector<8x128xf32>
    %314 = arith.negf %313 : vector<8x128xf32>
    %315 = math.exp %314 : vector<8x128xf32>
    %cst_87 = arith.constant 1.000000e+00 : f32
    %316 = vector.broadcast %cst_87 : f32 to vector<8x128xf32>
    %317 = arith.addf %316, %315 : vector<8x128xf32>
    %318 = arith.divf %316, %317 : vector<8x128xf32>
    %319 = vector.extract_strided_slice %306 {offsets = [0, 256], sizes = [8, 128], strides = [1, 1]} : vector<8x512xf32> to vector<8x128xf32>
    %320 = math.tanh %319 : vector<8x128xf32>
    %321 = vector.extract_strided_slice %306 {offsets = [0, 384], sizes = [8, 128], strides = [1, 1]} : vector<8x512xf32> to vector<8x128xf32>
    %322 = arith.negf %321 : vector<8x128xf32>
    %323 = math.exp %322 : vector<8x128xf32>
    %cst_88 = arith.constant 1.000000e+00 : f32
    %324 = vector.broadcast %cst_88 : f32 to vector<8x128xf32>
    %325 = arith.addf %324, %323 : vector<8x128xf32>
    %326 = arith.divf %324, %325 : vector<8x128xf32>
    %327 = arith.mulf %318, %273 : vector<8x128xf32>
    %328 = arith.mulf %312, %320 : vector<8x128xf32>
    %329 = arith.addf %327, %328 : vector<8x128xf32>
    %330 = math.tanh %329 : vector<8x128xf32>
    %331 = arith.mulf %326, %330 : vector<8x128xf32>
    %c16_89 = arith.constant 16 : index
    %c0_90 = arith.constant 0 : index
    %332 = vector.load %arg15[%c16_89, %c0_90] : memref<64x512xf32, #tpu.memory_space<vmem>>, vector<8x512xf32>
    %cst_91 = arith.constant dense<0.000000e+00> : vector<8x512xf32>
    %333 = tpu.matmul %303, %21, %cst_91 {dimension_numbers = #tpu.dot_dimension_numbers<[1], [0], [0], [1], [0, 0, 1, 1], [], []>} : vector<8x128xf32>, vector<128x512xf32>, vector<8x512xf32> -> vector<8x512xf32>
    %334 = arith.addf %332, %333 : vector<8x512xf32>
    %335 = vector.extract_strided_slice %334 {offsets = [0, 0], sizes = [8, 128], strides = [1, 1]} : vector<8x512xf32> to vector<8x128xf32>
    %336 = arith.negf %335 : vector<8x128xf32>
    %337 = math.exp %336 : vector<8x128xf32>
    %cst_92 = arith.constant 1.000000e+00 : f32
    %338 = vector.broadcast %cst_92 : f32 to vector<8x128xf32>
    %339 = arith.addf %338, %337 : vector<8x128xf32>
    %340 = arith.divf %338, %339 : vector<8x128xf32>
    %341 = vector.extract_strided_slice %334 {offsets = [0, 128], sizes = [8, 128], strides = [1, 1]} : vector<8x512xf32> to vector<8x128xf32>
    %342 = arith.negf %341 : vector<8x128xf32>
    %343 = math.exp %342 : vector<8x128xf32>
    %cst_93 = arith.constant 1.000000e+00 : f32
    %344 = vector.broadcast %cst_93 : f32 to vector<8x128xf32>
    %345 = arith.addf %344, %343 : vector<8x128xf32>
    %346 = arith.divf %344, %345 : vector<8x128xf32>
    %347 = vector.extract_strided_slice %334 {offsets = [0, 256], sizes = [8, 128], strides = [1, 1]} : vector<8x512xf32> to vector<8x128xf32>
    %348 = math.tanh %347 : vector<8x128xf32>
    %349 = vector.extract_strided_slice %334 {offsets = [0, 384], sizes = [8, 128], strides = [1, 1]} : vector<8x512xf32> to vector<8x128xf32>
    %350 = arith.negf %349 : vector<8x128xf32>
    %351 = math.exp %350 : vector<8x128xf32>
    %cst_94 = arith.constant 1.000000e+00 : f32
    %352 = vector.broadcast %cst_94 : f32 to vector<8x128xf32>
    %353 = arith.addf %352, %351 : vector<8x128xf32>
    %354 = arith.divf %352, %353 : vector<8x128xf32>
    %355 = arith.mulf %346, %301 : vector<8x128xf32>
    %356 = arith.mulf %340, %348 : vector<8x128xf32>
    %357 = arith.addf %355, %356 : vector<8x128xf32>
    %358 = math.tanh %357 : vector<8x128xf32>
    %359 = arith.mulf %354, %358 : vector<8x128xf32>
    %c48_95 = arith.constant 48 : index
    %c0_96 = arith.constant 0 : index
    %360 = vector.load %arg14[%c48_95, %c0_96] : memref<64x512xf32, #tpu.memory_space<vmem>>, vector<8x512xf32>
    %cst_97 = arith.constant dense<0.000000e+00> : vector<8x512xf32>
    %361 = tpu.matmul %331, %20, %cst_97 {dimension_numbers = #tpu.dot_dimension_numbers<[1], [0], [0], [1], [0, 0, 1, 1], [], []>} : vector<8x128xf32>, vector<128x512xf32>, vector<8x512xf32> -> vector<8x512xf32>
    %362 = arith.addf %360, %361 : vector<8x512xf32>
    %363 = vector.extract_strided_slice %362 {offsets = [0, 0], sizes = [8, 128], strides = [1, 1]} : vector<8x512xf32> to vector<8x128xf32>
    %364 = arith.negf %363 : vector<8x128xf32>
    %365 = math.exp %364 : vector<8x128xf32>
    %cst_98 = arith.constant 1.000000e+00 : f32
    %366 = vector.broadcast %cst_98 : f32 to vector<8x128xf32>
    %367 = arith.addf %366, %365 : vector<8x128xf32>
    %368 = arith.divf %366, %367 : vector<8x128xf32>
    %369 = vector.extract_strided_slice %362 {offsets = [0, 128], sizes = [8, 128], strides = [1, 1]} : vector<8x512xf32> to vector<8x128xf32>
    %370 = arith.negf %369 : vector<8x128xf32>
    %371 = math.exp %370 : vector<8x128xf32>
    %cst_99 = arith.constant 1.000000e+00 : f32
    %372 = vector.broadcast %cst_99 : f32 to vector<8x128xf32>
    %373 = arith.addf %372, %371 : vector<8x128xf32>
    %374 = arith.divf %372, %373 : vector<8x128xf32>
    %375 = vector.extract_strided_slice %362 {offsets = [0, 256], sizes = [8, 128], strides = [1, 1]} : vector<8x512xf32> to vector<8x128xf32>
    %376 = math.tanh %375 : vector<8x128xf32>
    %377 = vector.extract_strided_slice %362 {offsets = [0, 384], sizes = [8, 128], strides = [1, 1]} : vector<8x512xf32> to vector<8x128xf32>
    %378 = arith.negf %377 : vector<8x128xf32>
    %379 = math.exp %378 : vector<8x128xf32>
    %cst_100 = arith.constant 1.000000e+00 : f32
    %380 = vector.broadcast %cst_100 : f32 to vector<8x128xf32>
    %381 = arith.addf %380, %379 : vector<8x128xf32>
    %382 = arith.divf %380, %381 : vector<8x128xf32>
    %383 = arith.mulf %374, %329 : vector<8x128xf32>
    %384 = arith.mulf %368, %376 : vector<8x128xf32>
    %385 = arith.addf %383, %384 : vector<8x128xf32>
    %386 = math.tanh %385 : vector<8x128xf32>
    %387 = arith.mulf %382, %386 : vector<8x128xf32>
    %c8_101 = arith.constant 8 : index
    %c0_102 = arith.constant 0 : index
    %388 = vector.load %arg15[%c8_101, %c0_102] : memref<64x512xf32, #tpu.memory_space<vmem>>, vector<8x512xf32>
    %cst_103 = arith.constant dense<0.000000e+00> : vector<8x512xf32>
    %389 = tpu.matmul %359, %21, %cst_103 {dimension_numbers = #tpu.dot_dimension_numbers<[1], [0], [0], [1], [0, 0, 1, 1], [], []>} : vector<8x128xf32>, vector<128x512xf32>, vector<8x512xf32> -> vector<8x512xf32>
    %390 = arith.addf %388, %389 : vector<8x512xf32>
    %391 = vector.extract_strided_slice %390 {offsets = [0, 0], sizes = [8, 128], strides = [1, 1]} : vector<8x512xf32> to vector<8x128xf32>
    %392 = arith.negf %391 : vector<8x128xf32>
    %393 = math.exp %392 : vector<8x128xf32>
    %cst_104 = arith.constant 1.000000e+00 : f32
    %394 = vector.broadcast %cst_104 : f32 to vector<8x128xf32>
    %395 = arith.addf %394, %393 : vector<8x128xf32>
    %396 = arith.divf %394, %395 : vector<8x128xf32>
    %397 = vector.extract_strided_slice %390 {offsets = [0, 128], sizes = [8, 128], strides = [1, 1]} : vector<8x512xf32> to vector<8x128xf32>
    %398 = arith.negf %397 : vector<8x128xf32>
    %399 = math.exp %398 : vector<8x128xf32>
    %cst_105 = arith.constant 1.000000e+00 : f32
    %400 = vector.broadcast %cst_105 : f32 to vector<8x128xf32>
    %401 = arith.addf %400, %399 : vector<8x128xf32>
    %402 = arith.divf %400, %401 : vector<8x128xf32>
    %403 = vector.extract_strided_slice %390 {offsets = [0, 256], sizes = [8, 128], strides = [1, 1]} : vector<8x512xf32> to vector<8x128xf32>
    %404 = math.tanh %403 : vector<8x128xf32>
    %405 = vector.extract_strided_slice %390 {offsets = [0, 384], sizes = [8, 128], strides = [1, 1]} : vector<8x512xf32> to vector<8x128xf32>
    %406 = arith.negf %405 : vector<8x128xf32>
    %407 = math.exp %406 : vector<8x128xf32>
    %cst_106 = arith.constant 1.000000e+00 : f32
    %408 = vector.broadcast %cst_106 : f32 to vector<8x128xf32>
    %409 = arith.addf %408, %407 : vector<8x128xf32>
    %410 = arith.divf %408, %409 : vector<8x128xf32>
    %411 = arith.mulf %402, %357 : vector<8x128xf32>
    %412 = arith.mulf %396, %404 : vector<8x128xf32>
    %413 = arith.addf %411, %412 : vector<8x128xf32>
    %414 = math.tanh %413 : vector<8x128xf32>
    %415 = arith.mulf %410, %414 : vector<8x128xf32>
    %c56_107 = arith.constant 56 : index
    %c0_108 = arith.constant 0 : index
    %416 = vector.load %arg14[%c56_107, %c0_108] : memref<64x512xf32, #tpu.memory_space<vmem>>, vector<8x512xf32>
    %cst_109 = arith.constant dense<0.000000e+00> : vector<8x512xf32>
    %417 = tpu.matmul %387, %20, %cst_109 {dimension_numbers = #tpu.dot_dimension_numbers<[1], [0], [0], [1], [0, 0, 1, 1], [], []>} : vector<8x128xf32>, vector<128x512xf32>, vector<8x512xf32> -> vector<8x512xf32>
    %418 = arith.addf %416, %417 : vector<8x512xf32>
    %419 = vector.extract_strided_slice %418 {offsets = [0, 0], sizes = [8, 128], strides = [1, 1]} : vector<8x512xf32> to vector<8x128xf32>
    %420 = arith.negf %419 : vector<8x128xf32>
    %421 = math.exp %420 : vector<8x128xf32>
    %cst_110 = arith.constant 1.000000e+00 : f32
    %422 = vector.broadcast %cst_110 : f32 to vector<8x128xf32>
    %423 = arith.addf %422, %421 : vector<8x128xf32>
    %424 = arith.divf %422, %423 : vector<8x128xf32>
    %425 = vector.extract_strided_slice %418 {offsets = [0, 128], sizes = [8, 128], strides = [1, 1]} : vector<8x512xf32> to vector<8x128xf32>
    %426 = arith.negf %425 : vector<8x128xf32>
    %427 = math.exp %426 : vector<8x128xf32>
    %cst_111 = arith.constant 1.000000e+00 : f32
    %428 = vector.broadcast %cst_111 : f32 to vector<8x128xf32>
    %429 = arith.addf %428, %427 : vector<8x128xf32>
    %430 = arith.divf %428, %429 : vector<8x128xf32>
    %431 = vector.extract_strided_slice %418 {offsets = [0, 256], sizes = [8, 128], strides = [1, 1]} : vector<8x512xf32> to vector<8x128xf32>
    %432 = math.tanh %431 : vector<8x128xf32>
    %433 = vector.extract_strided_slice %418 {offsets = [0, 384], sizes = [8, 128], strides = [1, 1]} : vector<8x512xf32> to vector<8x128xf32>
    %434 = arith.negf %433 : vector<8x128xf32>
    %435 = math.exp %434 : vector<8x128xf32>
    %cst_112 = arith.constant 1.000000e+00 : f32
    %436 = vector.broadcast %cst_112 : f32 to vector<8x128xf32>
    %437 = arith.addf %436, %435 : vector<8x128xf32>
    %438 = arith.divf %436, %437 : vector<8x128xf32>
    %439 = arith.mulf %430, %385 : vector<8x128xf32>
    %440 = arith.mulf %424, %432 : vector<8x128xf32>
    %441 = arith.addf %439, %440 : vector<8x128xf32>
    %442 = math.tanh %441 : vector<8x128xf32>
    %443 = arith.mulf %438, %442 : vector<8x128xf32>
    %c0_113 = arith.constant 0 : index
    %c0_114 = arith.constant 0 : index
    %444 = vector.load %arg15[%c0_113, %c0_114] : memref<64x512xf32, #tpu.memory_space<vmem>>, vector<8x512xf32>
    %cst_115 = arith.constant dense<0.000000e+00> : vector<8x512xf32>
    %445 = tpu.matmul %415, %21, %cst_115 {dimension_numbers = #tpu.dot_dimension_numbers<[1], [0], [0], [1], [0, 0, 1, 1], [], []>} : vector<8x128xf32>, vector<128x512xf32>, vector<8x512xf32> -> vector<8x512xf32>
    %446 = arith.addf %444, %445 : vector<8x512xf32>
    %447 = vector.extract_strided_slice %446 {offsets = [0, 0], sizes = [8, 128], strides = [1, 1]} : vector<8x512xf32> to vector<8x128xf32>
    %448 = arith.negf %447 : vector<8x128xf32>
    %449 = math.exp %448 : vector<8x128xf32>
    %cst_116 = arith.constant 1.000000e+00 : f32
    %450 = vector.broadcast %cst_116 : f32 to vector<8x128xf32>
    %451 = arith.addf %450, %449 : vector<8x128xf32>
    %452 = arith.divf %450, %451 : vector<8x128xf32>
    %453 = vector.extract_strided_slice %446 {offsets = [0, 128], sizes = [8, 128], strides = [1, 1]} : vector<8x512xf32> to vector<8x128xf32>
    %454 = arith.negf %453 : vector<8x128xf32>
    %455 = math.exp %454 : vector<8x128xf32>
    %cst_117 = arith.constant 1.000000e+00 : f32
    %456 = vector.broadcast %cst_117 : f32 to vector<8x128xf32>
    %457 = arith.addf %456, %455 : vector<8x128xf32>
    %458 = arith.divf %456, %457 : vector<8x128xf32>
    %459 = vector.extract_strided_slice %446 {offsets = [0, 256], sizes = [8, 128], strides = [1, 1]} : vector<8x512xf32> to vector<8x128xf32>
    %460 = math.tanh %459 : vector<8x128xf32>
    %461 = vector.extract_strided_slice %446 {offsets = [0, 384], sizes = [8, 128], strides = [1, 1]} : vector<8x512xf32> to vector<8x128xf32>
    %462 = arith.negf %461 : vector<8x128xf32>
    %463 = math.exp %462 : vector<8x128xf32>
    %cst_118 = arith.constant 1.000000e+00 : f32
    %464 = vector.broadcast %cst_118 : f32 to vector<8x128xf32>
    %465 = arith.addf %464, %463 : vector<8x128xf32>
    %466 = arith.divf %464, %465 : vector<8x128xf32>
    %467 = arith.mulf %458, %413 : vector<8x128xf32>
    %468 = arith.mulf %452, %460 : vector<8x128xf32>
    %469 = arith.addf %467, %468 : vector<8x128xf32>
    %470 = math.tanh %469 : vector<8x128xf32>
    %471 = arith.mulf %466, %470 : vector<8x128xf32>
    %472 = arith.addf %443, %471 : vector<8x128xf32>
    %473 = arith.addf %441, %469 : vector<8x128xf32>
    %c0_119 = arith.constant 0 : index
    %c0_120 = arith.constant 0 : index
    %474 = vector.load %arg16[%c0_119, %c0_120] : memref<64x512xf32, #tpu.memory_space<vmem>>, vector<8x512xf32>
    %cst_121 = arith.constant dense<0.000000e+00> : vector<8x512xf32>
    %475 = tpu.matmul %472, %22, %cst_121 {dimension_numbers = #tpu.dot_dimension_numbers<[1], [0], [0], [1], [0, 0, 1, 1], [], []>} : vector<8x128xf32>, vector<128x512xf32>, vector<8x512xf32> -> vector<8x512xf32>
    %476 = arith.addf %474, %475 : vector<8x512xf32>
    %477 = vector.extract_strided_slice %476 {offsets = [0, 0], sizes = [8, 128], strides = [1, 1]} : vector<8x512xf32> to vector<8x128xf32>
    %478 = arith.negf %477 : vector<8x128xf32>
    %479 = math.exp %478 : vector<8x128xf32>
    %cst_122 = arith.constant 1.000000e+00 : f32
    %480 = vector.broadcast %cst_122 : f32 to vector<8x128xf32>
    %481 = arith.addf %480, %479 : vector<8x128xf32>
    %482 = arith.divf %480, %481 : vector<8x128xf32>
    %483 = vector.extract_strided_slice %476 {offsets = [0, 128], sizes = [8, 128], strides = [1, 1]} : vector<8x512xf32> to vector<8x128xf32>
    %484 = arith.negf %483 : vector<8x128xf32>
    %485 = math.exp %484 : vector<8x128xf32>
    %cst_123 = arith.constant 1.000000e+00 : f32
    %486 = vector.broadcast %cst_123 : f32 to vector<8x128xf32>
    %487 = arith.addf %486, %485 : vector<8x128xf32>
    %488 = arith.divf %486, %487 : vector<8x128xf32>
    %489 = vector.extract_strided_slice %476 {offsets = [0, 256], sizes = [8, 128], strides = [1, 1]} : vector<8x512xf32> to vector<8x128xf32>
    %490 = math.tanh %489 : vector<8x128xf32>
    %491 = vector.extract_strided_slice %476 {offsets = [0, 384], sizes = [8, 128], strides = [1, 1]} : vector<8x512xf32> to vector<8x128xf32>
    %492 = arith.negf %491 : vector<8x128xf32>
    %493 = math.exp %492 : vector<8x128xf32>
    %cst_124 = arith.constant 1.000000e+00 : f32
    %494 = vector.broadcast %cst_124 : f32 to vector<8x128xf32>
    %495 = arith.addf %494, %493 : vector<8x128xf32>
    %496 = arith.divf %494, %495 : vector<8x128xf32>
    %497 = arith.mulf %488, %473 : vector<8x128xf32>
    %498 = arith.mulf %482, %490 : vector<8x128xf32>
    %499 = arith.addf %497, %498 : vector<8x128xf32>
    %500 = math.tanh %499 : vector<8x128xf32>
    %501 = arith.mulf %496, %500 : vector<8x128xf32>
    %c0_125 = arith.constant 0 : index
    %c0_126 = arith.constant 0 : index
    %502 = vector.load %arg17[%c0_125, %c0_126] : memref<64x128xf32, #tpu.memory_space<vmem>>, vector<8x128xf32>
    tpu.vector_store %arg17[%c0_125, %c0_126], %501 {strides = array<i32>} : memref<64x128xf32, #tpu.memory_space<vmem>>, vector<8x128xf32>,
    %c8_127 = arith.constant 8 : index
    %c0_128 = arith.constant 0 : index
    %503 = vector.load %arg16[%c8_127, %c0_128] : memref<64x512xf32, #tpu.memory_space<vmem>>, vector<8x512xf32>
    %cst_129 = arith.constant dense<0.000000e+00> : vector<8x512xf32>
    %504 = tpu.matmul %501, %22, %cst_129 {dimension_numbers = #tpu.dot_dimension_numbers<[1], [0], [0], [1], [0, 0, 1, 1], [], []>} : vector<8x128xf32>, vector<128x512xf32>, vector<8x512xf32> -> vector<8x512xf32>
    %505 = arith.addf %503, %504 : vector<8x512xf32>
    %506 = vector.extract_strided_slice %505 {offsets = [0, 0], sizes = [8, 128], strides = [1, 1]} : vector<8x512xf32> to vector<8x128xf32>
    %507 = arith.negf %506 : vector<8x128xf32>
    %508 = math.exp %507 : vector<8x128xf32>
    %cst_130 = arith.constant 1.000000e+00 : f32
    %509 = vector.broadcast %cst_130 : f32 to vector<8x128xf32>
    %510 = arith.addf %509, %508 : vector<8x128xf32>
    %511 = arith.divf %509, %510 : vector<8x128xf32>
    %512 = vector.extract_strided_slice %505 {offsets = [0, 128], sizes = [8, 128], strides = [1, 1]} : vector<8x512xf32> to vector<8x128xf32>
    %513 = arith.negf %512 : vector<8x128xf32>
    %514 = math.exp %513 : vector<8x128xf32>
    %cst_131 = arith.constant 1.000000e+00 : f32
    %515 = vector.broadcast %cst_131 : f32 to vector<8x128xf32>
    %516 = arith.addf %515, %514 : vector<8x128xf32>
    %517 = arith.divf %515, %516 : vector<8x128xf32>
    %518 = vector.extract_strided_slice %505 {offsets = [0, 256], sizes = [8, 128], strides = [1, 1]} : vector<8x512xf32> to vector<8x128xf32>
    %519 = math.tanh %518 : vector<8x128xf32>
    %520 = vector.extract_strided_slice %505 {offsets = [0, 384], sizes = [8, 128], strides = [1, 1]} : vector<8x512xf32> to vector<8x128xf32>
    %521 = arith.negf %520 : vector<8x128xf32>
    %522 = math.exp %521 : vector<8x128xf32>
    %cst_132 = arith.constant 1.000000e+00 : f32
    %523 = vector.broadcast %cst_132 : f32 to vector<8x128xf32>
    %524 = arith.addf %523, %522 : vector<8x128xf32>
    %525 = arith.divf %523, %524 : vector<8x128xf32>
    %526 = arith.mulf %517, %499 : vector<8x128xf32>
    %527 = arith.mulf %511, %519 : vector<8x128xf32>
    %528 = arith.addf %526, %527 : vector<8x128xf32>
    %529 = math.tanh %528 : vector<8x128xf32>
    %530 = arith.mulf %525, %529 : vector<8x128xf32>
    %c8_133 = arith.constant 8 : index
    %c0_134 = arith.constant 0 : index
    %531 = vector.load %arg17[%c8_133, %c0_134] : memref<64x128xf32, #tpu.memory_space<vmem>>, vector<8x128xf32>
    tpu.vector_store %arg17[%c8_133, %c0_134], %530 {strides = array<i32>} : memref<64x128xf32, #tpu.memory_space<vmem>>, vector<8x128xf32>,
    %c16_135 = arith.constant 16 : index
    %c0_136 = arith.constant 0 : index
    %532 = vector.load %arg16[%c16_135, %c0_136] : memref<64x512xf32, #tpu.memory_space<vmem>>, vector<8x512xf32>
    %cst_137 = arith.constant dense<0.000000e+00> : vector<8x512xf32>
    %533 = tpu.matmul %530, %22, %cst_137 {dimension_numbers = #tpu.dot_dimension_numbers<[1], [0], [0], [1], [0, 0, 1, 1], [], []>} : vector<8x128xf32>, vector<128x512xf32>, vector<8x512xf32> -> vector<8x512xf32>
    %534 = arith.addf %532, %533 : vector<8x512xf32>
    %535 = vector.extract_strided_slice %534 {offsets = [0, 0], sizes = [8, 128], strides = [1, 1]} : vector<8x512xf32> to vector<8x128xf32>
    %536 = arith.negf %535 : vector<8x128xf32>
    %537 = math.exp %536 : vector<8x128xf32>
    %cst_138 = arith.constant 1.000000e+00 : f32
    %538 = vector.broadcast %cst_138 : f32 to vector<8x128xf32>
    %539 = arith.addf %538, %537 : vector<8x128xf32>
    %540 = arith.divf %538, %539 : vector<8x128xf32>
    %541 = vector.extract_strided_slice %534 {offsets = [0, 128], sizes = [8, 128], strides = [1, 1]} : vector<8x512xf32> to vector<8x128xf32>
    %542 = arith.negf %541 : vector<8x128xf32>
    %543 = math.exp %542 : vector<8x128xf32>
    %cst_139 = arith.constant 1.000000e+00 : f32
    %544 = vector.broadcast %cst_139 : f32 to vector<8x128xf32>
    %545 = arith.addf %544, %543 : vector<8x128xf32>
    %546 = arith.divf %544, %545 : vector<8x128xf32>
    %547 = vector.extract_strided_slice %534 {offsets = [0, 256], sizes = [8, 128], strides = [1, 1]} : vector<8x512xf32> to vector<8x128xf32>
    %548 = math.tanh %547 : vector<8x128xf32>
    %549 = vector.extract_strided_slice %534 {offsets = [0, 384], sizes = [8, 128], strides = [1, 1]} : vector<8x512xf32> to vector<8x128xf32>
    %550 = arith.negf %549 : vector<8x128xf32>
    %551 = math.exp %550 : vector<8x128xf32>
    %cst_140 = arith.constant 1.000000e+00 : f32
    %552 = vector.broadcast %cst_140 : f32 to vector<8x128xf32>
    %553 = arith.addf %552, %551 : vector<8x128xf32>
    %554 = arith.divf %552, %553 : vector<8x128xf32>
    %555 = arith.mulf %546, %528 : vector<8x128xf32>
    %556 = arith.mulf %540, %548 : vector<8x128xf32>
    %557 = arith.addf %555, %556 : vector<8x128xf32>
    %558 = math.tanh %557 : vector<8x128xf32>
    %559 = arith.mulf %554, %558 : vector<8x128xf32>
    %c16_141 = arith.constant 16 : index
    %c0_142 = arith.constant 0 : index
    %560 = vector.load %arg17[%c16_141, %c0_142] : memref<64x128xf32, #tpu.memory_space<vmem>>, vector<8x128xf32>
    tpu.vector_store %arg17[%c16_141, %c0_142], %559 {strides = array<i32>} : memref<64x128xf32, #tpu.memory_space<vmem>>, vector<8x128xf32>,
    %c24_143 = arith.constant 24 : index
    %c0_144 = arith.constant 0 : index
    %561 = vector.load %arg16[%c24_143, %c0_144] : memref<64x512xf32, #tpu.memory_space<vmem>>, vector<8x512xf32>
    %cst_145 = arith.constant dense<0.000000e+00> : vector<8x512xf32>
    %562 = tpu.matmul %559, %22, %cst_145 {dimension_numbers = #tpu.dot_dimension_numbers<[1], [0], [0], [1], [0, 0, 1, 1], [], []>} : vector<8x128xf32>, vector<128x512xf32>, vector<8x512xf32> -> vector<8x512xf32>
    %563 = arith.addf %561, %562 : vector<8x512xf32>
    %564 = vector.extract_strided_slice %563 {offsets = [0, 0], sizes = [8, 128], strides = [1, 1]} : vector<8x512xf32> to vector<8x128xf32>
    %565 = arith.negf %564 : vector<8x128xf32>
    %566 = math.exp %565 : vector<8x128xf32>
    %cst_146 = arith.constant 1.000000e+00 : f32
    %567 = vector.broadcast %cst_146 : f32 to vector<8x128xf32>
    %568 = arith.addf %567, %566 : vector<8x128xf32>
    %569 = arith.divf %567, %568 : vector<8x128xf32>
    %570 = vector.extract_strided_slice %563 {offsets = [0, 128], sizes = [8, 128], strides = [1, 1]} : vector<8x512xf32> to vector<8x128xf32>
    %571 = arith.negf %570 : vector<8x128xf32>
    %572 = math.exp %571 : vector<8x128xf32>
    %cst_147 = arith.constant 1.000000e+00 : f32
    %573 = vector.broadcast %cst_147 : f32 to vector<8x128xf32>
    %574 = arith.addf %573, %572 : vector<8x128xf32>
    %575 = arith.divf %573, %574 : vector<8x128xf32>
    %576 = vector.extract_strided_slice %563 {offsets = [0, 256], sizes = [8, 128], strides = [1, 1]} : vector<8x512xf32> to vector<8x128xf32>
    %577 = math.tanh %576 : vector<8x128xf32>
    %578 = vector.extract_strided_slice %563 {offsets = [0, 384], sizes = [8, 128], strides = [1, 1]} : vector<8x512xf32> to vector<8x128xf32>
    %579 = arith.negf %578 : vector<8x128xf32>
    %580 = math.exp %579 : vector<8x128xf32>
    %cst_148 = arith.constant 1.000000e+00 : f32
    %581 = vector.broadcast %cst_148 : f32 to vector<8x128xf32>
    %582 = arith.addf %581, %580 : vector<8x128xf32>
    %583 = arith.divf %581, %582 : vector<8x128xf32>
    %584 = arith.mulf %575, %557 : vector<8x128xf32>
    %585 = arith.mulf %569, %577 : vector<8x128xf32>
    %586 = arith.addf %584, %585 : vector<8x128xf32>
    %587 = math.tanh %586 : vector<8x128xf32>
    %588 = arith.mulf %583, %587 : vector<8x128xf32>
    %c24_149 = arith.constant 24 : index
    %c0_150 = arith.constant 0 : index
    %589 = vector.load %arg17[%c24_149, %c0_150] : memref<64x128xf32, #tpu.memory_space<vmem>>, vector<8x128xf32>
    tpu.vector_store %arg17[%c24_149, %c0_150], %588 {strides = array<i32>} : memref<64x128xf32, #tpu.memory_space<vmem>>, vector<8x128xf32>,
    %c32_151 = arith.constant 32 : index
    %c0_152 = arith.constant 0 : index
    %590 = vector.load %arg16[%c32_151, %c0_152] : memref<64x512xf32, #tpu.memory_space<vmem>>, vector<8x512xf32>
    %cst_153 = arith.constant dense<0.000000e+00> : vector<8x512xf32>
    %591 = tpu.matmul %588, %22, %cst_153 {dimension_numbers = #tpu.dot_dimension_numbers<[1], [0], [0], [1], [0, 0, 1, 1], [], []>} : vector<8x128xf32>, vector<128x512xf32>, vector<8x512xf32> -> vector<8x512xf32>
    %592 = arith.addf %590, %591 : vector<8x512xf32>
    %593 = vector.extract_strided_slice %592 {offsets = [0, 0], sizes = [8, 128], strides = [1, 1]} : vector<8x512xf32> to vector<8x128xf32>
    %594 = arith.negf %593 : vector<8x128xf32>
    %595 = math.exp %594 : vector<8x128xf32>
    %cst_154 = arith.constant 1.000000e+00 : f32
    %596 = vector.broadcast %cst_154 : f32 to vector<8x128xf32>
    %597 = arith.addf %596, %595 : vector<8x128xf32>
    %598 = arith.divf %596, %597 : vector<8x128xf32>
    %599 = vector.extract_strided_slice %592 {offsets = [0, 128], sizes = [8, 128], strides = [1, 1]} : vector<8x512xf32> to vector<8x128xf32>
    %600 = arith.negf %599 : vector<8x128xf32>
    %601 = math.exp %600 : vector<8x128xf32>
    %cst_155 = arith.constant 1.000000e+00 : f32
    %602 = vector.broadcast %cst_155 : f32 to vector<8x128xf32>
    %603 = arith.addf %602, %601 : vector<8x128xf32>
    %604 = arith.divf %602, %603 : vector<8x128xf32>
    %605 = vector.extract_strided_slice %592 {offsets = [0, 256], sizes = [8, 128], strides = [1, 1]} : vector<8x512xf32> to vector<8x128xf32>
    %606 = math.tanh %605 : vector<8x128xf32>
    %607 = vector.extract_strided_slice %592 {offsets = [0, 384], sizes = [8, 128], strides = [1, 1]} : vector<8x512xf32> to vector<8x128xf32>
    %608 = arith.negf %607 : vector<8x128xf32>
    %609 = math.exp %608 : vector<8x128xf32>
    %cst_156 = arith.constant 1.000000e+00 : f32
    %610 = vector.broadcast %cst_156 : f32 to vector<8x128xf32>
    %611 = arith.addf %610, %609 : vector<8x128xf32>
    %612 = arith.divf %610, %611 : vector<8x128xf32>
    %613 = arith.mulf %604, %586 : vector<8x128xf32>
    %614 = arith.mulf %598, %606 : vector<8x128xf32>
    %615 = arith.addf %613, %614 : vector<8x128xf32>
    %616 = math.tanh %615 : vector<8x128xf32>
    %617 = arith.mulf %612, %616 : vector<8x128xf32>
    %c32_157 = arith.constant 32 : index
    %c0_158 = arith.constant 0 : index
    %618 = vector.load %arg17[%c32_157, %c0_158] : memref<64x128xf32, #tpu.memory_space<vmem>>, vector<8x128xf32>
    tpu.vector_store %arg17[%c32_157, %c0_158], %617 {strides = array<i32>} : memref<64x128xf32, #tpu.memory_space<vmem>>, vector<8x128xf32>,
    %c40_159 = arith.constant 40 : index
    %c0_160 = arith.constant 0 : index
    %619 = vector.load %arg16[%c40_159, %c0_160] : memref<64x512xf32, #tpu.memory_space<vmem>>, vector<8x512xf32>
    %cst_161 = arith.constant dense<0.000000e+00> : vector<8x512xf32>
    %620 = tpu.matmul %617, %22, %cst_161 {dimension_numbers = #tpu.dot_dimension_numbers<[1], [0], [0], [1], [0, 0, 1, 1], [], []>} : vector<8x128xf32>, vector<128x512xf32>, vector<8x512xf32> -> vector<8x512xf32>
    %621 = arith.addf %619, %620 : vector<8x512xf32>
    %622 = vector.extract_strided_slice %621 {offsets = [0, 0], sizes = [8, 128], strides = [1, 1]} : vector<8x512xf32> to vector<8x128xf32>
    %623 = arith.negf %622 : vector<8x128xf32>
    %624 = math.exp %623 : vector<8x128xf32>
    %cst_162 = arith.constant 1.000000e+00 : f32
    %625 = vector.broadcast %cst_162 : f32 to vector<8x128xf32>
    %626 = arith.addf %625, %624 : vector<8x128xf32>
    %627 = arith.divf %625, %626 : vector<8x128xf32>
    %628 = vector.extract_strided_slice %621 {offsets = [0, 128], sizes = [8, 128], strides = [1, 1]} : vector<8x512xf32> to vector<8x128xf32>
    %629 = arith.negf %628 : vector<8x128xf32>
    %630 = math.exp %629 : vector<8x128xf32>
    %cst_163 = arith.constant 1.000000e+00 : f32
    %631 = vector.broadcast %cst_163 : f32 to vector<8x128xf32>
    %632 = arith.addf %631, %630 : vector<8x128xf32>
    %633 = arith.divf %631, %632 : vector<8x128xf32>
    %634 = vector.extract_strided_slice %621 {offsets = [0, 256], sizes = [8, 128], strides = [1, 1]} : vector<8x512xf32> to vector<8x128xf32>
    %635 = math.tanh %634 : vector<8x128xf32>
    %636 = vector.extract_strided_slice %621 {offsets = [0, 384], sizes = [8, 128], strides = [1, 1]} : vector<8x512xf32> to vector<8x128xf32>
    %637 = arith.negf %636 : vector<8x128xf32>
    %638 = math.exp %637 : vector<8x128xf32>
    %cst_164 = arith.constant 1.000000e+00 : f32
    %639 = vector.broadcast %cst_164 : f32 to vector<8x128xf32>
    %640 = arith.addf %639, %638 : vector<8x128xf32>
    %641 = arith.divf %639, %640 : vector<8x128xf32>
    %642 = arith.mulf %633, %615 : vector<8x128xf32>
    %643 = arith.mulf %627, %635 : vector<8x128xf32>
    %644 = arith.addf %642, %643 : vector<8x128xf32>
    %645 = math.tanh %644 : vector<8x128xf32>
    %646 = arith.mulf %641, %645 : vector<8x128xf32>
    %c40_165 = arith.constant 40 : index
    %c0_166 = arith.constant 0 : index
    %647 = vector.load %arg17[%c40_165, %c0_166] : memref<64x128xf32, #tpu.memory_space<vmem>>, vector<8x128xf32>
    tpu.vector_store %arg17[%c40_165, %c0_166], %646 {strides = array<i32>} : memref<64x128xf32, #tpu.memory_space<vmem>>, vector<8x128xf32>,
    %c48_167 = arith.constant 48 : index
    %c0_168 = arith.constant 0 : index
    %648 = vector.load %arg16[%c48_167, %c0_168] : memref<64x512xf32, #tpu.memory_space<vmem>>, vector<8x512xf32>
    %cst_169 = arith.constant dense<0.000000e+00> : vector<8x512xf32>
    %649 = tpu.matmul %646, %22, %cst_169 {dimension_numbers = #tpu.dot_dimension_numbers<[1], [0], [0], [1], [0, 0, 1, 1], [], []>} : vector<8x128xf32>, vector<128x512xf32>, vector<8x512xf32> -> vector<8x512xf32>
    %650 = arith.addf %648, %649 : vector<8x512xf32>
    %651 = vector.extract_strided_slice %650 {offsets = [0, 0], sizes = [8, 128], strides = [1, 1]} : vector<8x512xf32> to vector<8x128xf32>
    %652 = arith.negf %651 : vector<8x128xf32>
    %653 = math.exp %652 : vector<8x128xf32>
    %cst_170 = arith.constant 1.000000e+00 : f32
    %654 = vector.broadcast %cst_170 : f32 to vector<8x128xf32>
    %655 = arith.addf %654, %653 : vector<8x128xf32>
    %656 = arith.divf %654, %655 : vector<8x128xf32>
    %657 = vector.extract_strided_slice %650 {offsets = [0, 128], sizes = [8, 128], strides = [1, 1]} : vector<8x512xf32> to vector<8x128xf32>
    %658 = arith.negf %657 : vector<8x128xf32>
    %659 = math.exp %658 : vector<8x128xf32>
    %cst_171 = arith.constant 1.000000e+00 : f32
    %660 = vector.broadcast %cst_171 : f32 to vector<8x128xf32>
    %661 = arith.addf %660, %659 : vector<8x128xf32>
    %662 = arith.divf %660, %661 : vector<8x128xf32>
    %663 = vector.extract_strided_slice %650 {offsets = [0, 256], sizes = [8, 128], strides = [1, 1]} : vector<8x512xf32> to vector<8x128xf32>
    %664 = math.tanh %663 : vector<8x128xf32>
    %665 = vector.extract_strided_slice %650 {offsets = [0, 384], sizes = [8, 128], strides = [1, 1]} : vector<8x512xf32> to vector<8x128xf32>
    %666 = arith.negf %665 : vector<8x128xf32>
    %667 = math.exp %666 : vector<8x128xf32>
    %cst_172 = arith.constant 1.000000e+00 : f32
    %668 = vector.broadcast %cst_172 : f32 to vector<8x128xf32>
    %669 = arith.addf %668, %667 : vector<8x128xf32>
    %670 = arith.divf %668, %669 : vector<8x128xf32>
    %671 = arith.mulf %662, %644 : vector<8x128xf32>
    %672 = arith.mulf %656, %664 : vector<8x128xf32>
    %673 = arith.addf %671, %672 : vector<8x128xf32>
    %674 = math.tanh %673 : vector<8x128xf32>
    %675 = arith.mulf %670, %674 : vector<8x128xf32>
    %c48_173 = arith.constant 48 : index
    %c0_174 = arith.constant 0 : index
    %676 = vector.load %arg17[%c48_173, %c0_174] : memref<64x128xf32, #tpu.memory_space<vmem>>, vector<8x128xf32>
    tpu.vector_store %arg17[%c48_173, %c0_174], %675 {strides = array<i32>} : memref<64x128xf32, #tpu.memory_space<vmem>>, vector<8x128xf32>,
    %c56_175 = arith.constant 56 : index
    %c0_176 = arith.constant 0 : index
    %677 = vector.load %arg16[%c56_175, %c0_176] : memref<64x512xf32, #tpu.memory_space<vmem>>, vector<8x512xf32>
    %cst_177 = arith.constant dense<0.000000e+00> : vector<8x512xf32>
    %678 = tpu.matmul %675, %22, %cst_177 {dimension_numbers = #tpu.dot_dimension_numbers<[1], [0], [0], [1], [0, 0, 1, 1], [], []>} : vector<8x128xf32>, vector<128x512xf32>, vector<8x512xf32> -> vector<8x512xf32>
    %679 = arith.addf %677, %678 : vector<8x512xf32>
    %680 = vector.extract_strided_slice %679 {offsets = [0, 0], sizes = [8, 128], strides = [1, 1]} : vector<8x512xf32> to vector<8x128xf32>
    %681 = arith.negf %680 : vector<8x128xf32>
    %682 = math.exp %681 : vector<8x128xf32>
    %cst_178 = arith.constant 1.000000e+00 : f32
    %683 = vector.broadcast %cst_178 : f32 to vector<8x128xf32>
    %684 = arith.addf %683, %682 : vector<8x128xf32>
    %685 = arith.divf %683, %684 : vector<8x128xf32>
    %686 = vector.extract_strided_slice %679 {offsets = [0, 128], sizes = [8, 128], strides = [1, 1]} : vector<8x512xf32> to vector<8x128xf32>
    %687 = arith.negf %686 : vector<8x128xf32>
    %688 = math.exp %687 : vector<8x128xf32>
    %cst_179 = arith.constant 1.000000e+00 : f32
    %689 = vector.broadcast %cst_179 : f32 to vector<8x128xf32>
    %690 = arith.addf %689, %688 : vector<8x128xf32>
    %691 = arith.divf %689, %690 : vector<8x128xf32>
    %692 = vector.extract_strided_slice %679 {offsets = [0, 256], sizes = [8, 128], strides = [1, 1]} : vector<8x512xf32> to vector<8x128xf32>
    %693 = math.tanh %692 : vector<8x128xf32>
    %694 = vector.extract_strided_slice %679 {offsets = [0, 384], sizes = [8, 128], strides = [1, 1]} : vector<8x512xf32> to vector<8x128xf32>
    %695 = arith.negf %694 : vector<8x128xf32>
    %696 = math.exp %695 : vector<8x128xf32>
    %cst_180 = arith.constant 1.000000e+00 : f32
    %697 = vector.broadcast %cst_180 : f32 to vector<8x128xf32>
    %698 = arith.addf %697, %696 : vector<8x128xf32>
    %699 = arith.divf %697, %698 : vector<8x128xf32>
    %700 = arith.mulf %691, %673 : vector<8x128xf32>
    %701 = arith.mulf %685, %693 : vector<8x128xf32>
    %702 = arith.addf %700, %701 : vector<8x128xf32>
    %703 = math.tanh %702 : vector<8x128xf32>
    %704 = arith.mulf %699, %703 : vector<8x128xf32>
    %c56_181 = arith.constant 56 : index
    %c0_182 = arith.constant 0 : index
    %705 = vector.load %arg17[%c56_181, %c0_182] : memref<64x128xf32, #tpu.memory_space<vmem>>, vector<8x128xf32>
    tpu.vector_store %arg17[%c56_181, %c0_182], %704 {strides = array<i32>} : memref<64x128xf32, #tpu.memory_space<vmem>>, vector<8x128xf32>,
    %c0_183 = arith.constant 0 : index
    %c0_184 = arith.constant 0 : index
    %706 = vector.load %arg17[%c0_183, %c0_184] : memref<64x128xf32, #tpu.memory_space<vmem>>, vector<64x128xf32>
    %c0_185 = arith.constant 0 : index
    %c0_186 = arith.constant 0 : index
    %707 = vector.load %arg11[%c0_185, %c0_186] : memref<128x128xf32, #tpu.memory_space<vmem>>, vector<128x128xf32>
    %cst_187 = arith.constant dense<0.000000e+00> : vector<64x128xf32>
    %708 = tpu.matmul %706, %707, %cst_187 {dimension_numbers = #tpu.dot_dimension_numbers<[1], [0], [0], [1], [0, 0, 1, 1], [], []>} : vector<64x128xf32>, vector<128x128xf32>, vector<64x128xf32> -> vector<64x128xf32>
    %c0_188 = arith.constant 0 : index
    %c0_189 = arith.constant 0 : index
    %709 = vector.load %arg12[%c0_188, %c0_189] : memref<1x128xf32, #tpu.memory_space<vmem>>, vector<1x128xf32>
    %710 = vector.broadcast %709 : vector<1x128xf32> to vector<64x128xf32>
    %711 = arith.addf %708, %710 : vector<64x128xf32>
    %c0_190 = arith.constant 0 : index
    %c0_191 = arith.constant 0 : index
    %712 = vector.load %arg13[%c0_190, %c0_191] : memref<64x128xf32, #tpu.memory_space<vmem>>, vector<64x128xf32>
    tpu.vector_store %arg13[%c0_190, %c0_191], %711 {strides = array<i32>} : memref<64x128xf32, #tpu.memory_space<vmem>>, vector<64x128xf32>,
    return
  }
}

</mosaic_0001>

<bundles_post_ra>
// kernel: tpu_custom_call.1
= control target key start
LH: loop header
LB: loop body
LE: loop exit
PB: predicated region body
PF: predicated region fallthrough
CT: control target
= control target key end

     0   :  { %18 = vsyncpa [#allocation7], 0  ;;  %s10199_s0 = inlined_call_operand.vmem [shape: f32[64,32], index: 0, kind: input, shape index: {}]   ;;  %s10200_s1 = inlined_call_operand.vmem [shape: f32[64,32], index: 1, kind: input, shape index: {}]   ;;  %s10201_s2 = inlined_call_operand.vmem [shape: f32[32,512], index: 2, kind: input, shape index: {}]   ;;  %s10202_s3 = inlined_call_operand.hbm [shape: f32[128,512], index: 3, kind: input, shape index: {}]   ;;  %s10203_s4 = inlined_call_operand.vmem [shape: f32[1,512], index: 4, kind: input, shape index: {}]   ;;  %s10204_s5 = inlined_call_operand.hbm [shape: f32[32,512], index: 5, kind: input, shape index: {}]   ;;  %s10205_s6 = inlined_call_operand.hbm [shape: f32[128,512], index: 6, kind: input, shape index: {}]   ;;  %s10206_s7 = inlined_call_operand.vmem [shape: f32[1,512], index: 7, kind: input, shape index: {}]   ;;  %s10207_s8 = inlined_call_operand.hbm [shape: f32[32,512], index: 8, kind: input, shape index: {}]   ;;  %s10208_s9 = inlined_call_operand.hbm [shape: f32[128,512], index: 9, kind: input, shape index: {}]   ;;  %s10209_s10 = inlined_call_operand.vmem [shape: f32[1,512], index: 10, kind: input, shape index: {}]   ;;  %s10210_s11 = inlined_call_operand.hbm [shape: f32[128,128], index: 11, kind: input, shape index: {}]   ;;  %s10211_s12 = inlined_call_operand.vmem [shape: f32[1,128], index: 12, kind: input, shape index: {}]   ;;  %s10212_s13 = inlined_call_operand.hbm [shape: f32[64,128], index: 13, kind: output, shape index: {}]  }
   0x1   :  { %19 = vsyncpa [#allocation10], 0 }
   0x2   :  { %20 = vsyncpa [#allocation13], 0 }
   0x3   :  { %21 = vsyncpa [#allocation16], 0 }
   0x4   :  { %22 = vsyncpa [#allocation8], 0  ;;  %s48_s27 = sshll.u32 %s10204_s5, 4  ;;  %s5994_s28 = smov [#allocation9]   ;;  %s49_s27 = int_to_ptr.hbm [resolvable:$true] %s48_s27 }
   0x5   :  { %s50_s29 = sshll.u32 %s5994_s28, 4  ;;  %s76_s15 = sshll.u32 %s10207_s8, 4  ;;  %s51_s29 = int_to_ptr.vmem [resolvable:$true] %s50_s29  ;;  %s77_s15 = int_to_ptr.hbm [resolvable:$true] %s76_s15 }
   0x6   :  { %s5995_s16 = smov 512   ;;  %s5996_s17 = smov 32  }
   0x7   :  { %56 = dma.hbm_to_vmem [thread:$0]  %s49_s27, 2048, %s51_s29, [#allocation10], %s5995_s16, %s5995_s16, %s5996_s17  }
   0x8   :  { %s5997_s18 = smov [#allocation12]   ;;  %s33_s5 = sshll.u32 %s10202_s3, 4  ;;  %s34_s5 = int_to_ptr.hbm [resolvable:$true] %s33_s5 }
   0x9   :  { %s78_s19 = sshll.u32 %s5997_s18, 4  ;;  %s61_s23 = sshll.u32 %s10205_s6, 4  ;;  %s79_s19 = int_to_ptr.vmem [resolvable:$true] %s78_s19  ;;  %s62_s23 = int_to_ptr.hbm [resolvable:$true] %s61_s23 }
   0xa   :  { %84 = dma.hbm_to_vmem [thread:$0]  %s77_s15, 2048, %s79_s19, [#allocation13], %s5995_s16, %s5995_s16, %s5996_s17  }
   0xb   :  { %s5998_s24 = smov [#allocation6]   ;;  %s5999_s26 = smov [#allocation11]  }
   0xc   :  { %s35_s25 = sshll.u32 %s5998_s24, 4  ;;  %s63_s3 = sshll.u32 %s5999_s26, 4  ;;  %s36_s25 = int_to_ptr.vmem [resolvable:$true] %s35_s25  ;;  %s64_s3 = int_to_ptr.vmem [resolvable:$true] %s63_s3 }
   0xd   :  { %41 = dma.hbm_to_vmem [thread:$0]  %s34_s5, 8192, %s36_s25, [#allocation7], %s5995_s16, %s5995_s16, %s5996_s17  }
   0xe   :  { %s89_s29 = sshll.u32 %s10208_s9, 4  ;;  %s104_s14 = sshll.u32 %s10210_s11, 4  ;;  %s90_s29 = int_to_ptr.hbm [resolvable:$true] %s89_s29  ;;  %s105_s14 = int_to_ptr.hbm [resolvable:$true] %s104_s14 }
   0xf   :  { %69 = dma.hbm_to_vmem [thread:$0]  %s62_s23, 8192, %s64_s3, [#allocation10], %s5995_s16, %s5995_s16, %s5996_s17  }
  0x10   :  { %s6000_s15 = smov [#allocation14]   ;;  %s6001_s19 = smov [#allocation15]  }
  0x11   :  { %s91_s18 = sshll.u32 %s6000_s15, 4  ;;  %s106_s9 = sshll.u32 %s6001_s19, 4  ;;  %s92_s18 = int_to_ptr.vmem [resolvable:$true] %s91_s18  ;;  %s107_s9 = int_to_ptr.vmem [resolvable:$true] %s106_s9 }
  0x12   :  { %97 = dma.hbm_to_vmem [thread:$0]  %s90_s29, 8192, %s92_s18, [#allocation13], %s5995_s16, %s5995_s16, %s5996_s17  }
  0x13   :  { %s6002_s20 = smov 128   ;;  %s6003_s21 = smov 8  }
  0x14   :  { %112 = dma.hbm_to_vmem [thread:$0]  %s105_s14, 2048, %s107_s9, [#allocation16], %s6002_s20, %s6002_s20, %s6003_s21  }
  0x15   :  { %5984 = dma.done.wait [#allocation7], 8192  }
  0x16   :  { %5985 = vsyncadd [#allocation7], 4294959104 }
  0x17   :  { %5986 = dma.done.wait [#allocation10], 10240  }
  0x18   :  { %5987 = vsyncadd [#allocation10], 4294957056 }
  0x19   :  { %5988 = dma.done.wait [#allocation13], 10240  }
  0x1a   :  { %5989 = vsyncadd [#allocation13], 4294957056 }
  0x1b   :  { %5990 = dma.done.wait [#allocation16], 2048  }
  0x1c   :  { %5991 = vsyncadd [#allocation16], 4294965248  ;;  %v167_v0 = vld [vmem:[%s10201_s2 + $0x60] sm:$0xff]  ;;  %vm181_vm0 = vcmask 261120   ;;  %v6132_v9 = vld [vmem:[%s10199_s0 + $0x18] sm:$0xff] }
  0x1d   :  { %v414_v1 = vld [vmem:[#allocation9 + $0x60] sm:$0xff]  ;;  %218 = vmatpush.msra.mxu1 %v167_v0  ;;  %4963 = vmatpush.msra.mxu2 %v167_v0  ;;  %v6137_v10 = vld [vmem:[%s10199_s0 + $0x30] sm:$0xff]  ;;  %v168_v11 = vld [vmem:[%s10201_s2 + $0x68] sm:$0xff] }
  0x1e   :  { %v163_v2 = vld [vmem:[%s10201_s2 + $0x40] sm:$0xff]  ;;  %4964 = vmatpush.msra.mxu3 %v167_v0  ;;  %440 = vmatpush.msra.mxu0 %v414_v1  ;;  %v170_v12 = vld [vmem:[%s10201_s2 + $0x78] sm:$0xff]  ;;  %v164_v13 = vld [vmem:[%s10201_s2 + $0x48] sm:$0xff] }
  0x1f   :  { %v410_v3 = vld [vmem:[#allocation9 + $0x40] sm:$0xff]  ;;  %219 = vmatpush.msra.mxu1 %v163_v2  ;;  %4965 = vmatpush.msra.mxu2 %v163_v2  ;;  %v169_v14 = vld [vmem:[%s10201_s2 + $0x70] sm:$0xff]  ;;  %v166_v15 = vld [vmem:[%s10201_s2 + $0x58] sm:$0xff] }
  0x20   :  { %v159_v4 = vld [vmem:[%s10201_s2 + $0x20] sm:$0xff]  ;;  %4966 = vmatpush.msra.mxu3 %v163_v2  ;;  %441 = vmatpush.msra.mxu0 %v410_v3  ;;  %v160_v16 = vld [vmem:[%s10201_s2 + $0x28] sm:$0xff]  ;;  %v165_v17 = vld [vmem:[%s10201_s2 + $0x50] sm:$0xff] }
  0x21   :  { %v406_v5 = vld [vmem:[#allocation9 + $0x20] sm:$0xff]  ;;  %220 = vmatpush.msra.mxu1 %v159_v4  ;;  %4967 = vmatpush.msra.mxu2 %v159_v4  ;;  %v162_v18 = vld [vmem:[%s10201_s2 + $0x38] sm:$0xff]  ;;  %v156_v19 = vld [vmem:[%s10201_s2 + $0x8] sm:$0xff] }
  0x22   :  { %v155_v6 = vld [vmem:[%s10201_s2] sm:$0xff]  ;;  %4968 = vmatpush.msra.mxu3 %v159_v4  ;;  %442 = vmatpush.msra.mxu0 %v406_v5  ;;  %v161_v20 = vld [vmem:[%s10201_s2 + $0x30] sm:$0xff]  ;;  %v6180_v21 = vld [vmem:[%s10199_s0 + $0x8] sm:$0xff] }
  0x23   :  { %v402_v7 = vld [vmem:[#allocation9] sm:$0xff]  ;;  %221 = vmatpush.msra.mxu1 %v155_v6  ;;  %4969 = vmatpush.msra.mxu2 %v155_v6  ;;  %v6190_v23 = vld [vmem:[%s10199_s0 + $0x38] sm:$0xff]  ;;  %v157_v24 = vld [vmem:[%s10201_s2 + $0x10] sm:$0xff] }
  0x24   :  { %v6127_v8 = vld [vmem:[%s10199_s0] sm:$0xff]  ;;  %4970 = vmatpush.msra.mxu3 %v155_v6  ;;  %443 = vmatpush.msra.mxu0 %v402_v7  ;;  %v158_v25 = vld [vmem:[%s10201_s2 + $0x18] sm:$0xff]  ;;  %v415_v26 = vld [vmem:[#allocation9 + $0x68] sm:$0xff] }
  0x25   :  { %4795 = vmatmul.msk.f32.vlgmr.msra.gmra.mxu1 %vm181_vm0, %v6127_v8  ;;  %4798 = vmatmul.msk.f32.vlgmr.msra.gmra.mxu2 %vm181_vm0, %v6132_v9  ;;  %v6185_v22 = vld [vmem:[%s10199_s0 + $0x20] sm:$0xff]  ;;  %v417_v27 = vld [vmem:[#allocation9 + $0x78] sm:$0xff]  ;;  %v416_v28 = vld [vmem:[#allocation9 + $0x70] sm:$0xff] }
  0x26   :  { %4801 = vmatmul.msk.f32.vlgmr.msra.gmra.mxu3 %vm181_vm0, %v6137_v10  ;;  %259 = vmatpush.msrb.mxu1 %v168_v11  ;;  %v411_v29 = vld [vmem:[#allocation9 + $0x48] sm:$0xff]  ;;  %v413_v30 = vld [vmem:[#allocation9 + $0x58] sm:$0xff]  ;;  %v6209_v31 = vld [vmem:[%s10199_s0 + $0x10] sm:$0xff] }
  0x27   :  { %4827 = vmatmul.msk.f32.vlgmr.msra.gmra.mxu0 %vm181_vm0, %v6127_v8  ;;  %341 = vmatpush.msrb.mxu3 %v170_v12  ;;  %v6214_v32 = vld [vmem:[%s10199_s0 + $0x28] sm:$0xff]  ;;  %v412_v33 = vld [vmem:[#allocation9 + $0x50] sm:$0xff]  ;;  %v636_v35 = vld [vmem:[#allocation12 + $0x60] sm:$0xff]  ;;  %s4779_s0 = sshll.u32 %s10212_s13, 4  ;;  %s4780_s0 = int_to_ptr.hbm [resolvable:$true] %s4779_s0 }
  0x28   :  { %260 = vmatpush.msrb.mxu1 %v164_v13  ;;  %300 = vmatpush.msrb.mxu2 %v169_v14  ;;  %v407_v34 = vld [vmem:[#allocation9 + $0x28] sm:$0xff]  ;;  %v632_v36 = vld [vmem:[#allocation12 + $0x40] sm:$0xff]  ;;  %v409_v37 = vld [vmem:[#allocation9 + $0x38] sm:$0xff] }
  0x29   :  { %342 = vmatpush.msrb.mxu3 %v166_v15  ;;  %686 = vmatpush.msrb.mxu0 %v636_v35  ;;  %v628_v38 = vld [vmem:[#allocation12 + $0x20] sm:$0xff]  ;;  %v408_v40 = vld [vmem:[#allocation9 + $0x30] sm:$0xff]  ;;  %v403_v41 = vld [vmem:[#allocation9 + $0x8] sm:$0xff] }
  0x2a   :  { %261 = vmatpush.msrb.mxu1 %v160_v16  ;;  %301 = vmatpush.msrb.mxu2 %v165_v17  ;;  %v624_v39 = vld [vmem:[#allocation12] sm:$0xff]  ;;  %v405_v44 = vld [vmem:[#allocation9 + $0x18] sm:$0xff]  ;;  %v404_v48 = vld [vmem:[#allocation9 + $0x10] sm:$0xff] }
  0x2b   :  { %343 = vmatpush.msrb.mxu3 %v162_v18  ;;  %687 = vmatpush.msrb.mxu0 %v632_v36  ;;  %v6248_v42 = vld [vmem:[#allocation6 + $0x1e0] sm:$0xff]  ;;  %v637_v52 = vld [vmem:[#allocation12 + $0x68] sm:$0xff]  ;;  %v639_v54 = vld [vmem:[#allocation12 + $0x78] sm:$0xff] }
  0x2c   :  { %262 = vmatpush.msrb.mxu1 %v156_v19  ;;  %302 = vmatpush.msrb.mxu2 %v161_v20  ;;  %v6250_v43 = vld [vmem:[#allocation6 + $0x1c0] sm:$0xff]  ;;  %v638_v60 = vld [vmem:[#allocation12 + $0x70] sm:$0xff]  ;;  %v6323_v63 = vld [vmem:[%s10200_s1 + $0x8] sm:$0xff] }
  0x2d   :  { %4796 = vmatmul.msk.f32.gmra.mxu1 %vm181_vm0, %v6180_v21  ;;  %4799 = vmatmul.msk.f32.gmra.mxu2 %vm181_vm0, %v6185_v22  ;;  %v6253_v45 = vld [vmem:[#allocation6 + $0x1a0] sm:$0xff]  ;;  %v633_v1 = vld [vmem:[#allocation12 + $0x48] sm:$0xff]  ;;  %v635_v4 = vld [vmem:[#allocation12 + $0x58] sm:$0xff] }
  0x2e   :  { %4802 = vmatmul.msk.f32.gmra.mxu3 %vm181_vm0, %v6190_v23  ;;  %303 = vmatpush.msrb.mxu2 %v157_v24  ;;  %v6263_v46 = vld [vmem:[#allocation6 + $0x180] sm:$0xff]  ;;  %v6349_v6 = vld [vmem:[%s10200_s1 + $0x10] sm:$0xff]  ;;  %v6373_v15 = vld [vmem:[%s10200_s1 + $0x18] sm:$0xff] }
  0x2f   :  { %4828 = vmatmul.msk.f32.gmra.mxu0 %vm181_vm0, %v6180_v21  ;;  %344 = vmatpush.msrb.mxu3 %v158_v25  ;;  %v6267_v47 = vld [vmem:[#allocation6 + $0x160] sm:$0xff]  ;;  %v634_v12 = vld [vmem:[#allocation12 + $0x50] sm:$0xff]  ;;  %v629_v17 = vld [vmem:[#allocation12 + $0x28] sm:$0xff] }
  0x30   :  { %481 = vmatpush.msra.mxu1 %v415_v26  ;;  %522 = vmatpush.msra.mxu2 %v416_v28  ;;  %v6270_v49 = vld [vmem:[#allocation6 + $0x140] sm:$0xff]  ;;  %v631_v24 = vld [vmem:[#allocation12 + $0x38] sm:$0xff]  ;;  %v6423_v28 = vld [vmem:[%s10200_s1 + $0x28] sm:$0xff] }
  0x31   :  { %563 = vmatpush.msra.mxu3 %v417_v27  ;;  %688 = vmatpush.msrb.mxu0 %v628_v38  ;;  %v6273_v50 = vld [vmem:[#allocation6 + $0x120] sm:$0xff]  ;;  %v6454_v35 = vld [vmem:[%s10200_s1 + $0x38] sm:$0xff]  ;;  %v6462_v36 = vld [vmem:[#allocation6 + $0x1e8] sm:$0xff] }
  0x32   :  { %482 = vmatpush.msra.mxu1 %v411_v29  ;;  %523 = vmatpush.msra.mxu2 %v412_v33  ;;  %v6283_v51 = vld [vmem:[#allocation6 + $0x100] sm:$0xff]  ;;  %v630_v29 = vld [vmem:[#allocation12 + $0x30] sm:$0xff]  ;;  %v625_v33 = vld [vmem:[#allocation12 + $0x8] sm:$0xff] }
  0x33   :  { %564 = vmatpush.msra.mxu3 %v413_v30  ;;  %689 = vmatpush.msrb.mxu0 %v624_v39  ;;  %v6287_v53 = vld [vmem:[#allocation6 + $0xe0] sm:$0xff]  ;;  %v6472_v39 = vld [vmem:[#allocation6 + $0x1c8] sm:$0xff] }
  0x34   :  { %483 = vmatpush.msra.mxu1 %v407_v34  ;;  %524 = vmatpush.msra.mxu2 %v408_v40  ;;  %v6290_v55 = vld [vmem:[#allocation6 + $0xc0] sm:$0xff]  ;;  %v627_v34 = vld [vmem:[#allocation12 + $0x18] sm:$0xff] }
  0x35   :  { %4797 = vmatmul.msk.f32.gmra.mxu1 %vm181_vm0, %v6209_v31  ;;  %4800 = vmatmul.msk.f32.gmra.mxu2 %vm181_vm0, %v6214_v32  ;;  %v6293_v56 = vld [vmem:[#allocation6 + $0xa0] sm:$0xff] }
  0x36   :  { %4819 = vmatmul.msk.f32.vlgmr.msrb.gmra.mxu3 %vm181_vm0, %v6127_v8  ;;  %484 = vmatpush.msra.mxu1 %v403_v41  ;;  %v6298_v57 = vld [vmem:[%s10200_s1] sm:$0xff]  ;;  %v6483_v41 = vld [vmem:[#allocation6 + $0x1b8] sm:$0xff] }
  0x37   :  { %4829 = vmatmul.msk.f32.gmra.mxu0 %vm181_vm0, %v6209_v31  ;;  %565 = vmatpush.msra.mxu3 %v409_v37  ;;  %v6308_v58 = vld [vmem:[#allocation6 + $0x80] sm:$0xff]  ;;  %v6464_v37 = vld [vmem:[#allocation6 + $0x1f8] sm:$0xff] }
  0x38   :  { %1066 = vmatpush.msra.mxu0 %v6248_v42  ;;  %525 = vmatpush.msra.mxu2 %v404_v48  ;;  %v6312_v59 = vld [vmem:[#allocation6 + $0x60] sm:$0xff]  ;;  %v6493_v48 = vld [vmem:[#allocation6 + $0x198] sm:$0xff] }
  0x39   :  { %566 = vmatpush.msra.mxu3 %v405_v44  ;;  %v6315_v61 = vld [vmem:[#allocation6 + $0x40] sm:$0xff]  ;;  %v6491_v44 = vld [vmem:[#allocation6 + $0x1a8] sm:$0xff] }
  0x3a   :  { %1067 = vmatpush.msra.mxu0 %v6250_v43  ;;  %v6318_v62 = vld [vmem:[#allocation6 + $0x20] sm:$0xff] }
  0x3b   :  { %809 = vmatpush.msrb.mxu3 %v639_v54  ;;  %v6333_v0 = vld [vmem:[#allocation6] sm:$0xff] }
  0x3c   :  { %1068 = vmatpush.msra.mxu0 %v6253_v45  ;;  %v6337_v2 = vld [vmem:[#allocation11 + $0x1e0] sm:$0xff] }
  0x3d   :  { %4803 = vmatmul.msk.f32.vlgmr.msrb.gmra.mxu1 %vm181_vm0, %v6127_v8  ;;  %4811 = vmatmul.msk.f32.vlgmr.msrb.gmra.mxu2 %vm181_vm0, %v6127_v8  ;;  %v6340_v3 = vld [vmem:[#allocation11 + $0x1c0] sm:$0xff] }
  0x3e   :  { %4820 = vmatmul.msk.f32.gmra.mxu3 %vm181_vm0, %v6180_v21  ;;  %1069 = vmatpush.msra.mxu0 %v6263_v46  ;;  %v6344_v5 = vld [vmem:[#allocation11 + $0x1a0] sm:$0xff] }
  0x3f   :  { %4830 = vmatmul.msk.f32.gmra.mxu0 %vm181_vm0, %v6132_v9  ;;  %727 = vmatpush.msrb.mxu1 %v637_v52  ;;  %v6355_v7 = vld [vmem:[#allocation11 + $0x180] sm:$0xff]  ;;  %v6495_v52 = vld [vmem:[#allocation6 + $0x1f0] sm:$0xff] }
  0x40   :  { %1070 = vmatpush.msra.mxu0 %v6267_v47  ;;  %768 = vmatpush.msrb.mxu2 %v638_v60  ;;  %v6362_v11 = vld [vmem:[#allocation11 + $0x160] sm:$0xff]  ;;  %v10213_v60 = vmov 0.0  }
  0x41   :  { %728 = vmatpush.msrb.mxu1 %v633_v1  ;;  %810 = vmatpush.msrb.mxu3 %v635_v4  ;;  %v6365_v13 = vld [vmem:[#allocation11 + $0x140] sm:$0xff] }
  0x42   :  { %1071 = vmatpush.msra.mxu0 %v6270_v49  ;;  %769 = vmatpush.msrb.mxu2 %v634_v12  ;;  %v6368_v14 = vld [vmem:[#allocation11 + $0x120] sm:$0xff] }
  0x43   :  { %v6380_v16 = vld [vmem:[#allocation11 + $0x100] sm:$0xff]  ;;  %729 = vmatpush.msrb.mxu1 %v629_v17  ;;  %811 = vmatpush.msrb.mxu3 %v631_v24 }
  0x44   :  { %1072 = vmatpush.msra.mxu0 %v6273_v50  ;;  %v6387_v18 = vld [vmem:[#allocation11 + $0xe0] sm:$0xff]  ;;  %770 = vmatpush.msrb.mxu2 %v630_v29  ;;  %v6516_v29 = vld [vmem:[#allocation6 + $0x188] sm:$0xff] }
  0x45   :  { %4804 = vmatmul.msk.f32.gmra.mxu1 %vm181_vm0, %v6180_v21  ;;  %4812 = vmatmul.msk.f32.gmra.mxu2 %vm181_vm0, %v6180_v21  ;;  %v6390_v19 = vld [vmem:[#allocation11 + $0xc0] sm:$0xff] }
  0x46   :  { %4821 = vmatmul.msk.f32.gmra.mxu3 %vm181_vm0, %v6209_v31  ;;  %1073 = vmatpush.msra.mxu0 %v6283_v51  ;;  %v6398_v20 = vld [vmem:[%s10200_s1 + $0x20] sm:$0xff] }
  0x47   :  { %4831 = vmatmul.msk.f32.gmra.mxu0 %vm181_vm0, %v6185_v22  ;;  %v6405_v25 = vld [vmem:[#allocation11 + $0x80] sm:$0xff]  ;;  %730 = vmatpush.msrb.mxu1 %v625_v33  ;;  %v6518_v33 = vld [vmem:[#allocation6 + $0x1d0] sm:$0xff] }
  0x48   :  { %1074 = vmatpush.msra.mxu0 %v6287_v53  ;;  %v6412_v26 = vld [vmem:[#allocation11 + $0x60] sm:$0xff]  ;;  %812 = vmatpush.msrb.mxu3 %v627_v34  ;;  %v6523_v34 = vld [vmem:[#allocation6 + $0x158] sm:$0xff] }
  0x49   :  { %v6415_v27 = vld [vmem:[#allocation11 + $0x40] sm:$0xff] }
  0x4a   :  { %1075 = vmatpush.msra.mxu0 %v6290_v55  ;;  %v6430_v30 = vld [vmem:[#allocation11] sm:$0xff] }
  0x4b   :  { %v6481_v40 = vld [vmem:[%s10203_s4] sm:$0xf] }
  0x4c   :  { %1076 = vmatpush.msra.mxu0 %v6293_v56  ;;  %10654 = vst [vmem:[#allocation24_spill] sm:$0xff] %v6481_v40  ;;  %v6498_v54 = vperm.slane %v6481_v40, 0 }
  0x4d   :  { %4805 = vmatmul.msk.f32.gmra.mxu1 %vm181_vm0, %v6209_v31  ;;  %4813 = vmatmul.msk.f32.gmra.mxu2 %vm181_vm0, %v6209_v31 }
  0x4e   :  { %4822 = vmatmul.msk.f32.gmra.mxu3 %vm181_vm0, %v6132_v9  ;;  %1077 = vmatpush.msra.mxu0 %v6308_v58  ;;  %10655 = vst [vmem:[#allocation25_spill] sm:$0xff] %v6498_v54 }
  0x4f   :  { %4832 = vmatmul.msk.f32.gmra.mxu0 %vm181_vm0, %v6214_v32 }
  0x50   :  { %1078 = vmatpush.msra.mxu0 %v6312_v59 }
  0x52   :  { %1079 = vmatpush.msra.mxu0 %v6315_v61 }
  0x54   :  { %1080 = vmatpush.msra.mxu0 %v6318_v62 }
  0x55   :  { %4806 = vmatmul.msk.f32.gmra.mxu1 %vm181_vm0, %v6132_v9  ;;  %4814 = vmatmul.msk.f32.gmra.mxu2 %vm181_vm0, %v6132_v9 }
  0x56   :  { %4823 = vmatmul.msk.f32.gmra.mxu3 %vm181_vm0, %v6185_v22  ;;  %1081 = vmatpush.msra.mxu0 %v6333_v0 }
  0x57   :  { %4833 = vmatmul.msk.f32.gmra.mxu0 %vm181_vm0, %v6137_v10 }
  0x5d   :  { %4807 = vmatmul.msk.f32.gmra.mxu1 %vm181_vm0, %v6185_v22  ;;  %4815 = vmatmul.msk.f32.gmra.mxu2 %vm181_vm0, %v6185_v22 }
  0x5e   :  { %4824 = vmatmul.msk.f32.gmra.mxu3 %vm181_vm0, %v6214_v32 }
  0x5f   :  { %4834 = vmatmul.msk.f32.gmra.mxu0 %vm181_vm0, %v6190_v23 }
  0x65   :  { %4808 = vmatmul.msk.f32.gmra.mxu1 %vm181_vm0, %v6214_v32  ;;  %4816 = vmatmul.msk.f32.gmra.mxu2 %vm181_vm0, %v6214_v32 }
  0x66   :  { %4825 = vmatmul.msk.f32.gmra.mxu3 %vm181_vm0, %v6137_v10 }
  0x67   :  { %4859 = vmatmul.msk.f32.vlgmr.msrb.gmra.mxu0 %vm181_vm0, %v6298_v57 }
  0x68   :  { %1217 = vmatpush.msrb.mxu0 %v6337_v2 }
  0x6a   :  { %1218 = vmatpush.msrb.mxu0 %v6340_v3 }
  0x6c   :  { %1219 = vmatpush.msrb.mxu0 %v6344_v5 }
  0x6d   :  { %4809 = vmatmul.msk.f32.gmra.mxu1 %vm181_vm0, %v6137_v10  ;;  %4817 = vmatmul.msk.f32.gmra.mxu2 %vm181_vm0, %v6137_v10 }
  0x6e   :  { %4826 = vmatmul.msk.f32.gmra.mxu3 %vm181_vm0, %v6190_v23  ;;  %1220 = vmatpush.msrb.mxu0 %v6355_v7 }
  0x6f   :  { %4860 = vmatmul.msk.f32.gmra.mxu0 %vm181_vm0, %v6323_v63 }
  0x70   :  { %1221 = vmatpush.msrb.mxu0 %v6362_v11 }
  0x72   :  { %1222 = vmatpush.msrb.mxu0 %v6365_v13 }
  0x74   :  { %1223 = vmatpush.msrb.mxu0 %v6368_v14 }
  0x75   :  { %4810 = vmatmul.msk.f32.gmra.mxu1 %vm181_vm0, %v6190_v23  ;;  %4818 = vmatmul.msk.f32.gmra.mxu2 %vm181_vm0, %v6190_v23 }
  0x76   :  { %4851 = vmatmul.msk.f32.vlgmr.msra.gmra.mxu3 %vm181_vm0, %v6127_v8  ;;  %1224 = vmatpush.msrb.mxu0 %v6380_v16 }
  0x77   :  { %4861 = vmatmul.msk.f32.gmra.mxu0 %vm181_vm0, %v6349_v6  ;;  %1126 = vmatpush.msra.mxu3 %v6464_v37 }
  0x78   :  { %1225 = vmatpush.msrb.mxu0 %v6387_v18 }
  0x7a   :  { %1226 = vmatpush.msrb.mxu0 %v6390_v19 }
  0x7d   :  { %4835 = vmatmul.msk.f32.vlgmr.msra.gmra.mxu1 %vm181_vm0, %v6127_v8  ;;  %4843 = vmatmul.msk.f32.vlgmr.msra.gmra.mxu2 %vm181_vm0, %v6127_v8  ;;  %v6393_v8 = vld [vmem:[#allocation11 + $0xa0] sm:$0xff] }
  0x7e   :  { %4852 = vmatmul.msk.f32.gmra.mxu3 %vm181_vm0, %v6180_v21  ;;  %1227 = vmatpush.msrb.mxu0 %v6393_v8 }
  0x7f   :  { %4862 = vmatmul.msk.f32.gmra.mxu0 %vm181_vm0, %v6373_v15  ;;  %1086 = vmatpush.msra.mxu1 %v6462_v36 }
  0x80   :  { %1228 = vmatpush.msrb.mxu0 %v6405_v25 }
  0x81   :  { %1087 = vmatpush.msra.mxu1 %v6472_v39 }
  0x82   :  { %1229 = vmatpush.msrb.mxu0 %v6412_v26 }
  0x83   :  { %1088 = vmatpush.msra.mxu1 %v6491_v44 }
  0x84   :  { %1230 = vmatpush.msrb.mxu0 %v6415_v27 }
  0x85   :  { %4836 = vmatmul.msk.f32.gmra.mxu1 %vm181_vm0, %v6180_v21  ;;  %4844 = vmatmul.msk.f32.gmra.mxu2 %vm181_vm0, %v6180_v21  ;;  %v6418_v21 = vld [vmem:[#allocation11 + $0x20] sm:$0xff] }
  0x86   :  { %4853 = vmatmul.msk.f32.gmra.mxu3 %vm181_vm0, %v6209_v31  ;;  %1231 = vmatpush.msrb.mxu0 %v6418_v21 }
  0x87   :  { %4863 = vmatmul.msk.f32.gmra.mxu0 %vm181_vm0, %v6398_v20  ;;  %1089 = vmatpush.msra.mxu1 %v6516_v29 }
  0x88   :  { %1232 = vmatpush.msrb.mxu0 %v6430_v30 }
  0x8d   :  { %4837 = vmatmul.msk.f32.gmra.mxu1 %vm181_vm0, %v6209_v31  ;;  %4845 = vmatmul.msk.f32.gmra.mxu2 %vm181_vm0, %v6209_v31  ;;  %v6441_v31 = vld [vmem:[%s10200_s1 + $0x30] sm:$0xff] }
  0x8e   :  { %4854 = vmatmul.msk.f32.gmra.mxu3 %vm181_vm0, %v6132_v9 }
  0x8f   :  { %4864 = vmatmul.msk.f32.gmra.mxu0 %vm181_vm0, %v6423_v28 }
  0x95   :  { %4838 = vmatmul.msk.f32.gmra.mxu1 %vm181_vm0, %v6132_v9  ;;  %4846 = vmatmul.msk.f32.gmra.mxu2 %vm181_vm0, %v6132_v9  ;;  %v626_v9 = vld [vmem:[#allocation12 + $0x10] sm:$0xff] }
  0x96   :  { %4855 = vmatmul.msk.f32.gmra.mxu3 %vm181_vm0, %v6185_v22  ;;  %771 = vmatpush.msrb.mxu2 %v626_v9  ;;  %v6525_v9 = vld [vmem:[#allocation6 + $0x1b0] sm:$0xff] }
  0x97   :  { %4865 = vmatmul.msk.f32.gmra.mxu0 %vm181_vm0, %v6441_v31 }
  0x98   :  { %1106 = vmatpush.msra.mxu2 %v6495_v52 }
  0x9a   :  { %1107 = vmatpush.msra.mxu2 %v6518_v33 }
  0x9c   :  { %1108 = vmatpush.msra.mxu2 %v6525_v9 }
  0x9d   :  { %4839 = vmatmul.msk.f32.gmra.mxu1 %vm181_vm0, %v6185_v22  ;;  %4847 = vmatmul.msk.f32.gmra.mxu2 %vm181_vm0, %v6185_v22  ;;  %v6474_v22 = vld [vmem:[#allocation6 + $0x1d8] sm:$0xff] }
  0x9e   :  { %4856 = vmatmul.msk.f32.gmra.mxu3 %vm181_vm0, %v6214_v32 }
  0x9f   :  { %4866 = vmatmul.msk.f32.gmra.mxu0 %vm181_vm0, %v6454_v35  ;;  %1127 = vmatpush.msra.mxu3 %v6474_v22 }
  0xa1   :  { %1128 = vmatpush.msra.mxu3 %v6483_v41 }
  0xa2   :  { %v6470_v38 = vpop.f32.mrf.mxu1 }
  0xa3   :  { %10653 = vst [vmem:[#allocation23_spill] sm:$0xff] %v6470_v38  ;;  %1129 = vmatpush.msra.mxu3 %v6493_v48 }
  0xa5   :  { %4840 = vmatmul.msk.f32.gmra.mxu1 %vm181_vm0, %v6214_v32  ;;  %4848 = vmatmul.msk.f32.gmra.mxu2 %vm181_vm0, %v6214_v32  ;;  %v6504_v32 = vld [vmem:[#allocation6 + $0x178] sm:$0xff] }
  0xa6   :  { %4857 = vmatmul.msk.f32.gmra.mxu3 %vm181_vm0, %v6137_v10 }
  0xa7   :  { %1082 = vmatmul.f32.vlgmr.msra.gmra.mxu0 %v10213_v60  ;;  %1130 = vmatpush.msra.mxu3 %v6504_v32 }
  0xa8   :  { %v232_v1 = vpop.f32.mrf.mxu2  ;;  %1368 = vmatpush.msra.mxu0 %v6248_v42  ;;  %v6535_v42 = vld [vmem:[#allocation6 + $0x138] sm:$0xff] }
  0xa9   :  { %v6507_v4 = vadd.f32 %v232_v1, %v6498_v54  ;;  %v241_v12 = vpop.f32.mrf.mxu3  ;;  %v6537_v1 = vld [vmem:[#allocation6 + $0x168] sm:$0xff]  ;;  %1131 = vmatpush.msra.mxu3 %v6523_v34 }
  0xaa   :  { %v6512_v17 = vadd.f32 %v241_v12, %v6498_v54  ;;  %v6514_v24 = vpop.f32.mrf.mxu1  ;;  %1369 = vmatpush.msra.mxu0 %v6250_v43  ;;  %10659 = vst [vmem:[#allocation29_spill] sm:$0xff] %v6537_v1  ;;  %v6539_v12 = vld [vmem:[#allocation6 + $0x190] sm:$0xff]  ;;  %1090 = vmatpush.msra.mxu1 %v6537_v1  ;;  %v6560_v1 = vld [vmem:[#allocation6 + $0x148] sm:$0xff] }
  0xab   :  { %10656 = vst [vmem:[#allocation26_spill] sm:$0xff] %v6507_v4  ;;  %v6543_v43 = vld [vmem:[#allocation6 + $0x170] sm:$0xff]  ;;  %1109 = vmatpush.msra.mxu2 %v6539_v12  ;;  %1132 = vmatpush.msra.mxu3 %v6535_v42 }
  0xac   :  { %10657 = vst [vmem:[#allocation27_spill] sm:$0xff] %v6512_v17  ;;  %1370 = vmatpush.msra.mxu0 %v6253_v45  ;;  %1091 = vmatpush.msra.mxu1 %v6560_v1  ;;  %v6569_v45 = vld [vmem:[#allocation6 + $0x128] sm:$0xff] }
  0xad   :  { %10658 = vst [vmem:[#allocation28_spill] sm:$0xff] %v6514_v24  ;;  %4841 = vmatmul.msk.f32.gmra.mxu1 %vm181_vm0, %v6137_v10  ;;  %4849 = vmatmul.msk.f32.gmra.mxu2 %vm181_vm0, %v6137_v10  ;;  %v6547_v10 = vld [vmem:[#allocation6 + $0x118] sm:$0xff] }
  0xae   :  { %4858 = vmatmul.msk.f32.gmra.mxu3 %vm181_vm0, %v6190_v23  ;;  %10660 = vst [vmem:[#allocation30_spill] sm:$0xff] %v6539_v12  ;;  %1110 = vmatpush.msra.mxu2 %v6543_v43  ;;  %v6562_v12 = vld [vmem:[#allocation6 + $0x150] sm:$0xff] }
  0xaf   :  { %1233 = vmatmul.f32.vlgmr.msrb.gmra.mxu0 %v10213_v60  ;;  %10661 = vst [vmem:[#allocation31_spill] sm:$0xff] %v6547_v10  ;;  %1133 = vmatpush.msra.mxu3 %v6547_v10  ;;  %v6591_v10 = vld [vmem:[#allocation6 + $0xb8] sm:$0xff] }
  0xb0   :  { %v235_v17 = vpop.f32.mrf.mxu2  ;;  %10665 = vst [vmem:[#allocation35_spill] sm:$0xff] %v6560_v1  ;;  %1111 = vmatpush.msra.mxu2 %v6562_v12  ;;  %1371 = vmatpush.msra.mxu0 %v6263_v46  ;;  %v6589_v46 = vld [vmem:[#allocation6 + $0xe8] sm:$0xff] }
  0xb1   :  { %v6550_v4 = vadd.f32 %v235_v17, %v6498_v54  ;;  %v244_v24 = vpop.f32.mrf.mxu3  ;;  %10666 = vst [vmem:[#allocation36_spill] sm:$0xff] %v6562_v12  ;;  %v6566_v17 = vld [vmem:[#allocation6 + $0xf8] sm:$0xff]  ;;  %1092 = vmatpush.msra.mxu1 %v6569_v45 }
  0xb2   :  { %v6555_v60 = vadd.f32 %v244_v24, %v6498_v54  ;;  %v6557_v38 = vpop.f32.mrf.mxu1  ;;  %10667 = vst [vmem:[#allocation37_spill] sm:$0xff] %v6566_v17  ;;  %v6571_v24 = vld [vmem:[#allocation6 + $0x130] sm:$0xff]  ;;  %1134 = vmatpush.msra.mxu3 %v6566_v17  ;;  %1372 = vmatpush.msra.mxu0 %v6267_v47  ;;  %v6607_v17 = vld [vmem:[#allocation6 + $0xc8] sm:$0xff] }
  0xb3   :  { %10662 = vst [vmem:[#allocation32_spill] sm:$0xff] %v6550_v4  ;;  %v6583_v4 = vld [vmem:[#allocation6 + $0x108] sm:$0xff]  ;;  %1112 = vmatpush.msra.mxu2 %v6571_v24  ;;  %v6612_v47 = vld [vmem:[#allocation6 + $0xd0] sm:$0xff] }
  0xb4   :  { %10663 = vst [vmem:[#allocation33_spill] sm:$0xff] %v6555_v60  ;;  %v6580_v60 = vld [vmem:[#allocation6 + $0xd8] sm:$0xff]  ;;  %1093 = vmatpush.msra.mxu1 %v6583_v4  ;;  %1373 = vmatpush.msra.mxu0 %v6270_v49  ;;  %v6624_v49 = vld [vmem:[#allocation6 + $0xb0] sm:$0xff] }
  0xb5   :  { %10664 = vst [vmem:[#allocation34_spill] sm:$0xff] %v6557_v38  ;;  %4842 = vmatmul.msk.f32.gmra.mxu1 %vm181_vm0, %v6190_v23  ;;  %4850 = vmatmul.msk.f32.gmra.mxu2 %vm181_vm0, %v6190_v23  ;;  %v6585_v38 = vld [vmem:[#allocation6 + $0x110] sm:$0xff] }
  0xb6   :  { %10668 = vst [vmem:[#allocation38_spill] sm:$0xff] %v6569_v45  ;;  %4883 = vmatmul.msk.f32.vlgmr.msrb.gmra.mxu3 %vm181_vm0, %v6298_v57  ;;  %v6594_v23 = vld [vmem:[#allocation6 + $0xf0] sm:$0xff]  ;;  %1113 = vmatpush.msra.mxu2 %v6585_v38 }
  0xb7   :  { %10669 = vst [vmem:[#allocation39_spill] sm:$0xff] %v6571_v24  ;;  %1135 = vmatpush.msra.mxu3 %v6580_v60  ;;  %1094 = vmatpush.msra.mxu1 %v6589_v46 }
  0xb8   :  { %v238_v12 = vpop.f32.mrf.mxu2  ;;  %10670 = vst [vmem:[#allocation40_spill] sm:$0xff] %v6591_v10  ;;  %1114 = vmatpush.msra.mxu2 %v6594_v23  ;;  %1374 = vmatpush.msra.mxu0 %v6273_v50  ;;  %v6635_v50 = vld [vmem:[#allocation6 + $0x90] sm:$0xff] }
  0xb9   :  { %10671 = vst [vmem:[#allocation41_spill] sm:$0xff] %v6594_v23  ;;  %v6598_v45 = vadd.f32 %v238_v12, %v6498_v54  ;;  %v6600_v1 = vpop.f32.mrf.mxu3  ;;  %1136 = vmatpush.msra.mxu3 %v6591_v10  ;;  %v6614_v12 = vld [vmem:[#allocation6 + $0x98] sm:$0xff]  ;;  %1095 = vmatpush.msra.mxu1 %v6607_v17  ;;  %v6638_v54 = vperm.slane %v6481_v40, 3  ;;  %v6645_v23 = vld [vmem:[#allocation6 + $0x68] sm:$0xff] }
  0xba   :  { %10673 = vst [vmem:[#allocation43_spill] sm:$0xff] %v6600_v1  ;;  %v6604_v24 = vpop.f32.mrf.mxu1  ;;  %1115 = vmatpush.msra.mxu2 %v6612_v47  ;;  %v6631_v1 = vld [vmem:[#allocation6 + $0x88] sm:$0xff]  ;;  %1375 = vmatpush.msra.mxu0 %v6283_v51 }
  0xbb   :  { %10672 = vst [vmem:[#allocation42_spill] sm:$0xff] %v6598_v45  ;;  %v6617_v45 = vld [vmem:[#allocation6 + $0xa8] sm:$0xff]  ;;  %1137 = vmatpush.msra.mxu3 %v6614_v12 }
  0xbc   :  { %10674 = vst [vmem:[#allocation44_spill] sm:$0xff] %v6604_v24  ;;  %v6628_v24 = vld [vmem:[#allocation6 + $0x78] sm:$0xff]  ;;  %1096 = vmatpush.msra.mxu1 %v6617_v45  ;;  %1116 = vmatpush.msra.mxu2 %v6624_v49  ;;  %v6663_v51 = vld [vmem:[#allocation6 + $0x48] sm:$0xff] }
  0xbd   :  { %10675 = vst [vmem:[#allocation45_spill] sm:$0xff] %v6607_v17  ;;  %4867 = vmatmul.msk.f32.vlgmr.msrb.gmra.mxu1 %vm181_vm0, %v6298_v57  ;;  %4875 = vmatmul.msk.f32.vlgmr.msrb.gmra.mxu2 %vm181_vm0, %v6298_v57  ;;  %v6642_v17 = vld [vmem:[#allocation6 + $0x58] sm:$0xff] }
  0xbe   :  { %10676 = vst [vmem:[#allocation46_spill] sm:$0xff] %v6612_v47  ;;  %4884 = vmatmul.msk.f32.gmra.mxu3 %vm181_vm0, %v6323_v63  ;;  %1097 = vmatpush.msra.mxu1 %v6631_v1 }
  0xbf   :  { %10677 = vst [vmem:[#allocation47_spill] sm:$0xff] %v6614_v12  ;;  %1138 = vmatpush.msra.mxu3 %v6628_v24  ;;  %1117 = vmatpush.msra.mxu2 %v6635_v50 }
  0xc0   :  { %10678 = vst [vmem:[#allocation48_spill] sm:$0xff] %v6617_v45  ;;  %v6640_v57 = vpop.f32.mrf.mxu2  ;;  %v6650_v45 = vld [vmem:[#allocation6 + $0x70] sm:$0xff]  ;;  %1376 = vmatpush.msra.mxu0 %v6287_v53  ;;  %1098 = vmatpush.msra.mxu1 %v6645_v23  ;;  %v6675_v53 = vld [vmem:[#allocation6 + $0x28] sm:$0xff] }
  0xc1   :  { %10679 = vst [vmem:[#allocation49_spill] sm:$0xff] %v6631_v1  ;;  %v349_v47 = vpop.f32.mrf.mxu3  ;;  %1139 = vmatpush.msra.mxu3 %v6642_v17  ;;  %v6665_v1 = vld [vmem:[#allocation6 + $0x38] sm:$0xff]  ;;  %1118 = vmatpush.msra.mxu2 %v6650_v45 }
  0xc2   :  { %10680 = vst [vmem:[#allocation50_spill] sm:$0xff] %v6638_v54  ;;  %v6653_v12 = vadd.f32 %v349_v47, %v6638_v54  ;;  %v6655_v10 = vpop.f32.mrf.mxu1  ;;  %v6668_v47 = vld [vmem:[#allocation6 + $0x50] sm:$0xff]  ;;  %1377 = vmatpush.msra.mxu0 %v6290_v55  ;;  %1099 = vmatpush.msra.mxu1 %v6663_v51  ;;  %v6688_v55 = vld [vmem:[#allocation11 + $0x1f8] sm:$0xff] }
  0xc3   :  { %10681 = vst [vmem:[#allocation51_spill] sm:$0xff] %v6640_v57  ;;  %v6659_v57 = vpop.f32.mrf.mxu0  ;;  %1140 = vmatpush.msra.mxu3 %v6665_v1  ;;  %1119 = vmatpush.msra.mxu2 %v6668_v47 }
  0xc4   :  { %10682 = vst [vmem:[#allocation52_spill] sm:$0xff] %v6645_v23  ;;  %1100 = vmatpush.msra.mxu1 %v6675_v53  ;;  %v6696_v23 = vld [vmem:[#allocation11 + $0x1e8] sm:$0xff]  ;;  %1378 = vmatpush.msra.mxu0 %v6293_v56 }
  0xc5   :  { %10683 = vst [vmem:[#allocation53_spill] sm:$0xff] %v6650_v45  ;;  %4868 = vmatmul.msk.f32.gmra.mxu1 %vm181_vm0, %v6323_v63  ;;  %4876 = vmatmul.msk.f32.gmra.mxu2 %vm181_vm0, %v6323_v63  ;;  %v6691_v63 = vld [vmem:[#allocation6 + $0x8] sm:$0xff]  ;;  %v6694_v45 = vld [vmem:[#allocation6 + $0x10] sm:$0xff] }
  0xc6   :  { %10684 = vst [vmem:[#allocation54_spill] sm:$0xff] %v6653_v12  ;;  %4885 = vmatmul.msk.f32.gmra.mxu3 %vm181_vm0, %v6349_v6  ;;  %v6682_v12 = vld [vmem:[#allocation6 + $0x30] sm:$0xff]  ;;  %1101 = vmatpush.msra.mxu1 %v6691_v63  ;;  %v6716_v56 = vld [vmem:[#allocation11 + $0x1c8] sm:$0xff] }
  0xc7   :  { %10685 = vst [vmem:[#allocation55_spill] sm:$0xff] %v6655_v10  ;;  %v6685_v10 = vperm.slane %v6481_v40, 2  ;;  %1120 = vmatpush.msra.mxu2 %v6682_v12  ;;  %1379 = vmatpush.msra.mxu0 %v6308_v58  ;;  %v6765_v58 = vld [vmem:[#allocation11 + $0x158] sm:$0xff] }
  0xc8   :  { %10686 = vst [vmem:[#allocation56_spill] sm:$0xff] %v6659_v57  ;;  %v6679_v57 = vld [vmem:[#allocation6 + $0x18] sm:$0xff]  ;;  %v308_v54 = vpop.f32.mrf.mxu2  ;;  %1237 = vmatpush.msrb.mxu1 %v6696_v23 }
  0xc9   :  { %10687 = vst [vmem:[#allocation57_spill] sm:$0xff] %v6663_v51  ;;  %v6700_v40 = vadd.f32 %v308_v54, %v6685_v10  ;;  %v6702_v51 = vpop.f32.mrf.mxu3  ;;  %1141 = vmatpush.msra.mxu3 %v6679_v57  ;;  %1121 = vmatpush.msra.mxu2 %v6694_v45  ;;  %v6719_v54 = vld [vmem:[#allocation11 + $0x1b8] sm:$0xff] }
  0xca   :  { %10688 = vst [vmem:[#allocation58_spill] sm:$0xff] %v6665_v1  ;;  %v6705_v1 = vld [vmem:[#allocation11 + $0x1d8] sm:$0xff]  ;;  %1238 = vmatpush.msrb.mxu1 %v6716_v56  ;;  %1380 = vmatpush.msra.mxu0 %v6312_v59  ;;  %v6775_v59 = vld [vmem:[#allocation11 + $0x150] sm:$0xff] }
  0xcb   :  { %10689 = vst [vmem:[#allocation59_spill] sm:$0xff] %v6668_v47  ;;  %v6708_v47 = vld [vmem:[#allocation11 + $0x1f0] sm:$0xff]  ;;  %1277 = vmatpush.msrb.mxu3 %v6688_v55 }
  0xcc   :  { %10690 = vst [vmem:[#allocation60_spill] sm:$0xff] %v6675_v53  ;;  %v6710_v53 = vpop.f32.mrf.mxu1  ;;  %1257 = vmatpush.msrb.mxu2 %v6708_v47  ;;  %1381 = vmatpush.msra.mxu0 %v6315_v61  ;;  %v6788_v61 = vld [vmem:[#allocation11 + $0x130] sm:$0xff] }
  0xcd   :  { %10691 = vst [vmem:[#allocation61_spill] sm:$0xff] %v6685_v10  ;;  %1278 = vmatpush.msrb.mxu3 %v6705_v1  ;;  %4869 = vmatmul.msk.f32.gmra.mxu1 %vm181_vm0, %v6349_v6  ;;  %v6734_v10 = vld [vmem:[#allocation11 + $0x198] sm:$0xff] }
  0xce   :  { %10692 = vst [vmem:[#allocation62_spill] sm:$0xff] %v6694_v45  ;;  %4877 = vmatmul.msk.f32.gmra.mxu2 %vm181_vm0, %v6349_v6  ;;  %4886 = vmatmul.msk.f32.gmra.mxu3 %vm181_vm0, %v6373_v15  ;;  %v6745_v6 = vld [vmem:[#allocation11 + $0x178] sm:$0xff] }
  0xcf   :  { %10693 = vst [vmem:[#allocation63_spill] sm:$0xff] %v6696_v23  ;;  %1279 = vmatpush.msrb.mxu3 %v6719_v54  ;;  %1382 = vmatpush.msra.mxu0 %v6318_v62  ;;  %v6812_v62 = vld [vmem:[#allocation11 + $0xf8] sm:$0xff] }
  0xd0   :  { %10694 = vst [vmem:[#allocation64_spill] sm:$0xff] %v6700_v40  ;;  %v6724_v40 = vpop.f32.mrf.mxu0  ;;  %v6743_v45 = vpop.f32.mrf.mxu2 }
  0xd1   :  { %10695 = vst [vmem:[#allocation65_spill] sm:$0xff] %v6702_v51  ;;  %v6722_v51 = vld [vmem:[#allocation11 + $0x1d0] sm:$0xff]  ;;  %v6751_v23 = vpop.f32.mrf.mxu3  ;;  %1280 = vmatpush.msrb.mxu3 %v6734_v10  ;;  %1383 = vmatpush.msra.mxu0 %v6333_v0  ;;  %v6822_v0 = vld [vmem:[#allocation11 + $0xc8] sm:$0xff] }
  0xd2   :  { %10696 = vst [vmem:[#allocation66_spill] sm:$0xff] %v6705_v1  ;;  %1258 = vmatpush.msrb.mxu2 %v6722_v51  ;;  %v6748_v1 = vld [vmem:[#allocation11 + $0x190] sm:$0xff] }
  0xd3   :  { %10697 = vst [vmem:[#allocation67_spill] sm:$0xff] %v6708_v47  ;;  %v6737_v47 = vld [vmem:[#allocation11 + $0x1b0] sm:$0xff]  ;;  %1281 = vmatpush.msrb.mxu3 %v6745_v6  ;;  %1519 = vmatpush.msrb.mxu0 %v6337_v2  ;;  %v6833_v2 = vld [vmem:[#allocation11 + $0xa8] sm:$0xff] }
  0xd4   :  { %10698 = vst [vmem:[#allocation68_spill] sm:$0xff] %v6710_v53  ;;  %v6730_v53 = vld [vmem:[#allocation11 + $0x1a8] sm:$0xff]  ;;  %1259 = vmatpush.msrb.mxu2 %v6737_v47 }
  0xd5   :  { %10699 = vst [vmem:[#allocation69_spill] sm:$0xff] %v6719_v54  ;;  %1239 = vmatpush.msrb.mxu1 %v6730_v53  ;;  %v6755_v54 = vld [vmem:[#allocation11 + $0x168] sm:$0xff]  ;;  %1282 = vmatpush.msrb.mxu3 %v6765_v58 }
  0xd6   :  { %10700 = vst [vmem:[#allocation70_spill] sm:$0xff] %v6722_v51  ;;  %v6757_v51 = vpop.f32.mrf.mxu1  ;;  %1260 = vmatpush.msrb.mxu2 %v6748_v1  ;;  %4870 = vmatmul.msk.f32.gmra.mxu1 %vm181_vm0, %v6373_v15 }
  0xd7   :  { %10701 = vst [vmem:[#allocation71_spill] sm:$0xff] %v6724_v40  ;;  %v6741_v40 = vld [vmem:[#allocation11 + $0x188] sm:$0xff]  ;;  %4878 = vmatmul.msk.f32.gmra.mxu2 %vm181_vm0, %v6373_v15  ;;  %4887 = vmatmul.msk.f32.gmra.mxu3 %vm181_vm0, %v6398_v20 }
  0xd8   :  { %10702 = vst [vmem:[#allocation72_spill] sm:$0xff] %v6741_v40  ;;  %1240 = vmatpush.msrb.mxu1 %v6741_v40  ;;  %v6790_v15 = vpop.f32.mrf.mxu2  ;;  %v6795_v40 = vld [vmem:[#allocation11 + $0x108] sm:$0xff]  ;;  %1520 = vmatpush.msrb.mxu0 %v6340_v3  ;;  %v6857_v3 = vld [vmem:[#allocation11 + $0x90] sm:$0xff] }
  0xd9   :  { %10703 = vst [vmem:[#allocation73_spill] sm:$0xff] %v6743_v45  ;;  %v6763_v45 = vld [vmem:[#allocation11 + $0x170] sm:$0xff] }
  0xda   :  { %10704 = vst [vmem:[#allocation74_spill] sm:$0xff] %v6745_v6  ;;  %1241 = vmatpush.msrb.mxu1 %v6755_v54  ;;  %1261 = vmatpush.msrb.mxu2 %v6763_v45  ;;  %v6792_v6 = vld [vmem:[#allocation11 + $0x118] sm:$0xff] }
  0xdb   :  { %10705 = vst [vmem:[#allocation75_spill] sm:$0xff] %v6748_v1  ;;  %v6784_v1 = vpop.f32.mrf.mxu0  ;;  %1521 = vmatpush.msrb.mxu0 %v6344_v5  ;;  %v6869_v5 = vld [vmem:[#allocation11 + $0x70] sm:$0xff] }
  0xdc   :  { %10706 = vst [vmem:[#allocation76_spill] sm:$0xff] %v6751_v23  ;;  %v6768_v23 = vld [vmem:[#allocation11 + $0x148] sm:$0xff]  ;;  %1262 = vmatpush.msrb.mxu2 %v6775_v59 }
  0xdd   :  { %10707 = vst [vmem:[#allocation77_spill] sm:$0xff] %v6755_v54  ;;  %v6782_v54 = vld [vmem:[#allocation11 + $0x128] sm:$0xff]  ;;  %1242 = vmatpush.msrb.mxu1 %v6768_v23  ;;  %1522 = vmatpush.msrb.mxu0 %v6355_v7  ;;  %v6880_v7 = vld [vmem:[#allocation11 + $0x50] sm:$0xff] }
  0xde   :  { %10708 = vst [vmem:[#allocation78_spill] sm:$0xff] %v6757_v51  ;;  %v6779_v51 = vld [vmem:[#allocation11 + $0x138] sm:$0xff]  ;;  %1263 = vmatpush.msrb.mxu2 %v6788_v61  ;;  %4871 = vmatmul.msk.f32.gmra.mxu1 %vm181_vm0, %v6398_v20 }
  0xdf   :  { %10709 = vst [vmem:[#allocation79_spill] sm:$0xff] %v6763_v45  ;;  %v6798_v45 = vpop.f32.mrf.mxu3  ;;  %1283 = vmatpush.msrb.mxu3 %v6779_v51  ;;  %1243 = vmatpush.msrb.mxu1 %v6782_v54 }
  0xe0   :  { %10710 = vst [vmem:[#allocation80_spill] sm:$0xff] %v6768_v23  ;;  %v6804_v23 = vpop.f32.mrf.mxu1  ;;  %4879 = vmatmul.msk.f32.gmra.mxu2 %vm181_vm0, %v6398_v20  ;;  %4888 = vmatmul.msk.f32.gmra.mxu3 %vm181_vm0, %v6423_v28  ;;  %v6837_v20 = vld [vmem:[#allocation11 + $0xb8] sm:$0xff] }
  0xe1   :  { %10711 = vst [vmem:[#allocation81_spill] sm:$0xff] %v6784_v1  ;;  %v6802_v1 = vld [vmem:[#allocation11 + $0x110] sm:$0xff]  ;;  %1284 = vmatpush.msrb.mxu3 %v6792_v6  ;;  %1244 = vmatpush.msrb.mxu1 %v6795_v40 }
  0xe2   :  { %10712 = vst [vmem:[#allocation82_spill] sm:$0xff] %v6788_v61  ;;  %1264 = vmatpush.msrb.mxu2 %v6802_v1  ;;  %v6840_v61 = vld [vmem:[#allocation11 + $0xb0] sm:$0xff]  ;;  %1523 = vmatpush.msrb.mxu0 %v6362_v11  ;;  %v6904_v11 = vld [vmem:[#allocation11 + $0x8] sm:$0xff] }
  0xe3   :  { %10713 = vst [vmem:[#allocation83_spill] sm:$0xff] %v6790_v15  ;;  %v6810_v15 = vld [vmem:[#allocation11 + $0xe8] sm:$0xff]  ;;  %1285 = vmatpush.msrb.mxu3 %v6812_v62 }
  0xe4   :  { %10714 = vst [vmem:[#allocation84_spill] sm:$0xff] %v6792_v6  ;;  %1245 = vmatpush.msrb.mxu1 %v6810_v15  ;;  %v6843_v6 = vpop.f32.mrf.mxu0  ;;  %1524 = vmatpush.msrb.mxu0 %v6365_v13  ;;  %v6918_v13 = vld [vmem:[#allocation11 + $0x18] sm:$0xff] }
  0xe5   :  { %10715 = vst [vmem:[#allocation85_spill] sm:$0xff] %v6795_v40  ;;  %v6835_v40 = vpop.f32.mrf.mxu2 }
  0xe6   :  { %10716 = vst [vmem:[#allocation86_spill] sm:$0xff] %v6798_v45  ;;  %v6815_v45 = vld [vmem:[#allocation11 + $0xf0] sm:$0xff]  ;;  %1246 = vmatpush.msrb.mxu1 %v6822_v0  ;;  %1525 = vmatpush.msrb.mxu0 %v6368_v14 }
  0xe7   :  { %10717 = vst [vmem:[#allocation87_spill] sm:$0xff] %v6802_v1  ;;  %v6829_v1 = vld [vmem:[#allocation11 + $0xd0] sm:$0xff]  ;;  %1265 = vmatpush.msrb.mxu2 %v6815_v45  ;;  %4872 = vmatmul.msk.f32.gmra.mxu1 %vm181_vm0, %v6423_v28 }
  0xe8   :  { %10718 = vst [vmem:[#allocation88_spill] sm:$0xff] %v6804_v23  ;;  %v6826_v23 = vld [vmem:[#allocation11 + $0xd8] sm:$0xff]  ;;  %1247 = vmatpush.msrb.mxu1 %v6833_v2  ;;  %4880 = vmatmul.msk.f32.gmra.mxu2 %vm181_vm0, %v6423_v28 }
  0xe9   :  { %10719 = vst [vmem:[#allocation89_spill] sm:$0xff] %v6810_v15  ;;  %v6845_v15 = vpop.f32.mrf.mxu3  ;;  %1286 = vmatpush.msrb.mxu3 %v6826_v23  ;;  %1266 = vmatpush.msrb.mxu2 %v6829_v1  ;;  %v6884_v28 = vld [vmem:[#allocation11 + $0x58] sm:$0xff] }
  0xea   :  { %10720 = vst [vmem:[#allocation90_spill] sm:$0xff] %v6812_v62  ;;  %v6851_v62 = vpop.f32.mrf.mxu1  ;;  %4889 = vmatmul.msk.f32.gmra.mxu3 %vm181_vm0, %v6441_v31  ;;  %1526 = vmatpush.msrb.mxu0 %v6380_v16 }
  0xeb   :  { %10721 = vst [vmem:[#allocation91_spill] sm:$0xff] %v6815_v45  ;;  %v6849_v45 = vld [vmem:[#allocation11 + $0x88] sm:$0xff]  ;;  %1287 = vmatpush.msrb.mxu3 %v6837_v20  ;;  %1267 = vmatpush.msrb.mxu2 %v6840_v61 }
  0xec   :  { %10722 = vst [vmem:[#allocation92_spill] sm:$0xff] %v6833_v2  ;;  %1248 = vmatpush.msrb.mxu1 %v6849_v45  ;;  %1527 = vmatpush.msrb.mxu0 %v6387_v18 }
  0xed   :  { %10723 = vst [vmem:[#allocation93_spill] sm:$0xff] %v6835_v40  ;;  %v6859_v40 = vld [vmem:[#allocation11 + $0x98] sm:$0xff]  ;;  %1268 = vmatpush.msrb.mxu2 %v6857_v3 }
  0xee   :  { %10724 = vst [vmem:[#allocation94_spill] sm:$0xff] %v6840_v61  ;;  %1288 = vmatpush.msrb.mxu3 %v6859_v40  ;;  %v6887_v61 = vld [vmem:[#allocation11 + $0x28] sm:$0xff]  ;;  %1528 = vmatpush.msrb.mxu0 %v6390_v19 }
  0xef   :  { %10725 = vst [vmem:[#allocation95_spill] sm:$0xff] %v6843_v6  ;;  %v6876_v6 = vld [vmem:[#allocation11 + $0x48] sm:$0xff]  ;;  %1269 = vmatpush.msrb.mxu2 %v6869_v5  ;;  %4873 = vmatmul.msk.f32.gmra.mxu1 %vm181_vm0, %v6441_v31 }
  0xf0   :  { %10726 = vst [vmem:[#allocation96_spill] sm:$0xff] %v6845_v15  ;;  %v6862_v15 = vld [vmem:[#allocation11 + $0x68] sm:$0xff]  ;;  %4881 = vmatmul.msk.f32.gmra.mxu2 %vm181_vm0, %v6441_v31  ;;  %1529 = vmatpush.msrb.mxu0 %v6393_v8 }
  0xf1   :  { %10727 = vst [vmem:[#allocation97_spill] sm:$0xff] %v6849_v45  ;;  %1249 = vmatpush.msrb.mxu1 %v6862_v15  ;;  %v6882_v45 = vpop.f32.mrf.mxu2  ;;  %v6890_v2 = vpop.f32.mrf.mxu3  ;;  %1270 = vmatpush.msrb.mxu2 %v6880_v7 }
  0xf2   :  { %10728 = vst [vmem:[#allocation98_spill] sm:$0xff] %v6851_v62  ;;  %v6873_v62 = vld [vmem:[#allocation11 + $0x78] sm:$0xff]  ;;  %4890 = vmatmul.msk.f32.gmra.mxu3 %vm181_vm0, %v6454_v35  ;;  %1530 = vmatpush.msrb.mxu0 %v6405_v25 }
  0xf3   :  { %10729 = vst [vmem:[#allocation99_spill] sm:$0xff] %v6857_v3  ;;  %1289 = vmatpush.msrb.mxu3 %v6873_v62  ;;  %1250 = vmatpush.msrb.mxu1 %v6876_v6  ;;  %v6894_v3 = vld [vmem:[#allocation11 + $0x30] sm:$0xff] }
  0xf4   :  { %10730 = vst [vmem:[#allocation100_spill] sm:$0xff] %v6862_v15  ;;  %v6896_v15 = vpop.f32.mrf.mxu1  ;;  %1271 = vmatpush.msrb.mxu2 %v6894_v3  ;;  %1531 = vmatpush.msrb.mxu0 %v6412_v26 }
  0xf5   :  { %10731 = vst [vmem:[#allocation101_spill] sm:$0xff] %v6876_v6  ;;  %1290 = vmatpush.msrb.mxu3 %v6884_v28  ;;  %1251 = vmatpush.msrb.mxu1 %v6887_v61  ;;  %v6909_v6 = vld [vmem:[#allocation11 + $0x10] sm:$0xff] }
  0xf6   :  { %10732 = vst [vmem:[#allocation102_spill] sm:$0xff] %v6882_v45  ;;  %v6900_v45 = vpop.f32.mrf.mxu0  ;;  %1272 = vmatpush.msrb.mxu2 %v6909_v6  ;;  %1532 = vmatpush.msrb.mxu0 %v6415_v27 }
  0xf7   :  { %10733 = vst [vmem:[#allocation103_spill] sm:$0xff] %v6890_v2  ;;  %v6906_v2 = vld [vmem:[#allocation11 + $0x38] sm:$0xff]  ;;  %1252 = vmatpush.msrb.mxu1 %v6904_v11 }
  0xf8   :  { %10734 = vst [vmem:[#allocation104_spill] sm:$0xff] %v6896_v15  ;;  %1291 = vmatpush.msrb.mxu3 %v6906_v2  ;;  %4874 = vmatmul.msk.f32.gmra.mxu1 %vm181_vm0, %v6454_v35 }
  0xf9   :  { %10735 = vst [vmem:[#allocation105_spill] sm:$0xff] %v6900_v45  ;;  %v6923_v15 = vpop.f32.mrf.mxu2  ;;  %v6926_v14 = vpop.f32.mrf.mxu3  ;;  %4882 = vmatmul.msk.f32.gmra.mxu2 %vm181_vm0, %v6454_v35  ;;  %1533 = vmatpush.msrb.mxu0 %v6418_v21  ;;  %v10747_v21 = vld [vmem:[#allocation30_spill] sm:$0xff]  ;;  %v10748_v35 = vld [vmem:[#allocation29_spill] sm:$0xff] }
  0xfa   :  { %10736 = vst [vmem:[#allocation106_spill] sm:$0xff] %v6923_v15  ;;  %1292 = vmatpush.msrb.mxu3 %v6918_v13  ;;  %v10740_v15 = vmov 0.0  }
  0xfb   :  { %10737 = vst [vmem:[#allocation107_spill] sm:$0xff] %v6926_v14  ;;  %1142 = vmatmul.f32.vlgmr.msra.gmra.mxu3 %v10740_v15  ;;  %1534 = vmatpush.msrb.mxu0 %v6430_v30  ;;  %v10750_v30 = vld [vmem:[#allocation35_spill] sm:$0xff] }
  0xfc   :  { %v6929_v31 = vpop.f32.mrf.mxu1  ;;  %1428 = vmatpush.msra.mxu3 %v6464_v37 }
  0xfd   :  { %10738 = vst [vmem:[#allocation108_spill] sm:$0xff] %v6929_v31 }
  0xfe   :  { %v6933_v45 = vpop.f32.mrf.mxu0  ;;  %1429 = vmatpush.msra.mxu3 %v6474_v22  ;;  %v10752_v22 = vld [vmem:[#allocation31_spill] sm:$0xff] }
  0xff   :  { %10739 = vst [vmem:[#allocation109_spill] sm:$0xff] %v6933_v45 }
 0x100   :  { %1430 = vmatpush.msra.mxu3 %v6483_v41  ;;  %1102 = vmatmul.f32.vlgmr.msra.gmra.mxu1 %v10740_v15 }
 0x101   :  { %v6942_v16 = vpop.f32.mrf.mxu2  ;;  %v6945_v18 = vpop.f32.mrf.mxu3  ;;  %1122 = vmatmul.f32.vlgmr.msra.gmra.mxu2 %v10740_v15  ;;  %1388 = vmatpush.msra.mxu1 %v6462_v36 }
 0x102   :  { %10741 = vst [vmem:[#allocation110_spill] sm:$0xff] %v6942_v16  ;;  %1408 = vmatpush.msra.mxu2 %v6495_v52  ;;  %1431 = vmatpush.msra.mxu3 %v6493_v48  ;;  %v10755_v48 = vld [vmem:[#allocation38_spill] sm:$0xff]  ;;  %v10756_v52 = vld [vmem:[#allocation37_spill] sm:$0xff] }
 0x103   :  { %10742 = vst [vmem:[#allocation111_spill] sm:$0xff] %v6945_v18  ;;  %1293 = vmatmul.f32.vlgmr.msrb.gmra.mxu3 %v10740_v15  ;;  %1389 = vmatpush.msra.mxu1 %v6472_v39 }
 0x104   :  { %v6948_v19 = vpop.f32.mrf.mxu1  ;;  %1409 = vmatpush.msra.mxu2 %v6518_v33  ;;  %1432 = vmatpush.msra.mxu3 %v6504_v32  ;;  %v10757_v32 = vld [vmem:[#allocation39_spill] sm:$0xff] }
 0x105   :  { %10743 = vst [vmem:[#allocation112_spill] sm:$0xff] %v6948_v19  ;;  %1390 = vmatpush.msra.mxu1 %v6491_v44  ;;  %v10754_v44 = vld [vmem:[#allocation36_spill] sm:$0xff] }
 0x106   :  { %v6957_v8 = vpop.f32.mrf.mxu0  ;;  %1410 = vmatpush.msra.mxu2 %v6525_v9  ;;  %1433 = vmatpush.msra.mxu3 %v6523_v34  ;;  %v10760_v34 = vld [vmem:[#allocation41_spill] sm:$0xff] }
 0x107   :  { %1391 = vmatpush.msra.mxu1 %v6516_v29  ;;  %v10758_v29 = vld [vmem:[#allocation40_spill] sm:$0xff]  ;;  %v10761_v9 = vld [vmem:[#allocation45_spill] sm:$0xff] }
 0x108   :  { %1253 = vmatmul.f32.vlgmr.msrb.gmra.mxu1 %v10740_v15  ;;  %1411 = vmatpush.msra.mxu2 %v10747_v21  ;;  %v10769_v21 = vld [vmem:[#allocation52_spill] sm:$0xff] }
 0x109   :  { %v6961_v25 = vpop.f32.mrf.mxu2  ;;  %v6965_v26 = vpop.f32.mrf.mxu3  ;;  %1273 = vmatmul.f32.vlgmr.msrb.gmra.mxu2 %v10740_v15  ;;  %1392 = vmatpush.msra.mxu1 %v10748_v35  ;;  %v10770_v35 = vld [vmem:[#allocation58_spill] sm:$0xff] }
 0x10a   :  { %10744 = vst [vmem:[#allocation113_spill] sm:$0xff] %v6961_v25  ;;  %1434 = vmatpush.msra.mxu3 %v6535_v42  ;;  %1412 = vmatpush.msra.mxu2 %v6543_v43  ;;  %v10763_v43 = vld [vmem:[#allocation47_spill] sm:$0xff] }
 0x10b   :  { %10745 = vst [vmem:[#allocation114_spill] sm:$0xff] %v6965_v26  ;;  %1393 = vmatpush.msra.mxu1 %v10750_v30 }
 0x10c   :  { %v6969_v27 = vpop.f32.mrf.mxu1  ;;  %1435 = vmatpush.msra.mxu3 %v10752_v22  ;;  %1413 = vmatpush.msra.mxu2 %v10754_v44  ;;  %v10772_v22 = vld [vmem:[#allocation53_spill] sm:$0xff] }
 0x10d   :  { %10746 = vst [vmem:[#allocation115_spill] sm:$0xff] %v6969_v27  ;;  %1394 = vmatpush.msra.mxu1 %v10755_v48  ;;  %v10773_v44 = vld [vmem:[#allocation57_spill] sm:$0xff] }
 0x10e   :  { %v6985_v37 = vpop.f32.mrf.mxu0  ;;  %1436 = vmatpush.msra.mxu3 %v10756_v52  ;;  %1414 = vmatpush.msra.mxu2 %v10757_v32  ;;  %v10779_v52 = vld [vmem:[#allocation63_spill] sm:$0xff]  ;;  %v10780_v32 = vld [vmem:[#allocation66_spill] sm:$0xff] }
 0x10f   :  { %1395 = vmatpush.msra.mxu1 %v6583_v4  ;;  %v10765_v4 = vld [vmem:[#allocation46_spill] sm:$0xff] }
 0x110   :  { %1437 = vmatpush.msra.mxu3 %v6580_v60  ;;  %1415 = vmatpush.msra.mxu2 %v6585_v38  ;;  %v10766_v60 = vld [vmem:[#allocation48_spill] sm:$0xff] }
 0x111   :  { %v6981_v36 = vpop.f32.mrf.mxu2  ;;  %v6987_v39 = vpop.f32.mrf.mxu3  ;;  %1396 = vmatpush.msra.mxu1 %v6589_v46  ;;  %v10768_v46 = vld [vmem:[#allocation49_spill] sm:$0xff] }
 0x112   :  { %10749 = vst [vmem:[#allocation30_spill] sm:$0xff] %v6981_v36  ;;  %1438 = vmatpush.msra.mxu3 %v10758_v29  ;;  %1416 = vmatpush.msra.mxu2 %v10760_v34  ;;  %v10781_v29 = vld [vmem:[#allocation62_spill] sm:$0xff] }
 0x113   :  { %10751 = vst [vmem:[#allocation29_spill] sm:$0xff] %v6987_v39  ;;  %1397 = vmatpush.msra.mxu1 %v10761_v9  ;;  %v10784_v9 = vld [vmem:[#allocation69_spill] sm:$0xff] }
 0x114   :  { %v6990_v41 = vpop.f32.mrf.mxu1  ;;  %1439 = vmatpush.msra.mxu3 %v10763_v43  ;;  %1417 = vmatpush.msra.mxu2 %v10765_v4  ;;  %v10788_v43 = vld [vmem:[#allocation72_spill] sm:$0xff]  ;;  %v10789_v4 = vld [vmem:[#allocation74_spill] sm:$0xff] }
 0x115   :  { %10753 = vst [vmem:[#allocation35_spill] sm:$0xff] %v6990_v41  ;;  %1398 = vmatpush.msra.mxu1 %v10766_v60  ;;  %v10791_v60 = vld [vmem:[#allocation77_spill] sm:$0xff] }
 0x116   :  { %v7012_v38 = vpop.f32.mrf.mxu0  ;;  %1440 = vmatpush.msra.mxu3 %v6628_v24  ;;  %1418 = vmatpush.msra.mxu2 %v6624_v49  ;;  %v10776_v49 = vld [vmem:[#allocation59_spill] sm:$0xff] }
 0x117   :  { %10767 = vst [vmem:[#allocation37_spill] sm:$0xff] %v7012_v38  ;;  %1399 = vmatpush.msra.mxu1 %v10768_v46 }
 0x118   :  { %1441 = vmatpush.msra.mxu3 %v6642_v17  ;;  %1419 = vmatpush.msra.mxu2 %v6635_v50  ;;  %v10777_v17 = vld [vmem:[#allocation60_spill] sm:$0xff] }
 0x119   :  { %v7001_v33 = vpop.f32.mrf.mxu2  ;;  %v7005_v42 = vpop.f32.mrf.mxu3  ;;  %1400 = vmatpush.msra.mxu1 %v10769_v21  ;;  %v10793_v21 = vld [vmem:[#allocation79_spill] sm:$0xff] }
 0x11a   :  { %10759 = vst [vmem:[#allocation31_spill] sm:$0xff] %v7001_v33  ;;  %1442 = vmatpush.msra.mxu3 %v10770_v35  ;;  %1420 = vmatpush.msra.mxu2 %v10772_v22  ;;  %v10796_v22 = vld [vmem:[#allocation84_spill] sm:$0xff] }
 0x11b   :  { %10762 = vst [vmem:[#allocation36_spill] sm:$0xff] %v7005_v42  ;;  %1401 = vmatpush.msra.mxu1 %v10773_v44  ;;  %v10798_v44 = vld [vmem:[#allocation85_spill] sm:$0xff] }
 0x11c   :  { %v7008_v15 = vpop.f32.mrf.mxu1  ;;  %1443 = vmatpush.msra.mxu3 %v6679_v57  ;;  %1421 = vmatpush.msra.mxu2 %v10776_v49  ;;  %v10782_v57 = vld [vmem:[#allocation67_spill] sm:$0xff]  ;;  %v10799_v49 = vld [vmem:[#allocation90_spill] sm:$0xff] }
 0x11d   :  { %10764 = vst [vmem:[#allocation38_spill] sm:$0xff] %v7008_v15  ;;  %1402 = vmatpush.msra.mxu1 %v10777_v17  ;;  %v10800_v17 = vld [vmem:[#allocation87_spill] sm:$0xff] }
 0x11e   :  { %1579 = vmatpush.msrb.mxu3 %v6688_v55  ;;  %1422 = vmatpush.msra.mxu2 %v6682_v12  ;;  %v7035_v50 = vpop.f32.mrf.mxu0  ;;  %v10786_v12 = vld [vmem:[#allocation70_spill] sm:$0xff] }
 0x11f   :  { %1403 = vmatpush.msra.mxu1 %v6691_v63  ;;  %10778 = vst [vmem:[#allocation45_spill] sm:$0xff] %v7035_v50 }
 0x120   :  { %1580 = vmatpush.msrb.mxu3 %v10780_v32  ;;  %1423 = vmatpush.msra.mxu2 %v10781_v29  ;;  %v10804_v29 = vld [vmem:[#allocation92_spill] sm:$0xff] }
 0x121   :  { %v7021_v30 = vpop.f32.mrf.mxu2  ;;  %v7025_v48 = vpop.f32.mrf.mxu3  ;;  %1539 = vmatpush.msrb.mxu1 %v10779_v52  ;;  %v10801_v52 = vld [vmem:[#allocation89_spill] sm:$0xff] }
 0x122   :  { %10771 = vst [vmem:[#allocation39_spill] sm:$0xff] %v7021_v30  ;;  %1559 = vmatpush.msrb.mxu2 %v10782_v57  ;;  %1581 = vmatpush.msrb.mxu3 %v10784_v9  ;;  %v10805_v9 = vld [vmem:[#allocation94_spill] sm:$0xff] }
 0x123   :  { %10774 = vst [vmem:[#allocation40_spill] sm:$0xff] %v7025_v48  ;;  %1540 = vmatpush.msrb.mxu1 %v6716_v56  ;;  %v10790_v56 = vld [vmem:[#allocation75_spill] sm:$0xff] }
 0x124   :  { %v7028_v24 = vpop.f32.mrf.mxu1  ;;  %1560 = vmatpush.msrb.mxu2 %v10786_v12  ;;  %1582 = vmatpush.msrb.mxu3 %v6734_v10  ;;  %v10806_v12 = vld [vmem:[#allocation97_spill] sm:$0xff] }
 0x125   :  { %10775 = vst [vmem:[#allocation41_spill] sm:$0xff] %v7028_v24  ;;  %1541 = vmatpush.msrb.mxu1 %v6730_v53  ;;  %v10794_v53 = vld [vmem:[#allocation80_spill] sm:$0xff] }
 0x126   :  { %1561 = vmatpush.msrb.mxu2 %v6737_v47  ;;  %1583 = vmatpush.msrb.mxu3 %v10789_v4  ;;  %v7058_v46 = vpop.f32.mrf.mxu0  ;;  %v10808_v4 = vld [vmem:[#allocation100_spill] sm:$0xff] }
 0x127   :  { %1542 = vmatpush.msrb.mxu1 %v10788_v43  ;;  %10792 = vst [vmem:[#allocation49_spill] sm:$0xff] %v7058_v46  ;;  %v10807_v43 = vld [vmem:[#allocation99_spill] sm:$0xff] }
 0x128   :  { %1562 = vmatpush.msrb.mxu2 %v10790_v56  ;;  %1584 = vmatpush.msrb.mxu3 %v6765_v58  ;;  %v10797_v58 = vld [vmem:[#allocation82_spill] sm:$0xff]  ;;  %v10809_v56 = vld [vmem:[#allocation101_spill] sm:$0xff] }
 0x129   :  { %v7042_v34 = vpop.f32.mrf.mxu2  ;;  %v7045_v55 = vpop.f32.mrf.mxu3  ;;  %1543 = vmatpush.msrb.mxu1 %v10791_v60 }
 0x12a   :  { %10783 = vst [vmem:[#allocation47_spill] sm:$0xff] %v7042_v34  ;;  %1563 = vmatpush.msrb.mxu2 %v10793_v21  ;;  %1585 = vmatpush.msrb.mxu3 %v6779_v51  ;;  %v10802_v51 = vld [vmem:[#allocation91_spill] sm:$0xff] }
 0x12b   :  { %10785 = vst [vmem:[#allocation46_spill] sm:$0xff] %v7045_v55  ;;  %1544 = vmatpush.msrb.mxu1 %v10794_v53 }
 0x12c   :  { %v7049_v63 = vpop.f32.mrf.mxu1  ;;  %1564 = vmatpush.msrb.mxu2 %v6775_v59  ;;  %1586 = vmatpush.msrb.mxu3 %v10796_v22 }
 0x12d   :  { %10787 = vst [vmem:[#allocation48_spill] sm:$0xff] %v7049_v63  ;;  %1545 = vmatpush.msrb.mxu1 %v6782_v54 }
 0x12e   :  { %1565 = vmatpush.msrb.mxu2 %v10797_v58  ;;  %1587 = vmatpush.msrb.mxu3 %v10799_v49  ;;  %v7083_v59 = vpop.f32.mrf.mxu0 }
 0x12f   :  { %1546 = vmatpush.msrb.mxu1 %v10798_v44  ;;  %10803 = vst [vmem:[#allocation58_spill] sm:$0xff] %v7083_v59 }
 0x130   :  { %1566 = vmatpush.msrb.mxu2 %v10800_v17  ;;  %1588 = vmatpush.msrb.mxu3 %v6826_v23 }
 0x131   :  { %v7062_v35 = vpop.f32.mrf.mxu2  ;;  %v7065_v10 = vpop.f32.mrf.mxu3  ;;  %1547 = vmatpush.msrb.mxu1 %v10801_v52 }
 0x132   :  { %10795 = vst [vmem:[#allocation52_spill] sm:$0xff] %v7062_v35  ;;  %1567 = vmatpush.msrb.mxu2 %v10802_v51  ;;  %1589 = vmatpush.msrb.mxu3 %v6837_v20 }
 0x133   :  { %1548 = vmatpush.msrb.mxu1 %v6822_v0 }
 0x134   :  { %v7069_v47 = vpop.f32.mrf.mxu1  ;;  %1568 = vmatpush.msrb.mxu2 %v6829_v1  ;;  %1590 = vmatpush.msrb.mxu3 %v6859_v40 }
 0x135   :  { %1549 = vmatpush.msrb.mxu1 %v10804_v29 }
 0x136   :  { %1569 = vmatpush.msrb.mxu2 %v10805_v9  ;;  %1591 = vmatpush.msrb.mxu3 %v6873_v62  ;;  %v7110_v22 = vpop.f32.mrf.mxu0 }
 0x137   :  { %1550 = vmatpush.msrb.mxu1 %v10806_v12  ;;  %10812 = vst [vmem:[#allocation59_spill] sm:$0xff] %v7110_v22 }
 0x138   :  { %1570 = vmatpush.msrb.mxu2 %v10807_v43  ;;  %1592 = vmatpush.msrb.mxu3 %v6884_v28 }
 0x139   :  { %v7080_v54 = vpop.f32.mrf.mxu2  ;;  %v7085_v32 = vpop.f32.mrf.mxu3  ;;  %1551 = vmatpush.msrb.mxu1 %v10808_v4 }
 0x13a   :  { %1571 = vmatpush.msrb.mxu2 %v6869_v5  ;;  %1593 = vmatpush.msrb.mxu3 %v6906_v2 }
 0x13b   :  { %1552 = vmatpush.msrb.mxu1 %v10809_v56 }
 0x13c   :  { %v7089_v57 = vpop.f32.mrf.mxu1  ;;  %1572 = vmatpush.msrb.mxu2 %v6880_v7  ;;  %1594 = vmatpush.msrb.mxu3 %v6918_v13 }
 0x13d   :  { %1553 = vmatpush.msrb.mxu1 %v6887_v61 }
 0x13e   :  { %1573 = vmatpush.msrb.mxu2 %v6894_v3  ;;  %v7121_v17 = vpop.f32.mrf.mxu0 }
 0x13f   :  { %1554 = vmatpush.msrb.mxu1 %v6904_v11  ;;  %10816 = vst [vmem:[#allocation62_spill] sm:$0xff] %v7121_v17 }
 0x140   :  { %1574 = vmatpush.msrb.mxu2 %v6909_v6 }
 0x141   :  { %v7100_v60 = vpop.f32.mrf.mxu2  ;;  %v7103_v21 = vpop.f32.mrf.mxu3 }
 0x142   :  { %10810 = vst [vmem:[#allocation53_spill] sm:$0xff] %v7103_v21 }
 0x144   :  { %v7107_v53 = vpop.f32.mrf.mxu1 }
 0x145   :  { %10811 = vst [vmem:[#allocation57_spill] sm:$0xff] %v7107_v53  ;;  %v10832_v53 = vld [vmem:[#allocation23_spill] sm:$0xff] }
 0x146   :  { %v7129_v22 = vpop.f32.mrf.mxu0 }
 0x147   :  { %10820 = vst [vmem:[#allocation72_spill] sm:$0xff] %v7129_v22 }
 0x149   :  { %v7115_v58 = vpop.f32.mrf.mxu2  ;;  %v7117_v44 = vpop.f32.mrf.mxu3 }
 0x14a   :  { %10813 = vst [vmem:[#allocation60_spill] sm:$0xff] %v7115_v58 }
 0x14b   :  { %10814 = vst [vmem:[#allocation63_spill] sm:$0xff] %v7117_v44 }
 0x14c   :  { %v7119_v49 = vpop.f32.mrf.mxu1 }
 0x14d   :  { %10815 = vst [vmem:[#allocation66_spill] sm:$0xff] %v7119_v49 }
 0x14e   :  { %v7139_v44 = vpop.f32.mrf.mxu0 }
 0x14f   :  { %10825 = vst [vmem:[#allocation80_spill] sm:$0xff] %v7139_v44 }
 0x151   :  { %v7123_v52 = vpop.f32.mrf.mxu2  ;;  %v7125_v51 = vpop.f32.mrf.mxu3 }
 0x152   :  { %10817 = vst [vmem:[#allocation67_spill] sm:$0xff] %v7123_v52 }
 0x153   :  { %10818 = vst [vmem:[#allocation69_spill] sm:$0xff] %v7125_v51 }
 0x154   :  { %v7127_v59 = vpop.f32.mrf.mxu1 }
 0x155   :  { %10819 = vst [vmem:[#allocation70_spill] sm:$0xff] %v7127_v59 }
 0x156   :  { %v1083_v22 = vpop.f32.mrf.mxu0 }
 0x159   :  { %v7131_v46 = vpop.f32.mrf.mxu2  ;;  %v7133_v50 = vpop.f32.mrf.mxu3 }
 0x15a   :  { %10821 = vst [vmem:[#allocation74_spill] sm:$0xff] %v7131_v46  ;;  %v10831_v46 = vld [vmem:[#allocation25_spill] sm:$0xff] }
 0x15b   :  { %10822 = vst [vmem:[#allocation75_spill] sm:$0xff] %v7133_v50  ;;  %v224_v50 = vadd.f32 %v10832_v53, %v10831_v46 }
 0x15c   :  { %v7135_v21 = vpop.f32.mrf.mxu1 }
 0x15d   :  { %10823 = vst [vmem:[#allocation77_spill] sm:$0xff] %v7135_v21  ;;  %v1146_v44 = vadd.f32 %v1083_v22, %v224_v50 }
 0x15e   :  { %v1234_v53 = vpop.f32.mrf.mxu0 }
 0x161   :  { %v7137_v58 = vpop.f32.mrf.mxu2  ;;  %v7141_v49 = vpop.f32.mrf.mxu3 }
 0x162   :  { %10824 = vst [vmem:[#allocation79_spill] sm:$0xff] %v7137_v58  ;;  %v7156_v58 = vld [vmem:[%s10206_s7] sm:$0xf] }
 0x163   :  { %10826 = vst [vmem:[#allocation84_spill] sm:$0xff] %v7141_v49  ;;  %v7161_v49 = vperm.slane %v7156_v58, 0  ;;  %v7217_v41 = vperm.slane %v7156_v58, 2 }
 0x164   :  { %v7143_v17 = vpop.f32.mrf.mxu1 }
 0x165   :  { %10827 = vst [vmem:[#allocation82_spill] sm:$0xff] %v7143_v17 }
 0x166   :  { %10834 = vst [vmem:[#allocation91_spill] sm:$0xff] %v7161_v49 }
 0x169   :  { %v7145_v52 = vpop.f32.mrf.mxu2  ;;  %v7147_v51 = vpop.f32.mrf.mxu3 }
 0x16a   :  { %10828 = vst [vmem:[#allocation85_spill] sm:$0xff] %v7145_v52 }
 0x16b   :  { %10829 = vst [vmem:[#allocation90_spill] sm:$0xff] %v7147_v51  ;;  %v4891_v51 = vmul.f32 -1.442695, %v1146_v44  ;;  %v10842_v44 = vld [vmem:[#allocation50_spill] sm:$0xff] }
 0x16c   :  { %v7149_v59 = vpop.f32.mrf.mxu1 }
 0x16d   :  { %10830 = vst [vmem:[#allocation87_spill] sm:$0xff] %v7149_v59  ;;  %v467_v59 = vadd.f32 %v6985_v37, %v7161_v49  ;;  %4984 = vpow2.f32 %v4891_v51  ;;  %v10844_v37 = vld [vmem:[#allocation44_spill] sm:$0xff] }
 0x16e   :  { %10850 = vst [vmem:[#allocation44_spill] sm:$0xff] %v7217_v41 }
 0x16f   :  { %v1297_v38 = vadd.f32 %v1234_v53, %v467_v59 }
 0x171   :  { %v7158_v21 = vpop.f32.mrf.mxu3  ;;  %v7165_v17 = vpop.f32.mrf.mxu2  ;;  %v4894_v50 = vmul.f32 -1.442695, %v1297_v38 }
 0x172   :  { %10833 = vst [vmem:[#allocation89_spill] sm:$0xff] %v7158_v21  ;;  %v10839_v21 = vld [vmem:[#allocation24_spill] sm:$0xff] }
 0x173   :  { %10836 = vst [vmem:[#allocation94_spill] sm:$0xff] %v7165_v17  ;;  %v4985_v22 = vpop.eup %4984  ;;  %v7174_v19 = vperm.slane %v10839_v21, 1  ;;  %4986 = vpow2.f32 %v4894_v50 }
 0x174   :  { %v7163_v52 = vpop.f32.mrf.mxu1  ;;  %v7180_v14 = vadd.f32 1.0, %v4985_v22 }
 0x175   :  { %10835 = vst [vmem:[#allocation92_spill] sm:$0xff] %v7163_v52  ;;  %v10843_v52 = vld [vmem:[#allocation43_spill] sm:$0xff]  ;;  %v265_v59 = vadd.f32 %v10844_v37, %v7174_v19 }
 0x176   :  { %10840 = vst [vmem:[#allocation100_spill] sm:$0xff] %v7174_v19  ;;  %v347_v17 = vadd.f32 %v10843_v52, %v10842_v44  ;;  %4988 = vrcp.f32 %v7180_v14  ;;  %v7189_v52 = vperm.slane %v7156_v58, 1  ;;  %vm1159_vm1 = vweird.f32 %v7180_v14  ;;  %v7388_v44 = vld [vmem:[#allocation6 + $0x110] sm:$0xff] }
 0x177   :  { %v1165_v30 = vand.u32 2147483648, %v7180_v14  ;;  %10864 = vst [vmem:[#allocation120_spill] sm:$0xff] %v7388_v44 }
 0x178   :  { %10846 = vst [vmem:[#allocation24_spill] sm:$0xff] %v7189_v52 }
 0x179   :  { %v7169_v25 = vpop.f32.mrf.mxu3  ;;  %v7176_v16 = vpop.f32.mrf.mxu2  ;;  %v1166_v35 = vor.u32 1.1754944e-38, %v1165_v30 }
 0x17a   :  { %10837 = vst [vmem:[#allocation97_spill] sm:$0xff] %v7169_v25  ;;  %v4987_v31 = vpop.eup %4986 }
 0x17b   :  { %10841 = vst [vmem:[#allocation101_spill] sm:$0xff] %v7176_v16  ;;  %v7186_v16 = vperm.slane %v7156_v58, 3  ;;  %v7195_v22 = vadd.f32 1.0, %v4987_v31 }
 0x17c   :  { %v7171_v18 = vpop.f32.mrf.mxu1  ;;  %v7199_v37 = vpop.eup %4988 }
 0x17d   :  { %10838 = vst [vmem:[#allocation99_spill] sm:$0xff] %v7171_v18  ;;  %vm1160_vm2 = vweird.f32 %v7199_v37  ;;  %vm1310_vm9 = vweird.f32 %v7195_v22 }
 0x17e   :  { %10845 = vst [vmem:[#allocation23_spill] sm:$0xff] %v7186_v16  ;;  %vm7236_vm4 = vmor %vm1159_vm1, %vm1160_vm2 }
 0x181   :  { %v1143_v51 = vpop.f32.mrf.mxu3  ;;  %v7191_v50 = vpop.f32.mrf.mxu2 }
 0x182   :  { %v1149_v53 = vadd.f32 %v1143_v51, %v347_v17  ;;  %10847 = vst [vmem:[#allocation43_spill] sm:$0xff] %v7191_v50  ;;  %v590_v17 = vadd.f32 %v7085_v32, %v7186_v16 }
 0x184   :  { %v1103_v25 = vpop.f32.mrf.mxu1  ;;  %v4893_v38 = vmul.f32 -1.442695, %v1149_v53 }
 0x185   :  { %v1147_v18 = vadd.f32 %v1103_v25, %v265_v59  ;;  %v508_v25 = vadd.f32 %v7089_v57, %v7189_v52 }
 0x186   :  { %4990 = vpow2.f32 %v4893_v38 }
 0x187   :  { %v4892_v21 = vmul.f32 -1.442695, %v1147_v18 }
 0x189   :  { %4992 = vpow2.f32 %v4892_v21  ;;  %v1294_v18 = vpop.f32.mrf.mxu3  ;;  %v1155_v21 = vmul.f32 %v7199_v37, %v7180_v14 }
 0x18a   :  { %v1300_v59 = vadd.f32 %v1294_v18, %v590_v17  ;;  %4994 = vrcp.f32 %v7195_v22  ;;  %v1123_v17 = vpop.f32.mrf.mxu2  ;;  %v10849_v18 = vld [vmem:[#allocation51_spill] sm:$0xff] }
 0x18b   :  { %v1156_v57 = vsub.f32 1.0, %v1155_v21 }
 0x18c   :  { %v1254_v51 = vpop.f32.mrf.mxu1  ;;  %v4991_v38 = vpop.eup %4990  ;;  %v4896_v36 = vmul.f32 -1.442695, %v1300_v59 }
 0x18d   :  { %v1298_v53 = vadd.f32 %v1254_v51, %v508_v25  ;;  %v7204_v32 = vadd.f32 1.0, %v4991_v38  ;;  %v10848_v25 = vld [vmem:[#allocation61_spill] sm:$0xff]  ;;  %v1157_v38 = vmul.f32 %v7199_v37, %v1156_v57 }
 0x18e   :  { %4996 = vpow2.f32 %v4896_v36  ;;  %v306_v59 = vadd.f32 %v10849_v18, %v10848_v25 }
 0x18f   :  { %v4993_v26 = vpop.eup %4992  ;;  %v4895_v31 = vmul.f32 -1.442695, %v1298_v53  ;;  %4998 = vrcp.f32 %v7204_v32  ;;  %vm1198_vm14 = vweird.f32 %v7204_v32 }
 0x190   :  { %v1172_v50 = vadd.f32 1.0, %v4993_v26  ;;  %v7209_v51 = vpop.eup %4994  ;;  %v1148_v33 = vadd.f32 %v1123_v17, %v306_v59  ;;  %v1163_v59 = vand.u32 2147483647, %v7180_v14 }
 0x191   :  { %v1306_v21 = vmul.f32 %v7209_v51, %v7195_v22  ;;  %vm1311_vm10 = vweird.f32 %v7209_v51 }
 0x192   :  { %5000 = vrcp.f32 %v1172_v50  ;;  %v1184_v58 = vand.u32 2147483648, %v1172_v50  ;;  %vm1178_vm5 = vweird.f32 %v1172_v50  ;;  %vm1164_vm7 = vcmp.eq.f32.partialorder %v1163_v59, 8.507059e+37  ;;  %vm7265_vm13 = vmor %vm1310_vm9, %vm1311_vm10 }
 0x193   :  { %5002 = vpow2.f32 %v4895_v31  ;;  %v1307_v42 = vsub.f32 1.0, %v1306_v21 }
 0x194   :  { %v4997_v27 = vpop.eup %4996  ;;  %5004 = vtanh.f32 %v1148_v33  ;;  %v1182_v33 = vand.u32 2147483647, %v1172_v50  ;;  %v1185_v24 = vor.u32 1.1754944e-38, %v1184_v58  ;;  %v1204_v58 = vand.u32 2147483648, %v7204_v32 }
 0x195   :  { %v7211_v39 = vpop.eup %4998  ;;  %v7214_v53 = vadd.f32 1.0, %v4997_v27  ;;  %v1158_v27 = vadd.f32 %v7199_v37, %v1157_v38  ;;  %v1308_v14 = vmul.f32 %v7209_v51, %v1307_v42 }
 0x196   :  { %v1194_v18 = vmul.f32 %v7211_v39, %v7204_v32  ;;  %vm1183_vm8 = vcmp.eq.f32.partialorder %v1182_v33, 8.507059e+37  ;;  %vm1199_vm11 = vweird.f32 %v7211_v39 }
 0x197   :  { %5006 = vrcp.f32 %v7214_v53  ;;  %v1162_v48 = vsel %vm7236_vm4, %v7199_v37, %v1158_v27  ;;  %v1314_v27 = vand.u32 2147483647, %v7195_v22  ;;  %vm7275_vm0 = vmor %vm1198_vm14, %vm1199_vm11 }
 0x198   :  { %v5001_v26 = vpop.eup %5000  ;;  %v1195_v38 = vsub.f32 1.0, %v1194_v18  ;;  %v1167_v63 = vsel %vm1164_vm7, %v1166_v35, %v1162_v48 }
 0x199   :  { %v5003_v36 = vpop.eup %5002  ;;  %v1174_v31 = vmul.f32 %v5001_v26, %v1172_v50  ;;  %vm1179_vm3 = vweird.f32 %v5001_v26  ;;  %vm1315_vm2 = vcmp.eq.f32.partialorder %v1314_v27, 8.507059e+37  ;;  %v1353_v27 = vand.u32 2147483647, %v7214_v53 }
 0x19a   :  { %v7224_v17 = vadd.f32 1.0, %v5003_v36  ;;  %v1274_v36 = vpop.f32.mrf.mxu2  ;;  %vm1180_vm6 = vmor %vm1178_vm5, %vm1179_vm3  ;;  %v1196_v45 = vmul.f32 %v7211_v39, %v1195_v38 }
 0x19b   :  { %v1175_v57 = vsub.f32 1.0, %v1174_v31  ;;  %v549_v31 = vadd.f32 %v7100_v60, %v7217_v41 }
 0x19c   :  { %5008 = vrcp.f32 %v7224_v17  ;;  %v1197_v35 = vadd.f32 %v7211_v39, %v1196_v45  ;;  %v1202_v45 = vand.u32 2147483647, %v7204_v32  ;;  %vm1329_vm15 = vweird.f32 %v7224_v17 }
 0x19d   :  { %v1176_v15 = vmul.f32 %v5001_v26, %v1175_v57  ;;  %v5005_v57 = vpop.eup %5004  ;;  %v1299_v25 = vadd.f32 %v1274_v36, %v549_v31  ;;  %v7313_v36 = vld [vmem:[#allocation6 + $0x1c8] sm:$0xff] }
 0x19e   :  { %v7243_v55 = vpop.eup %5006  ;;  %v1209_v37 = vmul.f32 %v5005_v57, %v1167_v63  ;;  %v1335_v63 = vand.u32 2147483648, %v7224_v17  ;;  %vm1203_vm4 = vcmp.eq.f32.partialorder %v1202_v45, 8.507059e+37 }
 0x19f   :  { %v1177_v21 = vadd.f32 %v5001_v26, %v1176_v15  ;;  %v1345_v30 = vmul.f32 %v7243_v55, %v7214_v53  ;;  %5010 = vtanh.f32 %v1299_v25  ;;  %v1333_v25 = vand.u32 2147483647, %v7224_v17 }
 0x1a0   :  { %v1336_v57 = vor.u32 1.1754944e-38, %v1335_v63  ;;  %vm1350_vm5 = vweird.f32 %v7243_v55  ;;  %v7291_v63 = vld [vmem:[#allocation6 + $0x1e0] sm:$0xff] }
 0x1a1   :  { %v1181_v60 = vsel %vm1180_vm6, %v5001_v26, %v1177_v21  ;;  %v1316_v26 = vand.u32 2147483648, %v7195_v22  ;;  %v1346_v33 = vsub.f32 1.0, %v1345_v30  ;;  %vm1334_vm3 = vcmp.eq.f32.partialorder %v1333_v25, 8.507059e+37  ;;  %v7304_v25 = vld [vmem:[#allocation6 + $0x1f8] sm:$0xff]  ;;  %v7322_v21 = vld [vmem:[#allocation6 + $0x1a0] sm:$0xff] }
 0x1a2   :  { %v5009_v18 = vpop.eup %5008  ;;  %v1186_v50 = vsel %vm1183_vm8, %v1185_v24, %v1181_v60  ;;  %v1309_v24 = vadd.f32 %v7209_v51, %v1308_v14  ;;  %v1201_v14 = vsel %vm7275_vm0, %v7211_v39, %v1197_v35  ;;  %vm1349_vm6 = vweird.f32 %v7214_v53  ;;  %v7294_v35 = vld [vmem:[#allocation6 + $0x1e8] sm:$0xff] }
 0x1a3   :  { %v1208_v34 = vmul.f32 0.0, %v1186_v50  ;;  %v1325_v15 = vmul.f32 %v5009_v18, %v7224_v17  ;;  %vm1330_vm12 = vweird.f32 %v5009_v18  ;;  %v1317_v60 = vor.u32 1.1754944e-38, %v1316_v26  ;;  %vm7297_vm7 = vmor %vm1349_vm6, %vm1350_vm5 }
 0x1a4   :  { %v1313_v31 = vsel %vm7265_vm13, %v7209_v51, %v1309_v24  ;;  %vm1331_vm1 = vmor %vm1329_vm15, %vm1330_vm12  ;;  %v1205_v17 = vor.u32 1.1754944e-38, %v1204_v58  ;;  %v1347_v51 = vmul.f32 %v7243_v55, %v1346_v33  ;;  %v7310_v33 = vld [vmem:[#allocation6 + $0x1c0] sm:$0xff]  ;;  %vm1354_vm8 = vcmp.eq.f32.partialorder %v1353_v27, 8.507059e+37  ;;  %v7367_v27 = vld [vmem:[#allocation6 + $0x158] sm:$0xff] }
 0x1a5   :  { %v7253_v42 = vadd.f32 %v1209_v37, %v1208_v34  ;;  %v1326_v48 = vsub.f32 1.0, %v1325_v15  ;;  %v5011_v22 = vpop.eup %5010  ;;  %v1318_v50 = vsel %vm1315_vm2, %v1317_v60, %v1313_v31  ;;  %v7316_v31 = vld [vmem:[#allocation6 + $0x1d0] sm:$0xff]  ;;  %v7370_v58 = vld [vmem:[#allocation6 + $0x120] sm:$0xff] }
 0x1a6   :  { %v1360_v30 = vmul.f32 %v5011_v22, %v1318_v50  ;;  %v1348_v39 = vadd.f32 %v7243_v55, %v1347_v51  ;;  %v7328_v60 = vld [vmem:[#allocation6 + $0x1b0] sm:$0xff]  ;;  %v7337_v50 = vld [vmem:[#allocation6 + $0x188] sm:$0xff]  ;;  %v7343_v51 = vld [vmem:[#allocation6 + $0x198] sm:$0xff] }
 0x1a7   :  { %5012 = vtanh.f32 %v7253_v42  ;;  %v1327_v59 = vmul.f32 %v5009_v18, %v1326_v48  ;;  %v1206_v48 = vsel %vm1203_vm4, %v1205_v17, %v1201_v14  ;;  %v7331_v14 = vld [vmem:[#allocation6 + $0x1b8] sm:$0xff]  ;;  %v7334_v17 = vld [vmem:[#allocation6 + $0x180] sm:$0xff] }
 0x1a9   :  { %v1328_v38 = vadd.f32 %v5009_v18, %v1327_v59  ;;  %v7301_v59 = vld [vmem:[#allocation6 + $0x1f0] sm:$0xff] }
 0x1ab   :  { %v1332_v32 = vsel %vm1331_vm1, %v5009_v18, %v1328_v38  ;;  %v1355_v18 = vand.u32 2147483648, %v7214_v53  ;;  %v1352_v53 = vsel %vm7297_vm7, %v7243_v55, %v1348_v39  ;;  %v7319_v38 = vld [vmem:[#allocation6 + $0x1d8] sm:$0xff]  ;;  %v7325_v55 = vld [vmem:[#allocation6 + $0x1a8] sm:$0xff] }
 0x1ac   :  { %v1337_v34 = vsel %vm1334_vm3, %v1336_v57, %v1332_v32  ;;  %v7361_v39 = vld [vmem:[#allocation6 + $0x148] sm:$0xff] }
 0x1ad   :  { %v5013_v37 = vpop.eup %5012  ;;  %v1359_v15 = vmul.f32 0.0, %v1337_v34  ;;  %v1356_v45 = vor.u32 1.1754944e-38, %v1355_v18  ;;  %v7340_v34 = vld [vmem:[#allocation6 + $0x190] sm:$0xff] }
 0x1ae   :  { %v1212_v24 = vmul.f32 %v5013_v37, %v1206_v48  ;;  %v7346_v37 = vld [vmem:[#allocation6 + $0x160] sm:$0xff]  ;;  %v7355_v48 = vld [vmem:[#allocation6 + $0x178] sm:$0xff]  ;;  %v7364_v18 = vld [vmem:[#allocation6 + $0x150] sm:$0xff] }
 0x1af   :  { %v7283_v26 = vadd.f32 %v1360_v30, %v1359_v15  ;;  %v1357_v57 = vsel %vm1354_vm8, %v1356_v45, %v1352_v53  ;;  %v7349_v15 = vld [vmem:[#allocation6 + $0x168] sm:$0xff]  ;;  %v7352_v30 = vld [vmem:[#allocation6 + $0x170] sm:$0xff] }
 0x1b0   :  { %1384 = vmatmul.f32.vlgmr.msra.gmra.mxu0 %v1212_v24  ;;  %1404 = vmatmul.f32.vlgmr.msra.gmra.mxu1 %v1212_v24  ;;  %v7373_v53 = vld [vmem:[#allocation6 + $0x128] sm:$0xff]  ;;  %v7376_v45 = vld [vmem:[#allocation6 + $0x130] sm:$0xff] }
 0x1b1   :  { %5014 = vtanh.f32 %v7283_v26  ;;  %1424 = vmatmul.f32.vlgmr.msra.gmra.mxu2 %v1212_v24  ;;  %1444 = vmatmul.f32.vlgmr.msra.gmra.mxu3 %v1212_v24  ;;  %v7358_v24 = vld [vmem:[#allocation6 + $0x140] sm:$0xff]  ;;  %10859 = vst [vmem:[#allocation51_spill] sm:$0xff] %v7373_v53 }
 0x1b2   :  { %1670 = vmatpush.msra.mxu0 %v7291_v63  ;;  %1690 = vmatpush.msra.mxu1 %v7294_v35  ;;  %10860 = vst [vmem:[#allocation116_spill] sm:$0xff] %v7376_v45 }
 0x1b3   :  { %1710 = vmatpush.msra.mxu2 %v7301_v59  ;;  %1730 = vmatpush.msra.mxu3 %v7304_v25 }
 0x1b4   :  { %1671 = vmatpush.msra.mxu0 %v7310_v33  ;;  %1691 = vmatpush.msra.mxu1 %v7313_v36 }
 0x1b5   :  { %1711 = vmatpush.msra.mxu2 %v7316_v31  ;;  %1731 = vmatpush.msra.mxu3 %v7319_v38 }
 0x1b6   :  { %1672 = vmatpush.msra.mxu0 %v7322_v21  ;;  %1692 = vmatpush.msra.mxu1 %v7325_v55 }
 0x1b7   :  { %v5015_v22 = vpop.eup %5014  ;;  %1712 = vmatpush.msra.mxu2 %v7328_v60  ;;  %1732 = vmatpush.msra.mxu3 %v7331_v14 }
 0x1b8   :  { %v1363_v32 = vmul.f32 %v5015_v22, %v1357_v57  ;;  %1673 = vmatpush.msra.mxu0 %v7334_v17  ;;  %1693 = vmatpush.msra.mxu1 %v7337_v50  ;;  %v7379_v22 = vld [vmem:[#allocation6 + $0x138] sm:$0xff]  ;;  %v7382_v57 = vld [vmem:[#allocation6 + $0x100] sm:$0xff] }
 0x1b9   :  { %1713 = vmatpush.msra.mxu2 %v7340_v34  ;;  %1733 = vmatpush.msra.mxu3 %v7343_v51  ;;  %10861 = vst [vmem:[#allocation117_spill] sm:$0xff] %v7379_v22 }
 0x1ba   :  { %1535 = vmatmul.f32.vlgmr.msrb.gmra.mxu0 %v1363_v32  ;;  %1555 = vmatmul.f32.vlgmr.msrb.gmra.mxu1 %v1363_v32  ;;  %10862 = vst [vmem:[#allocation118_spill] sm:$0xff] %v7382_v57 }
 0x1bb   :  { %1575 = vmatmul.f32.vlgmr.msrb.gmra.mxu2 %v1363_v32  ;;  %1595 = vmatmul.f32.vlgmr.msrb.gmra.mxu3 %v1363_v32  ;;  %v7385_v32 = vld [vmem:[#allocation6 + $0x108] sm:$0xff] }
 0x1bc   :  { %1674 = vmatpush.msra.mxu0 %v7346_v37  ;;  %1694 = vmatpush.msra.mxu1 %v7349_v15  ;;  %10863 = vst [vmem:[#allocation119_spill] sm:$0xff] %v7385_v32 }
 0x1bd   :  { %1714 = vmatpush.msra.mxu2 %v7352_v30  ;;  %1734 = vmatpush.msra.mxu3 %v7355_v48 }
 0x1be   :  { %1675 = vmatpush.msra.mxu0 %v7358_v24  ;;  %1695 = vmatpush.msra.mxu1 %v7361_v39 }
 0x1bf   :  { %1715 = vmatpush.msra.mxu2 %v7364_v18  ;;  %1735 = vmatpush.msra.mxu3 %v7367_v27 }
 0x1c0   :  { %1676 = vmatpush.msra.mxu0 %v7370_v58  ;;  %1696 = vmatpush.msra.mxu1 %v7373_v53  ;;  %v7391_v53 = vld [vmem:[#allocation6 + $0x118] sm:$0xff] }
 0x1c1   :  { %1716 = vmatpush.msra.mxu2 %v7376_v45  ;;  %1736 = vmatpush.msra.mxu3 %v7379_v22  ;;  %10865 = vst [vmem:[#allocation121_spill] sm:$0xff] %v7391_v53  ;;  %v7394_v45 = vld [vmem:[#allocation6 + $0xe0] sm:$0xff]  ;;  %v7397_v22 = vld [vmem:[#allocation6 + $0xe8] sm:$0xff] }
 0x1c2   :  { %1677 = vmatpush.msra.mxu0 %v7382_v57  ;;  %1697 = vmatpush.msra.mxu1 %v7385_v32  ;;  %10866 = vst [vmem:[#allocation122_spill] sm:$0xff] %v7394_v45  ;;  %v7400_v57 = vld [vmem:[#allocation6 + $0xf0] sm:$0xff]  ;;  %v7403_v32 = vld [vmem:[#allocation6 + $0xf8] sm:$0xff] }
 0x1c3   :  { %1717 = vmatpush.msra.mxu2 %v7388_v44  ;;  %1737 = vmatpush.msra.mxu3 %v7391_v53  ;;  %10867 = vst [vmem:[#allocation123_spill] sm:$0xff] %v7397_v22  ;;  %v7406_v44 = vld [vmem:[#allocation6 + $0xc0] sm:$0xff]  ;;  %v7409_v53 = vld [vmem:[#allocation6 + $0xc8] sm:$0xff] }
 0x1c4   :  { %1678 = vmatpush.msra.mxu0 %v7394_v45  ;;  %1698 = vmatpush.msra.mxu1 %v7397_v22  ;;  %10868 = vst [vmem:[#allocation124_spill] sm:$0xff] %v7400_v57  ;;  %v7412_v45 = vld [vmem:[#allocation6 + $0xd0] sm:$0xff]  ;;  %v7415_v22 = vld [vmem:[#allocation6 + $0xd8] sm:$0xff] }
 0x1c5   :  { %1718 = vmatpush.msra.mxu2 %v7400_v57  ;;  %10869 = vst [vmem:[#allocation125_spill] sm:$0xff] %v7403_v32  ;;  %1738 = vmatpush.msra.mxu3 %v7403_v32  ;;  %v7418_v57 = vld [vmem:[#allocation6 + $0xa0] sm:$0xff]  ;;  %v7421_v32 = vld [vmem:[#allocation6 + $0xa8] sm:$0xff] }
 0x1c6   :  { %10870 = vst [vmem:[#allocation126_spill] sm:$0xff] %v7406_v44  ;;  %1679 = vmatpush.msra.mxu0 %v7406_v44  ;;  %1699 = vmatpush.msra.mxu1 %v7409_v53  ;;  %v7424_v44 = vld [vmem:[#allocation6 + $0xb0] sm:$0xff] }
 0x1c7   :  { %10871 = vst [vmem:[#allocation127_spill] sm:$0xff] %v7409_v53  ;;  %1719 = vmatpush.msra.mxu2 %v7412_v45  ;;  %1739 = vmatpush.msra.mxu3 %v7415_v22  ;;  %v7427_v53 = vld [vmem:[#allocation6 + $0xb8] sm:$0xff] }
 0x1c8   :  { %10872 = vst [vmem:[#allocation128_spill] sm:$0xff] %v7412_v45  ;;  %1680 = vmatpush.msra.mxu0 %v7418_v57  ;;  %1700 = vmatpush.msra.mxu1 %v7421_v32  ;;  %v7430_v45 = vld [vmem:[#allocation6 + $0x80] sm:$0xff] }
 0x1c9   :  { %10873 = vst [vmem:[#allocation129_spill] sm:$0xff] %v7415_v22  ;;  %1720 = vmatpush.msra.mxu2 %v7424_v44  ;;  %1740 = vmatpush.msra.mxu3 %v7427_v53  ;;  %v7433_v22 = vld [vmem:[#allocation6 + $0x88] sm:$0xff] }
 0x1ca   :  { %10874 = vst [vmem:[#allocation130_spill] sm:$0xff] %v7418_v57  ;;  %1681 = vmatpush.msra.mxu0 %v7430_v45  ;;  %1701 = vmatpush.msra.mxu1 %v7433_v22  ;;  %v7436_v57 = vld [vmem:[#allocation6 + $0x90] sm:$0xff] }
 0x1cb   :  { %10875 = vst [vmem:[#allocation131_spill] sm:$0xff] %v7421_v32  ;;  %1721 = vmatpush.msra.mxu2 %v7436_v57  ;;  %v7439_v32 = vld [vmem:[#allocation6 + $0x98] sm:$0xff] }
 0x1cc   :  { %10876 = vst [vmem:[#allocation132_spill] sm:$0xff] %v7424_v44  ;;  %1741 = vmatpush.msra.mxu3 %v7439_v32  ;;  %v7442_v44 = vld [vmem:[#allocation6 + $0x60] sm:$0xff] }
 0x1cd   :  { %10877 = vst [vmem:[#allocation133_spill] sm:$0xff] %v7427_v53  ;;  %1682 = vmatpush.msra.mxu0 %v7442_v44  ;;  %v7445_v53 = vld [vmem:[#allocation6 + $0x68] sm:$0xff] }
 0x1ce   :  { %10878 = vst [vmem:[#allocation134_spill] sm:$0xff] %v7430_v45  ;;  %1702 = vmatpush.msra.mxu1 %v7445_v53  ;;  %v7448_v45 = vld [vmem:[#allocation6 + $0x70] sm:$0xff] }
 0x1cf   :  { %10879 = vst [vmem:[#allocation135_spill] sm:$0xff] %v7433_v22  ;;  %1722 = vmatpush.msra.mxu2 %v7448_v45  ;;  %v7451_v22 = vld [vmem:[#allocation6 + $0x78] sm:$0xff] }
 0x1d0   :  { %10880 = vst [vmem:[#allocation136_spill] sm:$0xff] %v7436_v57  ;;  %1742 = vmatpush.msra.mxu3 %v7451_v22  ;;  %v7454_v57 = vld [vmem:[#allocation6 + $0x40] sm:$0xff] }
 0x1d1   :  { %10881 = vst [vmem:[#allocation137_spill] sm:$0xff] %v7439_v32  ;;  %1683 = vmatpush.msra.mxu0 %v7454_v57  ;;  %v7457_v32 = vld [vmem:[#allocation6 + $0x48] sm:$0xff] }
 0x1d2   :  { %10882 = vst [vmem:[#allocation138_spill] sm:$0xff] %v7442_v44  ;;  %1703 = vmatpush.msra.mxu1 %v7457_v32  ;;  %v7460_v44 = vld [vmem:[#allocation6 + $0x50] sm:$0xff] }
 0x1d3   :  { %10883 = vst [vmem:[#allocation139_spill] sm:$0xff] %v7445_v53  ;;  %1723 = vmatpush.msra.mxu2 %v7460_v44  ;;  %v7463_v53 = vld [vmem:[#allocation6 + $0x58] sm:$0xff] }
 0x1d4   :  { %10884 = vst [vmem:[#allocation140_spill] sm:$0xff] %v7448_v45  ;;  %1743 = vmatpush.msra.mxu3 %v7463_v53  ;;  %v7466_v45 = vld [vmem:[#allocation6 + $0x20] sm:$0xff] }
 0x1d5   :  { %10885 = vst [vmem:[#allocation141_spill] sm:$0xff] %v7451_v22  ;;  %1684 = vmatpush.msra.mxu0 %v7466_v45  ;;  %v7469_v22 = vld [vmem:[#allocation6 + $0x28] sm:$0xff] }
 0x1d6   :  { %10886 = vst [vmem:[#allocation142_spill] sm:$0xff] %v7454_v57  ;;  %1704 = vmatpush.msra.mxu1 %v7469_v22  ;;  %v7472_v57 = vld [vmem:[#allocation6 + $0x30] sm:$0xff] }
 0x1d7   :  { %10887 = vst [vmem:[#allocation143_spill] sm:$0xff] %v7457_v32  ;;  %1724 = vmatpush.msra.mxu2 %v7472_v57  ;;  %v7475_v32 = vld [vmem:[#allocation6 + $0x38] sm:$0xff] }
 0x1d8   :  { %10888 = vst [vmem:[#allocation144_spill] sm:$0xff] %v7460_v44  ;;  %1744 = vmatpush.msra.mxu3 %v7475_v32  ;;  %v7478_v44 = vld [vmem:[#allocation6] sm:$0xff] }
 0x1d9   :  { %10889 = vst [vmem:[#allocation145_spill] sm:$0xff] %v7463_v53  ;;  %1685 = vmatpush.msra.mxu0 %v7478_v44  ;;  %v7481_v53 = vld [vmem:[#allocation6 + $0x8] sm:$0xff] }
 0x1da   :  { %10890 = vst [vmem:[#allocation146_spill] sm:$0xff] %v7466_v45  ;;  %1705 = vmatpush.msra.mxu1 %v7481_v53  ;;  %v7484_v45 = vld [vmem:[#allocation6 + $0x10] sm:$0xff] }
 0x1db   :  { %10891 = vst [vmem:[#allocation147_spill] sm:$0xff] %v7469_v22  ;;  %1725 = vmatpush.msra.mxu2 %v7484_v45  ;;  %v7487_v22 = vld [vmem:[#allocation6 + $0x18] sm:$0xff] }
 0x1dc   :  { %10892 = vst [vmem:[#allocation148_spill] sm:$0xff] %v7472_v57  ;;  %1745 = vmatpush.msra.mxu3 %v7487_v22  ;;  %v7490_v57 = vld [vmem:[#allocation11 + $0x1e0] sm:$0xff] }
 0x1dd   :  { %10893 = vst [vmem:[#allocation149_spill] sm:$0xff] %v7475_v32  ;;  %1821 = vmatpush.msrb.mxu0 %v7490_v57  ;;  %v7493_v32 = vld [vmem:[#allocation11 + $0x1e8] sm:$0xff] }
 0x1de   :  { %10894 = vst [vmem:[#allocation150_spill] sm:$0xff] %v7478_v44  ;;  %1841 = vmatpush.msrb.mxu1 %v7493_v32  ;;  %v7496_v44 = vld [vmem:[#allocation11 + $0x1f0] sm:$0xff] }
 0x1df   :  { %10895 = vst [vmem:[#allocation151_spill] sm:$0xff] %v7481_v53  ;;  %1861 = vmatpush.msrb.mxu2 %v7496_v44  ;;  %v7499_v53 = vld [vmem:[#allocation11 + $0x1f8] sm:$0xff] }
 0x1e0   :  { %10896 = vst [vmem:[#allocation152_spill] sm:$0xff] %v7484_v45  ;;  %1881 = vmatpush.msrb.mxu3 %v7499_v53  ;;  %v7502_v45 = vld [vmem:[#allocation11 + $0x1c0] sm:$0xff] }
 0x1e1   :  { %10897 = vst [vmem:[#allocation153_spill] sm:$0xff] %v7487_v22  ;;  %1822 = vmatpush.msrb.mxu0 %v7502_v45  ;;  %v7505_v22 = vld [vmem:[#allocation11 + $0x1c8] sm:$0xff] }
 0x1e2   :  { %10898 = vst [vmem:[#allocation154_spill] sm:$0xff] %v7490_v57  ;;  %1842 = vmatpush.msrb.mxu1 %v7505_v22  ;;  %v7508_v57 = vld [vmem:[#allocation11 + $0x1d0] sm:$0xff] }
 0x1e3   :  { %10899 = vst [vmem:[#allocation155_spill] sm:$0xff] %v7493_v32  ;;  %1862 = vmatpush.msrb.mxu2 %v7508_v57  ;;  %v7511_v32 = vld [vmem:[#allocation11 + $0x1d8] sm:$0xff] }
 0x1e4   :  { %10900 = vst [vmem:[#allocation156_spill] sm:$0xff] %v7496_v44  ;;  %1882 = vmatpush.msrb.mxu3 %v7511_v32  ;;  %v7514_v44 = vld [vmem:[#allocation11 + $0x1a0] sm:$0xff] }
 0x1e5   :  { %10901 = vst [vmem:[#allocation157_spill] sm:$0xff] %v7499_v53  ;;  %1823 = vmatpush.msrb.mxu0 %v7514_v44  ;;  %v7517_v53 = vld [vmem:[#allocation11 + $0x1a8] sm:$0xff] }
 0x1e6   :  { %10902 = vst [vmem:[#allocation158_spill] sm:$0xff] %v7502_v45  ;;  %1843 = vmatpush.msrb.mxu1 %v7517_v53  ;;  %v7520_v45 = vld [vmem:[#allocation11 + $0x1b0] sm:$0xff] }
 0x1e7   :  { %10903 = vst [vmem:[#allocation159_spill] sm:$0xff] %v7505_v22  ;;  %1863 = vmatpush.msrb.mxu2 %v7520_v45  ;;  %v7523_v22 = vld [vmem:[#allocation11 + $0x1b8] sm:$0xff] }
 0x1e8   :  { %10904 = vst [vmem:[#allocation160_spill] sm:$0xff] %v7508_v57  ;;  %1883 = vmatpush.msrb.mxu3 %v7523_v22  ;;  %v7526_v57 = vld [vmem:[#allocation11 + $0x180] sm:$0xff] }
 0x1e9   :  { %10905 = vst [vmem:[#allocation161_spill] sm:$0xff] %v7511_v32  ;;  %1824 = vmatpush.msrb.mxu0 %v7526_v57  ;;  %v7529_v32 = vld [vmem:[#allocation11 + $0x188] sm:$0xff] }
 0x1ea   :  { %10906 = vst [vmem:[#allocation162_spill] sm:$0xff] %v7514_v44  ;;  %1844 = vmatpush.msrb.mxu1 %v7529_v32  ;;  %v7532_v44 = vld [vmem:[#allocation11 + $0x190] sm:$0xff] }
 0x1eb   :  { %10907 = vst [vmem:[#allocation163_spill] sm:$0xff] %v7517_v53  ;;  %1864 = vmatpush.msrb.mxu2 %v7532_v44  ;;  %v7535_v53 = vld [vmem:[#allocation11 + $0x198] sm:$0xff] }
 0x1ec   :  { %10908 = vst [vmem:[#allocation164_spill] sm:$0xff] %v7520_v45  ;;  %1884 = vmatpush.msrb.mxu3 %v7535_v53  ;;  %v7538_v45 = vld [vmem:[#allocation11 + $0x160] sm:$0xff] }
 0x1ed   :  { %10909 = vst [vmem:[#allocation165_spill] sm:$0xff] %v7523_v22  ;;  %1825 = vmatpush.msrb.mxu0 %v7538_v45  ;;  %v7541_v22 = vld [vmem:[#allocation11 + $0x168] sm:$0xff] }
 0x1ee   :  { %10910 = vst [vmem:[#allocation166_spill] sm:$0xff] %v7526_v57  ;;  %1845 = vmatpush.msrb.mxu1 %v7541_v22  ;;  %v7544_v57 = vld [vmem:[#allocation11 + $0x170] sm:$0xff] }
 0x1ef   :  { %10911 = vst [vmem:[#allocation167_spill] sm:$0xff] %v7529_v32  ;;  %1865 = vmatpush.msrb.mxu2 %v7544_v57  ;;  %v7547_v32 = vld [vmem:[#allocation11 + $0x178] sm:$0xff] }
 0x1f0   :  { %10912 = vst [vmem:[#allocation168_spill] sm:$0xff] %v7532_v44  ;;  %1885 = vmatpush.msrb.mxu3 %v7547_v32  ;;  %v7550_v44 = vld [vmem:[#allocation11 + $0x140] sm:$0xff] }
 0x1f1   :  { %10913 = vst [vmem:[#allocation169_spill] sm:$0xff] %v7535_v53  ;;  %1826 = vmatpush.msrb.mxu0 %v7550_v44  ;;  %v7553_v53 = vld [vmem:[#allocation11 + $0x148] sm:$0xff] }
 0x1f2   :  { %10914 = vst [vmem:[#allocation170_spill] sm:$0xff] %v7538_v45  ;;  %1846 = vmatpush.msrb.mxu1 %v7553_v53  ;;  %v7556_v45 = vld [vmem:[#allocation11 + $0x150] sm:$0xff] }
 0x1f3   :  { %10915 = vst [vmem:[#allocation171_spill] sm:$0xff] %v7541_v22  ;;  %1866 = vmatpush.msrb.mxu2 %v7556_v45  ;;  %v7559_v22 = vld [vmem:[#allocation11 + $0x158] sm:$0xff] }
 0x1f4   :  { %10916 = vst [vmem:[#allocation172_spill] sm:$0xff] %v7544_v57  ;;  %1886 = vmatpush.msrb.mxu3 %v7559_v22  ;;  %v7562_v57 = vld [vmem:[#allocation11 + $0x120] sm:$0xff] }
 0x1f5   :  { %10917 = vst [vmem:[#allocation173_spill] sm:$0xff] %v7547_v32  ;;  %1827 = vmatpush.msrb.mxu0 %v7562_v57  ;;  %v7565_v32 = vld [vmem:[#allocation11 + $0x128] sm:$0xff] }
 0x1f6   :  { %10918 = vst [vmem:[#allocation174_spill] sm:$0xff] %v7550_v44  ;;  %1847 = vmatpush.msrb.mxu1 %v7565_v32  ;;  %v7568_v44 = vld [vmem:[#allocation11 + $0x130] sm:$0xff] }
 0x1f7   :  { %10919 = vst [vmem:[#allocation175_spill] sm:$0xff] %v7553_v53  ;;  %1867 = vmatpush.msrb.mxu2 %v7568_v44  ;;  %v7571_v53 = vld [vmem:[#allocation11 + $0x138] sm:$0xff] }
 0x1f8   :  { %10920 = vst [vmem:[#allocation176_spill] sm:$0xff] %v7556_v45  ;;  %1887 = vmatpush.msrb.mxu3 %v7571_v53  ;;  %v7574_v45 = vld [vmem:[#allocation11 + $0x100] sm:$0xff] }
 0x1f9   :  { %10921 = vst [vmem:[#allocation177_spill] sm:$0xff] %v7559_v22  ;;  %1828 = vmatpush.msrb.mxu0 %v7574_v45  ;;  %v7577_v22 = vld [vmem:[#allocation11 + $0x108] sm:$0xff] }
 0x1fa   :  { %10922 = vst [vmem:[#allocation178_spill] sm:$0xff] %v7562_v57  ;;  %1848 = vmatpush.msrb.mxu1 %v7577_v22  ;;  %v7580_v57 = vld [vmem:[#allocation11 + $0x110] sm:$0xff] }
 0x1fb   :  { %10923 = vst [vmem:[#allocation179_spill] sm:$0xff] %v7565_v32  ;;  %1868 = vmatpush.msrb.mxu2 %v7580_v57  ;;  %v7583_v32 = vld [vmem:[#allocation11 + $0x118] sm:$0xff] }
 0x1fc   :  { %10924 = vst [vmem:[#allocation180_spill] sm:$0xff] %v7568_v44  ;;  %1888 = vmatpush.msrb.mxu3 %v7583_v32  ;;  %v7586_v44 = vld [vmem:[#allocation11 + $0xe0] sm:$0xff] }
 0x1fd   :  { %10925 = vst [vmem:[#allocation181_spill] sm:$0xff] %v7571_v53  ;;  %1829 = vmatpush.msrb.mxu0 %v7586_v44  ;;  %v7589_v53 = vld [vmem:[#allocation11 + $0xe8] sm:$0xff] }
 0x1fe   :  { %10926 = vst [vmem:[#allocation182_spill] sm:$0xff] %v7574_v45  ;;  %1849 = vmatpush.msrb.mxu1 %v7589_v53  ;;  %v7592_v45 = vld [vmem:[#allocation11 + $0xf0] sm:$0xff] }
 0x1ff   :  { %10927 = vst [vmem:[#allocation183_spill] sm:$0xff] %v7577_v22  ;;  %1869 = vmatpush.msrb.mxu2 %v7592_v45  ;;  %v7595_v22 = vld [vmem:[#allocation11 + $0xf8] sm:$0xff] }
 0x200   :  { %10928 = vst [vmem:[#allocation184_spill] sm:$0xff] %v7580_v57  ;;  %1889 = vmatpush.msrb.mxu3 %v7595_v22  ;;  %v7598_v57 = vld [vmem:[#allocation11 + $0xc0] sm:$0xff]  ;;  %1850 = vmatpush.msrb.mxu1 %v6822_v0  ;;  %v10934_v0 = vld [vmem:[#allocation28_spill] sm:$0xff] }
 0x201   :  { %10929 = vst [vmem:[#allocation185_spill] sm:$0xff] %v7586_v44  ;;  %1830 = vmatpush.msrb.mxu0 %v7598_v57  ;;  %1870 = vmatpush.msrb.mxu2 %v6829_v1  ;;  %v7604_v44 = vld [vmem:[#allocation11 + $0xa0] sm:$0xff] }
 0x202   :  { %10930 = vst [vmem:[#allocation186_spill] sm:$0xff] %v7595_v22  ;;  %1890 = vmatpush.msrb.mxu3 %v6826_v23  ;;  %1851 = vmatpush.msrb.mxu1 %v10804_v29  ;;  %v7610_v22 = vld [vmem:[#allocation11 + $0x80] sm:$0xff] }
 0x203   :  { %1831 = vmatpush.msrb.mxu0 %v7604_v44  ;;  %1871 = vmatpush.msrb.mxu2 %v10805_v9  ;;  %v7616_v1 = vld [vmem:[#allocation11 + $0x60] sm:$0xff] }
 0x204   :  { %1891 = vmatpush.msrb.mxu3 %v6837_v20  ;;  %1852 = vmatpush.msrb.mxu1 %v10806_v12  ;;  %v7622_v23 = vld [vmem:[#allocation11 + $0x40] sm:$0xff]  ;;  %v227_v20 = vadd.f32 %v10934_v0, %v10831_v46 }
 0x205   :  { %1832 = vmatpush.msrb.mxu0 %v7610_v22  ;;  %1872 = vmatpush.msrb.mxu2 %v10807_v43  ;;  %10931 = vst [vmem:[#allocation187_spill] sm:$0xff] %v7622_v23 }
 0x206   :  { %1892 = vmatpush.msrb.mxu3 %v6859_v40  ;;  %1853 = vmatpush.msrb.mxu1 %v10808_v4  ;;  %v7628_v40 = vld [vmem:[#allocation11 + $0x20] sm:$0xff] }
 0x207   :  { %1833 = vmatpush.msrb.mxu0 %v7616_v1  ;;  %1873 = vmatpush.msrb.mxu2 %v6869_v5  ;;  %10932 = vst [vmem:[#allocation188_spill] sm:$0xff] %v7628_v40  ;;  %v10935_v5 = vld [vmem:[#allocation55_spill] sm:$0xff] }
 0x208   :  { %1893 = vmatpush.msrb.mxu3 %v6873_v62  ;;  %1854 = vmatpush.msrb.mxu1 %v10809_v56  ;;  %v7634_v62 = vld [vmem:[#allocation11] sm:$0xff] }
 0x209   :  { %1834 = vmatpush.msrb.mxu0 %v7622_v23  ;;  %1874 = vmatpush.msrb.mxu2 %v6880_v7  ;;  %10933 = vst [vmem:[#allocation189_spill] sm:$0xff] %v7634_v62 }
 0x20a   :  { %1894 = vmatpush.msrb.mxu3 %v6884_v28  ;;  %1855 = vmatpush.msrb.mxu1 %v6887_v61  ;;  %v268_v61 = vadd.f32 %v10935_v5, %v7174_v19 }
 0x20b   :  { %1835 = vmatpush.msrb.mxu0 %v7628_v40  ;;  %1875 = vmatpush.msrb.mxu2 %v6894_v3 }
 0x20c   :  { %1895 = vmatpush.msrb.mxu3 %v6906_v2  ;;  %1856 = vmatpush.msrb.mxu1 %v6904_v11  ;;  %v10936_v11 = vld [vmem:[#allocation54_spill] sm:$0xff] }
 0x20d   :  { %1836 = vmatpush.msrb.mxu0 %v7634_v62  ;;  %1876 = vmatpush.msrb.mxu2 %v6909_v6  ;;  %v464_v6 = vadd.f32 %v6957_v8, %v7161_v49  ;;  %v587_v8 = vadd.f32 %v7065_v10, %v7186_v16 }
 0x20e   :  { %1896 = vmatpush.msrb.mxu3 %v6918_v13  ;;  %v505_v13 = vadd.f32 %v7069_v47, %v7189_v52 }
 0x22d   :  { %v1385_v7 = vpop.f32.mrf.mxu0  ;;  %v1405_v3 = vpop.f32.mrf.mxu1 }
 0x22e   :  { %v1448_v28 = vadd.f32 %v1385_v7, %v227_v20  ;;  %v1449_v2 = vadd.f32 %v1405_v3, %v268_v61 }
 0x230   :  { %v4897_v29 = vmul.f32 -1.442695, %v1448_v28  ;;  %v4898_v9 = vmul.f32 -1.442695, %v1449_v2 }
 0x232   :  { %5016 = vpow2.f32 %v4897_v29 }
 0x233   :  { %5018 = vpow2.f32 %v4898_v9 }
 0x234   :  { %v1445_v12 = vpop.f32.mrf.mxu3  ;;  %v1425_v29 = vpop.f32.mrf.mxu2 }
 0x235   :  { %v1451_v43 = vadd.f32 %v1445_v12, %v10936_v11  ;;  %v10937_v11 = vld [vmem:[#allocation64_spill] sm:$0xff] }
 0x237   :  { %v4899_v4 = vmul.f32 -1.442695, %v1451_v43  ;;  %v1536_v56 = vpop.f32.mrf.mxu0  ;;  %v1556_v0 = vpop.f32.mrf.mxu1  ;;  %v1450_v43 = vadd.f32 %v1425_v29, %v10937_v11 }
 0x238   :  { %v5017_v5 = vpop.eup %5016  ;;  %v1599_v19 = vadd.f32 %v1536_v56, %v464_v6  ;;  %v1600_v20 = vadd.f32 %v1556_v0, %v505_v13 }
 0x239   :  { %v5019_v61 = vpop.eup %5018  ;;  %v1455_v7 = vadd.f32 1.0, %v5017_v5  ;;  %5020 = vpow2.f32 %v4899_v4 }
 0x23a   :  { %v1474_v3 = vadd.f32 1.0, %v5019_v61  ;;  %v4900_v28 = vmul.f32 -1.442695, %v1599_v19  ;;  %v4901_v2 = vmul.f32 -1.442695, %v1600_v20 }
 0x23b   :  { %5022 = vrcp.f32 %v1455_v7  ;;  %vm1461_vm12 = vweird.f32 %v1455_v7 }
 0x23c   :  { %5024 = vrcp.f32 %v1474_v3  ;;  %v1484_v11 = vand.u32 2147483647, %v1474_v3  ;;  %vm1480_vm11 = vweird.f32 %v1474_v3 }
 0x23d   :  { %5026 = vpow2.f32 %v4900_v28 }
 0x23e   :  { %5028 = vpow2.f32 %v4901_v2  ;;  %v1596_v47 = vpop.f32.mrf.mxu3  ;;  %v1465_v2 = vand.u32 2147483647, %v1455_v7  ;;  %vm1485_vm0 = vcmp.eq.f32.partialorder %v1484_v11, 8.507059e+37 }
 0x23f   :  { %v5021_v9 = vpop.eup %5020  ;;  %v1602_v12 = vadd.f32 %v1596_v47, %v587_v8  ;;  %v1467_v8 = vand.u32 2147483648, %v1455_v7  ;;  %v1486_v47 = vand.u32 2147483648, %v1474_v3 }
 0x240   :  { %v7652_v6 = vadd.f32 1.0, %v5021_v9  ;;  %vm1466_vm14 = vcmp.eq.f32.partialorder %v1465_v2, 8.507059e+37 }
 0x241   :  { %v5023_v13 = vpop.eup %5022  ;;  %v4902_v4 = vmul.f32 -1.442695, %v1602_v12  ;;  %v1487_v52 = vor.u32 1.1754944e-38, %v1486_v47 }
 0x242   :  { %v5025_v56 = vpop.eup %5024  ;;  %v1457_v19 = vmul.f32 %v5023_v13, %v1455_v7  ;;  %5030 = vrcp.f32 %v7652_v6  ;;  %vm1462_vm9 = vweird.f32 %v5023_v13  ;;  %vm1500_vm1 = vweird.f32 %v7652_v6 }
 0x243   :  { %v5027_v0 = vpop.eup %5026  ;;  %v1476_v5 = vmul.f32 %v5025_v56, %v1474_v3  ;;  %5032 = vpow2.f32 %v4902_v4  ;;  %vm1481_vm10 = vweird.f32 %v5025_v56  ;;  %v1576_v4 = vpop.f32.mrf.mxu2  ;;  %vm1463_vm13 = vmor %vm1461_vm12, %vm1462_vm9 }
 0x244   :  { %v5029_v10 = vpop.eup %5028  ;;  %v1458_v20 = vsub.f32 1.0, %v1457_v19  ;;  %5034 = vtanh.f32 %v1450_v43  ;;  %v7655_v61 = vadd.f32 1.0, %v5027_v0  ;;  %v546_v43 = vadd.f32 %v7080_v54, %v7217_v41  ;;  %vm1482_vm15 = vmor %vm1480_vm11, %vm1481_vm10 }
 0x245   :  { %v1477_v28 = vsub.f32 1.0, %v1476_v5  ;;  %v7657_v29 = vadd.f32 1.0, %v5029_v10  ;;  %v1468_v10 = vor.u32 1.1754944e-38, %v1467_v8 }
 0x246   :  { %v1459_v9 = vmul.f32 %v5023_v13, %v1458_v20  ;;  %5036 = vrcp.f32 %v7655_v61  ;;  %v1601_v46 = vadd.f32 %v1576_v4, %v546_v43  ;;  %v1618_v4 = vand.u32 2147483648, %v7655_v61 }
 0x247   :  { %v1478_v12 = vmul.f32 %v5025_v56, %v1477_v28  ;;  %5038 = vrcp.f32 %v7657_v29  ;;  %vm1631_vm5 = vweird.f32 %v7657_v29  ;;  %vm1612_vm6 = vweird.f32 %v7655_v61 }
 0x248   :  { %v7661_v19 = vpop.eup %5030  ;;  %v1460_v0 = vadd.f32 %v5023_v13, %v1459_v9 }
 0x249   :  { %v5033_v5 = vpop.eup %5032  ;;  %v1479_v20 = vadd.f32 %v5025_v56, %v1478_v12  ;;  %v1496_v28 = vmul.f32 %v7661_v19, %v7652_v6  ;;  %vm1501_vm2 = vweird.f32 %v7661_v19 }
 0x24a   :  { %v5035_v16 = vpop.eup %5034  ;;  %v1464_v49 = vsel %vm1463_vm13, %v5023_v13, %v1460_v0  ;;  %v7668_v62 = vadd.f32 1.0, %v5033_v5  ;;  %v1504_v5 = vand.u32 2147483647, %v7652_v6  ;;  %vm7692_vm7 = vmor %vm1500_vm1, %vm1501_vm2 }
 0x24b   :  { %v1469_v54 = vsel %vm1466_vm14, %v1468_v10, %v1464_v49  ;;  %v1483_v3 = vsel %vm1482_vm15, %v5025_v56, %v1479_v20  ;;  %v1497_v7 = vsub.f32 1.0, %v1496_v28  ;;  %v10972_v28 = vld [vmem:[#allocation146_spill] sm:$0xff] }
 0x24c   :  { %v5037_v9 = vpop.eup %5036  ;;  %v1488_v41 = vsel %vm1485_vm0, %v1487_v52, %v1483_v3  ;;  %v1511_v2 = vmul.f32 %v5035_v16, %v1469_v54  ;;  %5040 = vrcp.f32 %v7668_v62  ;;  %v1616_v52 = vand.u32 2147483647, %v7655_v61 }
 0x24d   :  { %v5039_v8 = vpop.eup %5038  ;;  %v1510_v12 = vmul.f32 %v1488_v41, %v7253_v42  ;;  %v1608_v40 = vmul.f32 %v5037_v9, %v7655_v61  ;;  %v1498_v47 = vmul.f32 %v7661_v19, %v1497_v7  ;;  %5042 = vtanh.f32 %v1601_v46 }
 0x24e   :  { %v1627_v13 = vmul.f32 %v5039_v8, %v7657_v29  ;;  %v1506_v16 = vand.u32 2147483648, %v7652_v6  ;;  %v1637_v46 = vand.u32 2147483648, %v7657_v29  ;;  %vm1613_vm3 = vweird.f32 %v5037_v9 }
 0x24f   :  { %v7676_v49 = vadd.f32 %v1511_v2, %v1510_v12  ;;  %v1609_v56 = vsub.f32 1.0, %v1608_v40  ;;  %v1499_v41 = vadd.f32 %v7661_v19, %v1498_v47  ;;  %vm1632_vm4 = vweird.f32 %v5039_v8  ;;  %vm1614_vm8 = vmor %vm1612_vm6, %vm1613_vm3 }
 0x250   :  { %v1628_v11 = vsub.f32 1.0, %v1627_v13  ;;  %v1635_v40 = vand.u32 2147483647, %v7657_v29  ;;  %vm1617_vm9 = vcmp.eq.f32.partialorder %v1616_v52, 8.507059e+37  ;;  %v1619_v3 = vor.u32 1.1754944e-38, %v1618_v4  ;;  %vm1633_vm10 = vmor %vm1631_vm5, %vm1632_vm4 }
 0x251   :  { %10938 = vst [vmem:[#allocation28_spill] sm:$0xff] %v7676_v49  ;;  %5044 = vtanh.f32 %v7676_v49  ;;  %v1610_v42 = vmul.f32 %v5037_v9, %v1609_v56  ;;  %v1503_v29 = vsel %vm7692_vm7, %v7661_v19, %v1499_v41  ;;  %v1638_v2 = vor.u32 1.1754944e-38, %v1637_v46  ;;  %v10965_v41 = vld [vmem:[#allocation139_spill] sm:$0xff]  ;;  %v10966_v46 = vld [vmem:[#allocation140_spill] sm:$0xff] }
 0x252   :  { %v5041_v43 = vpop.eup %5040  ;;  %v1629_v0 = vmul.f32 %v5039_v8, %v1628_v11  ;;  %v1507_v47 = vor.u32 1.1754944e-38, %v1506_v16  ;;  %vm1636_vm11 = vcmp.eq.f32.partialorder %v1635_v40, 8.507059e+37  ;;  %vm1505_vm12 = vcmp.eq.f32.partialorder %v1504_v5, 8.507059e+37  ;;  %v10964_v16 = vld [vmem:[#allocation138_spill] sm:$0xff]  ;;  %v10969_v5 = vld [vmem:[#allocation143_spill] sm:$0xff] }
 0x253   :  { %v1611_v10 = vadd.f32 %v5037_v9, %v1610_v42  ;;  %v1647_v20 = vmul.f32 %v5041_v43, %v7668_v62  ;;  %v5043_v54 = vpop.eup %5042  ;;  %vm1652_vm13 = vweird.f32 %v5041_v43  ;;  %vm1651_vm14 = vweird.f32 %v7668_v62  ;;  %v10968_v40 = vld [vmem:[#allocation142_spill] sm:$0xff] }
 0x254   :  { %v1630_v7 = vadd.f32 %v5039_v8, %v1629_v0  ;;  %v1508_v49 = vsel %vm1505_vm12, %v1507_v47, %v1503_v29  ;;  %vm1653_vm15 = vmor %vm1651_vm14, %vm1652_vm13  ;;  %v10976_v29 = vld [vmem:[#allocation150_spill] sm:$0xff] }
 0x255   :  { %v1615_v61 = vsel %vm1614_vm8, %v5037_v9, %v1611_v10  ;;  %v1648_v12 = vsub.f32 1.0, %v1647_v20  ;;  %v1657_v9 = vand.u32 2147483648, %v7668_v62  ;;  %v10970_v10 = vld [vmem:[#allocation144_spill] sm:$0xff]  ;;  %v10971_v20 = vld [vmem:[#allocation145_spill] sm:$0xff]  ;;  %v10980_v47 = vld [vmem:[#allocation154_spill] sm:$0xff] }
 0x256   :  { %v1620_v13 = vsel %vm1617_vm9, %v1619_v3, %v1615_v61  ;;  %v1634_v6 = vsel %vm1633_vm10, %v5039_v8, %v1630_v7  ;;  %v10974_v3 = vld [vmem:[#allocation148_spill] sm:$0xff]  ;;  %v10975_v7 = vld [vmem:[#allocation149_spill] sm:$0xff] }
 0x257   :  { %v5045_v56 = vpop.eup %5044  ;;  %v1639_v11 = vsel %vm1636_vm11, %v1638_v2, %v1634_v6  ;;  %v1662_v42 = vmul.f32 %v5043_v54, %v1620_v13  ;;  %v1649_v52 = vmul.f32 %v5041_v43, %v1648_v12  ;;  %v10973_v54 = vld [vmem:[#allocation147_spill] sm:$0xff]  ;;  %v10978_v61 = vld [vmem:[#allocation152_spill] sm:$0xff]  ;;  %v10979_v12 = vld [vmem:[#allocation153_spill] sm:$0xff] }
 0x258   :  { %v1661_v4 = vmul.f32 %v1639_v11, %v7283_v26  ;;  %v1514_v0 = vmul.f32 %v5045_v56, %v1508_v49  ;;  %v1655_v26 = vand.u32 2147483647, %v7668_v62  ;;  %v10962_v62 = vld [vmem:[#allocation136_spill] sm:$0xff]  ;;  %v10963_v49 = vld [vmem:[#allocation137_spill] sm:$0xff]  ;;  %v10977_v2 = vld [vmem:[#allocation151_spill] sm:$0xff] }
 0x259   :  { %v1650_v19 = vadd.f32 %v5041_v43, %v1649_v52  ;;  %v10981_v13 = vld [vmem:[#allocation155_spill] sm:$0xff]  ;;  %v10982_v6 = vld [vmem:[#allocation156_spill] sm:$0xff]  ;;  %v10983_v56 = vld [vmem:[#allocation157_spill] sm:$0xff] }
 0x25a   :  { %v7700_v23 = vadd.f32 %v1662_v42, %v1661_v4  ;;  %1686 = vmatmul.f32.vlgmr.msra.gmra.mxu0 %v1514_v0  ;;  %1706 = vmatmul.f32.vlgmr.msra.gmra.mxu1 %v1514_v0  ;;  %vm1656_vm0 = vcmp.eq.f32.partialorder %v1655_v26, 8.507059e+37  ;;  %v10984_v11 = vld [vmem:[#allocation158_spill] sm:$0xff]  ;;  %v10985_v42 = vld [vmem:[#allocation159_spill] sm:$0xff]  ;;  %v10986_v52 = vld [vmem:[#allocation160_spill] sm:$0xff] }
 0x25b   :  { %1726 = vmatmul.f32.vlgmr.msra.gmra.mxu2 %v1514_v0  ;;  %1746 = vmatmul.f32.vlgmr.msra.gmra.mxu3 %v1514_v0  ;;  %v1654_v8 = vsel %vm1653_vm15, %v5041_v43, %v1650_v19  ;;  %v10967_v43 = vld [vmem:[#allocation141_spill] sm:$0xff]  ;;  %v10988_v0 = vld [vmem:[#allocation162_spill] sm:$0xff]  ;;  %v10989_v19 = vld [vmem:[#allocation163_spill] sm:$0xff] }
 0x25c   :  { %5046 = vtanh.f32 %v7700_v23  ;;  %1972 = vmatpush.msra.mxu0 %v7291_v63  ;;  %1992 = vmatpush.msra.mxu1 %v7294_v35  ;;  %v1658_v63 = vor.u32 1.1754944e-38, %v1657_v9  ;;  %v10987_v4 = vld [vmem:[#allocation161_spill] sm:$0xff]  ;;  %v10990_v9 = vld [vmem:[#allocation164_spill] sm:$0xff] }
 0x25d   :  { %2012 = vmatpush.msra.mxu2 %v7301_v59  ;;  %2032 = vmatpush.msra.mxu3 %v7304_v25  ;;  %v10991_v26 = vld [vmem:[#allocation165_spill] sm:$0xff] }
 0x25e   :  { %1973 = vmatpush.msra.mxu0 %v7310_v33  ;;  %1993 = vmatpush.msra.mxu1 %v7313_v36  ;;  %v1659_v59 = vsel %vm1656_vm0, %v1658_v63, %v1654_v8  ;;  %v10941_v33 = vld [vmem:[#allocation51_spill] sm:$0xff]  ;;  %v10942_v36 = vld [vmem:[#allocation116_spill] sm:$0xff]  ;;  %v10992_v8 = vld [vmem:[#allocation166_spill] sm:$0xff] }
 0x25f   :  { %2013 = vmatpush.msra.mxu2 %v7316_v31  ;;  %2033 = vmatpush.msra.mxu3 %v7319_v38  ;;  %v10943_v31 = vld [vmem:[#allocation117_spill] sm:$0xff]  ;;  %v10944_v38 = vld [vmem:[#allocation118_spill] sm:$0xff]  ;;  %v10993_v63 = vld [vmem:[#allocation167_spill] sm:$0xff] }
 0x260   :  { %1974 = vmatpush.msra.mxu0 %v7322_v21  ;;  %1994 = vmatpush.msra.mxu1 %v7325_v55  ;;  %v10945_v21 = vld [vmem:[#allocation119_spill] sm:$0xff]  ;;  %v10946_v55 = vld [vmem:[#allocation120_spill] sm:$0xff] }
 0x261   :  { %2014 = vmatpush.msra.mxu2 %v7328_v60  ;;  %2034 = vmatpush.msra.mxu3 %v7331_v14  ;;  %v10947_v60 = vld [vmem:[#allocation121_spill] sm:$0xff]  ;;  %v10948_v14 = vld [vmem:[#allocation122_spill] sm:$0xff] }
 0x262   :  { %v5047_v35 = vpop.eup %5046  ;;  %1975 = vmatpush.msra.mxu0 %v7334_v17  ;;  %1995 = vmatpush.msra.mxu1 %v7337_v50  ;;  %v10949_v17 = vld [vmem:[#allocation123_spill] sm:$0xff]  ;;  %v10950_v50 = vld [vmem:[#allocation124_spill] sm:$0xff] }
 0x263   :  { %v1665_v25 = vmul.f32 %v5047_v35, %v1659_v59  ;;  %2015 = vmatpush.msra.mxu2 %v7340_v34  ;;  %2035 = vmatpush.msra.mxu3 %v7343_v51  ;;  %v10951_v34 = vld [vmem:[#allocation125_spill] sm:$0xff]  ;;  %v10952_v51 = vld [vmem:[#allocation126_spill] sm:$0xff]  ;;  %v10994_v35 = vld [vmem:[#allocation168_spill] sm:$0xff] }
 0x264   :  { %1976 = vmatpush.msra.mxu0 %v7346_v37  ;;  %1996 = vmatpush.msra.mxu1 %v7349_v15  ;;  %v10953_v37 = vld [vmem:[#allocation127_spill] sm:$0xff]  ;;  %v10954_v15 = vld [vmem:[#allocation128_spill] sm:$0xff]  ;;  %v10995_v59 = vld [vmem:[#allocation169_spill] sm:$0xff] }
 0x265   :  { %1837 = vmatmul.f32.vlgmr.msrb.gmra.mxu0 %v1665_v25  ;;  %1857 = vmatmul.f32.vlgmr.msrb.gmra.mxu1 %v1665_v25 }
 0x266   :  { %1877 = vmatmul.f32.vlgmr.msrb.gmra.mxu2 %v1665_v25  ;;  %1897 = vmatmul.f32.vlgmr.msrb.gmra.mxu3 %v1665_v25  ;;  %v10996_v25 = vld [vmem:[#allocation170_spill] sm:$0xff] }
 0x267   :  { %2016 = vmatpush.msra.mxu2 %v7352_v30  ;;  %2036 = vmatpush.msra.mxu3 %v7355_v48  ;;  %v10955_v30 = vld [vmem:[#allocation129_spill] sm:$0xff]  ;;  %v10956_v48 = vld [vmem:[#allocation130_spill] sm:$0xff] }
 0x268   :  { %1977 = vmatpush.msra.mxu0 %v7358_v24  ;;  %1997 = vmatpush.msra.mxu1 %v7361_v39  ;;  %v10957_v24 = vld [vmem:[#allocation131_spill] sm:$0xff]  ;;  %v10958_v39 = vld [vmem:[#allocation132_spill] sm:$0xff] }
 0x269   :  { %2017 = vmatpush.msra.mxu2 %v7364_v18  ;;  %2037 = vmatpush.msra.mxu3 %v7367_v27  ;;  %v10959_v18 = vld [vmem:[#allocation133_spill] sm:$0xff]  ;;  %v10960_v27 = vld [vmem:[#allocation134_spill] sm:$0xff] }
 0x26a   :  { %1978 = vmatpush.msra.mxu0 %v7370_v58  ;;  %1998 = vmatpush.msra.mxu1 %v10941_v33  ;;  %v10961_v58 = vld [vmem:[#allocation135_spill] sm:$0xff] }
 0x26b   :  { %2018 = vmatpush.msra.mxu2 %v10942_v36  ;;  %2038 = vmatpush.msra.mxu3 %v10943_v31  ;;  %v10997_v33 = vld [vmem:[#allocation171_spill] sm:$0xff]  ;;  %v10998_v36 = vld [vmem:[#allocation172_spill] sm:$0xff]  ;;  %v10999_v31 = vld [vmem:[#allocation173_spill] sm:$0xff] }
 0x26c   :  { %1979 = vmatpush.msra.mxu0 %v10944_v38  ;;  %1999 = vmatpush.msra.mxu1 %v10945_v21  ;;  %v11000_v38 = vld [vmem:[#allocation174_spill] sm:$0xff]  ;;  %v11001_v21 = vld [vmem:[#allocation175_spill] sm:$0xff] }
 0x26d   :  { %2019 = vmatpush.msra.mxu2 %v10946_v55  ;;  %2039 = vmatpush.msra.mxu3 %v10947_v60  ;;  %v11002_v55 = vld [vmem:[#allocation176_spill] sm:$0xff]  ;;  %v11003_v60 = vld [vmem:[#allocation177_spill] sm:$0xff] }
 0x26e   :  { %1980 = vmatpush.msra.mxu0 %v10948_v14  ;;  %2000 = vmatpush.msra.mxu1 %v10949_v17  ;;  %v11004_v14 = vld [vmem:[#allocation178_spill] sm:$0xff]  ;;  %v11005_v17 = vld [vmem:[#allocation179_spill] sm:$0xff] }
 0x26f   :  { %2020 = vmatpush.msra.mxu2 %v10950_v50  ;;  %2040 = vmatpush.msra.mxu3 %v10951_v34  ;;  %v11006_v50 = vld [vmem:[#allocation180_spill] sm:$0xff]  ;;  %v11007_v34 = vld [vmem:[#allocation181_spill] sm:$0xff] }
 0x270   :  { %1981 = vmatpush.msra.mxu0 %v10952_v51  ;;  %2001 = vmatpush.msra.mxu1 %v10953_v37  ;;  %v11008_v51 = vld [vmem:[#allocation182_spill] sm:$0xff]  ;;  %v11009_v37 = vld [vmem:[#allocation183_spill] sm:$0xff] }
 0x271   :  { %2021 = vmatpush.msra.mxu2 %v10954_v15  ;;  %2041 = vmatpush.msra.mxu3 %v10955_v30  ;;  %v11010_v15 = vld [vmem:[#allocation184_spill] sm:$0xff]  ;;  %v11011_v30 = vld [vmem:[#allocation185_spill] sm:$0xff] }
 0x272   :  { %1982 = vmatpush.msra.mxu0 %v10956_v48  ;;  %2002 = vmatpush.msra.mxu1 %v10957_v24  ;;  %v11012_v48 = vld [vmem:[#allocation186_spill] sm:$0xff]  ;;  %v7807_v24 = vld [vmem:[#allocation11 + $0xc8] sm:$0xff] }
 0x273   :  { %2022 = vmatpush.msra.mxu2 %v10958_v39  ;;  %2042 = vmatpush.msra.mxu3 %v10959_v18  ;;  %v7810_v39 = vld [vmem:[#allocation11 + $0xd0] sm:$0xff]  ;;  %v7813_v18 = vld [vmem:[#allocation11 + $0xd8] sm:$0xff] }
 0x274   :  { %1983 = vmatpush.msra.mxu0 %v10960_v27  ;;  %2003 = vmatpush.msra.mxu1 %v10961_v58  ;;  %v7830_v27 = vld [vmem:[#allocation11 + $0x90] sm:$0xff]  ;;  %v7837_v58 = vld [vmem:[#allocation11 + $0x68] sm:$0xff] }
 0x275   :  { %2023 = vmatpush.msra.mxu2 %v10962_v62  ;;  %2043 = vmatpush.msra.mxu3 %v10963_v49  ;;  %v7840_v62 = vld [vmem:[#allocation11 + $0x70] sm:$0xff]  ;;  %v11013_v49 = vld [vmem:[#allocation187_spill] sm:$0xff] }
 0x276   :  { %1984 = vmatpush.msra.mxu0 %v10964_v16  ;;  %2004 = vmatpush.msra.mxu1 %v10965_v41  ;;  %v7847_v16 = vld [vmem:[#allocation11 + $0x48] sm:$0xff]  ;;  %v7850_v41 = vld [vmem:[#allocation11 + $0x50] sm:$0xff] }
 0x277   :  { %2024 = vmatpush.msra.mxu2 %v10966_v46  ;;  %2044 = vmatpush.msra.mxu3 %v10967_v43  ;;  %v11014_v46 = vld [vmem:[#allocation188_spill] sm:$0xff] }
 0x278   :  { %1985 = vmatpush.msra.mxu0 %v10968_v40  ;;  %2005 = vmatpush.msra.mxu1 %v10969_v5  ;;  %v7857_v43 = vld [vmem:[#allocation11 + $0x28] sm:$0xff]  ;;  %v7860_v40 = vld [vmem:[#allocation11 + $0x30] sm:$0xff]  ;;  %v7863_v5 = vld [vmem:[#allocation11 + $0x38] sm:$0xff] }
 0x279   :  { %2025 = vmatpush.msra.mxu2 %v10970_v10  ;;  %2045 = vmatpush.msra.mxu3 %v10971_v20  ;;  %v11015_v10 = vld [vmem:[#allocation189_spill] sm:$0xff]  ;;  %v7867_v20 = vld [vmem:[#allocation11 + $0x8] sm:$0xff] }
 0x27a   :  { %1986 = vmatpush.msra.mxu0 %v10972_v28  ;;  %2006 = vmatpush.msra.mxu1 %v10973_v54  ;;  %v7870_v28 = vld [vmem:[#allocation11 + $0x10] sm:$0xff]  ;;  %v7873_v54 = vld [vmem:[#allocation11 + $0x18] sm:$0xff] }
 0x27b   :  { %2026 = vmatpush.msra.mxu2 %v10974_v3  ;;  %2046 = vmatpush.msra.mxu3 %v10975_v7  ;;  %v11016_v3 = vld [vmem:[#allocation25_spill] sm:$0xff]  ;;  %v11017_v7 = vld [vmem:[#allocation34_spill] sm:$0xff] }
 0x27c   :  { %1987 = vmatpush.msra.mxu0 %v10976_v29  ;;  %2007 = vmatpush.msra.mxu1 %v10977_v2  ;;  %v230_v29 = vadd.f32 %v11017_v7, %v11016_v3  ;;  %v11018_v2 = vld [vmem:[#allocation100_spill] sm:$0xff] }
 0x27d   :  { %2027 = vmatpush.msra.mxu2 %v10978_v61  ;;  %2047 = vmatpush.msra.mxu3 %v10979_v12  ;;  %v11019_v61 = vld [vmem:[#allocation68_spill] sm:$0xff] }
 0x27e   :  { %2123 = vmatpush.msrb.mxu0 %v10980_v47  ;;  %2143 = vmatpush.msrb.mxu1 %v10981_v13  ;;  %v271_v12 = vadd.f32 %v11019_v61, %v11018_v2 }
 0x27f   :  { %2163 = vmatpush.msrb.mxu2 %v10982_v6  ;;  %2183 = vmatpush.msrb.mxu3 %v10983_v56 }
 0x280   :  { %2124 = vmatpush.msrb.mxu0 %v10984_v11  ;;  %2144 = vmatpush.msrb.mxu1 %v10985_v42 }
 0x281   :  { %2164 = vmatpush.msrb.mxu2 %v10986_v52  ;;  %2184 = vmatpush.msrb.mxu3 %v10987_v4  ;;  %v11020_v52 = vld [vmem:[#allocation50_spill] sm:$0xff]  ;;  %v11021_v4 = vld [vmem:[#allocation65_spill] sm:$0xff] }
 0x282   :  { %2125 = vmatpush.msrb.mxu0 %v10988_v0  ;;  %2145 = vmatpush.msrb.mxu1 %v10989_v19  ;;  %v353_v0 = vadd.f32 %v11021_v4, %v11020_v52 }
 0x283   :  { %2165 = vmatpush.msrb.mxu2 %v10990_v9  ;;  %2185 = vmatpush.msrb.mxu3 %v10991_v26  ;;  %v11022_v26 = vld [vmem:[#allocation91_spill] sm:$0xff] }
 0x284   :  { %2126 = vmatpush.msrb.mxu0 %v10992_v8  ;;  %2146 = vmatpush.msrb.mxu1 %v10993_v63  ;;  %v11023_v8 = vld [vmem:[#allocation109_spill] sm:$0xff] }
 0x285   :  { %2166 = vmatpush.msrb.mxu2 %v10994_v35  ;;  %2186 = vmatpush.msrb.mxu3 %v10995_v59  ;;  %v461_v63 = vadd.f32 %v11023_v8, %v11022_v26  ;;  %v11024_v35 = vld [vmem:[#allocation24_spill] sm:$0xff] }
 0x286   :  { %2127 = vmatpush.msrb.mxu0 %v10996_v25  ;;  %2147 = vmatpush.msrb.mxu1 %v10997_v33  ;;  %v11025_v59 = vld [vmem:[#allocation48_spill] sm:$0xff] }
 0x287   :  { %2167 = vmatpush.msrb.mxu2 %v10998_v36  ;;  %2187 = vmatpush.msrb.mxu3 %v10999_v31  ;;  %v502_v25 = vadd.f32 %v11025_v59, %v11024_v35 }
 0x288   :  { %2128 = vmatpush.msrb.mxu0 %v11000_v38  ;;  %2148 = vmatpush.msrb.mxu1 %v11001_v21 }
 0x289   :  { %2168 = vmatpush.msrb.mxu2 %v11002_v55  ;;  %2188 = vmatpush.msrb.mxu3 %v11003_v60 }
 0x28a   :  { %2129 = vmatpush.msrb.mxu0 %v11004_v14  ;;  %2149 = vmatpush.msrb.mxu1 %v11005_v17 }
 0x28b   :  { %2169 = vmatpush.msrb.mxu2 %v11006_v50  ;;  %2189 = vmatpush.msrb.mxu3 %v11007_v34 }
 0x28c   :  { %2130 = vmatpush.msrb.mxu0 %v11008_v51  ;;  %2150 = vmatpush.msrb.mxu1 %v11009_v37  ;;  %v11026_v37 = vld [vmem:[#allocation23_spill] sm:$0xff] }
 0x28d   :  { %2170 = vmatpush.msrb.mxu2 %v11010_v15  ;;  %2190 = vmatpush.msrb.mxu3 %v7583_v32  ;;  %v7827_v32 = vld [vmem:[#allocation11 + $0x88] sm:$0xff]  ;;  %v11027_v15 = vld [vmem:[#allocation46_spill] sm:$0xff] }
 0x28e   :  { %2131 = vmatpush.msrb.mxu0 %v11011_v30  ;;  %2151 = vmatpush.msrb.mxu1 %v7589_v53  ;;  %v7817_v53 = vld [vmem:[#allocation11 + $0xa8] sm:$0xff]  ;;  %v584_v30 = vadd.f32 %v11027_v15, %v11026_v37 }
 0x28f   :  { %2171 = vmatpush.msrb.mxu2 %v7592_v45  ;;  %2191 = vmatpush.msrb.mxu3 %v11012_v48  ;;  %v7820_v45 = vld [vmem:[#allocation11 + $0xb0] sm:$0xff] }
 0x290   :  { %2132 = vmatpush.msrb.mxu0 %v7598_v57  ;;  %2152 = vmatpush.msrb.mxu1 %v7807_v24  ;;  %v7823_v57 = vld [vmem:[#allocation11 + $0xb8] sm:$0xff] }
 0x291   :  { %2172 = vmatpush.msrb.mxu2 %v7810_v39  ;;  %2192 = vmatpush.msrb.mxu3 %v7813_v18 }
 0x292   :  { %2133 = vmatpush.msrb.mxu0 %v7604_v44  ;;  %2153 = vmatpush.msrb.mxu1 %v7817_v53  ;;  %v7833_v44 = vld [vmem:[#allocation11 + $0x98] sm:$0xff] }
 0x293   :  { %2173 = vmatpush.msrb.mxu2 %v7820_v45  ;;  %2193 = vmatpush.msrb.mxu3 %v7823_v57 }
 0x294   :  { %2134 = vmatpush.msrb.mxu0 %v7610_v22  ;;  %2154 = vmatpush.msrb.mxu1 %v7827_v32  ;;  %v7843_v22 = vld [vmem:[#allocation11 + $0x78] sm:$0xff] }
 0x295   :  { %2174 = vmatpush.msrb.mxu2 %v7830_v27  ;;  %2194 = vmatpush.msrb.mxu3 %v7833_v44 }
 0x296   :  { %2135 = vmatpush.msrb.mxu0 %v7616_v1  ;;  %2155 = vmatpush.msrb.mxu1 %v7837_v58  ;;  %v7853_v1 = vld [vmem:[#allocation11 + $0x58] sm:$0xff] }
 0x297   :  { %2175 = vmatpush.msrb.mxu2 %v7840_v62  ;;  %2195 = vmatpush.msrb.mxu3 %v7843_v22 }
 0x298   :  { %2136 = vmatpush.msrb.mxu0 %v11013_v49  ;;  %2156 = vmatpush.msrb.mxu1 %v7847_v16  ;;  %v11028_v49 = vld [vmem:[#allocation61_spill] sm:$0xff] }
 0x299   :  { %2176 = vmatpush.msrb.mxu2 %v7850_v41  ;;  %2196 = vmatpush.msrb.mxu3 %v7853_v1 }
 0x29a   :  { %2137 = vmatpush.msrb.mxu0 %v11014_v46  ;;  %2157 = vmatpush.msrb.mxu1 %v7857_v43  ;;  %v11029_v46 = vld [vmem:[#allocation73_spill] sm:$0xff] }
 0x29b   :  { %2177 = vmatpush.msrb.mxu2 %v7860_v40  ;;  %2197 = vmatpush.msrb.mxu3 %v7863_v5 }
 0x29c   :  { %2138 = vmatpush.msrb.mxu0 %v11015_v10  ;;  %2158 = vmatpush.msrb.mxu1 %v7867_v20  ;;  %v312_v10 = vadd.f32 %v11029_v46, %v11028_v49 }
 0x29d   :  { %2178 = vmatpush.msrb.mxu2 %v7870_v28  ;;  %2198 = vmatpush.msrb.mxu3 %v7873_v54 }
 0x2d7   :  { %v1687_v47 = vpop.f32.mrf.mxu0  ;;  %v1707_v13 = vpop.f32.mrf.mxu1 }
 0x2d8   :  { %v1750_v6 = vadd.f32 %v1687_v47, %v230_v29  ;;  %v1751_v56 = vadd.f32 %v1707_v13, %v271_v12 }
 0x2da   :  { %v4903_v11 = vmul.f32 -1.442695, %v1750_v6  ;;  %v4904_v42 = vmul.f32 -1.442695, %v1751_v56 }
 0x2dc   :  { %5048 = vpow2.f32 %v4903_v11  ;;  %v11030_v11 = vld [vmem:[#allocation44_spill] sm:$0xff] }
 0x2dd   :  { %5050 = vpow2.f32 %v4904_v42  ;;  %v11031_v42 = vld [vmem:[#allocation52_spill] sm:$0xff] }
 0x2de   :  { %v1747_v19 = vpop.f32.mrf.mxu3  ;;  %v1727_v50 = vpop.f32.mrf.mxu2  ;;  %v543_v4 = vadd.f32 %v11031_v42, %v11030_v11 }
 0x2df   :  { %v1753_v9 = vadd.f32 %v1747_v19, %v353_v0  ;;  %v1752_v12 = vadd.f32 %v1727_v50, %v312_v10 }
 0x2e1   :  { %v4905_v33 = vmul.f32 -1.442695, %v1753_v9 }
 0x2e2   :  { %v5049_v36 = vpop.eup %5048  ;;  %v1838_v31 = vpop.f32.mrf.mxu0 }
 0x2e3   :  { %v1858_v38 = vpop.f32.mrf.mxu1  ;;  %v5051_v21 = vpop.eup %5050  ;;  %v1757_v55 = vadd.f32 1.0, %v5049_v36  ;;  %5052 = vpow2.f32 %v4905_v33  ;;  %v1901_v60 = vadd.f32 %v1838_v31, %v461_v63 }
 0x2e4   :  { %v1902_v14 = vadd.f32 %v1858_v38, %v502_v25  ;;  %v1776_v17 = vadd.f32 1.0, %v5051_v21 }
 0x2e5   :  { %5054 = vrcp.f32 %v1757_v55  ;;  %v4906_v34 = vmul.f32 -1.442695, %v1901_v60  ;;  %v1767_v8 = vand.u32 2147483647, %v1757_v55  ;;  %v1769_v63 = vand.u32 2147483648, %v1757_v55 }
 0x2e6   :  { %5056 = vrcp.f32 %v1776_v17  ;;  %v4907_v51 = vmul.f32 -1.442695, %v1902_v14  ;;  %v1788_v25 = vand.u32 2147483648, %v1776_v17  ;;  %v1786_v38 = vand.u32 2147483647, %v1776_v17 }
 0x2e7   :  { %5058 = vpow2.f32 %v4906_v34  ;;  %vm1782_vm3 = vweird.f32 %v1776_v17  ;;  %vm1763_vm4 = vweird.f32 %v1757_v55  ;;  %v1770_v34 = vor.u32 1.1754944e-38, %v1769_v63 }
 0x2e8   :  { %5060 = vpow2.f32 %v4907_v51  ;;  %vm1768_vm7 = vcmp.eq.f32.partialorder %v1767_v8, 8.507059e+37  ;;  %vm1787_vm8 = vcmp.eq.f32.partialorder %v1786_v38, 8.507059e+37 }
 0x2e9   :  { %v5053_v48 = vpop.eup %5052  ;;  %v1898_v3 = vpop.f32.mrf.mxu3 }
 0x2ea   :  { %v7890_v7 = vadd.f32 1.0, %v5053_v48  ;;  %v1904_v29 = vadd.f32 %v1898_v3, %v584_v30  ;;  %v1878_v60 = vpop.f32.mrf.mxu2  ;;  %v1789_v48 = vor.u32 1.1754944e-38, %v1788_v25 }
 0x2eb   :  { %v5055_v61 = vpop.eup %5054  ;;  %v1903_v10 = vadd.f32 %v1878_v60, %v543_v4 }
 0x2ec   :  { %v5057_v47 = vpop.eup %5056  ;;  %v1759_v13 = vmul.f32 %v5055_v61, %v1757_v55  ;;  %5062 = vrcp.f32 %v7890_v7  ;;  %v4908_v6 = vmul.f32 -1.442695, %v1904_v29  ;;  %vm1764_vm1 = vweird.f32 %v5055_v61 }
 0x2ed   :  { %v1778_v56 = vmul.f32 %v5057_v47, %v1776_v17  ;;  %v5059_v19 = vpop.eup %5058  ;;  %vm1783_vm2 = vweird.f32 %v5057_v47  ;;  %vm1765_vm5 = vmor %vm1763_vm4, %vm1764_vm1  ;;  %v1806_v8 = vand.u32 2147483647, %v7890_v7  ;;  %v1808_v25 = vand.u32 2147483648, %v7890_v7 }
 0x2ee   :  { %v1760_v0 = vsub.f32 1.0, %v1759_v13  ;;  %5064 = vpow2.f32 %v4908_v6  ;;  %v5061_v59 = vpop.eup %5060  ;;  %v7895_v36 = vadd.f32 1.0, %v5059_v19  ;;  %vm1784_vm6 = vmor %vm1782_vm3, %vm1783_vm2  ;;  %v11032_v6 = vld [vmem:[#allocation28_spill] sm:$0xff]  ;;  %vm1802_vm10 = vweird.f32 %v7890_v7 }
 0x2ef   :  { %v1779_v9 = vsub.f32 1.0, %v1778_v56  ;;  %5066 = vtanh.f32 %v1752_v12  ;;  %v7897_v21 = vadd.f32 1.0, %v5061_v59  ;;  %vm7932_vm14 = vcmp.eq.f32.partialorder %v1806_v8, 8.507059e+37 }
 0x2f0   :  { %v1761_v33 = vmul.f32 %v5055_v61, %v1760_v0  ;;  %5068 = vrcp.f32 %v7895_v36  ;;  %v1920_v38 = vand.u32 2147483648, %v7895_v36  ;;  %vm1914_vm0 = vweird.f32 %v7895_v36 }
 0x2f1   :  { %v1780_v31 = vmul.f32 %v5057_v47, %v1779_v9  ;;  %5070 = vrcp.f32 %v7897_v21  ;;  %v1939_v60 = vand.u32 2147483648, %v7897_v21  ;;  %vm1933_vm15 = vweird.f32 %v7897_v21 }
 0x2f2   :  { %v7899_v14 = vpop.eup %5062  ;;  %v1762_v50 = vadd.f32 %v5055_v61, %v1761_v33  ;;  %5072 = vtanh.f32 %v1903_v10 }
 0x2f3   :  { %v1781_v51 = vadd.f32 %v5057_v47, %v1780_v31  ;;  %v1798_v15 = vmul.f32 %v7899_v14, %v7890_v7  ;;  %vm1803_vm9 = vweird.f32 %v7899_v14  ;;  %v1918_v31 = vand.u32 2147483647, %v7895_v36 }
 0x2f4   :  { %v5065_v30 = vpop.eup %5064  ;;  %v1766_v46 = vsel %vm1765_vm5, %v5055_v61, %v1762_v50  ;;  %vm7925_vm12 = vmor %vm1802_vm10, %vm1803_vm9 }
 0x2f5   :  { %v5067_v17 = vpop.eup %5066  ;;  %v1771_v3 = vsel %vm1768_vm7, %v1770_v34, %v1766_v46  ;;  %v1785_v55 = vsel %vm1784_vm6, %v5057_v47, %v1781_v51  ;;  %v1799_v29 = vsub.f32 1.0, %v1798_v15  ;;  %v7907_v42 = vadd.f32 1.0, %v5065_v30  ;;  %v7975_v51 = vld [vmem:[#allocation6 + $0x1d8] sm:$0xff]  ;;  %v7993_v46 = vld [vmem:[#allocation6 + $0x1b0] sm:$0xff] }
 0x2f6   :  { %v1790_v12 = vsel %vm1787_vm8, %v1789_v48, %v1785_v55  ;;  %v1813_v13 = vmul.f32 %v5067_v17, %v1771_v3  ;;  %v5069_v19 = vpop.eup %5068  ;;  %v1937_v34 = vand.u32 2147483647, %v7897_v21  ;;  %v1809_v17 = vor.u32 1.1754944e-38, %v1808_v25  ;;  %v7951_v25 = vld [vmem:[#allocation6 + $0x1e8] sm:$0xff] }
 0x2f7   :  { %v1812_v56 = vmul.f32 %v1790_v12, %v11032_v6  ;;  %v1800_v0 = vmul.f32 %v7899_v14, %v1799_v29  ;;  %v5071_v9 = vpop.eup %5070  ;;  %v1910_v61 = vmul.f32 %v5069_v19, %v7895_v36  ;;  %5074 = vrcp.f32 %v7907_v42 }
 0x2f8   :  { %v1929_v47 = vmul.f32 %v5071_v9, %v7897_v21  ;;  %vm1915_vm11 = vweird.f32 %v5069_v19  ;;  %v5073_v15 = vpop.eup %5072  ;;  %vm1934_vm13 = vweird.f32 %v5071_v9  ;;  %vm1919_vm2 = vcmp.eq.f32.partialorder %v1918_v31, 8.507059e+37 }
 0x2f9   :  { %v7910_v63 = vadd.f32 %v1813_v13, %v1812_v56  ;;  %v1801_v4 = vadd.f32 %v7899_v14, %v1800_v0  ;;  %v1911_v59 = vsub.f32 1.0, %v1910_v61  ;;  %vm1916_vm1 = vmor %vm1914_vm0, %vm1915_vm11  ;;  %v1921_v3 = vor.u32 1.1754944e-38, %v1920_v38  ;;  %v7964_v38 = vld [vmem:[#allocation6 + $0x1c0] sm:$0xff] }
 0x2fa   :  { %v1930_v33 = vsub.f32 1.0, %v1929_v47  ;;  %vm1935_vm3 = vmor %vm1933_vm15, %vm1934_vm13  ;;  %v1940_v12 = vor.u32 1.1754944e-38, %v1939_v60  ;;  %vm1938_vm4 = vcmp.eq.f32.partialorder %v1937_v34, 8.507059e+37  ;;  %v1959_v31 = vand.u32 2147483648, %v7907_v42  ;;  %v7967_v60 = vld [vmem:[#allocation6 + $0x1c8] sm:$0xff]  ;;  %v7972_v34 = vld [vmem:[#allocation6 + $0x1d0] sm:$0xff] }
 0x2fb   :  { %5076 = vtanh.f32 %v7910_v63  ;;  %v1912_v50 = vmul.f32 %v5069_v19, %v1911_v59  ;;  %v1805_v48 = vsel %vm7925_vm12, %v7899_v14, %v1801_v4  ;;  %vm1953_vm6 = vweird.f32 %v7907_v42 }
 0x2fc   :  { %v1931_v30 = vmul.f32 %v5071_v9, %v1930_v33  ;;  %v1810_v6 = vsel %vm7932_vm14, %v1809_v17, %v1805_v48  ;;  %v7959_v33 = vld [vmem:[#allocation6 + $0x1f8] sm:$0xff]  ;;  %v7987_v48 = vld [vmem:[#allocation6 + $0x1a8] sm:$0xff]  ;;  %v1960_v17 = vor.u32 1.1754944e-38, %v1959_v31  ;;  %v8041_v31 = vld [vmem:[#allocation6 + $0x130] sm:$0xff] }
 0x2fd   :  { %v7936_v7 = vpop.eup %5074  ;;  %v1913_v10 = vadd.f32 %v5069_v19, %v1912_v50  ;;  %v1957_v50 = vand.u32 2147483647, %v7907_v42 }
 0x2fe   :  { %v1932_v55 = vadd.f32 %v5071_v9, %v1931_v30  ;;  %v1949_v29 = vmul.f32 %v7936_v7, %v7907_v42  ;;  %vm1954_vm5 = vweird.f32 %v7936_v7  ;;  %v7984_v30 = vld [vmem:[#allocation6 + $0x1a0] sm:$0xff] }
 0x2ff   :  { %v1917_v13 = vsel %vm1916_vm1, %v5069_v19, %v1913_v10  ;;  %v7948_v19 = vld [vmem:[#allocation6 + $0x1e0] sm:$0xff]  ;;  %vm7980_vm7 = vmor %vm1953_vm6, %vm1954_vm5  ;;  %v7996_v10 = vld [vmem:[#allocation6 + $0x1b8] sm:$0xff]  ;;  %vm1958_vm8 = vcmp.eq.f32.partialorder %v1957_v50, 8.507059e+37 }
 0x300   :  { %v1922_v21 = vsel %vm1919_vm2, %v1921_v3, %v1917_v13  ;;  %v1936_v56 = vsel %vm1935_vm3, %v5071_v9, %v1932_v55  ;;  %v1950_v0 = vsub.f32 1.0, %v1949_v29  ;;  %v7999_v3 = vld [vmem:[#allocation6 + $0x180] sm:$0xff]  ;;  %v8002_v55 = vld [vmem:[#allocation6 + $0x188] sm:$0xff]  ;;  %v8005_v29 = vld [vmem:[#allocation6 + $0x190] sm:$0xff] }
 0x301   :  { %v5077_v14 = vpop.eup %5076  ;;  %v1941_v61 = vsel %vm1938_vm4, %v1940_v12, %v1936_v56  ;;  %v1964_v47 = vmul.f32 %v5073_v15, %v1922_v21  ;;  %v8011_v13 = vld [vmem:[#allocation6 + $0x160] sm:$0xff]  ;;  %v8017_v56 = vld [vmem:[#allocation6 + $0x170] sm:$0xff]  ;;  %v8044_v50 = vld [vmem:[#allocation6 + $0x138] sm:$0xff] }
 0x302   :  { %v1816_v36 = vmul.f32 %v5077_v14, %v1810_v6  ;;  %v1963_v4 = vmul.f32 %v1941_v61, %v7700_v23  ;;  %v1951_v8 = vmul.f32 %v7936_v7, %v1950_v0  ;;  %v7956_v23 = vld [vmem:[#allocation6 + $0x1f0] sm:$0xff]  ;;  %v8014_v6 = vld [vmem:[#allocation6 + $0x168] sm:$0xff]  ;;  %v8020_v0 = vld [vmem:[#allocation6 + $0x178] sm:$0xff] }
 0x303   :  { %v8026_v61 = vld [vmem:[#allocation6 + $0x148] sm:$0xff]  ;;  %v8047_v15 = vld [vmem:[#allocation6 + $0x100] sm:$0xff] }
 0x304   :  { %1988 = vmatmul.f32.vlgmr.msra.gmra.mxu0 %v1816_v36  ;;  %2008 = vmatmul.f32.vlgmr.msra.gmra.mxu1 %v1816_v36  ;;  %v7946_v59 = vadd.f32 %v1964_v47, %v1963_v4  ;;  %v1952_v9 = vadd.f32 %v7936_v7, %v1951_v8  ;;  %v8029_v47 = vld [vmem:[#allocation6 + $0x150] sm:$0xff]  ;;  %v8032_v4 = vld [vmem:[#allocation6 + $0x158] sm:$0xff]  ;;  %v8035_v8 = vld [vmem:[#allocation6 + $0x120] sm:$0xff]  ;;  %11039 = vst [vmem:[#allocation55_spill] sm:$0xff] %v8047_v15 }
 0x305   :  { %2028 = vmatmul.f32.vlgmr.msra.gmra.mxu2 %v1816_v36  ;;  %2048 = vmatmul.f32.vlgmr.msra.gmra.mxu3 %v1816_v36  ;;  %v8023_v36 = vld [vmem:[#allocation6 + $0x140] sm:$0xff] }
 0x306   :  { %2274 = vmatpush.msra.mxu0 %v7948_v19  ;;  %2294 = vmatpush.msra.mxu1 %v7951_v25  ;;  %5078 = vtanh.f32 %v7946_v59  ;;  %v1956_v42 = vsel %vm7980_vm7, %v7936_v7, %v1952_v9  ;;  %v8008_v7 = vld [vmem:[#allocation6 + $0x198] sm:$0xff]  ;;  %v8038_v9 = vld [vmem:[#allocation6 + $0x128] sm:$0xff] }
 0x307   :  { %2314 = vmatpush.msra.mxu2 %v7956_v23  ;;  %2334 = vmatpush.msra.mxu3 %v7959_v33  ;;  %v1961_v12 = vsel %vm1958_vm8, %v1960_v17, %v1956_v42  ;;  %v8050_v42 = vld [vmem:[#allocation6 + $0x108] sm:$0xff]  ;;  %v8053_v17 = vld [vmem:[#allocation6 + $0x110] sm:$0xff] }
 0x308   :  { %2275 = vmatpush.msra.mxu0 %v7964_v38  ;;  %2295 = vmatpush.msra.mxu1 %v7967_v60  ;;  %11040 = vst [vmem:[#allocation54_spill] sm:$0xff] %v8050_v42 }
 0x309   :  { %2315 = vmatpush.msra.mxu2 %v7972_v34  ;;  %2335 = vmatpush.msra.mxu3 %v7975_v51  ;;  %11041 = vst [vmem:[#allocation64_spill] sm:$0xff] %v8053_v17 }
 0x30a   :  { %2276 = vmatpush.msra.mxu0 %v7984_v30  ;;  %2296 = vmatpush.msra.mxu1 %v7987_v48 }
 0x30b   :  { %2316 = vmatpush.msra.mxu2 %v7993_v46  ;;  %2336 = vmatpush.msra.mxu3 %v7996_v10 }
 0x30c   :  { %2277 = vmatpush.msra.mxu0 %v7999_v3  ;;  %2297 = vmatpush.msra.mxu1 %v8002_v55  ;;  %v5079_v14 = vpop.eup %5078 }
 0x30d   :  { %2317 = vmatpush.msra.mxu2 %v8005_v29  ;;  %2337 = vmatpush.msra.mxu3 %v8008_v7  ;;  %v1967_v21 = vmul.f32 %v5079_v14, %v1961_v12  ;;  %v8056_v14 = vld [vmem:[#allocation6 + $0x118] sm:$0xff]  ;;  %v8059_v12 = vld [vmem:[#allocation6 + $0xe0] sm:$0xff] }
 0x30e   :  { %2278 = vmatpush.msra.mxu0 %v8011_v13  ;;  %2298 = vmatpush.msra.mxu1 %v8014_v6  ;;  %11042 = vst [vmem:[#allocation51_spill] sm:$0xff] %v8056_v14 }
 0x30f   :  { %2318 = vmatpush.msra.mxu2 %v8017_v56  ;;  %2338 = vmatpush.msra.mxu3 %v8020_v0  ;;  %11043 = vst [vmem:[#allocation116_spill] sm:$0xff] %v8059_v12 }
 0x310   :  { %2279 = vmatpush.msra.mxu0 %v8023_v36  ;;  %2299 = vmatpush.msra.mxu1 %v8026_v61 }
 0x311   :  { %2139 = vmatmul.f32.vlgmr.msrb.gmra.mxu0 %v1967_v21  ;;  %2159 = vmatmul.f32.vlgmr.msrb.gmra.mxu1 %v1967_v21 }
 0x312   :  { %2179 = vmatmul.f32.vlgmr.msrb.gmra.mxu2 %v1967_v21  ;;  %2199 = vmatmul.f32.vlgmr.msrb.gmra.mxu3 %v1967_v21  ;;  %v8062_v21 = vld [vmem:[#allocation6 + $0xe8] sm:$0xff] }
 0x313   :  { %2319 = vmatpush.msra.mxu2 %v8029_v47  ;;  %2339 = vmatpush.msra.mxu3 %v8032_v4  ;;  %11044 = vst [vmem:[#allocation117_spill] sm:$0xff] %v8062_v21 }
 0x314   :  { %2280 = vmatpush.msra.mxu0 %v8035_v8  ;;  %2300 = vmatpush.msra.mxu1 %v8038_v9 }
 0x315   :  { %2320 = vmatpush.msra.mxu2 %v8041_v31  ;;  %2340 = vmatpush.msra.mxu3 %v8044_v50 }
 0x316   :  { %2281 = vmatpush.msra.mxu0 %v8047_v15  ;;  %2301 = vmatpush.msra.mxu1 %v8050_v42  ;;  %v8065_v15 = vld [vmem:[#allocation6 + $0xf0] sm:$0xff]  ;;  %v8068_v42 = vld [vmem:[#allocation6 + $0xf8] sm:$0xff] }
 0x317   :  { %2321 = vmatpush.msra.mxu2 %v8053_v17  ;;  %2341 = vmatpush.msra.mxu3 %v8056_v14  ;;  %11045 = vst [vmem:[#allocation118_spill] sm:$0xff] %v8065_v15  ;;  %v8071_v17 = vld [vmem:[#allocation6 + $0xc0] sm:$0xff]  ;;  %v8074_v14 = vld [vmem:[#allocation6 + $0xc8] sm:$0xff] }
 0x318   :  { %2282 = vmatpush.msra.mxu0 %v8059_v12  ;;  %2302 = vmatpush.msra.mxu1 %v8062_v21  ;;  %11046 = vst [vmem:[#allocation119_spill] sm:$0xff] %v8068_v42  ;;  %v8077_v12 = vld [vmem:[#allocation6 + $0xd0] sm:$0xff]  ;;  %v8080_v21 = vld [vmem:[#allocation6 + $0xd8] sm:$0xff] }
 0x319   :  { %2322 = vmatpush.msra.mxu2 %v8065_v15  ;;  %2342 = vmatpush.msra.mxu3 %v8068_v42  ;;  %11047 = vst [vmem:[#allocation120_spill] sm:$0xff] %v8071_v17  ;;  %v8083_v15 = vld [vmem:[#allocation6 + $0xa0] sm:$0xff]  ;;  %v8086_v42 = vld [vmem:[#allocation6 + $0xa8] sm:$0xff] }
 0x31a   :  { %2283 = vmatpush.msra.mxu0 %v8071_v17  ;;  %11048 = vst [vmem:[#allocation121_spill] sm:$0xff] %v8074_v14  ;;  %2303 = vmatpush.msra.mxu1 %v8074_v14  ;;  %v8089_v17 = vld [vmem:[#allocation6 + $0xb0] sm:$0xff]  ;;  %v8092_v14 = vld [vmem:[#allocation6 + $0xb8] sm:$0xff] }
 0x31b   :  { %11049 = vst [vmem:[#allocation122_spill] sm:$0xff] %v8077_v12  ;;  %2323 = vmatpush.msra.mxu2 %v8077_v12  ;;  %2343 = vmatpush.msra.mxu3 %v8080_v21  ;;  %v8095_v12 = vld [vmem:[#allocation6 + $0x80] sm:$0xff] }
 0x31c   :  { %11050 = vst [vmem:[#allocation123_spill] sm:$0xff] %v8080_v21  ;;  %2284 = vmatpush.msra.mxu0 %v8083_v15  ;;  %2304 = vmatpush.msra.mxu1 %v8086_v42  ;;  %v8098_v21 = vld [vmem:[#allocation6 + $0x88] sm:$0xff] }
 0x31d   :  { %11051 = vst [vmem:[#allocation124_spill] sm:$0xff] %v8083_v15  ;;  %2324 = vmatpush.msra.mxu2 %v8089_v17  ;;  %2344 = vmatpush.msra.mxu3 %v8092_v14  ;;  %v8101_v15 = vld [vmem:[#allocation6 + $0x90] sm:$0xff] }
 0x31e   :  { %11052 = vst [vmem:[#allocation125_spill] sm:$0xff] %v8086_v42  ;;  %2285 = vmatpush.msra.mxu0 %v8095_v12  ;;  %2305 = vmatpush.msra.mxu1 %v8098_v21  ;;  %v8104_v42 = vld [vmem:[#allocation6 + $0x98] sm:$0xff] }
 0x31f   :  { %11053 = vst [vmem:[#allocation126_spill] sm:$0xff] %v8089_v17  ;;  %2325 = vmatpush.msra.mxu2 %v8101_v15  ;;  %2345 = vmatpush.msra.mxu3 %v8104_v42  ;;  %v8107_v17 = vld [vmem:[#allocation6 + $0x60] sm:$0xff] }
 0x320   :  { %11054 = vst [vmem:[#allocation127_spill] sm:$0xff] %v8092_v14  ;;  %2286 = vmatpush.msra.mxu0 %v8107_v17  ;;  %v8110_v14 = vld [vmem:[#allocation6 + $0x68] sm:$0xff] }
 0x321   :  { %11055 = vst [vmem:[#allocation128_spill] sm:$0xff] %v8095_v12  ;;  %2306 = vmatpush.msra.mxu1 %v8110_v14  ;;  %v8113_v12 = vld [vmem:[#allocation6 + $0x70] sm:$0xff] }
 0x322   :  { %11056 = vst [vmem:[#allocation129_spill] sm:$0xff] %v8098_v21  ;;  %2326 = vmatpush.msra.mxu2 %v8113_v12  ;;  %v8116_v21 = vld [vmem:[#allocation6 + $0x78] sm:$0xff] }
 0x323   :  { %11057 = vst [vmem:[#allocation130_spill] sm:$0xff] %v8101_v15  ;;  %2346 = vmatpush.msra.mxu3 %v8116_v21  ;;  %v8119_v15 = vld [vmem:[#allocation6 + $0x40] sm:$0xff] }
 0x324   :  { %11058 = vst [vmem:[#allocation131_spill] sm:$0xff] %v8104_v42  ;;  %2287 = vmatpush.msra.mxu0 %v8119_v15  ;;  %v8122_v42 = vld [vmem:[#allocation6 + $0x48] sm:$0xff] }
 0x325   :  { %11059 = vst [vmem:[#allocation132_spill] sm:$0xff] %v8107_v17  ;;  %2307 = vmatpush.msra.mxu1 %v8122_v42  ;;  %v8125_v17 = vld [vmem:[#allocation6 + $0x50] sm:$0xff] }
 0x326   :  { %11060 = vst [vmem:[#allocation133_spill] sm:$0xff] %v8110_v14  ;;  %2327 = vmatpush.msra.mxu2 %v8125_v17  ;;  %v8128_v14 = vld [vmem:[#allocation6 + $0x58] sm:$0xff] }
 0x327   :  { %11061 = vst [vmem:[#allocation134_spill] sm:$0xff] %v8113_v12  ;;  %2347 = vmatpush.msra.mxu3 %v8128_v14  ;;  %v8131_v12 = vld [vmem:[#allocation6 + $0x20] sm:$0xff] }
 0x328   :  { %11062 = vst [vmem:[#allocation135_spill] sm:$0xff] %v8116_v21  ;;  %2288 = vmatpush.msra.mxu0 %v8131_v12  ;;  %v8134_v21 = vld [vmem:[#allocation6 + $0x28] sm:$0xff] }
 0x329   :  { %11063 = vst [vmem:[#allocation136_spill] sm:$0xff] %v8119_v15  ;;  %2308 = vmatpush.msra.mxu1 %v8134_v21  ;;  %v8137_v15 = vld [vmem:[#allocation6 + $0x30] sm:$0xff] }
 0x32a   :  { %11064 = vst [vmem:[#allocation137_spill] sm:$0xff] %v8122_v42  ;;  %2328 = vmatpush.msra.mxu2 %v8137_v15  ;;  %v8140_v42 = vld [vmem:[#allocation6 + $0x38] sm:$0xff] }
 0x32b   :  { %11065 = vst [vmem:[#allocation138_spill] sm:$0xff] %v8125_v17  ;;  %2348 = vmatpush.msra.mxu3 %v8140_v42  ;;  %v8143_v17 = vld [vmem:[#allocation6] sm:$0xff] }
 0x32c   :  { %11066 = vst [vmem:[#allocation139_spill] sm:$0xff] %v8128_v14  ;;  %2289 = vmatpush.msra.mxu0 %v8143_v17  ;;  %v8146_v14 = vld [vmem:[#allocation6 + $0x8] sm:$0xff] }
 0x32d   :  { %11067 = vst [vmem:[#allocation140_spill] sm:$0xff] %v8131_v12  ;;  %2309 = vmatpush.msra.mxu1 %v8146_v14  ;;  %v8149_v12 = vld [vmem:[#allocation6 + $0x10] sm:$0xff] }
 0x32e   :  { %11068 = vst [vmem:[#allocation141_spill] sm:$0xff] %v8134_v21  ;;  %2329 = vmatpush.msra.mxu2 %v8149_v12  ;;  %v8152_v21 = vld [vmem:[#allocation6 + $0x18] sm:$0xff] }
 0x32f   :  { %11069 = vst [vmem:[#allocation142_spill] sm:$0xff] %v8137_v15  ;;  %2349 = vmatpush.msra.mxu3 %v8152_v21  ;;  %v8155_v15 = vld [vmem:[#allocation11 + $0x1e0] sm:$0xff] }
 0x330   :  { %11070 = vst [vmem:[#allocation143_spill] sm:$0xff] %v8140_v42  ;;  %2425 = vmatpush.msrb.mxu0 %v8155_v15  ;;  %v8158_v42 = vld [vmem:[#allocation11 + $0x1e8] sm:$0xff] }
 0x331   :  { %11071 = vst [vmem:[#allocation144_spill] sm:$0xff] %v8143_v17  ;;  %2445 = vmatpush.msrb.mxu1 %v8158_v42  ;;  %v8161_v17 = vld [vmem:[#allocation11 + $0x1f0] sm:$0xff] }
 0x332   :  { %11072 = vst [vmem:[#allocation145_spill] sm:$0xff] %v8146_v14  ;;  %2465 = vmatpush.msrb.mxu2 %v8161_v17  ;;  %v8164_v14 = vld [vmem:[#allocation11 + $0x1f8] sm:$0xff] }
 0x333   :  { %11073 = vst [vmem:[#allocation146_spill] sm:$0xff] %v8149_v12  ;;  %2485 = vmatpush.msrb.mxu3 %v8164_v14  ;;  %v8167_v12 = vld [vmem:[#allocation11 + $0x1c0] sm:$0xff] }
 0x334   :  { %11074 = vst [vmem:[#allocation147_spill] sm:$0xff] %v8152_v21  ;;  %2426 = vmatpush.msrb.mxu0 %v8167_v12  ;;  %v8170_v21 = vld [vmem:[#allocation11 + $0x1c8] sm:$0xff] }
 0x335   :  { %11075 = vst [vmem:[#allocation148_spill] sm:$0xff] %v8155_v15  ;;  %2446 = vmatpush.msrb.mxu1 %v8170_v21  ;;  %v8173_v15 = vld [vmem:[#allocation11 + $0x1d0] sm:$0xff] }
 0x336   :  { %11076 = vst [vmem:[#allocation149_spill] sm:$0xff] %v8158_v42  ;;  %2466 = vmatpush.msrb.mxu2 %v8173_v15  ;;  %v8176_v42 = vld [vmem:[#allocation11 + $0x1d8] sm:$0xff] }
 0x337   :  { %11077 = vst [vmem:[#allocation150_spill] sm:$0xff] %v8161_v17  ;;  %2486 = vmatpush.msrb.mxu3 %v8176_v42  ;;  %v8179_v17 = vld [vmem:[#allocation11 + $0x1a0] sm:$0xff] }
 0x338   :  { %11078 = vst [vmem:[#allocation151_spill] sm:$0xff] %v8164_v14  ;;  %2427 = vmatpush.msrb.mxu0 %v8179_v17  ;;  %v8182_v14 = vld [vmem:[#allocation11 + $0x1a8] sm:$0xff] }
 0x339   :  { %11079 = vst [vmem:[#allocation152_spill] sm:$0xff] %v8167_v12  ;;  %2447 = vmatpush.msrb.mxu1 %v8182_v14  ;;  %v8185_v12 = vld [vmem:[#allocation11 + $0x1b0] sm:$0xff] }
 0x33a   :  { %11080 = vst [vmem:[#allocation153_spill] sm:$0xff] %v8170_v21  ;;  %2467 = vmatpush.msrb.mxu2 %v8185_v12  ;;  %v8188_v21 = vld [vmem:[#allocation11 + $0x1b8] sm:$0xff] }
 0x33b   :  { %11081 = vst [vmem:[#allocation154_spill] sm:$0xff] %v8173_v15  ;;  %2487 = vmatpush.msrb.mxu3 %v8188_v21  ;;  %v8191_v15 = vld [vmem:[#allocation11 + $0x180] sm:$0xff] }
 0x33c   :  { %11082 = vst [vmem:[#allocation155_spill] sm:$0xff] %v8176_v42  ;;  %2428 = vmatpush.msrb.mxu0 %v8191_v15  ;;  %v8194_v42 = vld [vmem:[#allocation11 + $0x188] sm:$0xff] }
 0x33d   :  { %11083 = vst [vmem:[#allocation156_spill] sm:$0xff] %v8179_v17  ;;  %2448 = vmatpush.msrb.mxu1 %v8194_v42  ;;  %v8197_v17 = vld [vmem:[#allocation11 + $0x190] sm:$0xff] }
 0x33e   :  { %11084 = vst [vmem:[#allocation157_spill] sm:$0xff] %v8182_v14  ;;  %2468 = vmatpush.msrb.mxu2 %v8197_v17  ;;  %v8200_v14 = vld [vmem:[#allocation11 + $0x198] sm:$0xff] }
 0x33f   :  { %11085 = vst [vmem:[#allocation158_spill] sm:$0xff] %v8185_v12  ;;  %2488 = vmatpush.msrb.mxu3 %v8200_v14  ;;  %v8203_v12 = vld [vmem:[#allocation11 + $0x160] sm:$0xff] }
 0x340   :  { %11086 = vst [vmem:[#allocation159_spill] sm:$0xff] %v8188_v21  ;;  %2429 = vmatpush.msrb.mxu0 %v8203_v12  ;;  %v8206_v21 = vld [vmem:[#allocation11 + $0x168] sm:$0xff] }
 0x341   :  { %11087 = vst [vmem:[#allocation160_spill] sm:$0xff] %v8191_v15  ;;  %2449 = vmatpush.msrb.mxu1 %v8206_v21  ;;  %v8209_v15 = vld [vmem:[#allocation11 + $0x170] sm:$0xff] }
 0x342   :  { %11088 = vst [vmem:[#allocation161_spill] sm:$0xff] %v8194_v42  ;;  %2469 = vmatpush.msrb.mxu2 %v8209_v15  ;;  %v8212_v42 = vld [vmem:[#allocation11 + $0x178] sm:$0xff] }
 0x343   :  { %11089 = vst [vmem:[#allocation162_spill] sm:$0xff] %v8197_v17  ;;  %2489 = vmatpush.msrb.mxu3 %v8212_v42  ;;  %v8215_v17 = vld [vmem:[#allocation11 + $0x140] sm:$0xff] }
 0x344   :  { %11090 = vst [vmem:[#allocation163_spill] sm:$0xff] %v8200_v14  ;;  %2430 = vmatpush.msrb.mxu0 %v8215_v17  ;;  %v8218_v14 = vld [vmem:[#allocation11 + $0x148] sm:$0xff] }
 0x345   :  { %11091 = vst [vmem:[#allocation164_spill] sm:$0xff] %v8203_v12  ;;  %2450 = vmatpush.msrb.mxu1 %v8218_v14  ;;  %v8221_v12 = vld [vmem:[#allocation11 + $0x150] sm:$0xff] }
 0x346   :  { %11092 = vst [vmem:[#allocation165_spill] sm:$0xff] %v8206_v21  ;;  %2470 = vmatpush.msrb.mxu2 %v8221_v12  ;;  %v8224_v21 = vld [vmem:[#allocation11 + $0x158] sm:$0xff] }
 0x347   :  { %11093 = vst [vmem:[#allocation166_spill] sm:$0xff] %v8209_v15  ;;  %2490 = vmatpush.msrb.mxu3 %v8224_v21  ;;  %v8227_v15 = vld [vmem:[#allocation11 + $0x120] sm:$0xff] }
 0x348   :  { %11094 = vst [vmem:[#allocation167_spill] sm:$0xff] %v8212_v42  ;;  %2431 = vmatpush.msrb.mxu0 %v8227_v15  ;;  %v8230_v42 = vld [vmem:[#allocation11 + $0x128] sm:$0xff] }
 0x349   :  { %11095 = vst [vmem:[#allocation168_spill] sm:$0xff] %v8215_v17  ;;  %2451 = vmatpush.msrb.mxu1 %v8230_v42  ;;  %v8233_v17 = vld [vmem:[#allocation11 + $0x130] sm:$0xff] }
 0x34a   :  { %11096 = vst [vmem:[#allocation169_spill] sm:$0xff] %v8218_v14  ;;  %2471 = vmatpush.msrb.mxu2 %v8233_v17  ;;  %v8236_v14 = vld [vmem:[#allocation11 + $0x138] sm:$0xff] }
 0x34b   :  { %11097 = vst [vmem:[#allocation170_spill] sm:$0xff] %v8221_v12  ;;  %2491 = vmatpush.msrb.mxu3 %v8236_v14  ;;  %v8239_v12 = vld [vmem:[#allocation11 + $0x100] sm:$0xff] }
 0x34c   :  { %11098 = vst [vmem:[#allocation171_spill] sm:$0xff] %v8224_v21  ;;  %2432 = vmatpush.msrb.mxu0 %v8239_v12  ;;  %v8242_v21 = vld [vmem:[#allocation11 + $0x108] sm:$0xff] }
 0x34d   :  { %11099 = vst [vmem:[#allocation172_spill] sm:$0xff] %v8227_v15  ;;  %2452 = vmatpush.msrb.mxu1 %v8242_v21  ;;  %v8245_v15 = vld [vmem:[#allocation11 + $0x110] sm:$0xff] }
 0x34e   :  { %11100 = vst [vmem:[#allocation173_spill] sm:$0xff] %v8230_v42  ;;  %2472 = vmatpush.msrb.mxu2 %v8245_v15  ;;  %v8248_v42 = vld [vmem:[#allocation11 + $0x118] sm:$0xff] }
 0x34f   :  { %11101 = vst [vmem:[#allocation174_spill] sm:$0xff] %v8233_v17  ;;  %2492 = vmatpush.msrb.mxu3 %v8248_v42  ;;  %v8251_v17 = vld [vmem:[#allocation11 + $0xe0] sm:$0xff] }
 0x350   :  { %11102 = vst [vmem:[#allocation175_spill] sm:$0xff] %v8236_v14  ;;  %2433 = vmatpush.msrb.mxu0 %v8251_v17  ;;  %v8254_v14 = vld [vmem:[#allocation11 + $0xe8] sm:$0xff] }
 0x351   :  { %11103 = vst [vmem:[#allocation176_spill] sm:$0xff] %v8239_v12  ;;  %2453 = vmatpush.msrb.mxu1 %v8254_v14  ;;  %v8257_v12 = vld [vmem:[#allocation11 + $0xf0] sm:$0xff] }
 0x352   :  { %11104 = vst [vmem:[#allocation177_spill] sm:$0xff] %v8242_v21  ;;  %2473 = vmatpush.msrb.mxu2 %v8257_v12  ;;  %v8260_v21 = vld [vmem:[#allocation11 + $0xf8] sm:$0xff] }
 0x353   :  { %11105 = vst [vmem:[#allocation178_spill] sm:$0xff] %v8245_v15  ;;  %2493 = vmatpush.msrb.mxu3 %v8260_v21  ;;  %v8263_v15 = vld [vmem:[#allocation11 + $0xc0] sm:$0xff]  ;;  %2454 = vmatpush.msrb.mxu1 %v7807_v24 }
 0x354   :  { %11106 = vst [vmem:[#allocation179_spill] sm:$0xff] %v8251_v17  ;;  %2434 = vmatpush.msrb.mxu0 %v8263_v15  ;;  %2474 = vmatpush.msrb.mxu2 %v7810_v39  ;;  %v8269_v17 = vld [vmem:[#allocation11 + $0xa0] sm:$0xff] }
 0x355   :  { %11107 = vst [vmem:[#allocation180_spill] sm:$0xff] %v8260_v21  ;;  %2494 = vmatpush.msrb.mxu3 %v7813_v18  ;;  %2455 = vmatpush.msrb.mxu1 %v7817_v53  ;;  %v8275_v21 = vld [vmem:[#allocation11 + $0x80] sm:$0xff] }
 0x356   :  { %2435 = vmatpush.msrb.mxu0 %v8269_v17  ;;  %2475 = vmatpush.msrb.mxu2 %v7820_v45  ;;  %v8281_v24 = vld [vmem:[#allocation11 + $0x60] sm:$0xff]  ;;  %v11110_v45 = vld [vmem:[#allocation78_spill] sm:$0xff] }
 0x357   :  { %2495 = vmatpush.msrb.mxu3 %v7823_v57  ;;  %2456 = vmatpush.msrb.mxu1 %v7827_v32  ;;  %v8287_v39 = vld [vmem:[#allocation11 + $0x40] sm:$0xff]  ;;  %v274_v57 = vadd.f32 %v11110_v45, %v11018_v2 }
 0x358   :  { %2436 = vmatpush.msrb.mxu0 %v8275_v21  ;;  %2476 = vmatpush.msrb.mxu2 %v7830_v27  ;;  %v8293_v18 = vld [vmem:[#allocation11 + $0x20] sm:$0xff] }
 0x359   :  { %2496 = vmatpush.msrb.mxu3 %v7833_v44  ;;  %2457 = vmatpush.msrb.mxu1 %v7837_v58  ;;  %11108 = vst [vmem:[#allocation181_spill] sm:$0xff] %v8293_v18  ;;  %v8299_v53 = vld [vmem:[#allocation11] sm:$0xff]  ;;  %v11111_v44 = vld [vmem:[#allocation26_spill] sm:$0xff] }
 0x35a   :  { %2437 = vmatpush.msrb.mxu0 %v8281_v24  ;;  %2477 = vmatpush.msrb.mxu2 %v7840_v62  ;;  %11109 = vst [vmem:[#allocation182_spill] sm:$0xff] %v8299_v53 }
 0x35b   :  { %2497 = vmatpush.msrb.mxu3 %v7843_v22  ;;  %2458 = vmatpush.msrb.mxu1 %v7847_v16 }
 0x35c   :  { %2438 = vmatpush.msrb.mxu0 %v8287_v39  ;;  %2478 = vmatpush.msrb.mxu2 %v7850_v41  ;;  %v11112_v41 = vld [vmem:[#allocation76_spill] sm:$0xff] }
 0x35d   :  { %2498 = vmatpush.msrb.mxu3 %v7853_v1  ;;  %2459 = vmatpush.msrb.mxu1 %v7857_v43  ;;  %v356_v1 = vadd.f32 %v11112_v41, %v11020_v52  ;;  %v11115_v41 = vld [vmem:[#allocation83_spill] sm:$0xff] }
 0x35e   :  { %2439 = vmatpush.msrb.mxu0 %v8293_v18  ;;  %2479 = vmatpush.msrb.mxu2 %v7860_v40 }
 0x35f   :  { %2499 = vmatpush.msrb.mxu3 %v7863_v5  ;;  %2460 = vmatpush.msrb.mxu1 %v7867_v20 }
 0x360   :  { %2440 = vmatpush.msrb.mxu0 %v8299_v53  ;;  %2480 = vmatpush.msrb.mxu2 %v7870_v28 }
 0x361   :  { %2500 = vmatpush.msrb.mxu3 %v7873_v54 }
 0x381   :  { %v1989_v32 = vpop.f32.mrf.mxu0  ;;  %v2009_v27 = vpop.f32.mrf.mxu1 }
 0x382   :  { %v2052_v58 = vadd.f32 %v1989_v32, %v11111_v44  ;;  %v2053_v62 = vadd.f32 %v2009_v27, %v274_v57  ;;  %v11113_v32 = vld [vmem:[#allocation105_spill] sm:$0xff] }
 0x383   :  { %v458_v57 = vadd.f32 %v11113_v32, %v11022_v26  ;;  %v11114_v27 = vld [vmem:[#allocation41_spill] sm:$0xff] }
 0x384   :  { %v4909_v22 = vmul.f32 -1.442695, %v2052_v58  ;;  %v4910_v16 = vmul.f32 -1.442695, %v2053_v62  ;;  %v499_v44 = vadd.f32 %v11114_v27, %v11024_v35  ;;  %v11116_v27 = vld [vmem:[#allocation40_spill] sm:$0xff] }
 0x385   :  { %v581_v35 = vadd.f32 %v11116_v27, %v11026_v37 }
 0x386   :  { %5080 = vpow2.f32 %v4909_v22 }
 0x387   :  { %5082 = vpow2.f32 %v4910_v16 }
 0x388   :  { %v2049_v43 = vpop.f32.mrf.mxu3  ;;  %v2029_v22 = vpop.f32.mrf.mxu2 }
 0x389   :  { %v2055_v40 = vadd.f32 %v2049_v43, %v356_v1  ;;  %v315_v1 = vadd.f32 %v11115_v41, %v11028_v49 }
 0x38b   :  { %v4911_v5 = vmul.f32 -1.442695, %v2055_v40 }
 0x38c   :  { %v5081_v20 = vpop.eup %5080 }
 0x38d   :  { %v5083_v28 = vpop.eup %5082  ;;  %v2059_v54 = vadd.f32 1.0, %v5081_v20  ;;  %5084 = vpow2.f32 %v4911_v5 }
 0x38e   :  { %v2078_v45 = vadd.f32 1.0, %v5083_v28  ;;  %v2140_v2 = vpop.f32.mrf.mxu0  ;;  %v2160_v53 = vpop.f32.mrf.mxu1  ;;  %v2054_v28 = vadd.f32 %v2029_v22, %v315_v1 }
 0x38f   :  { %5086 = vrcp.f32 %v2059_v54  ;;  %v2203_v58 = vadd.f32 %v2140_v2, %v458_v57  ;;  %v2204_v62 = vadd.f32 %v2160_v53, %v499_v44  ;;  %vm2065_vm11 = vweird.f32 %v2059_v54 }
 0x390   :  { %5088 = vrcp.f32 %v2078_v45  ;;  %v2088_v27 = vand.u32 2147483647, %v2078_v45  ;;  %vm2084_vm12 = vweird.f32 %v2078_v45 }
 0x391   :  { %v4912_v43 = vmul.f32 -1.442695, %v2203_v58  ;;  %v4913_v40 = vmul.f32 -1.442695, %v2204_v62  ;;  %v2069_v58 = vand.u32 2147483647, %v2059_v54 }
 0x392   :  { %v2071_v62 = vand.u32 2147483648, %v2059_v54  ;;  %vm2089_vm0 = vcmp.eq.f32.partialorder %v2088_v27, 8.507059e+37 }
 0x393   :  { %v5085_v16 = vpop.eup %5084  ;;  %5090 = vpow2.f32 %v4912_v43  ;;  %vm2070_vm14 = vcmp.eq.f32.partialorder %v2069_v58, 8.507059e+37 }
 0x394   :  { %v8316_v5 = vadd.f32 1.0, %v5085_v16  ;;  %v2090_v16 = vand.u32 2147483648, %v2078_v45 }
 0x395   :  { %v5087_v20 = vpop.eup %5086  ;;  %v2200_v32 = vpop.f32.mrf.mxu3 }
 0x396   :  { %v5089_v26 = vpop.eup %5088  ;;  %v2061_v52 = vmul.f32 %v5087_v20, %v2059_v54  ;;  %5092 = vrcp.f32 %v8316_v5  ;;  %v2206_v57 = vadd.f32 %v2200_v32, %v581_v35  ;;  %vm2066_vm9 = vweird.f32 %v5087_v20 }
 0x397   :  { %v2080_v2 = vmul.f32 %v5089_v26, %v2078_v45  ;;  %5094 = vpow2.f32 %v4913_v40  ;;  %vm2085_vm10 = vweird.f32 %v5089_v26  ;;  %vm2067_vm13 = vmor %vm2065_vm11, %vm2066_vm9  ;;  %v2072_v35 = vor.u32 1.1754944e-38, %v2071_v62 }
 0x398   :  { %v2062_v53 = vsub.f32 1.0, %v2061_v52  ;;  %5096 = vtanh.f32 %v2054_v28  ;;  %v4914_v22 = vmul.f32 -1.442695, %v2206_v57  ;;  %vm2086_vm15 = vmor %vm2084_vm12, %vm2085_vm10  ;;  %v2110_v27 = vand.u32 2147483648, %v8316_v5 }
 0x399   :  { %v2081_v44 = vsub.f32 1.0, %v2080_v2  ;;  %v5091_v1 = vpop.eup %5090  ;;  %v2091_v2 = vor.u32 1.1754944e-38, %v2090_v16  ;;  %vm2104_vm2 = vweird.f32 %v8316_v5 }
 0x39a   :  { %v2063_v41 = vmul.f32 %v5087_v20, %v2062_v53  ;;  %v8323_v40 = vadd.f32 1.0, %v5091_v1  ;;  %5098 = vpow2.f32 %v4914_v22 }
 0x39b   :  { %v2082_v43 = vmul.f32 %v5089_v26, %v2081_v44 }
 0x39c   :  { %v8321_v37 = vpop.eup %5092  ;;  %v2064_v49 = vadd.f32 %v5087_v20, %v2063_v41  ;;  %5100 = vrcp.f32 %v8323_v40  ;;  %vm2216_vm5 = vweird.f32 %v8323_v40 }
 0x39d   :  { %v5095_v52 = vpop.eup %5094  ;;  %v2083_v28 = vadd.f32 %v5089_v26, %v2082_v43  ;;  %v2100_v32 = vmul.f32 %v8321_v37, %v8316_v5  ;;  %v2180_v43 = vpop.f32.mrf.mxu2  ;;  %vm2105_vm1 = vweird.f32 %v8321_v37 }
 0x39e   :  { %v2068_v53 = vsel %vm2067_vm13, %v5087_v20, %v2064_v49  ;;  %v8328_v54 = vadd.f32 1.0, %v5095_v52  ;;  %v5097_v45 = vpop.eup %5096  ;;  %v11117_v49 = vld [vmem:[#allocation47_spill] sm:$0xff]  ;;  %vm8347_vm3 = vmor %vm2104_vm2, %vm2105_vm1 }
 0x39f   :  { %v2073_v57 = vsel %vm2070_vm14, %v2072_v35, %v2068_v53  ;;  %v2087_v44 = vsel %vm2086_vm15, %v5089_v26, %v2083_v28  ;;  %v2101_v41 = vsub.f32 1.0, %v2100_v32  ;;  %v540_v20 = vadd.f32 %v11117_v49, %v11030_v11 }
 0x3a0   :  { %v2092_v22 = vsel %vm2089_vm0, %v2091_v2, %v2087_v44  ;;  %v2115_v1 = vmul.f32 %v5097_v45, %v2073_v57  ;;  %5102 = vrcp.f32 %v8328_v54  ;;  %v5099_v16 = vpop.eup %5098  ;;  %v2108_v2 = vand.u32 2147483647, %v8316_v5 }
 0x3a1   :  { %v2114_v58 = vmul.f32 %v2092_v22, %v7910_v63  ;;  %v2102_v62 = vmul.f32 %v8321_v37, %v2101_v41  ;;  %v8337_v18 = vadd.f32 1.0, %v5099_v16  ;;  %v2205_v35 = vadd.f32 %v2180_v43, %v540_v20 }
 0x3a2   :  { %v5101_v26 = vpop.eup %5100  ;;  %v2111_v44 = vor.u32 1.1754944e-38, %v2110_v27  ;;  %v2222_v41 = vand.u32 2147483648, %v8323_v40  ;;  %v2220_v5 = vand.u32 2147483647, %v8323_v40  ;;  %v2239_v43 = vand.u32 2147483647, %v8328_v54 }
 0x3a3   :  { %v8335_v52 = vadd.f32 %v2115_v1, %v2114_v58  ;;  %v2103_v28 = vadd.f32 %v8321_v37, %v2102_v62  ;;  %v2212_v63 = vmul.f32 %v5101_v26, %v8323_v40  ;;  %vm2217_vm4 = vweird.f32 %v5101_v26 }
 0x3a4   :  { %v2241_v62 = vand.u32 2147483648, %v8328_v54  ;;  %vm2109_vm6 = vcmp.eq.f32.partialorder %v2108_v2, 8.507059e+37  ;;  %vm2235_vm8 = vweird.f32 %v8328_v54  ;;  %vm2218_vm9 = vmor %vm2216_vm5, %vm2217_vm4  ;;  %vm2221_vm10 = vcmp.eq.f32.partialorder %v2220_v5, 8.507059e+37  ;;  %v11143_v5 = vld [vmem:[#allocation135_spill] sm:$0xff] }
 0x3a5   :  { %5104 = vtanh.f32 %v8335_v52  ;;  %v2213_v45 = vsub.f32 1.0, %v2212_v63  ;;  %v2107_v22 = vsel %vm8347_vm3, %v8321_v37, %v2103_v28  ;;  %v2223_v37 = vor.u32 1.1754944e-38, %v2222_v41 }
 0x3a6   :  { %v5103_v32 = vpop.eup %5102  ;;  %5106 = vrcp.f32 %v8337_v18  ;;  %v2112_v27 = vsel %vm2109_vm6, %v2111_v44, %v2107_v22  ;;  %vm2240_vm12 = vcmp.eq.f32.partialorder %v2239_v43, 8.507059e+37  ;;  %vm2255_vm14 = vweird.f32 %v8337_v18  ;;  %v11145_v43 = vld [vmem:[#allocation137_spill] sm:$0xff] }
 0x3a7   :  { %v2231_v57 = vmul.f32 %v5103_v32, %v8328_v54  ;;  %5108 = vtanh.f32 %v2205_v35  ;;  %v2214_v58 = vmul.f32 %v5101_v26, %v2213_v45  ;;  %vm2236_vm7 = vweird.f32 %v5103_v32 }
 0x3a8   :  { %vm2237_vm11 = vmor %vm2235_vm8, %vm2236_vm7 }
 0x3a9   :  { %v2232_v1 = vsub.f32 1.0, %v2231_v57  ;;  %v2215_v20 = vadd.f32 %v5101_v26, %v2214_v58  ;;  %v2242_v57 = vor.u32 1.1754944e-38, %v2241_v62  ;;  %v11142_v58 = vld [vmem:[#allocation134_spill] sm:$0xff]  ;;  %v11144_v62 = vld [vmem:[#allocation136_spill] sm:$0xff] }
 0x3ab   :  { %v5105_v16 = vpop.eup %5104  ;;  %v2233_v49 = vmul.f32 %v5103_v32, %v2232_v1  ;;  %v2219_v63 = vsel %vm2218_vm9, %v5101_v26, %v2215_v20  ;;  %v11148_v20 = vld [vmem:[#allocation140_spill] sm:$0xff] }
 0x3ac   :  { %v5107_v35 = vpop.eup %5106  ;;  %v2118_v28 = vmul.f32 %v5105_v16, %v2112_v27  ;;  %v2224_v2 = vsel %vm2221_vm10, %v2223_v37, %v2219_v63  ;;  %v11146_v16 = vld [vmem:[#allocation138_spill] sm:$0xff]  ;;  %v11149_v27 = vld [vmem:[#allocation141_spill] sm:$0xff]  ;;  %v11151_v37 = vld [vmem:[#allocation143_spill] sm:$0xff] }
 0x3ad   :  { %v2234_v53 = vadd.f32 %v5103_v32, %v2233_v49  ;;  %v2251_v45 = vmul.f32 %v5107_v35, %v8337_v18  ;;  %v5109_v40 = vpop.eup %5108  ;;  %vm2256_vm13 = vweird.f32 %v5107_v35  ;;  %v11147_v49 = vld [vmem:[#allocation139_spill] sm:$0xff]  ;;  %v11153_v63 = vld [vmem:[#allocation145_spill] sm:$0xff] }
 0x3ae   :  { %2290 = vmatmul.f32.vlgmr.msra.gmra.mxu0 %v2118_v28  ;;  %2310 = vmatmul.f32.vlgmr.msra.gmra.mxu1 %v2118_v28  ;;  %v2266_v44 = vmul.f32 %v5109_v40, %v2224_v2  ;;  %vm2257_vm15 = vmor %vm2255_vm14, %vm2256_vm13  ;;  %v11156_v40 = vld [vmem:[#allocation148_spill] sm:$0xff]  ;;  %v11158_v2 = vld [vmem:[#allocation150_spill] sm:$0xff] }
 0x3af   :  { %v2238_v1 = vsel %vm2237_vm11, %v5103_v32, %v2234_v53  ;;  %v2252_v22 = vsub.f32 1.0, %v2251_v45  ;;  %2330 = vmatmul.f32.vlgmr.msra.gmra.mxu2 %v2118_v28  ;;  %2350 = vmatmul.f32.vlgmr.msra.gmra.mxu3 %v2118_v28  ;;  %v11152_v28 = vld [vmem:[#allocation144_spill] sm:$0xff]  ;;  %v11154_v53 = vld [vmem:[#allocation146_spill] sm:$0xff]  ;;  %v11155_v45 = vld [vmem:[#allocation147_spill] sm:$0xff] }
 0x3b0   :  { %v2243_v54 = vsel %vm2240_vm12, %v2242_v57, %v2238_v1  ;;  %2576 = vmatpush.msra.mxu0 %v7948_v19  ;;  %2596 = vmatpush.msra.mxu1 %v7951_v25  ;;  %v2259_v25 = vand.u32 2147483647, %v8337_v18  ;;  %v11157_v57 = vld [vmem:[#allocation149_spill] sm:$0xff]  ;;  %v11159_v1 = vld [vmem:[#allocation151_spill] sm:$0xff] }
 0x3b1   :  { %v2265_v26 = vmul.f32 %v2243_v54, %v7946_v59  ;;  %v2253_v41 = vmul.f32 %v5107_v35, %v2252_v22  ;;  %2616 = vmatpush.msra.mxu2 %v7956_v23  ;;  %2636 = vmatpush.msra.mxu3 %v7959_v33  ;;  %v2261_v59 = vand.u32 2147483648, %v8337_v18  ;;  %v11141_v18 = vld [vmem:[#allocation133_spill] sm:$0xff]  ;;  %v11162_v54 = vld [vmem:[#allocation154_spill] sm:$0xff] }
 0x3b2   :  { %2577 = vmatpush.msra.mxu0 %v7964_v38  ;;  %2597 = vmatpush.msra.mxu1 %v7967_v60  ;;  %vm2260_vm0 = vcmp.eq.f32.partialorder %v2259_v25, 8.507059e+37  ;;  %v11161_v22 = vld [vmem:[#allocation153_spill] sm:$0xff]  ;;  %v11167_v25 = vld [vmem:[#allocation159_spill] sm:$0xff] }
 0x3b3   :  { %v8369_v32 = vadd.f32 %v2266_v44, %v2265_v26  ;;  %2617 = vmatpush.msra.mxu2 %v7972_v34  ;;  %2637 = vmatpush.msra.mxu3 %v7975_v51  ;;  %v2254_v19 = vadd.f32 %v5107_v35, %v2253_v41  ;;  %v2262_v33 = vor.u32 1.1754944e-38, %v2261_v59  ;;  %v11120_v51 = vld [vmem:[#allocation55_spill] sm:$0xff]  ;;  %v11160_v44 = vld [vmem:[#allocation152_spill] sm:$0xff]  ;;  %v11166_v59 = vld [vmem:[#allocation158_spill] sm:$0xff] }
 0x3b4   :  { %2578 = vmatpush.msra.mxu0 %v7984_v30  ;;  %2598 = vmatpush.msra.mxu1 %v7987_v48  ;;  %v11121_v30 = vld [vmem:[#allocation54_spill] sm:$0xff]  ;;  %v11122_v48 = vld [vmem:[#allocation64_spill] sm:$0xff]  ;;  %v11163_v26 = vld [vmem:[#allocation155_spill] sm:$0xff] }
 0x3b5   :  { %5110 = vtanh.f32 %v8369_v32  ;;  %2618 = vmatpush.msra.mxu2 %v7993_v46  ;;  %2638 = vmatpush.msra.mxu3 %v7996_v10  ;;  %v2258_v23 = vsel %vm2257_vm15, %v5107_v35, %v2254_v19  ;;  %v11123_v46 = vld [vmem:[#allocation51_spill] sm:$0xff]  ;;  %v11124_v10 = vld [vmem:[#allocation116_spill] sm:$0xff]  ;;  %v11150_v35 = vld [vmem:[#allocation142_spill] sm:$0xff] }
 0x3b6   :  { %2579 = vmatpush.msra.mxu0 %v7999_v3  ;;  %2599 = vmatpush.msra.mxu1 %v8002_v55  ;;  %v2263_v60 = vsel %vm2260_vm0, %v2262_v33, %v2258_v23  ;;  %v11125_v3 = vld [vmem:[#allocation117_spill] sm:$0xff]  ;;  %v11126_v55 = vld [vmem:[#allocation118_spill] sm:$0xff]  ;;  %v11164_v41 = vld [vmem:[#allocation156_spill] sm:$0xff] }
 0x3b7   :  { %2619 = vmatpush.msra.mxu2 %v8005_v29  ;;  %2639 = vmatpush.msra.mxu3 %v8008_v7  ;;  %v11127_v29 = vld [vmem:[#allocation119_spill] sm:$0xff]  ;;  %v11128_v7 = vld [vmem:[#allocation120_spill] sm:$0xff]  ;;  %v11165_v19 = vld [vmem:[#allocation157_spill] sm:$0xff] }
 0x3b8   :  { %2580 = vmatpush.msra.mxu0 %v8011_v13  ;;  %2600 = vmatpush.msra.mxu1 %v8014_v6  ;;  %v11129_v13 = vld [vmem:[#allocation121_spill] sm:$0xff]  ;;  %v11130_v6 = vld [vmem:[#allocation122_spill] sm:$0xff]  ;;  %v11168_v23 = vld [vmem:[#allocation160_spill] sm:$0xff] }
 0x3b9   :  { %2620 = vmatpush.msra.mxu2 %v8017_v56  ;;  %2640 = vmatpush.msra.mxu3 %v8020_v0  ;;  %v11131_v56 = vld [vmem:[#allocation123_spill] sm:$0xff]  ;;  %v11132_v0 = vld [vmem:[#allocation124_spill] sm:$0xff]  ;;  %v11169_v33 = vld [vmem:[#allocation161_spill] sm:$0xff] }
 0x3ba   :  { %2581 = vmatpush.msra.mxu0 %v8023_v36  ;;  %2601 = vmatpush.msra.mxu1 %v8026_v61  ;;  %v11133_v36 = vld [vmem:[#allocation125_spill] sm:$0xff]  ;;  %v11134_v61 = vld [vmem:[#allocation126_spill] sm:$0xff] }
 0x3bb   :  { %v5111_v38 = vpop.eup %5110  ;;  %2621 = vmatpush.msra.mxu2 %v8029_v47  ;;  %2641 = vmatpush.msra.mxu3 %v8032_v4  ;;  %v11135_v47 = vld [vmem:[#allocation127_spill] sm:$0xff]  ;;  %v11136_v4 = vld [vmem:[#allocation128_spill] sm:$0xff] }
 0x3bc   :  { %v2269_v34 = vmul.f32 %v5111_v38, %v2263_v60  ;;  %2582 = vmatpush.msra.mxu0 %v8035_v8  ;;  %2602 = vmatpush.msra.mxu1 %v8038_v9  ;;  %v11137_v8 = vld [vmem:[#allocation129_spill] sm:$0xff]  ;;  %v11138_v9 = vld [vmem:[#allocation130_spill] sm:$0xff]  ;;  %v11171_v60 = vld [vmem:[#allocation163_spill] sm:$0xff] }
 0x3bd   :  { %2622 = vmatpush.msra.mxu2 %v8041_v31  ;;  %2642 = vmatpush.msra.mxu3 %v8044_v50  ;;  %v11139_v31 = vld [vmem:[#allocation131_spill] sm:$0xff]  ;;  %v11140_v50 = vld [vmem:[#allocation132_spill] sm:$0xff]  ;;  %v11170_v38 = vld [vmem:[#allocation162_spill] sm:$0xff] }
 0x3be   :  { %2441 = vmatmul.f32.vlgmr.msrb.gmra.mxu0 %v2269_v34  ;;  %2461 = vmatmul.f32.vlgmr.msrb.gmra.mxu1 %v2269_v34 }
 0x3bf   :  { %2481 = vmatmul.f32.vlgmr.msrb.gmra.mxu2 %v2269_v34  ;;  %2501 = vmatmul.f32.vlgmr.msrb.gmra.mxu3 %v2269_v34  ;;  %v11172_v34 = vld [vmem:[#allocation164_spill] sm:$0xff] }
 0x3c0   :  { %2583 = vmatpush.msra.mxu0 %v11120_v51  ;;  %2603 = vmatpush.msra.mxu1 %v11121_v30  ;;  %v11173_v51 = vld [vmem:[#allocation165_spill] sm:$0xff]  ;;  %v11174_v30 = vld [vmem:[#allocation166_spill] sm:$0xff] }
 0x3c1   :  { %2623 = vmatpush.msra.mxu2 %v11122_v48  ;;  %2643 = vmatpush.msra.mxu3 %v11123_v46  ;;  %v11175_v48 = vld [vmem:[#allocation167_spill] sm:$0xff]  ;;  %v11176_v46 = vld [vmem:[#allocation168_spill] sm:$0xff] }
 0x3c2   :  { %2584 = vmatpush.msra.mxu0 %v11124_v10  ;;  %2604 = vmatpush.msra.mxu1 %v11125_v3  ;;  %v11177_v10 = vld [vmem:[#allocation169_spill] sm:$0xff]  ;;  %v11178_v3 = vld [vmem:[#allocation170_spill] sm:$0xff] }
 0x3c3   :  { %2624 = vmatpush.msra.mxu2 %v11126_v55  ;;  %2644 = vmatpush.msra.mxu3 %v11127_v29  ;;  %v11179_v55 = vld [vmem:[#allocation171_spill] sm:$0xff]  ;;  %v11180_v29 = vld [vmem:[#allocation172_spill] sm:$0xff] }
 0x3c4   :  { %2585 = vmatpush.msra.mxu0 %v11128_v7  ;;  %2605 = vmatpush.msra.mxu1 %v11129_v13  ;;  %v11181_v7 = vld [vmem:[#allocation173_spill] sm:$0xff]  ;;  %v11182_v13 = vld [vmem:[#allocation174_spill] sm:$0xff] }
 0x3c5   :  { %2625 = vmatpush.msra.mxu2 %v11130_v6  ;;  %2645 = vmatpush.msra.mxu3 %v11131_v56  ;;  %v11183_v6 = vld [vmem:[#allocation175_spill] sm:$0xff]  ;;  %v11184_v56 = vld [vmem:[#allocation176_spill] sm:$0xff] }
 0x3c6   :  { %2586 = vmatpush.msra.mxu0 %v11132_v0  ;;  %2606 = vmatpush.msra.mxu1 %v11133_v36  ;;  %v11185_v0 = vld [vmem:[#allocation177_spill] sm:$0xff]  ;;  %v11186_v36 = vld [vmem:[#allocation178_spill] sm:$0xff] }
 0x3c7   :  { %2626 = vmatpush.msra.mxu2 %v11134_v61  ;;  %2646 = vmatpush.msra.mxu3 %v11135_v47  ;;  %v11187_v61 = vld [vmem:[#allocation179_spill] sm:$0xff]  ;;  %v11188_v47 = vld [vmem:[#allocation180_spill] sm:$0xff] }
 0x3c8   :  { %2587 = vmatpush.msra.mxu0 %v11136_v4  ;;  %2607 = vmatpush.msra.mxu1 %v11137_v8  ;;  %v8470_v4 = vld [vmem:[#allocation11 + $0xc8] sm:$0xff]  ;;  %v8473_v8 = vld [vmem:[#allocation11 + $0xd0] sm:$0xff] }
 0x3c9   :  { %2627 = vmatpush.msra.mxu2 %v11138_v9  ;;  %2647 = vmatpush.msra.mxu3 %v11139_v31  ;;  %v8476_v9 = vld [vmem:[#allocation11 + $0xd8] sm:$0xff]  ;;  %v8493_v31 = vld [vmem:[#allocation11 + $0x90] sm:$0xff] }
 0x3ca   :  { %2588 = vmatpush.msra.mxu0 %v11140_v50  ;;  %2608 = vmatpush.msra.mxu1 %v11141_v18  ;;  %v8500_v50 = vld [vmem:[#allocation11 + $0x68] sm:$0xff]  ;;  %v8503_v18 = vld [vmem:[#allocation11 + $0x70] sm:$0xff] }
 0x3cb   :  { %2628 = vmatpush.msra.mxu2 %v11142_v58  ;;  %2648 = vmatpush.msra.mxu3 %v11143_v5  ;;  %v8510_v58 = vld [vmem:[#allocation11 + $0x48] sm:$0xff]  ;;  %v8513_v5 = vld [vmem:[#allocation11 + $0x50] sm:$0xff] }
 0x3cc   :  { %2589 = vmatpush.msra.mxu0 %v11144_v62  ;;  %2609 = vmatpush.msra.mxu1 %v11145_v43  ;;  %v11189_v62 = vld [vmem:[#allocation181_spill] sm:$0xff]  ;;  %v8520_v43 = vld [vmem:[#allocation11 + $0x28] sm:$0xff] }
 0x3cd   :  { %2629 = vmatpush.msra.mxu2 %v11146_v16  ;;  %2649 = vmatpush.msra.mxu3 %v11147_v49  ;;  %v8523_v16 = vld [vmem:[#allocation11 + $0x30] sm:$0xff]  ;;  %v11190_v49 = vld [vmem:[#allocation182_spill] sm:$0xff] }
 0x3ce   :  { %2590 = vmatpush.msra.mxu0 %v11148_v20  ;;  %2610 = vmatpush.msra.mxu1 %v11149_v27  ;;  %v8530_v20 = vld [vmem:[#allocation11 + $0x8] sm:$0xff]  ;;  %v8533_v27 = vld [vmem:[#allocation11 + $0x10] sm:$0xff] }
 0x3cf   :  { %2630 = vmatpush.msra.mxu2 %v11150_v35  ;;  %2650 = vmatpush.msra.mxu3 %v11151_v37  ;;  %v8536_v35 = vld [vmem:[#allocation11 + $0x18] sm:$0xff]  ;;  %v11191_v37 = vld [vmem:[#allocation100_spill] sm:$0xff] }
 0x3d0   :  { %2591 = vmatpush.msra.mxu0 %v11152_v28  ;;  %2611 = vmatpush.msra.mxu1 %v11153_v63  ;;  %v11192_v28 = vld [vmem:[#allocation88_spill] sm:$0xff] }
 0x3d1   :  { %2631 = vmatpush.msra.mxu2 %v11154_v53  ;;  %2651 = vmatpush.msra.mxu3 %v11155_v45  ;;  %v277_v63 = vadd.f32 %v11192_v28, %v11191_v37 }
 0x3d2   :  { %2727 = vmatpush.msrb.mxu0 %v11156_v40  ;;  %2747 = vmatpush.msrb.mxu1 %v11157_v57  ;;  %v11193_v40 = vld [vmem:[#allocation32_spill] sm:$0xff] }
 0x3d3   :  { %2767 = vmatpush.msrb.mxu2 %v11158_v2  ;;  %2787 = vmatpush.msrb.mxu3 %v11159_v1 }
 0x3d4   :  { %2728 = vmatpush.msrb.mxu0 %v11160_v44  ;;  %2748 = vmatpush.msrb.mxu1 %v11161_v22  ;;  %v11194_v22 = vld [vmem:[#allocation50_spill] sm:$0xff] }
 0x3d5   :  { %2768 = vmatpush.msrb.mxu2 %v11162_v54  ;;  %2788 = vmatpush.msrb.mxu3 %v11163_v26  ;;  %v11195_v54 = vld [vmem:[#allocation86_spill] sm:$0xff] }
 0x3d6   :  { %2729 = vmatpush.msrb.mxu0 %v11164_v41  ;;  %2749 = vmatpush.msrb.mxu1 %v11165_v19  ;;  %v359_v26 = vadd.f32 %v11195_v54, %v11194_v22 }
 0x3d7   :  { %2769 = vmatpush.msrb.mxu2 %v11166_v59  ;;  %2789 = vmatpush.msrb.mxu3 %v11167_v25 }
 0x3d8   :  { %2730 = vmatpush.msrb.mxu0 %v11168_v23  ;;  %2750 = vmatpush.msrb.mxu1 %v11169_v33 }
 0x3d9   :  { %2770 = vmatpush.msrb.mxu2 %v11170_v38  ;;  %2790 = vmatpush.msrb.mxu3 %v11171_v60  ;;  %v11196_v60 = vld [vmem:[#allocation91_spill] sm:$0xff] }
 0x3da   :  { %2731 = vmatpush.msrb.mxu0 %v11172_v34  ;;  %2751 = vmatpush.msrb.mxu1 %v11173_v51  ;;  %v11197_v34 = vld [vmem:[#allocation95_spill] sm:$0xff] }
 0x3db   :  { %2771 = vmatpush.msrb.mxu2 %v11174_v30  ;;  %2791 = vmatpush.msrb.mxu3 %v11175_v48  ;;  %v455_v51 = vadd.f32 %v11197_v34, %v11196_v60  ;;  %v11198_v30 = vld [vmem:[#allocation24_spill] sm:$0xff]  ;;  %v11199_v48 = vld [vmem:[#allocation38_spill] sm:$0xff] }
 0x3dc   :  { %2732 = vmatpush.msrb.mxu0 %v11176_v46  ;;  %2752 = vmatpush.msrb.mxu1 %v11177_v10  ;;  %v496_v46 = vadd.f32 %v11199_v48, %v11198_v30 }
 0x3dd   :  { %2772 = vmatpush.msrb.mxu2 %v11178_v3  ;;  %2792 = vmatpush.msrb.mxu3 %v11179_v55 }
 0x3de   :  { %2733 = vmatpush.msrb.mxu0 %v11180_v29  ;;  %2753 = vmatpush.msrb.mxu1 %v11181_v7 }
 0x3df   :  { %2773 = vmatpush.msrb.mxu2 %v11182_v13  ;;  %2793 = vmatpush.msrb.mxu3 %v11183_v6  ;;  %v11200_v6 = vld [vmem:[#allocation61_spill] sm:$0xff] }
 0x3e0   :  { %2734 = vmatpush.msrb.mxu0 %v11184_v56  ;;  %2754 = vmatpush.msrb.mxu1 %v11185_v0  ;;  %v11201_v56 = vld [vmem:[#allocation93_spill] sm:$0xff] }
 0x3e1   :  { %2774 = vmatpush.msrb.mxu2 %v11186_v36  ;;  %2794 = vmatpush.msrb.mxu3 %v8248_v42  ;;  %v8480_v42 = vld [vmem:[#allocation11 + $0xa8] sm:$0xff]  ;;  %v318_v0 = vadd.f32 %v11201_v56, %v11200_v6 }
 0x3e2   :  { %2735 = vmatpush.msrb.mxu0 %v11187_v61  ;;  %2755 = vmatpush.msrb.mxu1 %v8254_v14  ;;  %v8483_v14 = vld [vmem:[#allocation11 + $0xb0] sm:$0xff] }
 0x3e3   :  { %2775 = vmatpush.msrb.mxu2 %v8257_v12  ;;  %2795 = vmatpush.msrb.mxu3 %v11188_v47  ;;  %v8490_v12 = vld [vmem:[#allocation11 + $0x88] sm:$0xff] }
 0x3e4   :  { %2736 = vmatpush.msrb.mxu0 %v8263_v15  ;;  %2756 = vmatpush.msrb.mxu1 %v8470_v4  ;;  %v8486_v15 = vld [vmem:[#allocation11 + $0xb8] sm:$0xff] }
 0x3e5   :  { %2776 = vmatpush.msrb.mxu2 %v8473_v8  ;;  %2796 = vmatpush.msrb.mxu3 %v8476_v9 }
 0x3e6   :  { %2737 = vmatpush.msrb.mxu0 %v8269_v17  ;;  %2757 = vmatpush.msrb.mxu1 %v8480_v42  ;;  %v8496_v17 = vld [vmem:[#allocation11 + $0x98] sm:$0xff] }
 0x3e7   :  { %2777 = vmatpush.msrb.mxu2 %v8483_v14  ;;  %2797 = vmatpush.msrb.mxu3 %v8486_v15 }
 0x3e8   :  { %2738 = vmatpush.msrb.mxu0 %v8275_v21  ;;  %2758 = vmatpush.msrb.mxu1 %v8490_v12  ;;  %v8506_v21 = vld [vmem:[#allocation11 + $0x78] sm:$0xff] }
 0x3e9   :  { %2778 = vmatpush.msrb.mxu2 %v8493_v31  ;;  %2798 = vmatpush.msrb.mxu3 %v8496_v17 }
 0x3ea   :  { %2739 = vmatpush.msrb.mxu0 %v8281_v24  ;;  %2759 = vmatpush.msrb.mxu1 %v8500_v50  ;;  %v8516_v24 = vld [vmem:[#allocation11 + $0x58] sm:$0xff] }
 0x3eb   :  { %2779 = vmatpush.msrb.mxu2 %v8503_v18  ;;  %2799 = vmatpush.msrb.mxu3 %v8506_v21 }
 0x3ec   :  { %2740 = vmatpush.msrb.mxu0 %v8287_v39  ;;  %2760 = vmatpush.msrb.mxu1 %v8510_v58  ;;  %v8526_v39 = vld [vmem:[#allocation11 + $0x38] sm:$0xff] }
 0x3ed   :  { %2780 = vmatpush.msrb.mxu2 %v8513_v5  ;;  %2800 = vmatpush.msrb.mxu3 %v8516_v24 }
 0x3ee   :  { %2741 = vmatpush.msrb.mxu0 %v11189_v62  ;;  %2761 = vmatpush.msrb.mxu1 %v8520_v43 }
 0x3ef   :  { %2781 = vmatpush.msrb.mxu2 %v8523_v16  ;;  %2801 = vmatpush.msrb.mxu3 %v8526_v39 }
 0x3f0   :  { %2742 = vmatpush.msrb.mxu0 %v11190_v49  ;;  %2762 = vmatpush.msrb.mxu1 %v8530_v20 }
 0x3f1   :  { %2782 = vmatpush.msrb.mxu2 %v8533_v27  ;;  %2802 = vmatpush.msrb.mxu3 %v8536_v35 }
 0x42b   :  { %v2291_v53 = vpop.f32.mrf.mxu0  ;;  %v2311_v45 = vpop.f32.mrf.mxu1 }
 0x42c   :  { %v2354_v57 = vadd.f32 %v2291_v53, %v11193_v40  ;;  %v2355_v2 = vadd.f32 %v2311_v45, %v277_v63  ;;  %v11202_v53 = vld [vmem:[#allocation23_spill] sm:$0xff]  ;;  %v11203_v45 = vld [vmem:[#allocation36_spill] sm:$0xff] }
 0x42d   :  { %v578_v40 = vadd.f32 %v11203_v45, %v11202_v53 }
 0x42e   :  { %v4915_v1 = vmul.f32 -1.442695, %v2354_v57  ;;  %v4916_v44 = vmul.f32 -1.442695, %v2355_v2 }
 0x430   :  { %5112 = vpow2.f32 %v4915_v1 }
 0x431   :  { %5114 = vpow2.f32 %v4916_v44 }
 0x432   :  { %v2351_v41 = vpop.f32.mrf.mxu3  ;;  %v2331_v55 = vpop.f32.mrf.mxu2 }
 0x433   :  { %v2357_v19 = vadd.f32 %v2351_v41, %v359_v26  ;;  %v2356_v49 = vadd.f32 %v2331_v55, %v318_v0 }
 0x435   :  { %v4917_v59 = vmul.f32 -1.442695, %v2357_v19 }
 0x436   :  { %v5113_v25 = vpop.eup %5112 }
 0x437   :  { %v5115_v23 = vpop.eup %5114  ;;  %v2361_v33 = vadd.f32 1.0, %v5113_v25  ;;  %5116 = vpow2.f32 %v4917_v59 }
 0x438   :  { %v2380_v38 = vadd.f32 1.0, %v5115_v23 }
 0x439   :  { %5118 = vrcp.f32 %v2361_v33  ;;  %v2371_v1 = vand.u32 2147483647, %v2361_v33  ;;  %v2373_v26 = vand.u32 2147483648, %v2361_v33  ;;  %vm2367_vm4 = vweird.f32 %v2361_v33 }
 0x43a   :  { %5120 = vrcp.f32 %v2380_v38  ;;  %v2392_v19 = vand.u32 2147483648, %v2380_v38  ;;  %v2390_v25 = vand.u32 2147483647, %v2380_v38  ;;  %vm2386_vm3 = vweird.f32 %v2380_v38 }
 0x43b   :  { %v2442_v10 = vpop.f32.mrf.mxu0  ;;  %v2462_v3 = vpop.f32.mrf.mxu1  ;;  %vm2372_vm5 = vcmp.eq.f32.partialorder %v2371_v1, 8.507059e+37 }
 0x43c   :  { %v2505_v29 = vadd.f32 %v2442_v10, %v455_v51  ;;  %v2506_v7 = vadd.f32 %v2462_v3, %v496_v46  ;;  %v2374_v10 = vor.u32 1.1754944e-38, %v2373_v26  ;;  %vm2391_vm8 = vcmp.eq.f32.partialorder %v2390_v25, 8.507059e+37  ;;  %v8590_v25 = vld [vmem:[#allocation6 + $0x1f0] sm:$0xff] }
 0x43d   :  { %v5117_v13 = vpop.eup %5116 }
 0x43e   :  { %v8550_v36 = vadd.f32 1.0, %v5117_v13  ;;  %v4918_v61 = vmul.f32 -1.442695, %v2505_v29  ;;  %v4919_v47 = vmul.f32 -1.442695, %v2506_v7  ;;  %v2393_v7 = vor.u32 1.1754944e-38, %v2392_v19 }
 0x43f   :  { %v5119_v62 = vpop.eup %5118 }
 0x440   :  { %v5121_v28 = vpop.eup %5120  ;;  %v2363_v63 = vmul.f32 %v5119_v62, %v2361_v33  ;;  %5122 = vrcp.f32 %v8550_v36  ;;  %vm2368_vm1 = vweird.f32 %v5119_v62  ;;  %vm2406_vm10 = vweird.f32 %v8550_v36 }
 0x441   :  { %v2382_v57 = vmul.f32 %v5121_v28, %v2380_v38  ;;  %5124 = vpow2.f32 %v4918_v61  ;;  %vm2387_vm2 = vweird.f32 %v5121_v28  ;;  %vm2369_vm6 = vmor %vm2367_vm4, %vm2368_vm1 }
 0x442   :  { %v2364_v2 = vsub.f32 1.0, %v2363_v63  ;;  %5126 = vpow2.f32 %v4919_v47  ;;  %v2502_v44 = vpop.f32.mrf.mxu3  ;;  %vm2388_vm7 = vmor %vm2386_vm3, %vm2387_vm2  ;;  %v2482_v1 = vpop.f32.mrf.mxu2 }
 0x443   :  { %v2383_v54 = vsub.f32 1.0, %v2382_v57  ;;  %5128 = vtanh.f32 %v2356_v49  ;;  %v2508_v41 = vadd.f32 %v2502_v44, %v578_v40 }
 0x444   :  { %v2365_v59 = vmul.f32 %v5119_v62, %v2364_v2 }
 0x445   :  { %v2384_v23 = vmul.f32 %v5121_v28, %v2383_v54  ;;  %v4920_v34 = vmul.f32 -1.442695, %v2508_v41  ;;  %v2410_v41 = vand.u32 2147483647, %v8550_v36 }
 0x446   :  { %v5123_v51 = vpop.eup %5122  ;;  %v2366_v48 = vadd.f32 %v5119_v62, %v2365_v59 }
 0x447   :  { %v5125_v46 = vpop.eup %5124  ;;  %v2385_v3 = vadd.f32 %v5121_v28, %v2384_v23  ;;  %v2402_v55 = vmul.f32 %v5123_v51, %v8550_v36  ;;  %5130 = vpow2.f32 %v4920_v34  ;;  %vm2407_vm9 = vweird.f32 %v5123_v51 }
 0x448   :  { %v5127_v29 = vpop.eup %5126  ;;  %v2370_v13 = vsel %vm2369_vm6, %v5119_v62, %v2366_v48  ;;  %v2512_v56 = vadd.f32 1.0, %v5125_v46  ;;  %v11204_v62 = vld [vmem:[#allocation39_spill] sm:$0xff]  ;;  %vm8567_vm11 = vmor %vm2406_vm10, %vm2407_vm9  ;;  %vm2411_vm12 = vcmp.eq.f32.partialorder %v2410_v41, 8.507059e+37  ;;  %v8587_v41 = vld [vmem:[#allocation6 + $0x1e8] sm:$0xff] }
 0x449   :  { %v5129_v0 = vpop.eup %5128  ;;  %v2375_v61 = vsel %vm2372_vm5, %v2374_v10, %v2370_v13  ;;  %v2389_v47 = vsel %vm2388_vm7, %v5121_v28, %v2385_v3  ;;  %v2403_v38 = vsub.f32 1.0, %v2402_v55  ;;  %v2531_v49 = vadd.f32 1.0, %v5127_v29 }
 0x44a   :  { %v2394_v33 = vsel %vm2391_vm8, %v2393_v7, %v2389_v47  ;;  %v2417_v63 = vmul.f32 %v5129_v0, %v2375_v61  ;;  %5132 = vrcp.f32 %v2512_v56  ;;  %v537_v44 = vadd.f32 %v11204_v62, %v11030_v11 }
 0x44b   :  { %v2416_v45 = vmul.f32 %v2394_v33, %v8335_v52  ;;  %v2404_v40 = vmul.f32 %v5123_v51, %v2403_v38  ;;  %5134 = vrcp.f32 %v2531_v49  ;;  %v2412_v28 = vand.u32 2147483648, %v8550_v36 }
 0x44c   :  { %v2507_v19 = vadd.f32 %v2482_v1, %v537_v44  ;;  %v2543_v55 = vand.u32 2147483648, %v2531_v49  ;;  %v2524_v29 = vand.u32 2147483648, %v2512_v56  ;;  %v2522_v13 = vand.u32 2147483647, %v2512_v56 }
 0x44d   :  { %v5131_v57 = vpop.eup %5130  ;;  %v8557_v2 = vadd.f32 %v2417_v63, %v2416_v45  ;;  %v2405_v54 = vadd.f32 %v5123_v51, %v2404_v40  ;;  %v2413_v46 = vor.u32 1.1754944e-38, %v2412_v28  ;;  %v2541_v47 = vand.u32 2147483647, %v2531_v49  ;;  %v8584_v28 = vld [vmem:[#allocation6 + $0x1e0] sm:$0xff] }
 0x44e   :  { %v8563_v26 = vadd.f32 1.0, %v5131_v57  ;;  %vm2518_vm15 = vweird.f32 %v2512_v56  ;;  %vm2537_vm0 = vweird.f32 %v2531_v49  ;;  %v2544_v1 = vor.u32 1.1754944e-38, %v2543_v55  ;;  %v8651_v57 = vld [vmem:[#allocation6 + $0x168] sm:$0xff] }
 0x44f   :  { %5136 = vtanh.f32 %v8557_v2  ;;  %v2409_v48 = vsel %vm8567_vm11, %v5123_v51, %v2405_v54  ;;  %v2525_v51 = vor.u32 1.1754944e-38, %v2524_v29  ;;  %vm2523_vm3 = vcmp.eq.f32.partialorder %v2522_v13, 8.507059e+37  ;;  %v8615_v29 = vld [vmem:[#allocation6 + $0x1a8] sm:$0xff]  ;;  %v8623_v13 = vld [vmem:[#allocation6 + $0x1b8] sm:$0xff] }
 0x450   :  { %v5133_v52 = vpop.eup %5132  ;;  %5138 = vrcp.f32 %v8563_v26  ;;  %v2414_v0 = vsel %vm2411_vm12, %v2413_v46, %v2409_v48  ;;  %vm2542_vm4 = vcmp.eq.f32.partialorder %v2541_v47, 8.507059e+37  ;;  %v8598_v48 = vld [vmem:[#allocation6 + $0x1c0] sm:$0xff]  ;;  %v8601_v46 = vld [vmem:[#allocation6 + $0x1c8] sm:$0xff]  ;;  %vm2557_vm6 = vweird.f32 %v8563_v26 }
 0x451   :  { %v5135_v59 = vpop.eup %5134  ;;  %v2514_v23 = vmul.f32 %v5133_v52, %v2512_v56  ;;  %5140 = vtanh.f32 %v2507_v19  ;;  %vm2519_vm13 = vweird.f32 %v5133_v52  ;;  %v8631_v47 = vld [vmem:[#allocation6 + $0x188] sm:$0xff] }
 0x452   :  { %v2533_v34 = vmul.f32 %v5135_v59, %v2531_v49  ;;  %vm2538_vm14 = vweird.f32 %v5135_v59  ;;  %vm2520_vm1 = vmor %vm2518_vm15, %vm2519_vm13 }
 0x453   :  { %v2515_v10 = vsub.f32 1.0, %v2514_v23  ;;  %vm8578_vm2 = vmor %vm2537_vm0, %vm2538_vm14  ;;  %v8593_v23 = vld [vmem:[#allocation6 + $0x1f8] sm:$0xff] }
 0x454   :  { %v2534_v3 = vsub.f32 1.0, %v2533_v34 }
 0x455   :  { %v5137_v36 = vpop.eup %5136  ;;  %v2516_v7 = vmul.f32 %v5133_v52, %v2515_v10  ;;  %v8604_v10 = vld [vmem:[#allocation6 + $0x1d0] sm:$0xff] }
 0x456   :  { %v2535_v61 = vmul.f32 %v5135_v59, %v2534_v3  ;;  %v2420_v38 = vmul.f32 %v5137_v36, %v2414_v0  ;;  %v8574_v33 = vpop.eup %5138  ;;  %v8607_v3 = vld [vmem:[#allocation6 + $0x1d8] sm:$0xff]  ;;  %v2563_v0 = vand.u32 2147483648, %v8563_v26 }
 0x457   :  { %v2517_v63 = vadd.f32 %v5133_v52, %v2516_v7  ;;  %v2553_v40 = vmul.f32 %v8574_v33, %v8563_v26  ;;  %v5141_v44 = vpop.eup %5140  ;;  %vm2558_vm5 = vweird.f32 %v8574_v33  ;;  %v8620_v7 = vld [vmem:[#allocation6 + $0x1b0] sm:$0xff] }
 0x458   :  { %v2536_v45 = vadd.f32 %v5135_v59, %v2535_v61  ;;  %2592 = vmatmul.f32.vlgmr.msra.gmra.mxu0 %v2420_v38  ;;  %2612 = vmatmul.f32.vlgmr.msra.gmra.mxu1 %v2420_v38  ;;  %v8628_v61 = vld [vmem:[#allocation6 + $0x180] sm:$0xff]  ;;  %vm8644_vm7 = vmor %vm2557_vm6, %vm2558_vm5 }
 0x459   :  { %v2521_v62 = vsel %vm2520_vm1, %v5133_v52, %v2517_v63  ;;  %2632 = vmatmul.f32.vlgmr.msra.gmra.mxu2 %v2420_v38  ;;  %2652 = vmatmul.f32.vlgmr.msra.gmra.mxu3 %v2420_v38  ;;  %v2554_v54 = vsub.f32 1.0, %v2553_v40  ;;  %v2561_v38 = vand.u32 2147483647, %v8563_v26  ;;  %v8636_v63 = vld [vmem:[#allocation6 + $0x190] sm:$0xff]  ;;  %v8648_v40 = vld [vmem:[#allocation6 + $0x160] sm:$0xff] }
 0x45a   :  { %v2526_v56 = vsel %vm2523_vm3, %v2525_v51, %v2521_v62  ;;  %v2540_v49 = vsel %vm8578_vm2, %v5135_v59, %v2536_v45  ;;  %2878 = vmatpush.msra.mxu0 %v8584_v28  ;;  %2898 = vmatpush.msra.mxu1 %v8587_v41  ;;  %v8639_v51 = vld [vmem:[#allocation6 + $0x198] sm:$0xff]  ;;  %v8687_v45 = vld [vmem:[#allocation6 + $0x100] sm:$0xff] }
 0x45b   :  { %v2545_v19 = vsel %vm2542_vm4, %v2544_v1, %v2540_v49  ;;  %v2568_v52 = vmul.f32 %v5141_v44, %v2526_v56  ;;  %2918 = vmatpush.msra.mxu2 %v8590_v25  ;;  %2938 = vmatpush.msra.mxu3 %v8593_v23  ;;  %v2555_v34 = vmul.f32 %v8574_v33, %v2554_v54  ;;  %v8657_v1 = vld [vmem:[#allocation6 + $0x170] sm:$0xff]  ;;  %v8660_v62 = vld [vmem:[#allocation6 + $0x178] sm:$0xff]  ;;  %v2564_v44 = vor.u32 1.1754944e-38, %v2563_v0  ;;  %v8663_v56 = vld [vmem:[#allocation6 + $0x140] sm:$0xff] }
 0x45c   :  { %v2567_v59 = vmul.f32 %v2545_v19, %v8369_v32  ;;  %2879 = vmatpush.msra.mxu0 %v8598_v48  ;;  %2899 = vmatpush.msra.mxu1 %v8601_v46  ;;  %v8612_v32 = vld [vmem:[#allocation6 + $0x1a0] sm:$0xff]  ;;  %v8666_v49 = vld [vmem:[#allocation6 + $0x148] sm:$0xff]  ;;  %vm2562_vm8 = vcmp.eq.f32.partialorder %v2561_v38, 8.507059e+37  ;;  %v8669_v54 = vld [vmem:[#allocation6 + $0x150] sm:$0xff]  ;;  %11211 = vst [vmem:[#allocation183_spill] sm:$0xff] %v8687_v45 }
 0x45d   :  { %2919 = vmatpush.msra.mxu2 %v8604_v10  ;;  %2939 = vmatpush.msra.mxu3 %v8607_v3  ;;  %v2556_v36 = vadd.f32 %v8574_v33, %v2555_v34  ;;  %v8678_v34 = vld [vmem:[#allocation6 + $0x128] sm:$0xff]  ;;  %v8681_v0 = vld [vmem:[#allocation6 + $0x130] sm:$0xff]  ;;  %v8684_v38 = vld [vmem:[#allocation6 + $0x138] sm:$0xff] }
 0x45e   :  { %v8610_v55 = vadd.f32 %v2568_v52, %v2567_v59  ;;  %2880 = vmatpush.msra.mxu0 %v8612_v32  ;;  %2900 = vmatpush.msra.mxu1 %v8615_v29  ;;  %v8675_v59 = vld [vmem:[#allocation6 + $0x120] sm:$0xff] }
 0x45f   :  { %2920 = vmatpush.msra.mxu2 %v8620_v7  ;;  %2940 = vmatpush.msra.mxu3 %v8623_v13  ;;  %v2560_v26 = vsel %vm8644_vm7, %v8574_v33, %v2556_v36  ;;  %v8672_v33 = vld [vmem:[#allocation6 + $0x158] sm:$0xff] }
 0x460   :  { %5142 = vtanh.f32 %v8610_v55  ;;  %2881 = vmatpush.msra.mxu0 %v8628_v61  ;;  %2901 = vmatpush.msra.mxu1 %v8631_v47  ;;  %v2565_v52 = vsel %vm2562_vm8, %v2564_v44, %v2560_v26  ;;  %v8690_v26 = vld [vmem:[#allocation6 + $0x108] sm:$0xff]  ;;  %v8693_v44 = vld [vmem:[#allocation6 + $0x110] sm:$0xff] }
 0x461   :  { %2921 = vmatpush.msra.mxu2 %v8636_v63  ;;  %2941 = vmatpush.msra.mxu3 %v8639_v51  ;;  %11212 = vst [vmem:[#allocation184_spill] sm:$0xff] %v8690_v26 }
 0x462   :  { %2882 = vmatpush.msra.mxu0 %v8648_v40  ;;  %2902 = vmatpush.msra.mxu1 %v8651_v57  ;;  %11213 = vst [vmem:[#allocation185_spill] sm:$0xff] %v8693_v44 }
 0x463   :  { %2922 = vmatpush.msra.mxu2 %v8657_v1  ;;  %2942 = vmatpush.msra.mxu3 %v8660_v62 }
 0x464   :  { %2883 = vmatpush.msra.mxu0 %v8663_v56  ;;  %2903 = vmatpush.msra.mxu1 %v8666_v49 }
 0x465   :  { %2923 = vmatpush.msra.mxu2 %v8669_v54  ;;  %2943 = vmatpush.msra.mxu3 %v8672_v33 }
 0x466   :  { %v5143_v19 = vpop.eup %5142  ;;  %2884 = vmatpush.msra.mxu0 %v8675_v59  ;;  %2904 = vmatpush.msra.mxu1 %v8678_v34 }
 0x467   :  { %v2571_v36 = vmul.f32 %v5143_v19, %v2565_v52  ;;  %2924 = vmatpush.msra.mxu2 %v8681_v0  ;;  %2944 = vmatpush.msra.mxu3 %v8684_v38  ;;  %v8696_v19 = vld [vmem:[#allocation6 + $0x118] sm:$0xff]  ;;  %v8699_v52 = vld [vmem:[#allocation6 + $0xe0] sm:$0xff] }
 0x468   :  { %2885 = vmatpush.msra.mxu0 %v8687_v45  ;;  %2905 = vmatpush.msra.mxu1 %v8690_v26  ;;  %11214 = vst [vmem:[#allocation186_spill] sm:$0xff] %v8696_v19  ;;  %v8702_v45 = vld [vmem:[#allocation6 + $0xe8] sm:$0xff]  ;;  %v8705_v26 = vld [vmem:[#allocation6 + $0xf0] sm:$0xff] }
 0x469   :  { %2743 = vmatmul.f32.vlgmr.msrb.gmra.mxu0 %v2571_v36  ;;  %2763 = vmatmul.f32.vlgmr.msrb.gmra.mxu1 %v2571_v36  ;;  %11215 = vst [vmem:[#allocation187_spill] sm:$0xff] %v8699_v52 }
 0x46a   :  { %2783 = vmatmul.f32.vlgmr.msrb.gmra.mxu2 %v2571_v36  ;;  %2803 = vmatmul.f32.vlgmr.msrb.gmra.mxu3 %v2571_v36  ;;  %11216 = vst [vmem:[#allocation188_spill] sm:$0xff] %v8702_v45  ;;  %v8708_v36 = vld [vmem:[#allocation6 + $0xf8] sm:$0xff] }
 0x46b   :  { %2925 = vmatpush.msra.mxu2 %v8693_v44  ;;  %2945 = vmatpush.msra.mxu3 %v8696_v19  ;;  %11217 = vst [vmem:[#allocation189_spill] sm:$0xff] %v8705_v26  ;;  %v8711_v44 = vld [vmem:[#allocation6 + $0xc0] sm:$0xff]  ;;  %v8714_v19 = vld [vmem:[#allocation6 + $0xc8] sm:$0xff] }
 0x46c   :  { %2886 = vmatpush.msra.mxu0 %v8699_v52  ;;  %2906 = vmatpush.msra.mxu1 %v8702_v45  ;;  %11218 = vst [vmem:[#allocation25_spill] sm:$0xff] %v8708_v36  ;;  %v8717_v52 = vld [vmem:[#allocation6 + $0xd0] sm:$0xff]  ;;  %v8720_v45 = vld [vmem:[#allocation6 + $0xd8] sm:$0xff] }
 0x46d   :  { %2926 = vmatpush.msra.mxu2 %v8705_v26  ;;  %2946 = vmatpush.msra.mxu3 %v8708_v36  ;;  %11219 = vst [vmem:[#allocation34_spill] sm:$0xff] %v8711_v44  ;;  %v8723_v26 = vld [vmem:[#allocation6 + $0xa0] sm:$0xff]  ;;  %v8726_v36 = vld [vmem:[#allocation6 + $0xa8] sm:$0xff] }
 0x46e   :  { %2887 = vmatpush.msra.mxu0 %v8711_v44  ;;  %11220 = vst [vmem:[#allocation68_spill] sm:$0xff] %v8714_v19  ;;  %2907 = vmatpush.msra.mxu1 %v8714_v19  ;;  %v8729_v44 = vld [vmem:[#allocation6 + $0xb0] sm:$0xff]  ;;  %v8732_v19 = vld [vmem:[#allocation6 + $0xb8] sm:$0xff] }
 0x46f   :  { %11221 = vst [vmem:[#allocation65_spill] sm:$0xff] %v8717_v52  ;;  %2927 = vmatpush.msra.mxu2 %v8717_v52  ;;  %2947 = vmatpush.msra.mxu3 %v8720_v45  ;;  %v8735_v52 = vld [vmem:[#allocation6 + $0x80] sm:$0xff] }
 0x470   :  { %11222 = vst [vmem:[#allocation109_spill] sm:$0xff] %v8720_v45  ;;  %2888 = vmatpush.msra.mxu0 %v8723_v26  ;;  %2908 = vmatpush.msra.mxu1 %v8726_v36  ;;  %v8738_v45 = vld [vmem:[#allocation6 + $0x88] sm:$0xff] }
 0x471   :  { %11223 = vst [vmem:[#allocation48_spill] sm:$0xff] %v8723_v26  ;;  %2928 = vmatpush.msra.mxu2 %v8729_v44  ;;  %2948 = vmatpush.msra.mxu3 %v8732_v19  ;;  %v8741_v26 = vld [vmem:[#allocation6 + $0x90] sm:$0xff] }
 0x472   :  { %11224 = vst [vmem:[#allocation46_spill] sm:$0xff] %v8726_v36  ;;  %2889 = vmatpush.msra.mxu0 %v8735_v52  ;;  %2909 = vmatpush.msra.mxu1 %v8738_v45  ;;  %v8744_v36 = vld [vmem:[#allocation6 + $0x98] sm:$0xff] }
 0x473   :  { %11225 = vst [vmem:[#allocation73_spill] sm:$0xff] %v8729_v44  ;;  %2929 = vmatpush.msra.mxu2 %v8741_v26  ;;  %2949 = vmatpush.msra.mxu3 %v8744_v36  ;;  %v8747_v44 = vld [vmem:[#allocation6 + $0x60] sm:$0xff] }
 0x474   :  { %11226 = vst [vmem:[#allocation44_spill] sm:$0xff] %v8732_v19  ;;  %2890 = vmatpush.msra.mxu0 %v8747_v44  ;;  %v8750_v19 = vld [vmem:[#allocation6 + $0x68] sm:$0xff] }
 0x475   :  { %11227 = vst [vmem:[#allocation52_spill] sm:$0xff] %v8735_v52  ;;  %2910 = vmatpush.msra.mxu1 %v8750_v19  ;;  %v8753_v52 = vld [vmem:[#allocation6 + $0x70] sm:$0xff] }
 0x476   :  { %11228 = vst [vmem:[#allocation28_spill] sm:$0xff] %v8738_v45  ;;  %2930 = vmatpush.msra.mxu2 %v8753_v52  ;;  %v8756_v45 = vld [vmem:[#allocation6 + $0x78] sm:$0xff] }
 0x477   :  { %11229 = vst [vmem:[#allocation78_spill] sm:$0xff] %v8741_v26  ;;  %2950 = vmatpush.msra.mxu3 %v8756_v45  ;;  %v8759_v26 = vld [vmem:[#allocation6 + $0x40] sm:$0xff] }
 0x478   :  { %11230 = vst [vmem:[#allocation26_spill] sm:$0xff] %v8744_v36  ;;  %2891 = vmatpush.msra.mxu0 %v8759_v26  ;;  %v8762_v36 = vld [vmem:[#allocation6 + $0x48] sm:$0xff] }
 0x479   :  { %11231 = vst [vmem:[#allocation76_spill] sm:$0xff] %v8747_v44  ;;  %2911 = vmatpush.msra.mxu1 %v8762_v36  ;;  %v8765_v44 = vld [vmem:[#allocation6 + $0x50] sm:$0xff] }
 0x47a   :  { %11232 = vst [vmem:[#allocation105_spill] sm:$0xff] %v8750_v19  ;;  %2931 = vmatpush.msra.mxu2 %v8765_v44  ;;  %v8768_v19 = vld [vmem:[#allocation6 + $0x58] sm:$0xff] }
 0x47b   :  { %11233 = vst [vmem:[#allocation41_spill] sm:$0xff] %v8753_v52  ;;  %2951 = vmatpush.msra.mxu3 %v8768_v19  ;;  %v8771_v52 = vld [vmem:[#allocation6 + $0x20] sm:$0xff] }
 0x47c   :  { %11234 = vst [vmem:[#allocation83_spill] sm:$0xff] %v8756_v45  ;;  %2892 = vmatpush.msra.mxu0 %v8771_v52  ;;  %v8774_v45 = vld [vmem:[#allocation6 + $0x28] sm:$0xff] }
 0x47d   :  { %11235 = vst [vmem:[#allocation40_spill] sm:$0xff] %v8759_v26  ;;  %2912 = vmatpush.msra.mxu1 %v8774_v45  ;;  %v8777_v26 = vld [vmem:[#allocation6 + $0x30] sm:$0xff] }
 0x47e   :  { %11236 = vst [vmem:[#allocation47_spill] sm:$0xff] %v8762_v36  ;;  %2932 = vmatpush.msra.mxu2 %v8777_v26  ;;  %v8780_v36 = vld [vmem:[#allocation6 + $0x38] sm:$0xff] }
 0x47f   :  { %11237 = vst [vmem:[#allocation55_spill] sm:$0xff] %v8765_v44  ;;  %2952 = vmatpush.msra.mxu3 %v8780_v36  ;;  %v8783_v44 = vld [vmem:[#allocation6] sm:$0xff] }
 0x480   :  { %11238 = vst [vmem:[#allocation54_spill] sm:$0xff] %v8768_v19  ;;  %2893 = vmatpush.msra.mxu0 %v8783_v44  ;;  %v8786_v19 = vld [vmem:[#allocation6 + $0x8] sm:$0xff] }
 0x481   :  { %11239 = vst [vmem:[#allocation64_spill] sm:$0xff] %v8771_v52  ;;  %2913 = vmatpush.msra.mxu1 %v8786_v19  ;;  %v8789_v52 = vld [vmem:[#allocation6 + $0x10] sm:$0xff] }
 0x482   :  { %11240 = vst [vmem:[#allocation51_spill] sm:$0xff] %v8774_v45  ;;  %2933 = vmatpush.msra.mxu2 %v8789_v52  ;;  %v8792_v45 = vld [vmem:[#allocation6 + $0x18] sm:$0xff] }
 0x483   :  { %11241 = vst [vmem:[#allocation116_spill] sm:$0xff] %v8777_v26  ;;  %2953 = vmatpush.msra.mxu3 %v8792_v45  ;;  %v8795_v26 = vld [vmem:[#allocation11 + $0x1e0] sm:$0xff] }
 0x484   :  { %11242 = vst [vmem:[#allocation117_spill] sm:$0xff] %v8780_v36  ;;  %3029 = vmatpush.msrb.mxu0 %v8795_v26  ;;  %v8798_v36 = vld [vmem:[#allocation11 + $0x1e8] sm:$0xff] }
 0x485   :  { %11243 = vst [vmem:[#allocation118_spill] sm:$0xff] %v8783_v44  ;;  %3049 = vmatpush.msrb.mxu1 %v8798_v36  ;;  %v8801_v44 = vld [vmem:[#allocation11 + $0x1f0] sm:$0xff] }
 0x486   :  { %11244 = vst [vmem:[#allocation119_spill] sm:$0xff] %v8786_v19  ;;  %3069 = vmatpush.msrb.mxu2 %v8801_v44  ;;  %v8804_v19 = vld [vmem:[#allocation11 + $0x1f8] sm:$0xff] }
 0x487   :  { %11245 = vst [vmem:[#allocation120_spill] sm:$0xff] %v8789_v52  ;;  %3089 = vmatpush.msrb.mxu3 %v8804_v19  ;;  %v8807_v52 = vld [vmem:[#allocation11 + $0x1c0] sm:$0xff] }
 0x488   :  { %11246 = vst [vmem:[#allocation121_spill] sm:$0xff] %v8792_v45  ;;  %3030 = vmatpush.msrb.mxu0 %v8807_v52  ;;  %v8810_v45 = vld [vmem:[#allocation11 + $0x1c8] sm:$0xff] }
 0x489   :  { %11247 = vst [vmem:[#allocation122_spill] sm:$0xff] %v8795_v26  ;;  %3050 = vmatpush.msrb.mxu1 %v8810_v45  ;;  %v8813_v26 = vld [vmem:[#allocation11 + $0x1d0] sm:$0xff] }
 0x48a   :  { %11248 = vst [vmem:[#allocation123_spill] sm:$0xff] %v8798_v36  ;;  %3070 = vmatpush.msrb.mxu2 %v8813_v26  ;;  %v8816_v36 = vld [vmem:[#allocation11 + $0x1d8] sm:$0xff] }
 0x48b   :  { %11249 = vst [vmem:[#allocation124_spill] sm:$0xff] %v8801_v44  ;;  %3090 = vmatpush.msrb.mxu3 %v8816_v36  ;;  %v8819_v44 = vld [vmem:[#allocation11 + $0x1a0] sm:$0xff] }
 0x48c   :  { %11250 = vst [vmem:[#allocation125_spill] sm:$0xff] %v8804_v19  ;;  %3031 = vmatpush.msrb.mxu0 %v8819_v44  ;;  %v8822_v19 = vld [vmem:[#allocation11 + $0x1a8] sm:$0xff] }
 0x48d   :  { %11251 = vst [vmem:[#allocation126_spill] sm:$0xff] %v8807_v52  ;;  %3051 = vmatpush.msrb.mxu1 %v8822_v19  ;;  %v8825_v52 = vld [vmem:[#allocation11 + $0x1b0] sm:$0xff] }
 0x48e   :  { %11252 = vst [vmem:[#allocation127_spill] sm:$0xff] %v8810_v45  ;;  %3071 = vmatpush.msrb.mxu2 %v8825_v52  ;;  %v8828_v45 = vld [vmem:[#allocation11 + $0x1b8] sm:$0xff] }
 0x48f   :  { %11253 = vst [vmem:[#allocation128_spill] sm:$0xff] %v8813_v26  ;;  %3091 = vmatpush.msrb.mxu3 %v8828_v45  ;;  %v8831_v26 = vld [vmem:[#allocation11 + $0x180] sm:$0xff] }
 0x490   :  { %11254 = vst [vmem:[#allocation129_spill] sm:$0xff] %v8816_v36  ;;  %3032 = vmatpush.msrb.mxu0 %v8831_v26  ;;  %v8834_v36 = vld [vmem:[#allocation11 + $0x188] sm:$0xff] }
 0x491   :  { %11255 = vst [vmem:[#allocation130_spill] sm:$0xff] %v8819_v44  ;;  %3052 = vmatpush.msrb.mxu1 %v8834_v36  ;;  %v8837_v44 = vld [vmem:[#allocation11 + $0x190] sm:$0xff] }
 0x492   :  { %11256 = vst [vmem:[#allocation131_spill] sm:$0xff] %v8822_v19  ;;  %3072 = vmatpush.msrb.mxu2 %v8837_v44  ;;  %v8840_v19 = vld [vmem:[#allocation11 + $0x198] sm:$0xff] }
 0x493   :  { %11257 = vst [vmem:[#allocation132_spill] sm:$0xff] %v8825_v52  ;;  %3092 = vmatpush.msrb.mxu3 %v8840_v19  ;;  %v8843_v52 = vld [vmem:[#allocation11 + $0x160] sm:$0xff] }
 0x494   :  { %11258 = vst [vmem:[#allocation133_spill] sm:$0xff] %v8828_v45  ;;  %3033 = vmatpush.msrb.mxu0 %v8843_v52  ;;  %v8846_v45 = vld [vmem:[#allocation11 + $0x168] sm:$0xff] }
 0x495   :  { %11259 = vst [vmem:[#allocation134_spill] sm:$0xff] %v8831_v26  ;;  %3053 = vmatpush.msrb.mxu1 %v8846_v45  ;;  %v8849_v26 = vld [vmem:[#allocation11 + $0x170] sm:$0xff] }
 0x496   :  { %11260 = vst [vmem:[#allocation135_spill] sm:$0xff] %v8834_v36  ;;  %3073 = vmatpush.msrb.mxu2 %v8849_v26  ;;  %v8852_v36 = vld [vmem:[#allocation11 + $0x178] sm:$0xff] }
 0x497   :  { %11261 = vst [vmem:[#allocation136_spill] sm:$0xff] %v8837_v44  ;;  %3093 = vmatpush.msrb.mxu3 %v8852_v36  ;;  %v8855_v44 = vld [vmem:[#allocation11 + $0x140] sm:$0xff] }
 0x498   :  { %11262 = vst [vmem:[#allocation137_spill] sm:$0xff] %v8840_v19  ;;  %3034 = vmatpush.msrb.mxu0 %v8855_v44  ;;  %v8858_v19 = vld [vmem:[#allocation11 + $0x148] sm:$0xff] }
 0x499   :  { %11263 = vst [vmem:[#allocation138_spill] sm:$0xff] %v8843_v52  ;;  %3054 = vmatpush.msrb.mxu1 %v8858_v19  ;;  %v8861_v52 = vld [vmem:[#allocation11 + $0x150] sm:$0xff] }
 0x49a   :  { %11264 = vst [vmem:[#allocation139_spill] sm:$0xff] %v8846_v45  ;;  %3074 = vmatpush.msrb.mxu2 %v8861_v52  ;;  %v8864_v45 = vld [vmem:[#allocation11 + $0x158] sm:$0xff] }
 0x49b   :  { %11265 = vst [vmem:[#allocation140_spill] sm:$0xff] %v8849_v26  ;;  %3094 = vmatpush.msrb.mxu3 %v8864_v45  ;;  %v8867_v26 = vld [vmem:[#allocation11 + $0x120] sm:$0xff] }
 0x49c   :  { %11266 = vst [vmem:[#allocation141_spill] sm:$0xff] %v8852_v36  ;;  %3035 = vmatpush.msrb.mxu0 %v8867_v26  ;;  %v8870_v36 = vld [vmem:[#allocation11 + $0x128] sm:$0xff] }
 0x49d   :  { %11267 = vst [vmem:[#allocation142_spill] sm:$0xff] %v8855_v44  ;;  %3055 = vmatpush.msrb.mxu1 %v8870_v36  ;;  %v8873_v44 = vld [vmem:[#allocation11 + $0x130] sm:$0xff] }
 0x49e   :  { %11268 = vst [vmem:[#allocation143_spill] sm:$0xff] %v8858_v19  ;;  %3075 = vmatpush.msrb.mxu2 %v8873_v44  ;;  %v8876_v19 = vld [vmem:[#allocation11 + $0x138] sm:$0xff] }
 0x49f   :  { %11269 = vst [vmem:[#allocation144_spill] sm:$0xff] %v8861_v52  ;;  %3095 = vmatpush.msrb.mxu3 %v8876_v19  ;;  %v8879_v52 = vld [vmem:[#allocation11 + $0x100] sm:$0xff] }
 0x4a0   :  { %11270 = vst [vmem:[#allocation145_spill] sm:$0xff] %v8864_v45  ;;  %3036 = vmatpush.msrb.mxu0 %v8879_v52  ;;  %v8882_v45 = vld [vmem:[#allocation11 + $0x108] sm:$0xff] }
 0x4a1   :  { %11271 = vst [vmem:[#allocation146_spill] sm:$0xff] %v8867_v26  ;;  %3056 = vmatpush.msrb.mxu1 %v8882_v45  ;;  %v8885_v26 = vld [vmem:[#allocation11 + $0x110] sm:$0xff] }
 0x4a2   :  { %11272 = vst [vmem:[#allocation147_spill] sm:$0xff] %v8870_v36  ;;  %3076 = vmatpush.msrb.mxu2 %v8885_v26  ;;  %v8888_v36 = vld [vmem:[#allocation11 + $0x118] sm:$0xff] }
 0x4a3   :  { %11273 = vst [vmem:[#allocation148_spill] sm:$0xff] %v8873_v44  ;;  %3096 = vmatpush.msrb.mxu3 %v8888_v36  ;;  %v8891_v44 = vld [vmem:[#allocation11 + $0xe0] sm:$0xff] }
 0x4a4   :  { %11274 = vst [vmem:[#allocation149_spill] sm:$0xff] %v8876_v19  ;;  %3037 = vmatpush.msrb.mxu0 %v8891_v44  ;;  %v8894_v19 = vld [vmem:[#allocation11 + $0xe8] sm:$0xff] }
 0x4a5   :  { %11275 = vst [vmem:[#allocation150_spill] sm:$0xff] %v8879_v52  ;;  %3057 = vmatpush.msrb.mxu1 %v8894_v19  ;;  %v8897_v52 = vld [vmem:[#allocation11 + $0xf0] sm:$0xff] }
 0x4a6   :  { %11276 = vst [vmem:[#allocation151_spill] sm:$0xff] %v8882_v45  ;;  %3077 = vmatpush.msrb.mxu2 %v8897_v52  ;;  %v8900_v45 = vld [vmem:[#allocation11 + $0xf8] sm:$0xff] }
 0x4a7   :  { %11277 = vst [vmem:[#allocation152_spill] sm:$0xff] %v8885_v26  ;;  %3097 = vmatpush.msrb.mxu3 %v8900_v45  ;;  %v8903_v26 = vld [vmem:[#allocation11 + $0xc0] sm:$0xff]  ;;  %3058 = vmatpush.msrb.mxu1 %v8470_v4 }
 0x4a8   :  { %11278 = vst [vmem:[#allocation153_spill] sm:$0xff] %v8891_v44  ;;  %3038 = vmatpush.msrb.mxu0 %v8903_v26  ;;  %3078 = vmatpush.msrb.mxu2 %v8473_v8  ;;  %v8909_v44 = vld [vmem:[#allocation11 + $0xa0] sm:$0xff] }
 0x4a9   :  { %11279 = vst [vmem:[#allocation154_spill] sm:$0xff] %v8900_v45  ;;  %3098 = vmatpush.msrb.mxu3 %v8476_v9  ;;  %3059 = vmatpush.msrb.mxu1 %v8480_v42  ;;  %v8915_v45 = vld [vmem:[#allocation11 + $0x80] sm:$0xff] }
 0x4aa   :  { %3039 = vmatpush.msrb.mxu0 %v8909_v44  ;;  %3079 = vmatpush.msrb.mxu2 %v8483_v14  ;;  %v8921_v4 = vld [vmem:[#allocation11 + $0x60] sm:$0xff]  ;;  %v11284_v14 = vld [vmem:[#allocation98_spill] sm:$0xff] }
 0x4ab   :  { %3099 = vmatpush.msrb.mxu3 %v8486_v15  ;;  %3060 = vmatpush.msrb.mxu1 %v8490_v12  ;;  %11280 = vst [vmem:[#allocation155_spill] sm:$0xff] %v8921_v4  ;;  %v8927_v8 = vld [vmem:[#allocation11 + $0x40] sm:$0xff]  ;;  %v280_v15 = vadd.f32 %v11284_v14, %v11191_v37 }
 0x4ac   :  { %3040 = vmatpush.msrb.mxu0 %v8915_v45  ;;  %3080 = vmatpush.msrb.mxu2 %v8493_v31  ;;  %11281 = vst [vmem:[#allocation156_spill] sm:$0xff] %v8927_v8  ;;  %v8933_v9 = vld [vmem:[#allocation11 + $0x20] sm:$0xff] }
 0x4ad   :  { %3100 = vmatpush.msrb.mxu3 %v8496_v17  ;;  %3061 = vmatpush.msrb.mxu1 %v8500_v50  ;;  %11282 = vst [vmem:[#allocation157_spill] sm:$0xff] %v8933_v9  ;;  %v8939_v42 = vld [vmem:[#allocation11] sm:$0xff]  ;;  %v11285_v17 = vld [vmem:[#allocation42_spill] sm:$0xff] }
 0x4ae   :  { %3041 = vmatpush.msrb.mxu0 %v8921_v4  ;;  %3081 = vmatpush.msrb.mxu2 %v8503_v18  ;;  %11283 = vst [vmem:[#allocation158_spill] sm:$0xff] %v8939_v42 }
 0x4af   :  { %3101 = vmatpush.msrb.mxu3 %v8506_v21  ;;  %3062 = vmatpush.msrb.mxu1 %v8510_v58 }
 0x4b0   :  { %3042 = vmatpush.msrb.mxu0 %v8927_v8  ;;  %3082 = vmatpush.msrb.mxu2 %v8513_v5  ;;  %v11286_v5 = vld [vmem:[#allocation96_spill] sm:$0xff] }
 0x4b1   :  { %3102 = vmatpush.msrb.mxu3 %v8516_v24  ;;  %3063 = vmatpush.msrb.mxu1 %v8520_v43  ;;  %v362_v24 = vadd.f32 %v11286_v5, %v11194_v22  ;;  %v11289_v5 = vld [vmem:[#allocation102_spill] sm:$0xff] }
 0x4b2   :  { %3043 = vmatpush.msrb.mxu0 %v8933_v9  ;;  %3083 = vmatpush.msrb.mxu2 %v8523_v16 }
 0x4b3   :  { %3103 = vmatpush.msrb.mxu3 %v8526_v39  ;;  %3064 = vmatpush.msrb.mxu1 %v8530_v20 }
 0x4b4   :  { %3044 = vmatpush.msrb.mxu0 %v8939_v42  ;;  %3084 = vmatpush.msrb.mxu2 %v8533_v27 }
 0x4b5   :  { %3104 = vmatpush.msrb.mxu3 %v8536_v35 }
 0x4d5   :  { %v2593_v12 = vpop.f32.mrf.mxu0  ;;  %v2613_v31 = vpop.f32.mrf.mxu1 }
 0x4d6   :  { %v2656_v50 = vadd.f32 %v2593_v12, %v11285_v17  ;;  %v2657_v18 = vadd.f32 %v2613_v31, %v280_v15  ;;  %v11287_v12 = vld [vmem:[#allocation81_spill] sm:$0xff]  ;;  %v11288_v31 = vld [vmem:[#allocation35_spill] sm:$0xff] }
 0x4d7   :  { %v452_v15 = vadd.f32 %v11287_v12, %v11196_v60  ;;  %v493_v17 = vadd.f32 %v11288_v31, %v11198_v30  ;;  %v11290_v30 = vld [vmem:[#allocation29_spill] sm:$0xff] }
 0x4d8   :  { %v4921_v21 = vmul.f32 -1.442695, %v2656_v50  ;;  %v4922_v58 = vmul.f32 -1.442695, %v2657_v18  ;;  %v575_v60 = vadd.f32 %v11290_v30, %v11202_v53 }
 0x4da   :  { %5144 = vpow2.f32 %v4921_v21 }
 0x4db   :  { %5146 = vpow2.f32 %v4922_v58 }
 0x4dc   :  { %v2653_v43 = vpop.f32.mrf.mxu3  ;;  %v2633_v50 = vpop.f32.mrf.mxu2 }
 0x4dd   :  { %v2659_v16 = vadd.f32 %v2653_v43, %v362_v24  ;;  %v321_v24 = vadd.f32 %v11289_v5, %v11200_v6 }
 0x4df   :  { %v4923_v39 = vmul.f32 -1.442695, %v2659_v16 }
 0x4e0   :  { %v5145_v20 = vpop.eup %5144 }
 0x4e1   :  { %v5147_v27 = vpop.eup %5146  ;;  %v2663_v35 = vadd.f32 1.0, %v5145_v20  ;;  %5148 = vpow2.f32 %v4923_v39 }
 0x4e2   :  { %v2682_v14 = vadd.f32 1.0, %v5147_v27  ;;  %v2658_v27 = vadd.f32 %v2633_v50, %v321_v24 }
 0x4e3   :  { %5150 = vrcp.f32 %v2663_v35  ;;  %v2673_v8 = vand.u32 2147483647, %v2663_v35  ;;  %vm2669_vm11 = vweird.f32 %v2663_v35 }
 0x4e4   :  { %5152 = vrcp.f32 %v2682_v14  ;;  %vm2688_vm12 = vweird.f32 %v2682_v14 }
 0x4e5   :  { %vm2674_vm13 = vcmp.eq.f32.partialorder %v2673_v8, 8.507059e+37 }
 0x4e6   :  { %v2744_v18 = vpop.f32.mrf.mxu0  ;;  %v2764_v21 = vpop.f32.mrf.mxu1 }
 0x4e7   :  { %v5149_v58 = vpop.eup %5148  ;;  %v2807_v43 = vadd.f32 %v2744_v18, %v452_v15  ;;  %v2808_v16 = vadd.f32 %v2764_v21, %v493_v17  ;;  %v2694_v17 = vand.u32 2147483648, %v2682_v14  ;;  %v2675_v18 = vand.u32 2147483648, %v2663_v35 }
 0x4e8   :  { %v8956_v20 = vadd.f32 1.0, %v5149_v58  ;;  %v2692_v58 = vand.u32 2147483647, %v2682_v14 }
 0x4e9   :  { %v5151_v39 = vpop.eup %5150  ;;  %v4924_v22 = vmul.f32 -1.442695, %v2807_v43  ;;  %v4925_v37 = vmul.f32 -1.442695, %v2808_v16 }
 0x4ea   :  { %v5153_v42 = vpop.eup %5152  ;;  %v2665_v12 = vmul.f32 %v5151_v39, %v2663_v35  ;;  %5154 = vrcp.f32 %v8956_v20  ;;  %vm2670_vm9 = vweird.f32 %v5151_v39  ;;  %vm2693_vm0 = vcmp.eq.f32.partialorder %v2692_v58, 8.507059e+37 }
 0x4eb   :  { %v2684_v31 = vmul.f32 %v5153_v42, %v2682_v14  ;;  %5156 = vpow2.f32 %v4924_v22  ;;  %vm2689_vm10 = vweird.f32 %v5153_v42  ;;  %vm2671_vm14 = vmor %vm2669_vm11, %vm2670_vm9  ;;  %vm2708_vm2 = vweird.f32 %v8956_v20 }
 0x4ec   :  { %v2666_v9 = vsub.f32 1.0, %v2665_v12  ;;  %5158 = vpow2.f32 %v4925_v37  ;;  %v2695_v12 = vor.u32 1.1754944e-38, %v2694_v17  ;;  %v2676_v37 = vor.u32 1.1754944e-38, %v2675_v18  ;;  %vm2690_vm15 = vmor %vm2688_vm12, %vm2689_vm10 }
 0x4ed   :  { %v2685_v15 = vsub.f32 1.0, %v2684_v31  ;;  %5160 = vtanh.f32 %v2658_v27  ;;  %v2804_v21 = vpop.f32.mrf.mxu3  ;;  %v2784_v6 = vpop.f32.mrf.mxu2 }
 0x4ee   :  { %v2667_v50 = vmul.f32 %v5151_v39, %v2666_v9  ;;  %v2810_v5 = vadd.f32 %v2804_v21, %v575_v60 }
 0x4ef   :  { %v2686_v24 = vmul.f32 %v5153_v42, %v2685_v15 }
 0x4f0   :  { %v5155_v43 = vpop.eup %5154  ;;  %v2668_v22 = vadd.f32 %v5151_v39, %v2667_v50  ;;  %v4926_v30 = vmul.f32 -1.442695, %v2810_v5 }
 0x4f1   :  { %v5157_v16 = vpop.eup %5156  ;;  %v2687_v31 = vadd.f32 %v5153_v42, %v2686_v24  ;;  %v2704_v27 = vmul.f32 %v5155_v43, %v8956_v20  ;;  %vm2709_vm1 = vweird.f32 %v5155_v43 }
 0x4f2   :  { %v5159_v53 = vpop.eup %5158  ;;  %v2672_v9 = vsel %vm2671_vm14, %v5151_v39, %v2668_v22  ;;  %v2814_v60 = vadd.f32 1.0, %v5157_v16  ;;  %5162 = vpow2.f32 %v4926_v30  ;;  %v11291_v39 = vld [vmem:[#allocation31_spill] sm:$0xff]  ;;  %v2712_v30 = vand.u32 2147483647, %v8956_v20  ;;  %vm8973_vm3 = vmor %vm2708_vm2, %vm2709_vm1 }
 0x4f3   :  { %v5161_v15 = vpop.eup %5160  ;;  %v2677_v35 = vsel %vm2674_vm13, %v2676_v37, %v2672_v9  ;;  %v2691_v21 = vsel %vm2690_vm15, %v5153_v42, %v2687_v31  ;;  %v2705_v14 = vsub.f32 1.0, %v2704_v27  ;;  %v2833_v50 = vadd.f32 1.0, %v5159_v53 }
 0x4f4   :  { %v2696_v8 = vsel %vm2693_vm0, %v2695_v12, %v2691_v21  ;;  %v2719_v5 = vmul.f32 %v5161_v15, %v2677_v35  ;;  %5164 = vrcp.f32 %v2814_v60  ;;  %v534_v58 = vadd.f32 %v11291_v39, %v11030_v11 }
 0x4f5   :  { %v2718_v17 = vmul.f32 %v2696_v8, %v8557_v2  ;;  %v2706_v18 = vmul.f32 %v5155_v43, %v2705_v14  ;;  %5166 = vrcp.f32 %v2833_v50  ;;  %v2714_v53 = vand.u32 2147483648, %v8956_v20 }
 0x4f6   :  { %v2809_v16 = vadd.f32 %v2784_v6, %v534_v58  ;;  %vm2713_vm4 = vcmp.eq.f32.partialorder %v2712_v30, 8.507059e+37  ;;  %v2845_v21 = vand.u32 2147483648, %v2833_v50  ;;  %v2826_v14 = vand.u32 2147483648, %v2814_v60 }
 0x4f7   :  { %v8963_v24 = vadd.f32 %v2719_v5, %v2718_v17  ;;  %v2707_v22 = vadd.f32 %v5155_v43, %v2706_v18  ;;  %v2824_v8 = vand.u32 2147483647, %v2814_v60  ;;  %v2843_v18 = vand.u32 2147483647, %v2833_v50 }
 0x4f8   :  { %v5163_v4 = vpop.eup %5162  ;;  %vm2820_vm7 = vweird.f32 %v2814_v60  ;;  %vm2839_vm8 = vweird.f32 %v2833_v50  ;;  %v2846_v30 = vor.u32 1.1754944e-38, %v2845_v21  ;;  %v11317_v21 = vld [vmem:[#allocation83_spill] sm:$0xff] }
 0x4f9   :  { %5168 = vtanh.f32 %v8963_v24  ;;  %v8969_v42 = vadd.f32 1.0, %v5163_v4  ;;  %v2711_v9 = vsel %vm8973_vm3, %v5155_v43, %v2707_v22  ;;  %v2715_v4 = vor.u32 1.1754944e-38, %v2714_v53 }
 0x4fa   :  { %v5165_v2 = vpop.eup %5164  ;;  %v2827_v43 = vor.u32 1.1754944e-38, %v2826_v14  ;;  %vm2825_vm11 = vcmp.eq.f32.partialorder %v2824_v8, 8.507059e+37  ;;  %vm2844_vm12 = vcmp.eq.f32.partialorder %v2843_v18, 8.507059e+37  ;;  %v11318_v14 = vld [vmem:[#allocation40_spill] sm:$0xff]  ;;  %v11321_v8 = vld [vmem:[#allocation54_spill] sm:$0xff] }
 0x4fb   :  { %v5167_v12 = vpop.eup %5166  ;;  %v2816_v31 = vmul.f32 %v5165_v2, %v2814_v60  ;;  %5170 = vrcp.f32 %v8969_v42  ;;  %vm2821_vm5 = vweird.f32 %v5165_v2  ;;  %v2716_v5 = vsel %vm2713_vm4, %v2715_v4, %v2711_v9  ;;  %v11324_v18 = vld [vmem:[#allocation116_spill] sm:$0xff] }
 0x4fc   :  { %v2835_v27 = vmul.f32 %v5167_v12, %v2833_v50  ;;  %5172 = vtanh.f32 %v2809_v16  ;;  %vm2840_vm6 = vweird.f32 %v5167_v12  ;;  %vm2822_vm9 = vmor %vm2820_vm7, %vm2821_vm5  ;;  %vm2859_vm14 = vweird.f32 %v8969_v42 }
 0x4fd   :  { %v2817_v15 = vsub.f32 1.0, %v2816_v31  ;;  %vm2841_vm10 = vmor %vm2839_vm8, %vm2840_vm6 }
 0x4fe   :  { %v2836_v35 = vsub.f32 1.0, %v2835_v27 }
 0x4ff   :  { %v5169_v6 = vpop.eup %5168  ;;  %v2818_v20 = vmul.f32 %v5165_v2, %v2817_v15 }
 0x500   :  { %v2837_v17 = vmul.f32 %v5167_v12, %v2836_v35  ;;  %v2722_v39 = vmul.f32 %v5169_v6, %v2716_v5  ;;  %v11316_v35 = vld [vmem:[#allocation41_spill] sm:$0xff]  ;;  %v11319_v6 = vld [vmem:[#allocation47_spill] sm:$0xff]  ;;  %v11322_v5 = vld [vmem:[#allocation64_spill] sm:$0xff] }
 0x501   :  { %v8980_v58 = vpop.eup %5170  ;;  %v2819_v37 = vadd.f32 %v5165_v2, %v2818_v20  ;;  %v11320_v20 = vld [vmem:[#allocation55_spill] sm:$0xff] }
 0x502   :  { %v2838_v22 = vadd.f32 %v5167_v12, %v2837_v17  ;;  %v2855_v53 = vmul.f32 %v8980_v58, %v8969_v42  ;;  %2894 = vmatmul.f32.vlgmr.msra.gmra.mxu0 %v2722_v39  ;;  %2914 = vmatmul.f32.vlgmr.msra.gmra.mxu1 %v2722_v39  ;;  %v5173_v31 = vpop.eup %5172  ;;  %vm2860_vm13 = vweird.f32 %v8980_v58  ;;  %v11323_v17 = vld [vmem:[#allocation51_spill] sm:$0xff] }
 0x503   :  { %v2823_v16 = vsel %vm2822_vm9, %v5165_v2, %v2819_v37  ;;  %2934 = vmatmul.f32.vlgmr.msra.gmra.mxu2 %v2722_v39  ;;  %2954 = vmatmul.f32.vlgmr.msra.gmra.mxu3 %v2722_v39  ;;  %vm2861_vm15 = vmor %vm2859_vm14, %vm2860_vm13  ;;  %v11325_v39 = vld [vmem:[#allocation117_spill] sm:$0xff]  ;;  %v11327_v37 = vld [vmem:[#allocation119_spill] sm:$0xff] }
 0x504   :  { %v2828_v27 = vsel %vm2825_vm11, %v2827_v43, %v2823_v16  ;;  %v2842_v9 = vsel %vm2841_vm10, %v5167_v12, %v2838_v22  ;;  %v2856_v60 = vsub.f32 1.0, %v2855_v53  ;;  %3180 = vmatpush.msra.mxu0 %v8584_v28  ;;  %3200 = vmatpush.msra.mxu1 %v8587_v41  ;;  %v11315_v12 = vld [vmem:[#allocation105_spill] sm:$0xff]  ;;  %v11328_v43 = vld [vmem:[#allocation120_spill] sm:$0xff]  ;;  %v11330_v53 = vld [vmem:[#allocation122_spill] sm:$0xff] }
 0x505   :  { %v2847_v50 = vsel %vm2844_vm12, %v2846_v30, %v2842_v9  ;;  %v2870_v4 = vmul.f32 %v5173_v31, %v2828_v27  ;;  %3220 = vmatpush.msra.mxu2 %v8590_v25  ;;  %3240 = vmatpush.msra.mxu3 %v8593_v23  ;;  %v2865_v25 = vand.u32 2147483648, %v8969_v42  ;;  %v2863_v23 = vand.u32 2147483647, %v8969_v42  ;;  %v11314_v42 = vld [vmem:[#allocation76_spill] sm:$0xff]  ;;  %v11329_v22 = vld [vmem:[#allocation121_spill] sm:$0xff]  ;;  %v11331_v30 = vld [vmem:[#allocation123_spill] sm:$0xff] }
 0x506   :  { %v2869_v2 = vmul.f32 %v2847_v50, %v8610_v55  ;;  %v2857_v15 = vmul.f32 %v8980_v58, %v2856_v60  ;;  %3181 = vmatpush.msra.mxu0 %v8598_v48  ;;  %3201 = vmatpush.msra.mxu1 %v8601_v46  ;;  %v11332_v16 = vld [vmem:[#allocation124_spill] sm:$0xff]  ;;  %v11333_v31 = vld [vmem:[#allocation125_spill] sm:$0xff]  ;;  %v11334_v27 = vld [vmem:[#allocation126_spill] sm:$0xff] }
 0x507   :  { %3221 = vmatpush.msra.mxu2 %v8604_v10  ;;  %3241 = vmatpush.msra.mxu3 %v8607_v3  ;;  %v2866_v46 = vor.u32 1.1754944e-38, %v2865_v25  ;;  %vm2864_vm0 = vcmp.eq.f32.partialorder %v2863_v23, 8.507059e+37  ;;  %v11335_v9 = vld [vmem:[#allocation127_spill] sm:$0xff]  ;;  %v11336_v60 = vld [vmem:[#allocation128_spill] sm:$0xff]  ;;  %v11337_v50 = vld [vmem:[#allocation129_spill] sm:$0xff] }
 0x508   :  { %v8994_v28 = vadd.f32 %v2870_v4, %v2869_v2  ;;  %3182 = vmatpush.msra.mxu0 %v8612_v32  ;;  %3202 = vmatpush.msra.mxu1 %v8615_v29  ;;  %v2858_v41 = vadd.f32 %v8980_v58, %v2857_v15  ;;  %v11294_v32 = vld [vmem:[#allocation183_spill] sm:$0xff]  ;;  %v11295_v29 = vld [vmem:[#allocation184_spill] sm:$0xff]  ;;  %v11338_v4 = vld [vmem:[#allocation130_spill] sm:$0xff] }
 0x509   :  { %3222 = vmatpush.msra.mxu2 %v8620_v7  ;;  %3242 = vmatpush.msra.mxu3 %v8623_v13  ;;  %v11296_v7 = vld [vmem:[#allocation185_spill] sm:$0xff]  ;;  %v11297_v13 = vld [vmem:[#allocation186_spill] sm:$0xff]  ;;  %v11339_v2 = vld [vmem:[#allocation131_spill] sm:$0xff] }
 0x50a   :  { %5174 = vtanh.f32 %v8994_v28  ;;  %3183 = vmatpush.msra.mxu0 %v8628_v61  ;;  %3203 = vmatpush.msra.mxu1 %v8631_v47  ;;  %v2862_v48 = vsel %vm2861_vm15, %v8980_v58, %v2858_v41  ;;  %v11298_v61 = vld [vmem:[#allocation187_spill] sm:$0xff]  ;;  %v11299_v47 = vld [vmem:[#allocation188_spill] sm:$0xff]  ;;  %v11326_v58 = vld [vmem:[#allocation118_spill] sm:$0xff] }
 0x50b   :  { %3223 = vmatpush.msra.mxu2 %v8636_v63  ;;  %3243 = vmatpush.msra.mxu3 %v8639_v51  ;;  %v2867_v3 = vsel %vm2864_vm0, %v2866_v46, %v2862_v48  ;;  %v11300_v63 = vld [vmem:[#allocation189_spill] sm:$0xff]  ;;  %v11340_v15 = vld [vmem:[#allocation132_spill] sm:$0xff]  ;;  %v11342_v25 = vld [vmem:[#allocation134_spill] sm:$0xff] }
 0x50c   :  { %3184 = vmatpush.msra.mxu0 %v8648_v40  ;;  %3204 = vmatpush.msra.mxu1 %v8651_v57  ;;  %v11301_v51 = vld [vmem:[#allocation25_spill] sm:$0xff]  ;;  %v11302_v40 = vld [vmem:[#allocation34_spill] sm:$0xff]  ;;  %v11303_v57 = vld [vmem:[#allocation68_spill] sm:$0xff] }
 0x50d   :  { %3224 = vmatpush.msra.mxu2 %v8657_v1  ;;  %3244 = vmatpush.msra.mxu3 %v8660_v62  ;;  %v11304_v1 = vld [vmem:[#allocation65_spill] sm:$0xff]  ;;  %v11343_v23 = vld [vmem:[#allocation135_spill] sm:$0xff]  ;;  %v11344_v48 = vld [vmem:[#allocation136_spill] sm:$0xff] }
 0x50e   :  { %3185 = vmatpush.msra.mxu0 %v8663_v56  ;;  %3205 = vmatpush.msra.mxu1 %v8666_v49  ;;  %v11305_v62 = vld [vmem:[#allocation109_spill] sm:$0xff]  ;;  %v11306_v56 = vld [vmem:[#allocation48_spill] sm:$0xff]  ;;  %v11307_v49 = vld [vmem:[#allocation46_spill] sm:$0xff] }
 0x50f   :  { %3225 = vmatpush.msra.mxu2 %v8669_v54  ;;  %3245 = vmatpush.msra.mxu3 %v8672_v33  ;;  %v11308_v54 = vld [vmem:[#allocation73_spill] sm:$0xff]  ;;  %v11309_v33 = vld [vmem:[#allocation44_spill] sm:$0xff] }
 0x510   :  { %v5175_v10 = vpop.eup %5174  ;;  %3186 = vmatpush.msra.mxu0 %v8675_v59  ;;  %3206 = vmatpush.msra.mxu1 %v8678_v34  ;;  %v11310_v59 = vld [vmem:[#allocation52_spill] sm:$0xff]  ;;  %v11341_v41 = vld [vmem:[#allocation133_spill] sm:$0xff] }
 0x511   :  { %v2873_v55 = vmul.f32 %v5175_v10, %v2867_v3  ;;  %3226 = vmatpush.msra.mxu2 %v8681_v0  ;;  %3246 = vmatpush.msra.mxu3 %v8684_v38  ;;  %v11311_v34 = vld [vmem:[#allocation28_spill] sm:$0xff]  ;;  %v11312_v0 = vld [vmem:[#allocation78_spill] sm:$0xff]  ;;  %v11345_v46 = vld [vmem:[#allocation137_spill] sm:$0xff] }
 0x512   :  { %3187 = vmatpush.msra.mxu0 %v11294_v32  ;;  %3207 = vmatpush.msra.mxu1 %v11295_v29  ;;  %v11313_v38 = vld [vmem:[#allocation26_spill] sm:$0xff]  ;;  %v11347_v3 = vld [vmem:[#allocation139_spill] sm:$0xff]  ;;  %v11349_v32 = vld [vmem:[#allocation141_spill] sm:$0xff] }
 0x513   :  { %3045 = vmatmul.f32.vlgmr.msrb.gmra.mxu0 %v2873_v55  ;;  %3065 = vmatmul.f32.vlgmr.msrb.gmra.mxu1 %v2873_v55  ;;  %v11346_v10 = vld [vmem:[#allocation138_spill] sm:$0xff] }
 0x514   :  { %3085 = vmatmul.f32.vlgmr.msrb.gmra.mxu2 %v2873_v55  ;;  %3105 = vmatmul.f32.vlgmr.msrb.gmra.mxu3 %v2873_v55  ;;  %v11348_v55 = vld [vmem:[#allocation140_spill] sm:$0xff]  ;;  %v11350_v29 = vld [vmem:[#allocation142_spill] sm:$0xff] }
 0x515   :  { %3227 = vmatpush.msra.mxu2 %v11296_v7  ;;  %3247 = vmatpush.msra.mxu3 %v11297_v13  ;;  %v11351_v7 = vld [vmem:[#allocation143_spill] sm:$0xff]  ;;  %v11352_v13 = vld [vmem:[#allocation144_spill] sm:$0xff] }
 0x516   :  { %3188 = vmatpush.msra.mxu0 %v11298_v61  ;;  %3208 = vmatpush.msra.mxu1 %v11299_v47  ;;  %v11353_v61 = vld [vmem:[#allocation145_spill] sm:$0xff]  ;;  %v11354_v47 = vld [vmem:[#allocation146_spill] sm:$0xff] }
 0x517   :  { %3228 = vmatpush.msra.mxu2 %v11300_v63  ;;  %3248 = vmatpush.msra.mxu3 %v11301_v51  ;;  %v11355_v63 = vld [vmem:[#allocation147_spill] sm:$0xff]  ;;  %v11356_v51 = vld [vmem:[#allocation148_spill] sm:$0xff] }
 0x518   :  { %3189 = vmatpush.msra.mxu0 %v11302_v40  ;;  %3209 = vmatpush.msra.mxu1 %v11303_v57  ;;  %v11357_v40 = vld [vmem:[#allocation149_spill] sm:$0xff]  ;;  %v11358_v57 = vld [vmem:[#allocation150_spill] sm:$0xff] }
 0x519   :  { %3229 = vmatpush.msra.mxu2 %v11304_v1  ;;  %3249 = vmatpush.msra.mxu3 %v11305_v62  ;;  %v11359_v1 = vld [vmem:[#allocation151_spill] sm:$0xff]  ;;  %v11360_v62 = vld [vmem:[#allocation152_spill] sm:$0xff] }
 0x51a   :  { %3190 = vmatpush.msra.mxu0 %v11306_v56  ;;  %3210 = vmatpush.msra.mxu1 %v11307_v49  ;;  %v11361_v56 = vld [vmem:[#allocation153_spill] sm:$0xff]  ;;  %v11362_v49 = vld [vmem:[#allocation154_spill] sm:$0xff] }
 0x51b   :  { %3230 = vmatpush.msra.mxu2 %v11308_v54  ;;  %3250 = vmatpush.msra.mxu3 %v11309_v33  ;;  %v5731_v54 = vld [vmem:[#allocation11 + $0xc8] sm:$0xff]  ;;  %v5732_v33 = vld [vmem:[#allocation11 + $0xd0] sm:$0xff] }
 0x51c   :  { %3191 = vmatpush.msra.mxu0 %v11310_v59  ;;  %3211 = vmatpush.msra.mxu1 %v11311_v34  ;;  %v5733_v59 = vld [vmem:[#allocation11 + $0xd8] sm:$0xff]  ;;  %v5734_v34 = vld [vmem:[#allocation11 + $0xa8] sm:$0xff] }
 0x51d   :  { %3231 = vmatpush.msra.mxu2 %v11312_v0  ;;  %3251 = vmatpush.msra.mxu3 %v11313_v38  ;;  %v5736_v0 = vld [vmem:[#allocation11 + $0xb8] sm:$0xff]  ;;  %v11363_v38 = vld [vmem:[#allocation155_spill] sm:$0xff] }
 0x51e   :  { %3192 = vmatpush.msra.mxu0 %v11314_v42  ;;  %3212 = vmatpush.msra.mxu1 %v11315_v12  ;;  %v5740_v42 = vld [vmem:[#allocation11 + $0x68] sm:$0xff]  ;;  %v5741_v12 = vld [vmem:[#allocation11 + $0x70] sm:$0xff] }
 0x51f   :  { %3232 = vmatpush.msra.mxu2 %v11316_v35  ;;  %3252 = vmatpush.msra.mxu3 %v11317_v21  ;;  %v11364_v35 = vld [vmem:[#allocation156_spill] sm:$0xff] }
 0x520   :  { %3193 = vmatpush.msra.mxu0 %v11318_v14  ;;  %3213 = vmatpush.msra.mxu1 %v11319_v6  ;;  %v5743_v21 = vld [vmem:[#allocation11 + $0x48] sm:$0xff]  ;;  %v5744_v14 = vld [vmem:[#allocation11 + $0x50] sm:$0xff] }
 0x521   :  { %3233 = vmatpush.msra.mxu2 %v11320_v20  ;;  %3253 = vmatpush.msra.mxu3 %v11321_v8  ;;  %v11365_v6 = vld [vmem:[#allocation157_spill] sm:$0xff]  ;;  %v5746_v20 = vld [vmem:[#allocation11 + $0x28] sm:$0xff] }
 0x522   :  { %3194 = vmatpush.msra.mxu0 %v11322_v5  ;;  %3214 = vmatpush.msra.mxu1 %v11323_v17  ;;  %v5747_v8 = vld [vmem:[#allocation11 + $0x30] sm:$0xff]  ;;  %v5748_v5 = vld [vmem:[#allocation11 + $0x38] sm:$0xff] }
 0x523   :  { %3234 = vmatpush.msra.mxu2 %v11324_v18  ;;  %3254 = vmatpush.msra.mxu3 %v11325_v39  ;;  %v11366_v17 = vld [vmem:[#allocation158_spill] sm:$0xff]  ;;  %v5749_v18 = vld [vmem:[#allocation11 + $0x8] sm:$0xff]  ;;  %v5750_v39 = vld [vmem:[#allocation11 + $0x10] sm:$0xff] }
 0x524   :  { %3195 = vmatpush.msra.mxu0 %v11326_v58  ;;  %3215 = vmatpush.msra.mxu1 %v11327_v37  ;;  %v5751_v58 = vld [vmem:[#allocation11 + $0x18] sm:$0xff]  ;;  %v11367_v37 = vld [vmem:[#allocation100_spill] sm:$0xff] }
 0x525   :  { %3235 = vmatpush.msra.mxu2 %v11328_v43  ;;  %3255 = vmatpush.msra.mxu3 %v11329_v22  ;;  %v11368_v43 = vld [vmem:[#allocation104_spill] sm:$0xff] }
 0x526   :  { %3331 = vmatpush.msrb.mxu0 %v11330_v53  ;;  %3351 = vmatpush.msrb.mxu1 %v11331_v30  ;;  %v283_v22 = vadd.f32 %v11368_v43, %v11367_v37 }
 0x527   :  { %3371 = vmatpush.msrb.mxu2 %v11332_v16  ;;  %3391 = vmatpush.msrb.mxu3 %v11333_v31  ;;  %v11369_v16 = vld [vmem:[#allocation27_spill] sm:$0xff] }
 0x528   :  { %3332 = vmatpush.msrb.mxu0 %v11334_v27  ;;  %3352 = vmatpush.msrb.mxu1 %v11335_v9 }
 0x529   :  { %3372 = vmatpush.msrb.mxu2 %v11336_v60  ;;  %3392 = vmatpush.msrb.mxu3 %v11337_v50  ;;  %v11370_v50 = vld [vmem:[#allocation50_spill] sm:$0xff] }
 0x52a   :  { %3333 = vmatpush.msrb.mxu0 %v11338_v4  ;;  %3353 = vmatpush.msrb.mxu1 %v11339_v2  ;;  %v11371_v4 = vld [vmem:[#allocation103_spill] sm:$0xff] }
 0x52b   :  { %3373 = vmatpush.msrb.mxu2 %v11340_v15  ;;  %3393 = vmatpush.msrb.mxu3 %v11341_v41  ;;  %v365_v2 = vadd.f32 %v11371_v4, %v11370_v50 }
 0x52c   :  { %3334 = vmatpush.msrb.mxu0 %v11342_v25  ;;  %3354 = vmatpush.msrb.mxu1 %v11343_v23 }
 0x52d   :  { %3374 = vmatpush.msrb.mxu2 %v11344_v48  ;;  %3394 = vmatpush.msrb.mxu3 %v11345_v46 }
 0x52e   :  { %3335 = vmatpush.msrb.mxu0 %v11346_v10  ;;  %3355 = vmatpush.msrb.mxu1 %v11347_v3  ;;  %v11372_v3 = vld [vmem:[#allocation91_spill] sm:$0xff] }
 0x52f   :  { %3375 = vmatpush.msrb.mxu2 %v11348_v55  ;;  %3395 = vmatpush.msrb.mxu3 %v11349_v32  ;;  %v11373_v55 = vld [vmem:[#allocation71_spill] sm:$0xff] }
 0x530   :  { %3336 = vmatpush.msrb.mxu0 %v11350_v29  ;;  %3356 = vmatpush.msrb.mxu1 %v11351_v7  ;;  %v449_v32 = vadd.f32 %v11373_v55, %v11372_v3  ;;  %v11374_v29 = vld [vmem:[#allocation24_spill] sm:$0xff]  ;;  %v11375_v7 = vld [vmem:[#allocation115_spill] sm:$0xff]  ;;  %v11380_v55 = vld [vmem:[#allocation30_spill] sm:$0xff] }
 0x531   :  { %3376 = vmatpush.msrb.mxu2 %v11352_v13  ;;  %3396 = vmatpush.msrb.mxu3 %v11353_v61  ;;  %v490_v13 = vadd.f32 %v11375_v7, %v11374_v29 }
 0x532   :  { %3337 = vmatpush.msrb.mxu0 %v11354_v47  ;;  %3357 = vmatpush.msrb.mxu1 %v11355_v63 }
 0x533   :  { %3377 = vmatpush.msrb.mxu2 %v11356_v51  ;;  %3397 = vmatpush.msrb.mxu3 %v11357_v40  ;;  %v11376_v40 = vld [vmem:[#allocation61_spill] sm:$0xff] }
 0x534   :  { %3338 = vmatpush.msrb.mxu0 %v11358_v57  ;;  %3358 = vmatpush.msrb.mxu1 %v11359_v1  ;;  %v11377_v57 = vld [vmem:[#allocation106_spill] sm:$0xff] }
 0x535   :  { %3378 = vmatpush.msrb.mxu2 %v11360_v62  ;;  %3398 = vmatpush.msrb.mxu3 %v8888_v36  ;;  %v5735_v36 = vld [vmem:[#allocation11 + $0xb0] sm:$0xff]  ;;  %v324_v1 = vadd.f32 %v11377_v57, %v11376_v40  ;;  %v11385_v57 = vld [vmem:[#allocation107_spill] sm:$0xff] }
 0x536   :  { %3339 = vmatpush.msrb.mxu0 %v11361_v56  ;;  %3359 = vmatpush.msrb.mxu1 %v8894_v19  ;;  %v5737_v19 = vld [vmem:[#allocation11 + $0x88] sm:$0xff] }
 0x537   :  { %3379 = vmatpush.msrb.mxu2 %v8897_v52  ;;  %3399 = vmatpush.msrb.mxu3 %v11362_v49  ;;  %v5738_v52 = vld [vmem:[#allocation11 + $0x90] sm:$0xff] }
 0x538   :  { %3340 = vmatpush.msrb.mxu0 %v8903_v26  ;;  %3360 = vmatpush.msrb.mxu1 %v5731_v54  ;;  %v5739_v26 = vld [vmem:[#allocation11 + $0x98] sm:$0xff] }
 0x539   :  { %3380 = vmatpush.msrb.mxu2 %v5732_v33  ;;  %3400 = vmatpush.msrb.mxu3 %v5733_v59 }
 0x53a   :  { %3341 = vmatpush.msrb.mxu0 %v8909_v44  ;;  %3361 = vmatpush.msrb.mxu1 %v5734_v34  ;;  %v5742_v44 = vld [vmem:[#allocation11 + $0x78] sm:$0xff] }
 0x53b   :  { %3381 = vmatpush.msrb.mxu2 %v5735_v36  ;;  %3401 = vmatpush.msrb.mxu3 %v5736_v0 }
 0x53c   :  { %3342 = vmatpush.msrb.mxu0 %v8915_v45  ;;  %3362 = vmatpush.msrb.mxu1 %v5737_v19  ;;  %v5745_v45 = vld [vmem:[#allocation11 + $0x58] sm:$0xff] }
 0x53d   :  { %3382 = vmatpush.msrb.mxu2 %v5738_v52  ;;  %3402 = vmatpush.msrb.mxu3 %v5739_v26  ;;  %v11378_v52 = vld [vmem:[#allocation23_spill] sm:$0xff]  ;;  %v11379_v26 = vld [vmem:[#allocation114_spill] sm:$0xff] }
 0x53e   :  { %3343 = vmatpush.msrb.mxu0 %v11363_v38  ;;  %3363 = vmatpush.msrb.mxu1 %v5740_v42  ;;  %v572_v38 = vadd.f32 %v11379_v26, %v11378_v52 }
 0x53f   :  { %3383 = vmatpush.msrb.mxu2 %v5741_v12  ;;  %3403 = vmatpush.msrb.mxu3 %v5742_v44 }
 0x540   :  { %3344 = vmatpush.msrb.mxu0 %v11364_v35  ;;  %3364 = vmatpush.msrb.mxu1 %v5743_v21 }
 0x541   :  { %3384 = vmatpush.msrb.mxu2 %v5744_v14  ;;  %3404 = vmatpush.msrb.mxu3 %v5745_v45 }
 0x542   :  { %3345 = vmatpush.msrb.mxu0 %v11365_v6  ;;  %3365 = vmatpush.msrb.mxu1 %v5746_v20 }
 0x543   :  { %3385 = vmatpush.msrb.mxu2 %v5747_v8  ;;  %3405 = vmatpush.msrb.mxu3 %v5748_v5 }
 0x544   :  { %3346 = vmatpush.msrb.mxu0 %v11366_v17  ;;  %3366 = vmatpush.msrb.mxu1 %v5749_v18 }
 0x545   :  { %3386 = vmatpush.msrb.mxu2 %v5750_v39  ;;  %3406 = vmatpush.msrb.mxu3 %v5751_v58 }
 0x57f   :  { %v2895_v53 = vpop.f32.mrf.mxu0  ;;  %v2915_v30 = vpop.f32.mrf.mxu1 }
 0x580   :  { %v2958_v31 = vadd.f32 %v2895_v53, %v11369_v16  ;;  %v2959_v27 = vadd.f32 %v2915_v30, %v283_v22 }
 0x582   :  { %v4927_v9 = vmul.f32 -1.442695, %v2958_v31  ;;  %v4928_v60 = vmul.f32 -1.442695, %v2959_v27 }
 0x584   :  { %5176 = vpow2.f32 %v4927_v9 }
 0x585   :  { %5178 = vpow2.f32 %v4928_v60 }
 0x586   :  { %v2955_v15 = vpop.f32.mrf.mxu3  ;;  %v2935_v61 = vpop.f32.mrf.mxu2 }
 0x587   :  { %v2961_v41 = vadd.f32 %v2955_v15, %v365_v2  ;;  %v2960_v33 = vadd.f32 %v2935_v61, %v324_v1 }
 0x589   :  { %v4929_v25 = vmul.f32 -1.442695, %v2961_v41 }
 0x58a   :  { %v5177_v23 = vpop.eup %5176 }
 0x58b   :  { %v5179_v48 = vpop.eup %5178  ;;  %v2965_v46 = vadd.f32 1.0, %v5177_v23  ;;  %5180 = vpow2.f32 %v4929_v25 }
 0x58c   :  { %v2984_v10 = vadd.f32 1.0, %v5179_v48 }
 0x58d   :  { %5182 = vrcp.f32 %v2965_v46  ;;  %v2975_v12 = vand.u32 2147483647, %v2965_v46  ;;  %v2977_v21 = vand.u32 2147483648, %v2965_v46  ;;  %vm2971_vm3 = vweird.f32 %v2965_v46 }
 0x58e   :  { %5184 = vrcp.f32 %v2984_v10  ;;  %v2996_v35 = vand.u32 2147483648, %v2984_v10  ;;  %v2994_v6 = vand.u32 2147483647, %v2984_v10  ;;  %vm2990_vm4 = vweird.f32 %v2984_v10 }
 0x58f   :  { %vm2976_vm5 = vcmp.eq.f32.partialorder %v2975_v12, 8.507059e+37  ;;  %v2978_v43 = vor.u32 1.1754944e-38, %v2977_v21 }
 0x590   :  { %v3046_v47 = vpop.f32.mrf.mxu0  ;;  %v3066_v63 = vpop.f32.mrf.mxu1  ;;  %v2997_v58 = vor.u32 1.1754944e-38, %v2996_v35  ;;  %vm2995_vm8 = vcmp.eq.f32.partialorder %v2994_v6, 8.507059e+37 }
 0x591   :  { %v5181_v51 = vpop.eup %5180  ;;  %v3109_v62 = vadd.f32 %v3046_v47, %v449_v32  ;;  %v3110_v56 = vadd.f32 %v3066_v63, %v490_v13  ;;  %v531_v32 = vadd.f32 %v11380_v55, %v11030_v11  ;;  %v9141_v55 = vld [vmem:[#allocation14 + $0x1e0] sm:$0xff] }
 0x592   :  { %v9113_v49 = vadd.f32 1.0, %v5181_v51 }
 0x593   :  { %v5183_v54 = vpop.eup %5182  ;;  %v4930_v59 = vmul.f32 -1.442695, %v3109_v62  ;;  %v4931_v34 = vmul.f32 -1.442695, %v3110_v56 }
 0x594   :  { %v5185_v36 = vpop.eup %5184  ;;  %v2967_v0 = vmul.f32 %v5183_v54, %v2965_v46  ;;  %5186 = vrcp.f32 %v9113_v49  ;;  %vm2972_vm1 = vweird.f32 %v5183_v54  ;;  %v3016_v13 = vand.u32 2147483648, %v9113_v49 }
 0x595   :  { %v2986_v19 = vmul.f32 %v5185_v36, %v2984_v10  ;;  %5188 = vpow2.f32 %v4930_v59  ;;  %vm2991_vm2 = vweird.f32 %v5185_v36  ;;  %vm2973_vm6 = vmor %vm2971_vm3, %vm2972_vm1  ;;  %v3014_v47 = vand.u32 2147483647, %v9113_v49 }
 0x596   :  { %v2968_v42 = vsub.f32 1.0, %v2967_v0  ;;  %5190 = vpow2.f32 %v4931_v34  ;;  %vm2992_vm7 = vmor %vm2990_vm4, %vm2991_vm2  ;;  %vm3010_vm10 = vweird.f32 %v9113_v49 }
 0x597   :  { %v2987_v44 = vsub.f32 1.0, %v2986_v19  ;;  %5192 = vtanh.f32 %v2960_v33  ;;  %v3106_v14 = vpop.f32.mrf.mxu3  ;;  %v3086_v46 = vpop.f32.mrf.mxu2  ;;  %vm3015_vm12 = vcmp.eq.f32.partialorder %v3014_v47, 8.507059e+37  ;;  %v9149_v47 = vld [vmem:[#allocation14 + $0x1f8] sm:$0xff] }
 0x598   :  { %v2969_v45 = vmul.f32 %v5183_v54, %v2968_v42  ;;  %v3112_v20 = vadd.f32 %v3106_v14, %v572_v38 }
 0x599   :  { %v2988_v8 = vmul.f32 %v5185_v36, %v2987_v44 }
 0x59a   :  { %v5187_v5 = vpop.eup %5186  ;;  %v2970_v17 = vadd.f32 %v5183_v54, %v2969_v45  ;;  %v4932_v18 = vmul.f32 -1.442695, %v3112_v20 }
 0x59b   :  { %v5189_v39 = vpop.eup %5188  ;;  %v2989_v22 = vadd.f32 %v5185_v36, %v2988_v8  ;;  %v3006_v53 = vmul.f32 %v5187_v5, %v9113_v49  ;;  %vm3011_vm9 = vweird.f32 %v5187_v5 }
 0x59c   :  { %v5191_v30 = vpop.eup %5190  ;;  %v2974_v16 = vsel %vm2973_vm6, %v5183_v54, %v2970_v17  ;;  %v3116_v31 = vadd.f32 1.0, %v5189_v39  ;;  %5194 = vpow2.f32 %v4932_v18  ;;  %vm9128_vm11 = vmor %vm3010_vm10, %vm3011_vm9  ;;  %v3017_v54 = vor.u32 1.1754944e-38, %v3016_v13 }
 0x59d   :  { %v5193_v27 = vpop.eup %5192  ;;  %v2979_v9 = vsel %vm2976_vm5, %v2978_v43, %v2974_v16  ;;  %v2993_v60 = vsel %vm2992_vm7, %v5185_v36, %v2989_v22  ;;  %v3007_v4 = vsub.f32 1.0, %v3006_v53  ;;  %v3135_v2 = vadd.f32 1.0, %v5191_v30 }
 0x59e   :  { %v2998_v15 = vsel %vm2995_vm8, %v2997_v58, %v2993_v60  ;;  %v3021_v41 = vmul.f32 %v5193_v27, %v2979_v9  ;;  %5196 = vrcp.f32 %v3116_v31  ;;  %v3128_v36 = vand.u32 2147483648, %v3116_v31 }
 0x59f   :  { %v3020_v25 = vmul.f32 %v2998_v15, %v8963_v24  ;;  %v3008_v23 = vmul.f32 %v5187_v5, %v3007_v4  ;;  %5198 = vrcp.f32 %v3135_v2  ;;  %v3111_v24 = vadd.f32 %v3086_v46, %v531_v32  ;;  %v9143_v32 = vld [vmem:[#allocation14 + $0x1e8] sm:$0xff] }
 0x5a0   :  { %v3147_v34 = vand.u32 2147483648, %v3135_v2  ;;  %v3126_v19 = vand.u32 2147483647, %v3116_v31  ;;  %v3145_v42 = vand.u32 2147483647, %v3135_v2  ;;  %vm3122_vm15 = vweird.f32 %v3116_v31 }
 0x5a1   :  { %v9120_v48 = vadd.f32 %v3021_v41, %v3020_v25  ;;  %v3009_v7 = vadd.f32 %v5187_v5, %v3008_v23  ;;  %vm3141_vm0 = vweird.f32 %v3135_v2  ;;  %v3129_v21 = vor.u32 1.1754944e-38, %v3128_v36  ;;  %v11384_v23 = vld [vmem:[#allocation33_spill] sm:$0xff]  ;;  %v9181_v36 = vld [vmem:[#allocation14 + $0x188] sm:$0xff] }
 0x5a2   :  { %v5195_v10 = vpop.eup %5194  ;;  %v3148_v6 = vor.u32 1.1754944e-38, %v3147_v34  ;;  %vm3127_vm3 = vcmp.eq.f32.partialorder %v3126_v19, 8.507059e+37  ;;  %vm3146_vm4 = vcmp.eq.f32.partialorder %v3145_v42, 8.507059e+37  ;;  %v9195_v42 = vld [vmem:[#allocation14 + $0x170] sm:$0xff] }
 0x5a3   :  { %5200 = vtanh.f32 %v9120_v48  ;;  %v3155_v61 = vadd.f32 1.0, %v5195_v10  ;;  %v3013_v56 = vsel %vm9128_vm11, %v5187_v5, %v3009_v7  ;;  %v9145_v7 = vld [vmem:[#allocation14 + $0x1f0] sm:$0xff] }
 0x5a4   :  { %v5197_v63 = vpop.eup %5196  ;;  %v3018_v26 = vsel %vm3015_vm12, %v3017_v54, %v3013_v56  ;;  %v9169_v56 = vld [vmem:[#allocation14 + $0x1a8] sm:$0xff]  ;;  %v9171_v54 = vld [vmem:[#allocation14 + $0x1b0] sm:$0xff] }
 0x5a5   :  { %v5199_v51 = vpop.eup %5198  ;;  %v3118_v1 = vmul.f32 %v5197_v63, %v3116_v31  ;;  %5202 = vrcp.f32 %v3155_v61  ;;  %vm3123_vm13 = vweird.f32 %v5197_v63  ;;  %v3167_v16 = vand.u32 2147483648, %v3155_v61 }
 0x5a6   :  { %v3137_v62 = vmul.f32 %v5199_v51, %v3135_v2  ;;  %5204 = vtanh.f32 %v3111_v24  ;;  %vm3142_vm14 = vweird.f32 %v5199_v51  ;;  %vm3124_vm1 = vmor %vm3122_vm15, %vm3123_vm13  ;;  %vm3161_vm6 = vweird.f32 %v3155_v61  ;;  %v9157_v24 = vld [vmem:[#allocation14 + $0x1d0] sm:$0xff] }
 0x5a7   :  { %v3119_v33 = vsub.f32 1.0, %v3118_v1  ;;  %vm3143_vm2 = vmor %vm3141_vm0, %vm3142_vm14  ;;  %v3165_v31 = vand.u32 2147483647, %v3155_v61  ;;  %v3168_v9 = vor.u32 1.1754944e-38, %v3167_v16  ;;  %v368_v1 = vadd.f32 %v11385_v57, %v11370_v50  ;;  %v9179_v50 = vld [vmem:[#allocation14 + $0x180] sm:$0xff] }
 0x5a8   :  { %v3138_v59 = vsub.f32 1.0, %v3137_v62  ;;  %v9167_v62 = vld [vmem:[#allocation14 + $0x1a0] sm:$0xff] }
 0x5a9   :  { %v5201_v49 = vpop.eup %5200  ;;  %v3120_v0 = vmul.f32 %v5197_v63, %v3119_v33  ;;  %vm3166_vm8 = vcmp.eq.f32.partialorder %v3165_v31, 8.507059e+37  ;;  %v11390_v31 = vld [vmem:[#allocation112_spill] sm:$0xff] }
 0x5aa   :  { %v3139_v38 = vmul.f32 %v5199_v51, %v3138_v59  ;;  %v3024_v12 = vmul.f32 %v5201_v49, %v3018_v26  ;;  %v9175_v59 = vld [vmem:[#allocation14 + $0x1b8] sm:$0xff]  ;;  %v9183_v49 = vld [vmem:[#allocation14 + $0x190] sm:$0xff]  ;;  %v9191_v26 = vld [vmem:[#allocation14 + $0x160] sm:$0xff] }
 0x5ab   :  { %v5203_v44 = vpop.eup %5202  ;;  %v3121_v35 = vadd.f32 %v5197_v63, %v3120_v0  ;;  %v9187_v0 = vld [vmem:[#allocation14 + $0x198] sm:$0xff] }
 0x5ac   :  { %v3140_v14 = vadd.f32 %v5199_v51, %v3139_v38  ;;  %v3157_v45 = vmul.f32 %v5203_v44, %v3155_v61  ;;  %3196 = vmatmul.f32.vlgmr.msra.gmra.mxu0 %v3024_v12  ;;  %3216 = vmatmul.f32.vlgmr.msra.gmra.mxu1 %v3024_v12  ;;  %v5205_v8 = vpop.eup %5204  ;;  %vm3162_vm5 = vweird.f32 %v5203_v44  ;;  %v9193_v38 = vld [vmem:[#allocation14 + $0x168] sm:$0xff] }
 0x5ad   :  { %v3125_v20 = vsel %vm3124_vm1, %v5197_v63, %v3121_v35  ;;  %3236 = vmatmul.f32.vlgmr.msra.gmra.mxu2 %v3024_v12  ;;  %3256 = vmatmul.f32.vlgmr.msra.gmra.mxu3 %v3024_v12  ;;  %vm3163_vm7 = vmor %vm3161_vm6, %vm3162_vm5  ;;  %v9155_v63 = vld [vmem:[#allocation14 + $0x1c8] sm:$0xff] }
 0x5ae   :  { %v3130_v5 = vsel %vm3127_vm3, %v3129_v21, %v3125_v20  ;;  %v3144_v17 = vsel %vm3143_vm2, %v5199_v51, %v3140_v14  ;;  %v3158_v18 = vsub.f32 1.0, %v3157_v45  ;;  %3484 = vmatpush.msra.mxu0 %v9141_v55  ;;  %3504 = vmatpush.msra.mxu1 %v9143_v32  ;;  %v9161_v51 = vld [vmem:[#allocation14 + $0x1d8] sm:$0xff]  ;;  %v9205_v14 = vld [vmem:[#allocation14 + $0x140] sm:$0xff]  ;;  %v9207_v45 = vld [vmem:[#allocation14 + $0x148] sm:$0xff] }
 0x5af   :  { %v3149_v39 = vsel %vm3146_vm4, %v3148_v6, %v3144_v17  ;;  %v3172_v58 = vmul.f32 %v5205_v8, %v3130_v5  ;;  %3524 = vmatpush.msra.mxu2 %v9145_v7  ;;  %3544 = vmatpush.msra.mxu3 %v9149_v47  ;;  %11386 = vst [vmem:[#allocation159_spill] sm:$0xff] %v9207_v45  ;;  %v9209_v6 = vld [vmem:[#allocation14 + $0x150] sm:$0xff]  ;;  %v9215_v8 = vld [vmem:[#allocation14 + $0x158] sm:$0xff]  ;;  %v9220_v5 = vld [vmem:[#allocation14 + $0x120] sm:$0xff] }
 0x5b0   :  { %v3171_v43 = vmul.f32 %v3149_v39, %v8994_v28  ;;  %v3159_v22 = vmul.f32 %v5203_v44, %v3158_v18  ;;  %v11383_v28 = vld [vmem:[#allocation108_spill] sm:$0xff]  ;;  %3505 = vmatpush.msra.mxu1 %v9155_v63  ;;  %11387 = vst [vmem:[#allocation160_spill] sm:$0xff] %v9215_v8  ;;  %v9224_v18 = vld [vmem:[#allocation14 + $0x130] sm:$0xff] }
 0x5b1   :  { %v286_v15 = vadd.f32 %v11383_v28, %v11367_v37  ;;  %v9153_v37 = vld [vmem:[#allocation14 + $0x1c0] sm:$0xff]  ;;  %3525 = vmatpush.msra.mxu2 %v9157_v24  ;;  %3545 = vmatpush.msra.mxu3 %v9161_v51  ;;  %v9222_v17 = vld [vmem:[#allocation14 + $0x128] sm:$0xff] }
 0x5b2   :  { %v9135_v53 = vadd.f32 %v3172_v58, %v3171_v43  ;;  %v3160_v30 = vadd.f32 %v5203_v44, %v3159_v22  ;;  %3485 = vmatpush.msra.mxu0 %v9153_v37  ;;  %3506 = vmatpush.msra.mxu1 %v9169_v56  ;;  %v9229_v58 = vld [vmem:[#allocation14 + $0x138] sm:$0xff]  ;;  %v11388_v43 = vld [vmem:[#allocation56_spill] sm:$0xff] }
 0x5b3   :  { %3526 = vmatpush.msra.mxu2 %v9171_v54  ;;  %3546 = vmatpush.msra.mxu3 %v9175_v59  ;;  %v446_v22 = vadd.f32 %v11388_v43, %v11372_v3  ;;  %v9247_v3 = vld [vmem:[#allocation14 + $0x118] sm:$0xff] }
 0x5b4   :  { %5206 = vtanh.f32 %v9135_v53  ;;  %v3164_v27 = vsel %vm3163_vm7, %v5203_v44, %v3160_v30  ;;  %3486 = vmatpush.msra.mxu0 %v9167_v62  ;;  %3507 = vmatpush.msra.mxu1 %v9181_v36  ;;  %v9199_v44 = vld [vmem:[#allocation14 + $0x178] sm:$0xff] }
 0x5b5   :  { %v3169_v4 = vsel %vm3166_vm8, %v3168_v9, %v3164_v27  ;;  %3527 = vmatpush.msra.mxu2 %v9183_v49  ;;  %3547 = vmatpush.msra.mxu3 %v9187_v0  ;;  %v11389_v30 = vld [vmem:[#allocation110_spill] sm:$0xff]  ;;  %v487_v27 = vadd.f32 %v11390_v31, %v11374_v29  ;;  %v9239_v9 = vld [vmem:[#allocation14 + $0x100] sm:$0xff] }
 0x5b6   :  { %3487 = vmatpush.msra.mxu0 %v9179_v50  ;;  %3508 = vmatpush.msra.mxu1 %v9193_v38  ;;  %v327_v16 = vadd.f32 %v11389_v30, %v11376_v40  ;;  %v9288_v30 = vld [vmem:[#allocation14 + $0xa8] sm:$0xff] }
 0x5b7   :  { %3528 = vmatpush.msra.mxu2 %v9195_v42  ;;  %3548 = vmatpush.msra.mxu3 %v9199_v44  ;;  %11399 = vst [vmem:[#allocation169_spill] sm:$0xff] %v9288_v30 }
 0x5b8   :  { %3488 = vmatpush.msra.mxu0 %v9191_v26  ;;  %3509 = vmatpush.msra.mxu1 %v9207_v45 }
 0x5b9   :  { %3529 = vmatpush.msra.mxu2 %v9209_v6  ;;  %3549 = vmatpush.msra.mxu3 %v9215_v8 }
 0x5ba   :  { %v5207_v60 = vpop.eup %5206  ;;  %3489 = vmatpush.msra.mxu0 %v9205_v14  ;;  %3510 = vmatpush.msra.mxu1 %v9222_v17 }
 0x5bb   :  { %v3175_v2 = vmul.f32 %v5207_v60, %v3169_v4  ;;  %3530 = vmatpush.msra.mxu2 %v9224_v18  ;;  %3550 = vmatpush.msra.mxu3 %v9229_v58  ;;  %v9241_v60 = vld [vmem:[#allocation14 + $0x108] sm:$0xff]  ;;  %v9243_v4 = vld [vmem:[#allocation14 + $0x110] sm:$0xff] }
 0x5bc   :  { %3490 = vmatpush.msra.mxu0 %v9220_v5  ;;  %3511 = vmatpush.msra.mxu1 %v9241_v60 }
 0x5bd   :  { %3347 = vmatmul.f32.vlgmr.msrb.gmra.mxu0 %v3175_v2  ;;  %3367 = vmatmul.f32.vlgmr.msrb.gmra.mxu1 %v3175_v2 }
 0x5be   :  { %3387 = vmatmul.f32.vlgmr.msrb.gmra.mxu2 %v3175_v2  ;;  %3407 = vmatmul.f32.vlgmr.msrb.gmra.mxu3 %v3175_v2 }
 0x5bf   :  { %3491 = vmatpush.msra.mxu0 %v9239_v9  ;;  %3531 = vmatpush.msra.mxu2 %v9243_v4 }
 0x5c0   :  { %3551 = vmatpush.msra.mxu3 %v9247_v3 }
 0x629   :  { %v3197_v41 = vpop.f32.mrf.mxu0  ;;  %v3217_v25 = vpop.f32.mrf.mxu1 }
 0x62a   :  { %v3260_v46 = vadd.f32 %v3197_v41, %v11384_v23  ;;  %v3261_v10 = vadd.f32 %v3217_v25, %v286_v15  ;;  %v9251_v25 = vld [vmem:[#allocation14 + $0xe0] sm:$0xff]  ;;  %v9253_v23 = vld [vmem:[#allocation14 + $0xe8] sm:$0xff] }
 0x62b   :  { %11391 = vst [vmem:[#allocation161_spill] sm:$0xff] %v9253_v23  ;;  %3492 = vmatpush.msra.mxu0 %v9251_v25  ;;  %3512 = vmatpush.msra.mxu1 %v9253_v23 }
 0x62c   :  { %v4933_v13 = vmul.f32 -1.442695, %v3260_v46  ;;  %v4934_v61 = vmul.f32 -1.442695, %v3261_v10  ;;  %v9255_v46 = vld [vmem:[#allocation14 + $0xf0] sm:$0xff] }
 0x62d   :  { %11392 = vst [vmem:[#allocation162_spill] sm:$0xff] %v9255_v46  ;;  %3532 = vmatpush.msra.mxu2 %v9255_v46 }
 0x62e   :  { %5208 = vpow2.f32 %v4933_v13  ;;  %v9261_v13 = vld [vmem:[#allocation14 + $0xf8] sm:$0xff] }
 0x62f   :  { %5210 = vpow2.f32 %v4934_v61  ;;  %11393 = vst [vmem:[#allocation163_spill] sm:$0xff] %v9261_v13  ;;  %3552 = vmatpush.msra.mxu3 %v9261_v13  ;;  %v9360_v13 = vld [vmem:[#allocation14 + $0x28] sm:$0xff] }
 0x630   :  { %v3257_v33 = vpop.f32.mrf.mxu3  ;;  %v3237_v39 = vpop.f32.mrf.mxu2  ;;  %11420 = vst [vmem:[#allocation86_spill] sm:$0xff] %v9360_v13 }
 0x631   :  { %v3263_v34 = vadd.f32 %v3257_v33, %v368_v1  ;;  %v3262_v29 = vadd.f32 %v3237_v39, %v327_v16  ;;  %v9267_v33 = vld [vmem:[#allocation14 + $0xc0] sm:$0xff]  ;;  %v9280_v39 = vld [vmem:[#allocation14 + $0xd8] sm:$0xff] }
 0x632   :  { %11394 = vst [vmem:[#allocation164_spill] sm:$0xff] %v9267_v33  ;;  %3493 = vmatpush.msra.mxu0 %v9267_v33  ;;  %3553 = vmatpush.msra.mxu3 %v9280_v39  ;;  %v11400_v16 = vld [vmem:[#allocation111_spill] sm:$0xff] }
 0x633   :  { %v4935_v19 = vmul.f32 -1.442695, %v3263_v34  ;;  %v9269_v34 = vld [vmem:[#allocation14 + $0xc8] sm:$0xff]  ;;  %11397 = vst [vmem:[#allocation167_spill] sm:$0xff] %v9280_v39  ;;  %v569_v31 = vadd.f32 %v11400_v16, %v11378_v52  ;;  %v9303_v52 = vld [vmem:[#allocation14 + $0x80] sm:$0xff] }
 0x634   :  { %v5209_v12 = vpop.eup %5208  ;;  %11395 = vst [vmem:[#allocation165_spill] sm:$0xff] %v9269_v34  ;;  %3513 = vmatpush.msra.mxu1 %v9269_v34 }
 0x635   :  { %v5211_v35 = vpop.eup %5210  ;;  %v9201_v21 = vadd.f32 1.0, %v5209_v12  ;;  %5212 = vpow2.f32 %v4935_v19  ;;  %11403 = vst [vmem:[#allocation172_spill] sm:$0xff] %v9303_v52 }
 0x636   :  { %v9211_v20 = vadd.f32 1.0, %v5211_v35  ;;  %v9278_v35 = vld [vmem:[#allocation14 + $0xd0] sm:$0xff]  ;;  %3514 = vmatpush.msra.mxu1 %v9288_v30 }
 0x637   :  { %5214 = vrcp.f32 %v9201_v21  ;;  %11396 = vst [vmem:[#allocation166_spill] sm:$0xff] %v9278_v35  ;;  %3533 = vmatpush.msra.mxu2 %v9278_v35  ;;  %vm3273_vm12 = vweird.f32 %v9201_v21  ;;  %v9341_v35 = vld [vmem:[#allocation14 + $0x58] sm:$0xff] }
 0x638   :  { %5216 = vrcp.f32 %v9211_v20  ;;  %vm3292_vm11 = vweird.f32 %v9211_v20  ;;  %11414 = vst [vmem:[#allocation88_spill] sm:$0xff] %v9341_v35 }
 0x63a   :  { %v3348_v2 = vpop.f32.mrf.mxu0  ;;  %v3368_v28 = vpop.f32.mrf.mxu1 }
 0x63b   :  { %v5213_v40 = vpop.eup %5212  ;;  %v3411_v15 = vadd.f32 %v3348_v2, %v446_v22  ;;  %v3412_v41 = vadd.f32 %v3368_v28, %v487_v27  ;;  %v9286_v22 = vld [vmem:[#allocation14 + $0xa0] sm:$0xff]  ;;  %v3277_v2 = vand.u32 2147483647, %v9201_v21  ;;  %v9295_v28 = vld [vmem:[#allocation14 + $0xb0] sm:$0xff] }
 0x63c   :  { %v9257_v10 = vadd.f32 1.0, %v5213_v40  ;;  %11398 = vst [vmem:[#allocation168_spill] sm:$0xff] %v9286_v22  ;;  %3494 = vmatpush.msra.mxu0 %v9286_v22  ;;  %v9297_v40 = vld [vmem:[#allocation14 + $0xb8] sm:$0xff]  ;;  %3534 = vmatpush.msra.mxu2 %v9295_v28 }
 0x63d   :  { %v9263_v61 = vpop.eup %5214  ;;  %v4936_v57 = vmul.f32 -1.442695, %v3411_v15  ;;  %v4937_v1 = vmul.f32 -1.442695, %v3412_v41  ;;  %11401 = vst [vmem:[#allocation170_spill] sm:$0xff] %v9295_v28  ;;  %v3298_v15 = vand.u32 2147483648, %v9211_v20  ;;  %3554 = vmatpush.msra.mxu3 %v9297_v40 }
 0x63e   :  { %v9271_v19 = vpop.eup %5216  ;;  %v3269_v12 = vmul.f32 %v9263_v61, %v9201_v21  ;;  %5218 = vrcp.f32 %v9257_v10  ;;  %11402 = vst [vmem:[#allocation171_spill] sm:$0xff] %v9297_v40  ;;  %v3279_v41 = vand.u32 2147483648, %v9201_v21  ;;  %vm3274_vm9 = vweird.f32 %v9263_v61  ;;  %3495 = vmatpush.msra.mxu0 %v9303_v52  ;;  %v9316_v40 = vld [vmem:[#allocation14 + $0x60] sm:$0xff]  ;;  %v9318_v28 = vld [vmem:[#allocation14 + $0x68] sm:$0xff] }
 0x63f   :  { %v3288_v43 = vmul.f32 %v9271_v19, %v9211_v20  ;;  %5220 = vtanh.f32 %v3262_v29  ;;  %11407 = vst [vmem:[#allocation176_spill] sm:$0xff] %v9316_v40  ;;  %vm3293_vm10 = vweird.f32 %v9271_v19  ;;  %vm9345_vm13 = vmor %vm3273_vm12, %vm3274_vm9  ;;  %vm9349_vm14 = vcmp.eq.f32.partialorder %v3277_v2, 8.507059e+37 }
 0x640   :  { %v3270_v27 = vsub.f32 1.0, %v3269_v12  ;;  %5222 = vpow2.f32 %v4936_v57  ;;  %v9305_v57 = vld [vmem:[#allocation14 + $0x88] sm:$0xff]  ;;  %v9307_v12 = vld [vmem:[#allocation14 + $0x90] sm:$0xff]  ;;  %11408 = vst [vmem:[#allocation177_spill] sm:$0xff] %v9318_v28  ;;  %3496 = vmatpush.msra.mxu0 %v9316_v40  ;;  %v9358_v40 = vld [vmem:[#allocation14 + $0x20] sm:$0xff]  ;;  %vm3312_vm2 = vweird.f32 %v9257_v10 }
 0x641   :  { %v3289_v29 = vsub.f32 1.0, %v3288_v43  ;;  %5224 = vpow2.f32 %v4937_v1  ;;  %v3408_v39 = vpop.f32.mrf.mxu3  ;;  %11404 = vst [vmem:[#allocation173_spill] sm:$0xff] %v9305_v57  ;;  %v3296_v43 = vand.u32 2147483647, %v9211_v20  ;;  %3515 = vmatpush.msra.mxu1 %v9305_v57  ;;  %v9314_v1 = vld [vmem:[#allocation14 + $0x98] sm:$0xff]  ;;  %3535 = vmatpush.msra.mxu2 %v9307_v12  ;;  %vm9366_vm15 = vmor %vm3292_vm11, %vm3293_vm10 }
 0x642   :  { %11405 = vst [vmem:[#allocation174_spill] sm:$0xff] %v9307_v12  ;;  %v3271_v16 = vmul.f32 %v9263_v61, %v3270_v27  ;;  %v3414_v30 = vadd.f32 %v3408_v39, %v569_v31  ;;  %3555 = vmatpush.msra.mxu3 %v9314_v1  ;;  %v9324_v27 = vld [vmem:[#allocation14 + $0x70] sm:$0xff]  ;;  %v9326_v39 = vld [vmem:[#allocation14 + $0x78] sm:$0xff]  ;;  %v9328_v31 = vld [vmem:[#allocation14 + $0x40] sm:$0xff] }
 0x643   :  { %11406 = vst [vmem:[#allocation175_spill] sm:$0xff] %v9314_v1  ;;  %v3290_v22 = vmul.f32 %v9271_v19, %v3289_v29  ;;  %3516 = vmatpush.msra.mxu1 %v9318_v28  ;;  %v9337_v1 = vld [vmem:[#allocation14 + $0x48] sm:$0xff]  ;;  %v9339_v12 = vld [vmem:[#allocation14 + $0x50] sm:$0xff]  ;;  %3536 = vmatpush.msra.mxu2 %v9324_v27  ;;  %vm3297_vm0 = vcmp.eq.f32.partialorder %v3296_v43, 8.507059e+37 }
 0x644   :  { %11409 = vst [vmem:[#allocation178_spill] sm:$0xff] %v9324_v27  ;;  %v9330_v57 = vpop.eup %5218  ;;  %v3272_v52 = vadd.f32 %v9263_v61, %v3271_v16  ;;  %v4938_v29 = vmul.f32 -1.442695, %v3414_v30  ;;  %v3280_v30 = vor.u32 1.1754944e-38, %v3279_v41  ;;  %3556 = vmatpush.msra.mxu3 %v9326_v39  ;;  %3497 = vmatpush.msra.mxu0 %v9328_v31  ;;  %v9377_v27 = vld [vmem:[#allocation14 + $0x38] sm:$0xff]  ;;  %v9390_v43 = vld [vmem:[#allocation14 + $0x8] sm:$0xff] }
 0x645   :  { %11410 = vst [vmem:[#allocation179_spill] sm:$0xff] %v9326_v39  ;;  %v5221_v34 = vpop.eup %5220  ;;  %v3291_v16 = vadd.f32 %v9271_v19, %v3290_v22  ;;  %v3308_v28 = vmul.f32 %v9330_v57, %v9257_v10  ;;  %v3299_v22 = vor.u32 1.1754944e-38, %v3298_v15  ;;  %3517 = vmatpush.msra.mxu1 %v9337_v1  ;;  %v9375_v39 = vld [vmem:[#allocation14 + $0x30] sm:$0xff]  ;;  %3537 = vmatpush.msra.mxu2 %v9339_v12  ;;  %vm3313_vm1 = vweird.f32 %v9330_v57 }
 0x646   :  { %11411 = vst [vmem:[#allocation180_spill] sm:$0xff] %v9328_v31  ;;  %v5223_v46 = vpop.eup %5222  ;;  %v3276_v41 = vsel %vm9345_vm13, %v9263_v61, %v3272_v52  ;;  %5226 = vpow2.f32 %v4938_v29  ;;  %3557 = vmatpush.msra.mxu3 %v9341_v35  ;;  %v9388_v52 = vld [vmem:[#allocation14] sm:$0xff]  ;;  %3498 = vmatpush.msra.mxu0 %v9358_v40  ;;  %vm9428_vm3 = vmor %vm3312_vm2, %vm3313_vm1 }
 0x647   :  { %11412 = vst [vmem:[#allocation181_spill] sm:$0xff] %v9337_v1  ;;  %v5225_v20 = vpop.eup %5224  ;;  %v3281_v23 = vsel %vm9349_vm14, %v3280_v30, %v3276_v41  ;;  %v3295_v15 = vsel %vm9366_vm15, %v9271_v19, %v3291_v16  ;;  %v3309_v33 = vsub.f32 1.0, %v3308_v28  ;;  %v9384_v61 = vadd.f32 1.0, %v5223_v46  ;;  %3518 = vmatpush.msra.mxu1 %v9360_v13  ;;  %v9396_v19 = vld [vmem:[#allocation14 + $0x10] sm:$0xff]  ;;  %v9398_v46 = vld [vmem:[#allocation14 + $0x18] sm:$0xff]  ;;  %3538 = vmatpush.msra.mxu2 %v9375_v39 }
 0x648   :  { %11413 = vst [vmem:[#allocation182_spill] sm:$0xff] %v9339_v12  ;;  %v3300_v29 = vsel %vm3297_vm0, %v3299_v22, %v3295_v15  ;;  %v3323_v1 = vmul.f32 %v5221_v34, %v3281_v23  ;;  %v9392_v31 = vadd.f32 1.0, %v5225_v20  ;;  %3558 = vmatpush.msra.mxu3 %v9377_v27  ;;  %3499 = vmatpush.msra.mxu0 %v9388_v52  ;;  %v3388_v34 = vpop.f32.mrf.mxu2  ;;  %v11429_v30 = vld [vmem:[#allocation113_spill] sm:$0xff] }
 0x649   :  { %11419 = vst [vmem:[#allocation32_spill] sm:$0xff] %v9358_v40  ;;  %v3322_v28 = vmul.f32 %v3300_v29, %v9120_v48  ;;  %v3310_v21 = vmul.f32 %v9330_v57, %v3309_v33  ;;  %5228 = vrcp.f32 %v9384_v61  ;;  %3519 = vmatpush.msra.mxu1 %v9390_v43  ;;  %3539 = vmatpush.msra.mxu2 %v9396_v19  ;;  %vm3424_vm7 = vweird.f32 %v9384_v61 }
 0x64a   :  { %11423 = vst [vmem:[#allocation95_spill] sm:$0xff] %v9375_v39  ;;  %5230 = vrcp.f32 %v9392_v31  ;;  %3559 = vmatpush.msra.mxu3 %v9398_v46  ;;  %v528_v16 = vadd.f32 %v11429_v30, %v11030_v11  ;;  %3636 = vmatpush.msrb.mxu0 %v9141_v55  ;;  %v3316_v11 = vand.u32 2147483647, %v9257_v10  ;;  %v3449_v30 = vand.u32 2147483648, %v9392_v31 }
 0x64b   :  { %11424 = vst [vmem:[#allocation38_spill] sm:$0xff] %v9377_v27  ;;  %v9408_v23 = vadd.f32 %v3323_v1, %v3322_v28  ;;  %v3311_v2 = vadd.f32 %v9330_v57, %v3310_v21  ;;  %3656 = vmatpush.msrb.mxu1 %v9143_v32  ;;  %v3318_v1 = vand.u32 2147483648, %v9257_v10  ;;  %3676 = vmatpush.msrb.mxu2 %v9145_v7  ;;  %vm3443_vm8 = vweird.f32 %v9392_v31 }
 0x64c   :  { %11425 = vst [vmem:[#allocation93_spill] sm:$0xff] %v9388_v52  ;;  %v5227_v48 = vpop.eup %5226  ;;  %3696 = vmatpush.msrb.mxu3 %v9149_v47  ;;  %v3413_v41 = vadd.f32 %v3388_v34, %v528_v16  ;;  %3637 = vmatpush.msrb.mxu0 %v9153_v37  ;;  %vm3317_vm4 = vcmp.eq.f32.partialorder %v3316_v11, 8.507059e+37  ;;  %v3430_v16 = vand.u32 2147483648, %v9384_v61  ;;  %v3428_v11 = vand.u32 2147483647, %v9384_v61 }
 0x64d   :  { %11426 = vst [vmem:[#allocation36_spill] sm:$0xff] %v9390_v43  ;;  %5232 = vtanh.f32 %v9408_v23  ;;  %v9420_v22 = vadd.f32 1.0, %v5227_v48  ;;  %3657 = vmatpush.msrb.mxu1 %v9155_v63  ;;  %3677 = vmatpush.msrb.mxu2 %v9157_v24  ;;  %v3315_v10 = vsel %vm9428_vm3, %v9330_v57, %v3311_v2  ;;  %v3319_v28 = vor.u32 1.1754944e-38, %v3318_v1 }
 0x64e   :  { %11427 = vst [vmem:[#allocation39_spill] sm:$0xff] %v9396_v19  ;;  %3697 = vmatpush.msrb.mxu3 %v9161_v51  ;;  %3638 = vmatpush.msrb.mxu0 %v9167_v62  ;;  %vm3429_vm11 = vcmp.eq.f32.partialorder %v3428_v11, 8.507059e+37  ;;  %v11433_v11 = vld [vmem:[#allocation162_spill] sm:$0xff] }
 0x64f   :  { %11428 = vst [vmem:[#allocation98_spill] sm:$0xff] %v9398_v46  ;;  %v5229_v20 = vpop.eup %5228  ;;  %5234 = vrcp.f32 %v9420_v22  ;;  %3658 = vmatpush.msrb.mxu1 %v9169_v56  ;;  %3678 = vmatpush.msrb.mxu2 %v9171_v54  ;;  %v3320_v2 = vsel %vm3317_vm4, %v3319_v28, %v3315_v10  ;;  %v3447_v10 = vand.u32 2147483647, %v9392_v31  ;;  %vm3463_vm14 = vweird.f32 %v9420_v22 }
 0x650   :  { %v5231_v33 = vpop.eup %5230  ;;  %v3420_v29 = vmul.f32 %v5229_v20, %v9384_v61  ;;  %3698 = vmatpush.msrb.mxu3 %v9175_v59  ;;  %5236 = vtanh.f32 %v3413_v41  ;;  %3639 = vmatpush.msrb.mxu0 %v9179_v50  ;;  %vm3425_vm5 = vweird.f32 %v5229_v20  ;;  %v3450_v61 = vor.u32 1.1754944e-38, %v3449_v30 }
 0x651   :  { %v3439_v21 = vmul.f32 %v5231_v33, %v9392_v31  ;;  %3659 = vmatpush.msrb.mxu1 %v9181_v36  ;;  %3679 = vmatpush.msrb.mxu2 %v9183_v49  ;;  %vm3444_vm6 = vweird.f32 %v5231_v33  ;;  %vm3426_vm9 = vmor %vm3424_vm7, %vm3425_vm5  ;;  %vm3448_vm12 = vcmp.eq.f32.partialorder %v3447_v10, 8.507059e+37 }
 0x652   :  { %v3421_v34 = vsub.f32 1.0, %v3420_v29  ;;  %3699 = vmatpush.msrb.mxu3 %v9187_v0  ;;  %3640 = vmatpush.msrb.mxu0 %v9191_v26  ;;  %vm3445_vm10 = vmor %vm3443_vm8, %vm3444_vm6 }
 0x653   :  { %v5233_v48 = vpop.eup %5232  ;;  %v3440_v57 = vsub.f32 1.0, %v3439_v21  ;;  %3660 = vmatpush.msrb.mxu1 %v9193_v38  ;;  %3680 = vmatpush.msrb.mxu2 %v9195_v42 }
 0x654   :  { %v3422_v1 = vmul.f32 %v5229_v20, %v3421_v34  ;;  %v9451_v41 = vmul.f32 %v5233_v48, %v3320_v2  ;;  %3700 = vmatpush.msrb.mxu3 %v9199_v44  ;;  %3641 = vmatpush.msrb.mxu0 %v9205_v14  ;;  %v3431_v34 = vor.u32 1.1754944e-38, %v3430_v16 }
 0x655   :  { %v9455_v15 = vpop.eup %5234  ;;  %v3441_v29 = vmul.f32 %v5231_v33, %v3440_v57  ;;  %3661 = vmatpush.msrb.mxu1 %v9207_v45  ;;  %3681 = vmatpush.msrb.mxu2 %v9209_v6 }
 0x656   :  { %v3423_v28 = vadd.f32 %v5229_v20, %v3422_v1  ;;  %v3459_v21 = vmul.f32 %v9455_v15, %v9420_v22  ;;  %3701 = vmatpush.msrb.mxu3 %v9215_v8  ;;  %v5237_v57 = vpop.eup %5236  ;;  %3642 = vmatpush.msrb.mxu0 %v9220_v5  ;;  %vm3464_vm13 = vweird.f32 %v9455_v15 }
 0x657   :  { %v3442_v48 = vadd.f32 %v5231_v33, %v3441_v29  ;;  %3662 = vmatpush.msrb.mxu1 %v9222_v17  ;;  %3682 = vmatpush.msrb.mxu2 %v9224_v18  ;;  %vm3465_vm15 = vmor %vm3463_vm14, %vm3464_vm13 }
 0x658   :  { %v3427_v2 = vsel %vm3426_vm9, %v5229_v20, %v3423_v28  ;;  %v3460_v1 = vsub.f32 1.0, %v3459_v21  ;;  %3702 = vmatpush.msrb.mxu3 %v9229_v58  ;;  %3643 = vmatpush.msrb.mxu0 %v9239_v9  ;;  %v11435_v28 = vld [vmem:[#allocation164_spill] sm:$0xff] }
 0x659   :  { %v3432_v31 = vsel %vm3429_vm11, %v3431_v34, %v3427_v2  ;;  %v3446_v45 = vsel %vm3445_vm10, %v5231_v33, %v3442_v48  ;;  %3663 = vmatpush.msrb.mxu1 %v9241_v60  ;;  %3683 = vmatpush.msrb.mxu2 %v9243_v4  ;;  %v11432_v33 = vld [vmem:[#allocation161_spill] sm:$0xff]  ;;  %v3469_v34 = vand.u32 2147483648, %v9420_v22  ;;  %v11438_v48 = vld [vmem:[#allocation166_spill] sm:$0xff] }
 0x65a   :  { %v3451_v16 = vsel %vm3448_vm12, %v3450_v61, %v3446_v45  ;;  %v3474_v29 = vmul.f32 %v5237_v57, %v3432_v31  ;;  %v3461_v8 = vmul.f32 %v9455_v15, %v3460_v1  ;;  %3703 = vmatpush.msrb.mxu3 %v9247_v3  ;;  %3644 = vmatpush.msrb.mxu0 %v9251_v25  ;;  %v11434_v45 = vld [vmem:[#allocation163_spill] sm:$0xff]  ;;  %v11440_v61 = vld [vmem:[#allocation168_spill] sm:$0xff]  ;;  %v11441_v2 = vld [vmem:[#allocation169_spill] sm:$0xff] }
 0x65b   :  { %v3473_v20 = vmul.f32 %v3451_v16, %v9135_v53  ;;  %3664 = vmatpush.msrb.mxu1 %v11432_v33  ;;  %3684 = vmatpush.msrb.mxu2 %v11433_v11  ;;  %v11436_v53 = vld [vmem:[#allocation165_spill] sm:$0xff]  ;;  %v11439_v57 = vld [vmem:[#allocation167_spill] sm:$0xff]  ;;  %v11442_v1 = vld [vmem:[#allocation170_spill] sm:$0xff] }
 0x65c   :  { %3704 = vmatpush.msrb.mxu3 %v11434_v45  ;;  %v3462_v10 = vadd.f32 %v9455_v15, %v3461_v8  ;;  %3645 = vmatpush.msrb.mxu0 %v11435_v28  ;;  %v3467_v8 = vand.u32 2147483647, %v9420_v22  ;;  %v11443_v31 = vld [vmem:[#allocation171_spill] sm:$0xff]  ;;  %v11444_v16 = vld [vmem:[#allocation172_spill] sm:$0xff] }
 0x65d   :  { %v3475_v30 = vadd.f32 %v3474_v29, %v3473_v20  ;;  %3665 = vmatpush.msrb.mxu1 %v11436_v53  ;;  %3685 = vmatpush.msrb.mxu2 %v11438_v48  ;;  %v11445_v29 = vld [vmem:[#allocation173_spill] sm:$0xff]  ;;  %v3470_v20 = vor.u32 1.1754944e-38, %v3469_v34  ;;  %v11448_v22 = vld [vmem:[#allocation176_spill] sm:$0xff] }
 0x65e   :  { %3705 = vmatpush.msrb.mxu3 %v11439_v57  ;;  %3646 = vmatpush.msrb.mxu0 %v11440_v61  ;;  %vm3468_vm0 = vcmp.eq.f32.partialorder %v3467_v8, 8.507059e+37  ;;  %v11450_v57 = vld [vmem:[#allocation178_spill] sm:$0xff]  ;;  %v11455_v8 = vld [vmem:[#allocation160_spill] sm:$0xff] }
 0x65f   :  { %5238 = vtanh.f32 %v3475_v30  ;;  %v9489_v21 = vadd.f32 %v3475_v30, %v9408_v23  ;;  %3666 = vmatpush.msrb.mxu1 %v11441_v2  ;;  %3686 = vmatpush.msrb.mxu2 %v11442_v1  ;;  %v3466_v23 = vsel %vm3465_vm15, %v9455_v15, %v3462_v10  ;;  %v11446_v30 = vld [vmem:[#allocation174_spill] sm:$0xff]  ;;  %v11449_v2 = vld [vmem:[#allocation177_spill] sm:$0xff]  ;;  %v11452_v10 = vld [vmem:[#allocation180_spill] sm:$0xff] }
 0x660   :  { %3706 = vmatpush.msrb.mxu3 %v11443_v31  ;;  %3647 = vmatpush.msrb.mxu0 %v11444_v16  ;;  %v3471_v1 = vsel %vm3468_vm0, %v3470_v20, %v3466_v23  ;;  %v11451_v31 = vld [vmem:[#allocation179_spill] sm:$0xff]  ;;  %v11458_v23 = vld [vmem:[#allocation169_spill] sm:$0xff]  ;;  %v11459_v20 = vld [vmem:[#allocation170_spill] sm:$0xff] }
 0x661   :  { %11437 = vst [vmem:[#allocation42_spill] sm:$0xff] %v9489_v21  ;;  %3667 = vmatpush.msrb.mxu1 %v11445_v29  ;;  %3687 = vmatpush.msrb.mxu2 %v11446_v30  ;;  %v11447_v21 = vld [vmem:[#allocation175_spill] sm:$0xff]  ;;  %v11453_v29 = vld [vmem:[#allocation181_spill] sm:$0xff] }
 0x662   :  { %3707 = vmatpush.msrb.mxu3 %v11447_v21  ;;  %3648 = vmatpush.msrb.mxu0 %v11448_v22 }
 0x663   :  { %3668 = vmatpush.msrb.mxu1 %v11449_v2  ;;  %3688 = vmatpush.msrb.mxu2 %v11450_v57 }
 0x664   :  { %3708 = vmatpush.msrb.mxu3 %v11451_v31  ;;  %3649 = vmatpush.msrb.mxu0 %v11452_v10 }
 0x665   :  { %v5239_v61 = vpop.eup %5238  ;;  %3669 = vmatpush.msrb.mxu1 %v11453_v29  ;;  %3689 = vmatpush.msrb.mxu2 %v9339_v12 }
 0x666   :  { %v3477_v15 = vmul.f32 %v5239_v61, %v3471_v1  ;;  %3709 = vmatpush.msrb.mxu3 %v9341_v35  ;;  %3650 = vmatpush.msrb.mxu0 %v9358_v40  ;;  %v11456_v61 = vld [vmem:[#allocation167_spill] sm:$0xff]  ;;  %v11457_v1 = vld [vmem:[#allocation168_spill] sm:$0xff] }
 0x667   :  { %3670 = vmatpush.msrb.mxu1 %v9360_v13  ;;  %3690 = vmatpush.msrb.mxu2 %v9375_v39 }
 0x668   :  { %v3478_v34 = vadd.f32 %v3477_v15, %v9451_v41  ;;  %3710 = vmatpush.msrb.mxu3 %v9377_v27  ;;  %3651 = vmatpush.msrb.mxu0 %v9388_v52  ;;  %v11454_v41 = vld [vmem:[#allocation159_spill] sm:$0xff] }
 0x669   :  { %3671 = vmatpush.msrb.mxu1 %v9390_v43  ;;  %3691 = vmatpush.msrb.mxu2 %v9396_v19  ;;  %v11460_v15 = vld [vmem:[#allocation171_spill] sm:$0xff] }
 0x66a   :  { %3500 = vmatmul.f32.vlgmr.msra.gmra.mxu0 %v3478_v34  ;;  %3520 = vmatmul.f32.vlgmr.msra.gmra.mxu1 %v3478_v34 }
 0x66b   :  { %3540 = vmatmul.f32.vlgmr.msra.gmra.mxu2 %v3478_v34  ;;  %3560 = vmatmul.f32.vlgmr.msra.gmra.mxu3 %v3478_v34  ;;  %v11461_v34 = vld [vmem:[#allocation173_spill] sm:$0xff] }
 0x66c   :  { %3711 = vmatpush.msrb.mxu3 %v9398_v46  ;;  %3788 = vmatpush.msra.mxu0 %v9141_v55 }
 0x66d   :  { %3808 = vmatpush.msra.mxu1 %v9143_v32  ;;  %3828 = vmatpush.msra.mxu2 %v9145_v7 }
 0x66e   :  { %3848 = vmatpush.msra.mxu3 %v9149_v47  ;;  %3789 = vmatpush.msra.mxu0 %v9153_v37 }
 0x66f   :  { %3809 = vmatpush.msra.mxu1 %v9155_v63  ;;  %3829 = vmatpush.msra.mxu2 %v9157_v24 }
 0x670   :  { %3849 = vmatpush.msra.mxu3 %v9161_v51  ;;  %3790 = vmatpush.msra.mxu0 %v9167_v62 }
 0x671   :  { %3810 = vmatpush.msra.mxu1 %v9169_v56  ;;  %3830 = vmatpush.msra.mxu2 %v9171_v54 }
 0x672   :  { %3850 = vmatpush.msra.mxu3 %v9175_v59  ;;  %3791 = vmatpush.msra.mxu0 %v9179_v50 }
 0x673   :  { %3811 = vmatpush.msra.mxu1 %v9181_v36  ;;  %3831 = vmatpush.msra.mxu2 %v9183_v49 }
 0x674   :  { %3851 = vmatpush.msra.mxu3 %v9187_v0  ;;  %3792 = vmatpush.msra.mxu0 %v9191_v26 }
 0x675   :  { %3812 = vmatpush.msra.mxu1 %v9193_v38  ;;  %3832 = vmatpush.msra.mxu2 %v9195_v42 }
 0x676   :  { %3852 = vmatpush.msra.mxu3 %v9199_v44  ;;  %3793 = vmatpush.msra.mxu0 %v9205_v14 }
 0x677   :  { %3813 = vmatpush.msra.mxu1 %v11454_v41  ;;  %3833 = vmatpush.msra.mxu2 %v9209_v6 }
 0x678   :  { %3853 = vmatpush.msra.mxu3 %v11455_v8  ;;  %3794 = vmatpush.msra.mxu0 %v9220_v5 }
 0x679   :  { %3814 = vmatpush.msra.mxu1 %v9222_v17  ;;  %3834 = vmatpush.msra.mxu2 %v9224_v18 }
 0x67a   :  { %3854 = vmatpush.msra.mxu3 %v9229_v58  ;;  %3795 = vmatpush.msra.mxu0 %v9239_v9 }
 0x67b   :  { %3815 = vmatpush.msra.mxu1 %v9241_v60  ;;  %3835 = vmatpush.msra.mxu2 %v9243_v4 }
 0x67c   :  { %3855 = vmatpush.msra.mxu3 %v9247_v3  ;;  %3796 = vmatpush.msra.mxu0 %v9251_v25 }
 0x67d   :  { %3816 = vmatpush.msra.mxu1 %v11432_v33  ;;  %3836 = vmatpush.msra.mxu2 %v11433_v11 }
 0x67e   :  { %3856 = vmatpush.msra.mxu3 %v11434_v45  ;;  %3797 = vmatpush.msra.mxu0 %v11435_v28 }
 0x67f   :  { %3817 = vmatpush.msra.mxu1 %v11436_v53  ;;  %3837 = vmatpush.msra.mxu2 %v11438_v48 }
 0x680   :  { %3857 = vmatpush.msra.mxu3 %v11456_v61  ;;  %3798 = vmatpush.msra.mxu0 %v11457_v1  ;;  %v11470_v61 = vld [vmem:[#allocation42_spill] sm:$0xff] }
 0x681   :  { %3818 = vmatpush.msra.mxu1 %v11458_v23  ;;  %3838 = vmatpush.msra.mxu2 %v11459_v20 }
 0x682   :  { %3858 = vmatpush.msra.mxu3 %v11460_v15  ;;  %3799 = vmatpush.msra.mxu0 %v11444_v16 }
 0x683   :  { %3819 = vmatpush.msra.mxu1 %v11461_v34  ;;  %3839 = vmatpush.msra.mxu2 %v11446_v30 }
 0x684   :  { %3859 = vmatpush.msra.mxu3 %v11447_v21  ;;  %3800 = vmatpush.msra.mxu0 %v11448_v22 }
 0x685   :  { %3820 = vmatpush.msra.mxu1 %v11449_v2  ;;  %3840 = vmatpush.msra.mxu2 %v11450_v57  ;;  %v11467_v2 = vld [vmem:[#allocation53_spill] sm:$0xff] }
 0x686   :  { %3860 = vmatpush.msra.mxu3 %v11451_v31  ;;  %3801 = vmatpush.msra.mxu0 %v11452_v10 }
 0x687   :  { %3821 = vmatpush.msra.mxu1 %v11453_v29  ;;  %3841 = vmatpush.msra.mxu2 %v9339_v12 }
 0x688   :  { %3861 = vmatpush.msra.mxu3 %v9341_v35  ;;  %3802 = vmatpush.msra.mxu0 %v9358_v40  ;;  %v640_v35 = vld [vmem:[%s10209_s10] sm:$0xf] }
 0x689   :  { %3822 = vmatpush.msra.mxu1 %v9360_v13  ;;  %3842 = vmatpush.msra.mxu2 %v9375_v39  ;;  %v9589_v12 = vperm.slane %v640_v35, 0  ;;  %v9591_v40 = vperm.slane %v640_v35, 1  ;;  %v11464_v39 = vld [vmem:[#allocation37_spill] sm:$0xff]  ;;  %v9597_v31 = vperm.slane %v640_v35, 3 }
 0x68a   :  { %3862 = vmatpush.msra.mxu3 %v9377_v27  ;;  %3803 = vmatpush.msra.mxu0 %v9388_v52  ;;  %v11465_v27 = vld [vmem:[#allocation57_spill] sm:$0xff] }
 0x68b   :  { %3823 = vmatpush.msra.mxu1 %v9390_v43  ;;  %3843 = vmatpush.msra.mxu2 %v9396_v19  ;;  %11462 = vst [vmem:[#allocation96_spill] sm:$0xff] %v9589_v12  ;;  %v692_v13 = vadd.f32 %v11464_v39, %v9589_v12  ;;  %v733_v52 = vadd.f32 %v11465_v27, %v9591_v40 }
 0x68c   :  { %3863 = vmatpush.msra.mxu3 %v9398_v46  ;;  %11463 = vst [vmem:[#allocation81_spill] sm:$0xff] %v9591_v40  ;;  %v815_v22 = vadd.f32 %v11467_v2, %v9597_v31  ;;  %v9601_v40 = vperm.slane %v640_v35, 2 }
 0x68d   :  { %11466 = vst [vmem:[#allocation35_spill] sm:$0xff] %v9597_v31 }
 0x68e   :  { %11468 = vst [vmem:[#allocation102_spill] sm:$0xff] %v9601_v40 }
 0x6e7   :  { %v3501_v29 = vpop.f32.mrf.mxu0  ;;  %v3521_v43 = vpop.f32.mrf.mxu1 }
 0x6e8   :  { %v3564_v10 = vadd.f32 %v3501_v29, %v692_v13  ;;  %v3565_v19 = vadd.f32 %v3521_v43, %v733_v52  ;;  %v11469_v43 = vld [vmem:[#allocation60_spill] sm:$0xff] }
 0x6ea   :  { %v4939_v46 = vmul.f32 -1.442695, %v3564_v10  ;;  %v4940_v57 = vmul.f32 -1.442695, %v3565_v19  ;;  %v774_v19 = vadd.f32 %v11469_v43, %v9601_v40 }
 0x6ec   :  { %5240 = vpow2.f32 %v4939_v46 }
 0x6ed   :  { %5242 = vpow2.f32 %v4940_v57 }
 0x6ee   :  { %v3561_v21 = vpop.f32.mrf.mxu3  ;;  %v3541_v13 = vpop.f32.mrf.mxu2 }
 0x6ef   :  { %v3567_v30 = vadd.f32 %v3561_v21, %v815_v22  ;;  %v3566_v57 = vadd.f32 %v3541_v13, %v774_v19 }
 0x6f1   :  { %v4941_v34 = vmul.f32 -1.442695, %v3567_v30 }
 0x6f2   :  { %v5241_v39 = vpop.eup %5240 }
 0x6f3   :  { %v5243_v12 = vpop.eup %5242  ;;  %v3571_v16 = vadd.f32 1.0, %v5241_v39  ;;  %5244 = vpow2.f32 %v4941_v34 }
 0x6f4   :  { %v3590_v27 = vadd.f32 1.0, %v5243_v12 }
 0x6f5   :  { %5246 = vrcp.f32 %v3571_v16  ;;  %v3583_v34 = vand.u32 2147483648, %v3571_v16  ;;  %v3581_v39 = vand.u32 2147483647, %v3571_v16  ;;  %vm3577_vm3 = vweird.f32 %v3571_v16 }
 0x6f6   :  { %5248 = vrcp.f32 %v3590_v27  ;;  %v3602_v35 = vand.u32 2147483648, %v3590_v27  ;;  %v3600_v15 = vand.u32 2147483647, %v3590_v27  ;;  %vm3596_vm4 = vweird.f32 %v3590_v27 }
 0x6f7   :  { %v3584_v13 = vor.u32 1.1754944e-38, %v3583_v34  ;;  %vm3582_vm7 = vcmp.eq.f32.partialorder %v3581_v39, 8.507059e+37 }
 0x6f8   :  { %vm3601_vm8 = vcmp.eq.f32.partialorder %v3600_v15, 8.507059e+37 }
 0x6f9   :  { %v5245_v52 = vpop.eup %5244 }
 0x6fa   :  { %v3610_v46 = vadd.f32 1.0, %v5245_v52 }
 0x6fb   :  { %v5247_v2 = vpop.eup %5246 }
 0x6fc   :  { %v5249_v29 = vpop.eup %5248  ;;  %v3573_v21 = vmul.f32 %v5247_v2, %v3571_v16  ;;  %5250 = vrcp.f32 %v3610_v46  ;;  %vm3578_vm1 = vweird.f32 %v5247_v2  ;;  %vm3616_vm10 = vweird.f32 %v3610_v46 }
 0x6fd   :  { %v3592_v30 = vmul.f32 %v5249_v29, %v3590_v27  ;;  %5252 = vtanh.f32 %v3566_v57  ;;  %vm3597_vm2 = vweird.f32 %v5249_v29  ;;  %vm3579_vm5 = vmor %vm3577_vm3, %vm3578_vm1 }
 0x6fe   :  { %v3574_v22 = vsub.f32 1.0, %v3573_v21  ;;  %vm3598_vm6 = vmor %vm3596_vm4, %vm3597_vm2  ;;  %v3603_v21 = vor.u32 1.1754944e-38, %v3602_v35 }
 0x6ff   :  { %v3593_v10 = vsub.f32 1.0, %v3592_v30 }
 0x700   :  { %v3575_v12 = vmul.f32 %v5247_v2, %v3574_v22 }
 0x701   :  { %v3594_v31 = vmul.f32 %v5249_v29, %v3593_v10 }
 0x702   :  { %v5251_v20 = vpop.eup %5250  ;;  %v3576_v43 = vadd.f32 %v5247_v2, %v3575_v12 }
 0x703   :  { %v3595_v52 = vadd.f32 %v5249_v29, %v3594_v31  ;;  %v3612_v19 = vmul.f32 %v5251_v20, %v3610_v46  ;;  %v5253_v57 = vpop.eup %5252  ;;  %vm3617_vm9 = vweird.f32 %v5251_v20  ;;  %v3622_v31 = vand.u32 2147483648, %v3610_v46 }
 0x704   :  { %v3580_v30 = vsel %vm3579_vm5, %v5247_v2, %v3576_v43  ;;  %v3620_v2 = vand.u32 2147483647, %v3610_v46  ;;  %vm3618_vm11 = vmor %vm3616_vm10, %vm3617_vm9 }
 0x705   :  { %v3585_v40 = vsel %vm3582_vm7, %v3584_v13, %v3580_v30  ;;  %v3599_v22 = vsel %vm3598_vm6, %v5249_v29, %v3595_v52  ;;  %v3613_v23 = vsub.f32 1.0, %v3612_v19  ;;  %v3623_v35 = vor.u32 1.1754944e-38, %v3622_v31  ;;  %v11504_v30 = vld [vmem:[#allocation102_spill] sm:$0xff] }
 0x706   :  { %v3604_v10 = vsel %vm3601_vm8, %v3603_v21, %v3599_v22  ;;  %v3627_v1 = vmul.f32 %v5253_v57, %v3585_v40  ;;  %vm3621_vm12 = vcmp.eq.f32.partialorder %v3620_v2, 8.507059e+37  ;;  %v11505_v57 = vld [vmem:[#allocation67_spill] sm:$0xff] }
 0x707   :  { %v3626_v48 = vmul.f32 %v3604_v10, %v11470_v61  ;;  %v3614_v12 = vmul.f32 %v5251_v20, %v3613_v23  ;;  %v777_v22 = vadd.f32 %v11505_v57, %v11504_v30  ;;  %v9748_v57 = vld [vmem:[#allocation14 + $0x168] sm:$0xff] }
 0x709   :  { %v9606_v16 = vadd.f32 %v3627_v1, %v3626_v48  ;;  %v3615_v27 = vadd.f32 %v5251_v20, %v3614_v12 }
 0x70b   :  { %5254 = vtanh.f32 %v9606_v16  ;;  %v3619_v34 = vsel %vm3618_vm11, %v5251_v20, %v3615_v27 }
 0x70c   :  { %v3624_v29 = vsel %vm3621_vm12, %v3623_v35, %v3619_v34 }
 0x711   :  { %v5255_v15 = vpop.eup %5254 }
 0x712   :  { %v9609_v39 = vmul.f32 %v5255_v15, %v3624_v29 }
 0x714   :  { %11471 = vst [vmem:[#allocation29_spill] sm:$0xff] %v9609_v39  ;;  %3652 = vmatmul.f32.vlgmr.msrb.gmra.mxu0 %v9609_v39  ;;  %3672 = vmatmul.f32.vlgmr.msrb.gmra.mxu1 %v9609_v39 }
 0x715   :  { %3692 = vmatmul.f32.vlgmr.msrb.gmra.mxu2 %v9609_v39  ;;  %3712 = vmatmul.f32.vlgmr.msrb.gmra.mxu3 %v9609_v39  ;;  %v9865_v39 = vld [vmem:[#allocation14 + $0x20] sm:$0xff] }
 0x716   :  { %3940 = vmatpush.msrb.mxu0 %v9141_v55  ;;  %3960 = vmatpush.msrb.mxu1 %v9143_v32  ;;  %v11472_v55 = vld [vmem:[#allocation166_spill] sm:$0xff]  ;;  %v11473_v32 = vld [vmem:[#allocation167_spill] sm:$0xff]  ;;  %11525 = vst [vmem:[#allocation78_spill] sm:$0xff] %v9865_v39 }
 0x717   :  { %3980 = vmatpush.msrb.mxu2 %v9145_v7  ;;  %4000 = vmatpush.msrb.mxu3 %v9149_v47  ;;  %v11474_v7 = vld [vmem:[#allocation168_spill] sm:$0xff]  ;;  %v11475_v47 = vld [vmem:[#allocation169_spill] sm:$0xff] }
 0x718   :  { %3941 = vmatpush.msrb.mxu0 %v9153_v37  ;;  %3961 = vmatpush.msrb.mxu1 %v9155_v63  ;;  %v11476_v37 = vld [vmem:[#allocation170_spill] sm:$0xff]  ;;  %v11477_v63 = vld [vmem:[#allocation171_spill] sm:$0xff] }
 0x719   :  { %3981 = vmatpush.msrb.mxu2 %v9157_v24  ;;  %4001 = vmatpush.msrb.mxu3 %v9161_v51  ;;  %v11478_v24 = vld [vmem:[#allocation172_spill] sm:$0xff]  ;;  %v11479_v51 = vld [vmem:[#allocation173_spill] sm:$0xff] }
 0x71a   :  { %3942 = vmatpush.msrb.mxu0 %v9167_v62  ;;  %3962 = vmatpush.msrb.mxu1 %v9169_v56  ;;  %v11480_v62 = vld [vmem:[#allocation174_spill] sm:$0xff]  ;;  %v11481_v56 = vld [vmem:[#allocation175_spill] sm:$0xff] }
 0x71b   :  { %3982 = vmatpush.msrb.mxu2 %v9171_v54  ;;  %4002 = vmatpush.msrb.mxu3 %v9175_v59  ;;  %v11482_v54 = vld [vmem:[#allocation176_spill] sm:$0xff]  ;;  %v11483_v59 = vld [vmem:[#allocation177_spill] sm:$0xff] }
 0x71c   :  { %3943 = vmatpush.msrb.mxu0 %v9179_v50  ;;  %3963 = vmatpush.msrb.mxu1 %v9181_v36  ;;  %v11484_v50 = vld [vmem:[#allocation178_spill] sm:$0xff]  ;;  %v11485_v36 = vld [vmem:[#allocation179_spill] sm:$0xff] }
 0x71d   :  { %3983 = vmatpush.msrb.mxu2 %v9183_v49  ;;  %4003 = vmatpush.msrb.mxu3 %v9187_v0  ;;  %v11486_v49 = vld [vmem:[#allocation180_spill] sm:$0xff]  ;;  %v11487_v0 = vld [vmem:[#allocation181_spill] sm:$0xff] }
 0x71e   :  { %3944 = vmatpush.msrb.mxu0 %v9191_v26  ;;  %3964 = vmatpush.msrb.mxu1 %v9193_v38  ;;  %v11488_v26 = vld [vmem:[#allocation182_spill] sm:$0xff]  ;;  %v11489_v38 = vld [vmem:[#allocation88_spill] sm:$0xff] }
 0x71f   :  { %3984 = vmatpush.msrb.mxu2 %v9195_v42  ;;  %4004 = vmatpush.msrb.mxu3 %v9199_v44  ;;  %v11490_v42 = vld [vmem:[#allocation32_spill] sm:$0xff]  ;;  %v11491_v44 = vld [vmem:[#allocation86_spill] sm:$0xff] }
 0x720   :  { %3945 = vmatpush.msrb.mxu0 %v9205_v14  ;;  %3965 = vmatpush.msrb.mxu1 %v11454_v41  ;;  %v11492_v14 = vld [vmem:[#allocation95_spill] sm:$0xff] }
 0x721   :  { %3985 = vmatpush.msrb.mxu2 %v9209_v6  ;;  %4005 = vmatpush.msrb.mxu3 %v11455_v8  ;;  %v11493_v6 = vld [vmem:[#allocation38_spill] sm:$0xff]  ;;  %v11502_v41 = vld [vmem:[#allocation35_spill] sm:$0xff] }
 0x722   :  { %3946 = vmatpush.msrb.mxu0 %v9220_v5  ;;  %3966 = vmatpush.msrb.mxu1 %v9222_v17  ;;  %v11494_v5 = vld [vmem:[#allocation93_spill] sm:$0xff]  ;;  %v11495_v17 = vld [vmem:[#allocation36_spill] sm:$0xff]  ;;  %v11503_v8 = vld [vmem:[#allocation63_spill] sm:$0xff] }
 0x723   :  { %3986 = vmatpush.msrb.mxu2 %v9224_v18  ;;  %4006 = vmatpush.msrb.mxu3 %v9229_v58  ;;  %v11496_v18 = vld [vmem:[#allocation39_spill] sm:$0xff]  ;;  %v11497_v58 = vld [vmem:[#allocation98_spill] sm:$0xff]  ;;  %v818_v61 = vadd.f32 %v11503_v8, %v11502_v41  ;;  %v9715_v8 = vld [vmem:[#allocation14 + $0x1d0] sm:$0xff] }
 0x724   :  { %3947 = vmatpush.msrb.mxu0 %v9239_v9  ;;  %3967 = vmatpush.msrb.mxu1 %v9241_v60  ;;  %v11498_v9 = vld [vmem:[#allocation96_spill] sm:$0xff]  ;;  %v11499_v60 = vld [vmem:[#allocation45_spill] sm:$0xff] }
 0x725   :  { %3987 = vmatpush.msrb.mxu2 %v9243_v4  ;;  %4007 = vmatpush.msrb.mxu3 %v9247_v3  ;;  %v695_v4 = vadd.f32 %v11499_v60, %v11498_v9  ;;  %v11500_v3 = vld [vmem:[#allocation81_spill] sm:$0xff] }
 0x726   :  { %3948 = vmatpush.msrb.mxu0 %v9251_v25  ;;  %3968 = vmatpush.msrb.mxu1 %v11432_v33  ;;  %v11501_v25 = vld [vmem:[#allocation66_spill] sm:$0xff] }
 0x727   :  { %3988 = vmatpush.msrb.mxu2 %v11433_v11  ;;  %4008 = vmatpush.msrb.mxu3 %v11434_v45  ;;  %v736_v40 = vadd.f32 %v11501_v25, %v11500_v3 }
 0x728   :  { %3949 = vmatpush.msrb.mxu0 %v11435_v28  ;;  %3969 = vmatpush.msrb.mxu1 %v11436_v53 }
 0x729   :  { %3989 = vmatpush.msrb.mxu2 %v11472_v55  ;;  %4009 = vmatpush.msrb.mxu3 %v11473_v32 }
 0x72a   :  { %3950 = vmatpush.msrb.mxu0 %v11474_v7  ;;  %3970 = vmatpush.msrb.mxu1 %v11475_v47 }
 0x72b   :  { %3990 = vmatpush.msrb.mxu2 %v11476_v37  ;;  %4010 = vmatpush.msrb.mxu3 %v11477_v63 }
 0x72c   :  { %3951 = vmatpush.msrb.mxu0 %v11478_v24  ;;  %3971 = vmatpush.msrb.mxu1 %v11479_v51 }
 0x72d   :  { %3991 = vmatpush.msrb.mxu2 %v11480_v62  ;;  %4011 = vmatpush.msrb.mxu3 %v11481_v56 }
 0x72e   :  { %3952 = vmatpush.msrb.mxu0 %v11482_v54  ;;  %3972 = vmatpush.msrb.mxu1 %v11483_v59 }
 0x72f   :  { %3992 = vmatpush.msrb.mxu2 %v11484_v50  ;;  %4012 = vmatpush.msrb.mxu3 %v11485_v36 }
 0x730   :  { %3953 = vmatpush.msrb.mxu0 %v11486_v49  ;;  %3973 = vmatpush.msrb.mxu1 %v11487_v0 }
 0x731   :  { %3993 = vmatpush.msrb.mxu2 %v11488_v26  ;;  %4013 = vmatpush.msrb.mxu3 %v11489_v38 }
 0x732   :  { %3954 = vmatpush.msrb.mxu0 %v11490_v42  ;;  %3974 = vmatpush.msrb.mxu1 %v11491_v44 }
 0x733   :  { %3994 = vmatpush.msrb.mxu2 %v11492_v14  ;;  %4014 = vmatpush.msrb.mxu3 %v11493_v6 }
 0x734   :  { %3955 = vmatpush.msrb.mxu0 %v11494_v5  ;;  %3975 = vmatpush.msrb.mxu1 %v11495_v17 }
 0x735   :  { %3995 = vmatpush.msrb.mxu2 %v11496_v18  ;;  %4015 = vmatpush.msrb.mxu3 %v11497_v58 }
 0x791   :  { %v3653_v33 = vpop.f32.mrf.mxu0  ;;  %v3673_v11 = vpop.f32.mrf.mxu1 }
 0x792   :  { %v3716_v45 = vadd.f32 %v3653_v33, %v695_v4  ;;  %v3717_v28 = vadd.f32 %v3673_v11, %v736_v40  ;;  %v9700_v11 = vld [vmem:[#allocation14 + $0x1e8] sm:$0xff] }
 0x794   :  { %v4942_v53 = vmul.f32 -1.442695, %v3716_v45  ;;  %v4943_v48 = vmul.f32 -1.442695, %v3717_v28  ;;  %v9703_v45 = vld [vmem:[#allocation14 + $0x1f0] sm:$0xff]  ;;  %v9706_v28 = vld [vmem:[#allocation14 + $0x1f8] sm:$0xff] }
 0x796   :  { %5256 = vpow2.f32 %v4942_v53  ;;  %v9709_v53 = vld [vmem:[#allocation14 + $0x1c0] sm:$0xff] }
 0x797   :  { %5258 = vpow2.f32 %v4943_v48  ;;  %v9712_v48 = vld [vmem:[#allocation14 + $0x1c8] sm:$0xff] }
 0x798   :  { %v3713_v1 = vpop.f32.mrf.mxu3  ;;  %v3693_v19 = vpop.f32.mrf.mxu2 }
 0x799   :  { %v3719_v23 = vadd.f32 %v3713_v1, %v818_v61  ;;  %v3718_v27 = vadd.f32 %v3693_v19, %v777_v22  ;;  %v9718_v61 = vld [vmem:[#allocation14 + $0x1d8] sm:$0xff]  ;;  %v9721_v1 = vld [vmem:[#allocation14 + $0x1a0] sm:$0xff]  ;;  %v9751_v22 = vld [vmem:[#allocation14 + $0x170] sm:$0xff] }
 0x79a   :  { %v9742_v19 = vld [vmem:[#allocation14 + $0x198] sm:$0xff] }
 0x79b   :  { %v4944_v20 = vmul.f32 -1.442695, %v3719_v23  ;;  %v9724_v23 = vld [vmem:[#allocation14 + $0x1a8] sm:$0xff] }
 0x79c   :  { %v5257_v46 = vpop.eup %5256 }
 0x79d   :  { %v5259_v43 = vpop.eup %5258  ;;  %v3723_v13 = vadd.f32 1.0, %v5257_v46  ;;  %5260 = vpow2.f32 %v4944_v20  ;;  %v9727_v20 = vld [vmem:[#allocation14 + $0x1b0] sm:$0xff]  ;;  %v9730_v46 = vld [vmem:[#allocation14 + $0x1b8] sm:$0xff] }
 0x79e   :  { %v3742_v52 = vadd.f32 1.0, %v5259_v43  ;;  %v9733_v43 = vld [vmem:[#allocation14 + $0x180] sm:$0xff] }
 0x79f   :  { %5262 = vrcp.f32 %v3723_v13  ;;  %v3735_v29 = vand.u32 2147483648, %v3723_v13  ;;  %v3733_v7 = vand.u32 2147483647, %v3723_v13  ;;  %vm3729_vm15 = vweird.f32 %v3723_v13 }
 0x7a0   :  { %5264 = vrcp.f32 %v3742_v52  ;;  %v3754_v55 = vand.u32 2147483648, %v3742_v52  ;;  %v3752_v37 = vand.u32 2147483647, %v3742_v52  ;;  %vm3748_vm0 = vweird.f32 %v3742_v52 }
 0x7a1   :  { %v3736_v51 = vor.u32 1.1754944e-38, %v3735_v29  ;;  %vm3734_vm3 = vcmp.eq.f32.partialorder %v3733_v7, 8.507059e+37  ;;  %v9778_v29 = vld [vmem:[#allocation14 + $0x138] sm:$0xff]  ;;  %v9787_v7 = vld [vmem:[#allocation14 + $0x110] sm:$0xff] }
 0x7a2   :  { %v3755_v54 = vor.u32 1.1754944e-38, %v3754_v55  ;;  %vm3753_vm4 = vcmp.eq.f32.partialorder %v3752_v37, 8.507059e+37  ;;  %v9781_v55 = vld [vmem:[#allocation14 + $0x100] sm:$0xff] }
 0x7a3   :  { %v5261_v21 = vpop.eup %5260  ;;  %v9793_v37 = vld [vmem:[#allocation14 + $0xe0] sm:$0xff] }
 0x7a4   :  { %v3762_v10 = vadd.f32 1.0, %v5261_v21  ;;  %v9745_v21 = vld [vmem:[#allocation14 + $0x160] sm:$0xff] }
 0x7a5   :  { %v5263_v12 = vpop.eup %5262 }
 0x7a6   :  { %v5265_v31 = vpop.eup %5264  ;;  %v3725_v2 = vmul.f32 %v5263_v12, %v3723_v13  ;;  %5266 = vrcp.f32 %v3762_v10  ;;  %vm3730_vm13 = vweird.f32 %v5263_v12  ;;  %v3774_v5 = vand.u32 2147483648, %v3762_v10  ;;  %v9736_v13 = vld [vmem:[#allocation14 + $0x188] sm:$0xff] }
 0x7a7   :  { %v3744_v34 = vmul.f32 %v5265_v31, %v3742_v52  ;;  %5268 = vtanh.f32 %v3718_v27  ;;  %vm3749_vm14 = vweird.f32 %v5265_v31  ;;  %vm3731_vm1 = vmor %vm3729_vm15, %vm3730_vm13  ;;  %vm3768_vm6 = vweird.f32 %v3762_v10  ;;  %v9739_v52 = vld [vmem:[#allocation14 + $0x190] sm:$0xff]  ;;  %v9760_v27 = vld [vmem:[#allocation14 + $0x148] sm:$0xff] }
 0x7a8   :  { %v3726_v35 = vsub.f32 1.0, %v3725_v2  ;;  %vm3750_vm2 = vmor %vm3748_vm0, %vm3749_vm14  ;;  %v3772_v17 = vand.u32 2147483647, %v3762_v10  ;;  %v3775_v4 = vor.u32 1.1754944e-38, %v3774_v5  ;;  %v9766_v2 = vld [vmem:[#allocation14 + $0x158] sm:$0xff]  ;;  %v9844_v5 = vld [vmem:[#allocation14 + $0x68] sm:$0xff] }
 0x7a9   :  { %v3745_v15 = vsub.f32 1.0, %v3744_v34  ;;  %v9769_v34 = vld [vmem:[#allocation14 + $0x120] sm:$0xff]  ;;  %11518 = vst [vmem:[#allocation109_spill] sm:$0xff] %v9844_v5 }
 0x7aa   :  { %v3727_v32 = vmul.f32 %v5263_v12, %v3726_v35  ;;  %vm3773_vm8 = vcmp.eq.f32.partialorder %v3772_v17, 8.507059e+37  ;;  %v9772_v35 = vld [vmem:[#allocation14 + $0x128] sm:$0xff]  ;;  %v9847_v17 = vld [vmem:[#allocation14 + $0x70] sm:$0xff] }
 0x7ab   :  { %v3746_v47 = vmul.f32 %v5265_v31, %v3745_v15  ;;  %v9775_v15 = vld [vmem:[#allocation14 + $0x130] sm:$0xff]  ;;  %11519 = vst [vmem:[#allocation48_spill] sm:$0xff] %v9847_v17 }
 0x7ac   :  { %v5267_v63 = vpop.eup %5266  ;;  %v3728_v24 = vadd.f32 %v5263_v12, %v3727_v32  ;;  %v9784_v32 = vld [vmem:[#allocation14 + $0x108] sm:$0xff] }
 0x7ad   :  { %v3747_v62 = vadd.f32 %v5265_v31, %v3746_v47  ;;  %v3764_v56 = vmul.f32 %v5267_v63, %v3762_v10  ;;  %v5269_v50 = vpop.eup %5268  ;;  %vm3769_vm5 = vweird.f32 %v5267_v63  ;;  %v9754_v10 = vld [vmem:[#allocation14 + $0x178] sm:$0xff] }
 0x7ae   :  { %v3732_v59 = vsel %vm3731_vm1, %v5263_v12, %v3728_v24  ;;  %vm3770_vm7 = vmor %vm3768_vm6, %vm3769_vm5  ;;  %v9757_v12 = vld [vmem:[#allocation14 + $0x140] sm:$0xff]  ;;  %v9790_v47 = vld [vmem:[#allocation14 + $0x118] sm:$0xff] }
 0x7af   :  { %v3737_v36 = vsel %vm3734_vm3, %v3736_v51, %v3732_v59  ;;  %v3751_v49 = vsel %vm3750_vm2, %v5265_v31, %v3747_v62  ;;  %v3765_v0 = vsub.f32 1.0, %v3764_v56  ;;  %v9763_v31 = vld [vmem:[#allocation14 + $0x150] sm:$0xff]  ;;  %v9802_v51 = vld [vmem:[#allocation14 + $0xf8] sm:$0xff]  ;;  %v9805_v62 = vld [vmem:[#allocation14 + $0xc0] sm:$0xff] }
 0x7b0   :  { %v3756_v26 = vsel %vm3753_vm4, %v3755_v54, %v3751_v49  ;;  %v3779_v38 = vmul.f32 %v5269_v50, %v3737_v36  ;;  %v9799_v24 = vld [vmem:[#allocation14 + $0xf0] sm:$0xff]  ;;  %v9808_v56 = vld [vmem:[#allocation14 + $0xc8] sm:$0xff]  ;;  %v9814_v59 = vld [vmem:[#allocation14 + $0xd8] sm:$0xff] }
 0x7b1   :  { %v3778_v42 = vmul.f32 %v3756_v26, %v9606_v16  ;;  %v3766_v44 = vmul.f32 %v5267_v63, %v3765_v0  ;;  %v9697_v16 = vld [vmem:[#allocation14 + $0x1e0] sm:$0xff]  ;;  %v9811_v54 = vld [vmem:[#allocation14 + $0xd0] sm:$0xff]  ;;  %11508 = vst [vmem:[#allocation184_spill] sm:$0xff] %v9814_v59  ;;  %v9820_v36 = vld [vmem:[#allocation14 + $0xa8] sm:$0xff] }
 0x7b2   :  { %11507 = vst [vmem:[#allocation183_spill] sm:$0xff] %v9811_v54  ;;  %v9817_v50 = vld [vmem:[#allocation14 + $0xa0] sm:$0xff]  ;;  %v9823_v49 = vld [vmem:[#allocation14 + $0xb0] sm:$0xff]  ;;  %v9826_v0 = vld [vmem:[#allocation14 + $0xb8] sm:$0xff] }
 0x7b3   :  { %v9688_v14 = vadd.f32 %v3779_v38, %v3778_v42  ;;  %v3767_v6 = vadd.f32 %v5267_v63, %v3766_v44  ;;  %11509 = vst [vmem:[#allocation185_spill] sm:$0xff] %v9817_v50  ;;  %v9829_v26 = vld [vmem:[#allocation14 + $0x80] sm:$0xff]  ;;  %v9832_v38 = vld [vmem:[#allocation14 + $0x88] sm:$0xff]  ;;  %v9835_v42 = vld [vmem:[#allocation14 + $0x90] sm:$0xff] }
 0x7b4   :  { %11510 = vst [vmem:[#allocation186_spill] sm:$0xff] %v9820_v36  ;;  %v9838_v44 = vld [vmem:[#allocation14 + $0x98] sm:$0xff] }
 0x7b5   :  { %5270 = vtanh.f32 %v9688_v14  ;;  %v3771_v60 = vsel %vm3770_vm7, %v5267_v63, %v3767_v6  ;;  %v9796_v63 = vld [vmem:[#allocation14 + $0xe8] sm:$0xff]  ;;  %11511 = vst [vmem:[#allocation187_spill] sm:$0xff] %v9823_v49  ;;  %v9841_v6 = vld [vmem:[#allocation14 + $0x60] sm:$0xff] }
 0x7b6   :  { %v3776_v40 = vsel %vm3773_vm8, %v3775_v4, %v3771_v60  ;;  %11512 = vst [vmem:[#allocation188_spill] sm:$0xff] %v9826_v0  ;;  %v9850_v60 = vld [vmem:[#allocation14 + $0x78] sm:$0xff]  ;;  %v9853_v4 = vld [vmem:[#allocation14 + $0x40] sm:$0xff] }
 0x7b7   :  { %11513 = vst [vmem:[#allocation189_spill] sm:$0xff] %v9829_v26 }
 0x7b8   :  { %11514 = vst [vmem:[#allocation25_spill] sm:$0xff] %v9832_v38 }
 0x7b9   :  { %11515 = vst [vmem:[#allocation34_spill] sm:$0xff] %v9835_v42 }
 0x7ba   :  { %11516 = vst [vmem:[#allocation68_spill] sm:$0xff] %v9838_v44 }
 0x7bb   :  { %v5271_v25 = vpop.eup %5270  ;;  %11517 = vst [vmem:[#allocation65_spill] sm:$0xff] %v9841_v6 }
 0x7bc   :  { %v9691_v33 = vmul.f32 %v5271_v25, %v3776_v40  ;;  %11520 = vst [vmem:[#allocation46_spill] sm:$0xff] %v9850_v60  ;;  %v9856_v25 = vld [vmem:[#allocation14 + $0x48] sm:$0xff]  ;;  %v9859_v40 = vld [vmem:[#allocation14 + $0x50] sm:$0xff] }
 0x7bd   :  { %11521 = vst [vmem:[#allocation73_spill] sm:$0xff] %v9853_v4 }
 0x7be   :  { %11506 = vst [vmem:[#allocation31_spill] sm:$0xff] %v9691_v33  ;;  %3804 = vmatmul.f32.vlgmr.msra.gmra.mxu0 %v9691_v33  ;;  %3824 = vmatmul.f32.vlgmr.msra.gmra.mxu1 %v9691_v33 }
 0x7bf   :  { %3844 = vmatmul.f32.vlgmr.msra.gmra.mxu2 %v9691_v33  ;;  %3864 = vmatmul.f32.vlgmr.msra.gmra.mxu3 %v9691_v33  ;;  %11522 = vst [vmem:[#allocation44_spill] sm:$0xff] %v9856_v25  ;;  %v9862_v33 = vld [vmem:[#allocation14 + $0x58] sm:$0xff] }
 0x7c0   :  { %4092 = vmatpush.msra.mxu0 %v9697_v16  ;;  %4112 = vmatpush.msra.mxu1 %v9700_v11  ;;  %11523 = vst [vmem:[#allocation52_spill] sm:$0xff] %v9859_v40 }
 0x7c1   :  { %4132 = vmatpush.msra.mxu2 %v9703_v45  ;;  %4152 = vmatpush.msra.mxu3 %v9706_v28  ;;  %11524 = vst [vmem:[#allocation28_spill] sm:$0xff] %v9862_v33 }
 0x7c2   :  { %4093 = vmatpush.msra.mxu0 %v9709_v53  ;;  %4113 = vmatpush.msra.mxu1 %v9712_v48 }
 0x7c3   :  { %4133 = vmatpush.msra.mxu2 %v9715_v8  ;;  %4153 = vmatpush.msra.mxu3 %v9718_v61 }
 0x7c4   :  { %4094 = vmatpush.msra.mxu0 %v9721_v1  ;;  %4114 = vmatpush.msra.mxu1 %v9724_v23 }
 0x7c5   :  { %4134 = vmatpush.msra.mxu2 %v9727_v20  ;;  %4154 = vmatpush.msra.mxu3 %v9730_v46 }
 0x7c6   :  { %4095 = vmatpush.msra.mxu0 %v9733_v43  ;;  %4115 = vmatpush.msra.mxu1 %v9736_v13 }
 0x7c7   :  { %4135 = vmatpush.msra.mxu2 %v9739_v52  ;;  %4155 = vmatpush.msra.mxu3 %v9742_v19 }
 0x7c8   :  { %4096 = vmatpush.msra.mxu0 %v9745_v21  ;;  %4116 = vmatpush.msra.mxu1 %v9748_v57 }
 0x7c9   :  { %4136 = vmatpush.msra.mxu2 %v9751_v22  ;;  %4156 = vmatpush.msra.mxu3 %v9754_v10 }
 0x7ca   :  { %4097 = vmatpush.msra.mxu0 %v9757_v12  ;;  %4117 = vmatpush.msra.mxu1 %v9760_v27 }
 0x7cb   :  { %4137 = vmatpush.msra.mxu2 %v9763_v31  ;;  %4157 = vmatpush.msra.mxu3 %v9766_v2 }
 0x7cc   :  { %4098 = vmatpush.msra.mxu0 %v9769_v34  ;;  %4118 = vmatpush.msra.mxu1 %v9772_v35 }
 0x7cd   :  { %4138 = vmatpush.msra.mxu2 %v9775_v15  ;;  %4158 = vmatpush.msra.mxu3 %v9778_v29 }
 0x7ce   :  { %4099 = vmatpush.msra.mxu0 %v9781_v55  ;;  %4119 = vmatpush.msra.mxu1 %v9784_v32 }
 0x7cf   :  { %4139 = vmatpush.msra.mxu2 %v9787_v7  ;;  %4159 = vmatpush.msra.mxu3 %v9790_v47 }
 0x7d0   :  { %4100 = vmatpush.msra.mxu0 %v9793_v37  ;;  %4120 = vmatpush.msra.mxu1 %v9796_v63 }
 0x7d1   :  { %4140 = vmatpush.msra.mxu2 %v9799_v24  ;;  %4160 = vmatpush.msra.mxu3 %v9802_v51 }
 0x7d2   :  { %4101 = vmatpush.msra.mxu0 %v9805_v62  ;;  %4121 = vmatpush.msra.mxu1 %v9808_v56 }
 0x7d3   :  { %4141 = vmatpush.msra.mxu2 %v9811_v54  ;;  %4161 = vmatpush.msra.mxu3 %v9814_v59 }
 0x7d4   :  { %4102 = vmatpush.msra.mxu0 %v9817_v50  ;;  %4122 = vmatpush.msra.mxu1 %v9820_v36 }
 0x7d5   :  { %4142 = vmatpush.msra.mxu2 %v9823_v49  ;;  %4162 = vmatpush.msra.mxu3 %v9826_v0 }
 0x7d6   :  { %4103 = vmatpush.msra.mxu0 %v9829_v26  ;;  %4123 = vmatpush.msra.mxu1 %v9832_v38  ;;  %v11533_v38 = vld [vmem:[#allocation69_spill] sm:$0xff] }
 0x7d7   :  { %4143 = vmatpush.msra.mxu2 %v9835_v42  ;;  %4163 = vmatpush.msra.mxu3 %v9838_v44 }
 0x7d8   :  { %4104 = vmatpush.msra.mxu0 %v9841_v6  ;;  %4124 = vmatpush.msra.mxu1 %v9844_v5 }
 0x7d9   :  { %4144 = vmatpush.msra.mxu2 %v9847_v17  ;;  %4164 = vmatpush.msra.mxu3 %v9850_v60  ;;  %v9868_v60 = vld [vmem:[#allocation14 + $0x28] sm:$0xff] }
 0x7da   :  { %4105 = vmatpush.msra.mxu0 %v9853_v4  ;;  %4125 = vmatpush.msra.mxu1 %v9856_v25  ;;  %11526 = vst [vmem:[#allocation26_spill] sm:$0xff] %v9868_v60  ;;  %v9871_v4 = vld [vmem:[#allocation14 + $0x30] sm:$0xff]  ;;  %v9874_v25 = vld [vmem:[#allocation14 + $0x38] sm:$0xff] }
 0x7db   :  { %4145 = vmatpush.msra.mxu2 %v9859_v40  ;;  %4165 = vmatpush.msra.mxu3 %v9862_v33  ;;  %11527 = vst [vmem:[#allocation76_spill] sm:$0xff] %v9871_v4  ;;  %v9877_v40 = vld [vmem:[#allocation14] sm:$0xff]  ;;  %v9880_v33 = vld [vmem:[#allocation14 + $0x8] sm:$0xff] }
 0x7dc   :  { %4106 = vmatpush.msra.mxu0 %v9865_v39  ;;  %4126 = vmatpush.msra.mxu1 %v9868_v60  ;;  %11528 = vst [vmem:[#allocation105_spill] sm:$0xff] %v9874_v25  ;;  %v11531_v60 = vld [vmem:[#allocation49_spill] sm:$0xff] }
 0x7dd   :  { %4146 = vmatpush.msra.mxu2 %v9871_v4  ;;  %4166 = vmatpush.msra.mxu3 %v9874_v25  ;;  %11529 = vst [vmem:[#allocation41_spill] sm:$0xff] %v9877_v40  ;;  %v698_v39 = vadd.f32 %v11531_v60, %v11498_v9  ;;  %v11532_v4 = vld [vmem:[#allocation70_spill] sm:$0xff] }
 0x7de   :  { %4107 = vmatpush.msra.mxu0 %v9877_v40  ;;  %11530 = vst [vmem:[#allocation83_spill] sm:$0xff] %v9880_v33  ;;  %4127 = vmatpush.msra.mxu1 %v9880_v33  ;;  %v739_v17 = vadd.f32 %v11532_v4, %v11500_v3  ;;  %v821_v33 = vadd.f32 %v11533_v38, %v11502_v41 }
 0x7df   :  { %4147 = vmatpush.msra.mxu2 %v11496_v18  ;;  %4167 = vmatpush.msra.mxu3 %v11497_v58 }
 0x83b   :  { %v3805_v5 = vpop.f32.mrf.mxu0  ;;  %v3825_v25 = vpop.f32.mrf.mxu1 }
 0x83c   :  { %v3868_v6 = vadd.f32 %v3805_v5, %v698_v39  ;;  %v3869_v44 = vadd.f32 %v3825_v25, %v739_v17 }
 0x83e   :  { %v4945_v42 = vmul.f32 -1.442695, %v3868_v6  ;;  %v4946_v40 = vmul.f32 -1.442695, %v3869_v44  ;;  %v11534_v6 = vld [vmem:[#allocation74_spill] sm:$0xff] }
 0x83f   :  { %v780_v44 = vadd.f32 %v11534_v6, %v11504_v30 }
 0x840   :  { %5272 = vpow2.f32 %v4945_v42 }
 0x841   :  { %5274 = vpow2.f32 %v4946_v40 }
 0x842   :  { %v3865_v18 = vpop.f32.mrf.mxu3  ;;  %v3845_v4 = vpop.f32.mrf.mxu2 }
 0x843   :  { %v3871_v26 = vadd.f32 %v3865_v18, %v821_v33  ;;  %v3870_v17 = vadd.f32 %v3845_v4, %v780_v44 }
 0x845   :  { %v4947_v58 = vmul.f32 -1.442695, %v3871_v26 }
 0x846   :  { %v5273_v0 = vpop.eup %5272 }
 0x847   :  { %v5275_v49 = vpop.eup %5274  ;;  %v3875_v60 = vadd.f32 1.0, %v5273_v0  ;;  %5276 = vpow2.f32 %v4947_v58 }
 0x848   :  { %v3894_v9 = vadd.f32 1.0, %v5275_v49 }
 0x849   :  { %5278 = vrcp.f32 %v3875_v60  ;;  %v3887_v18 = vand.u32 2147483648, %v3875_v60  ;;  %v3885_v58 = vand.u32 2147483647, %v3875_v60  ;;  %vm3881_vm11 = vweird.f32 %v3875_v60 }
 0x84a   :  { %5280 = vrcp.f32 %v3894_v9  ;;  %v3906_v0 = vand.u32 2147483648, %v3894_v9  ;;  %v3904_v3 = vand.u32 2147483647, %v3894_v9  ;;  %vm3900_vm12 = vweird.f32 %v3894_v9 }
 0x84b   :  { %v3888_v4 = vor.u32 1.1754944e-38, %v3887_v18  ;;  %vm3886_vm15 = vcmp.eq.f32.partialorder %v3885_v58, 8.507059e+37 }
 0x84c   :  { %vm3905_vm0 = vcmp.eq.f32.partialorder %v3904_v3, 8.507059e+37 }
 0x84d   :  { %v5277_v39 = vpop.eup %5276 }
 0x84e   :  { %v3914_v42 = vadd.f32 1.0, %v5277_v39 }
 0x84f   :  { %v5279_v5 = vpop.eup %5278 }
 0x850   :  { %v5281_v38 = vpop.eup %5280  ;;  %v3877_v25 = vmul.f32 %v5279_v5, %v3875_v60  ;;  %5282 = vrcp.f32 %v3914_v42  ;;  %vm3882_vm9 = vweird.f32 %v5279_v5  ;;  %vm3920_vm2 = vweird.f32 %v3914_v42 }
 0x851   :  { %v3896_v33 = vmul.f32 %v5281_v38, %v3894_v9  ;;  %5284 = vtanh.f32 %v3870_v17  ;;  %vm3901_vm10 = vweird.f32 %v5281_v38  ;;  %vm3883_vm13 = vmor %vm3881_vm11, %vm3882_vm9 }
 0x852   :  { %v3878_v26 = vsub.f32 1.0, %v3877_v25  ;;  %vm3902_vm14 = vmor %vm3900_vm12, %vm3901_vm10  ;;  %v3907_v25 = vor.u32 1.1754944e-38, %v3906_v0 }
 0x853   :  { %v3897_v40 = vsub.f32 1.0, %v3896_v33 }
 0x854   :  { %v3879_v49 = vmul.f32 %v5279_v5, %v3878_v26 }
 0x855   :  { %v3898_v41 = vmul.f32 %v5281_v38, %v3897_v40 }
 0x856   :  { %v5283_v36 = vpop.eup %5282  ;;  %v3880_v6 = vadd.f32 %v5279_v5, %v3879_v49 }
 0x857   :  { %v3899_v39 = vadd.f32 %v5281_v38, %v3898_v41  ;;  %v3916_v44 = vmul.f32 %v5283_v36, %v3914_v42  ;;  %v5285_v17 = vpop.eup %5284  ;;  %vm3921_vm1 = vweird.f32 %v5283_v36  ;;  %v3926_v41 = vand.u32 2147483648, %v3914_v42 }
 0x858   :  { %v3884_v33 = vsel %vm3883_vm13, %v5279_v5, %v3880_v6  ;;  %v3924_v5 = vand.u32 2147483647, %v3914_v42  ;;  %vm3922_vm3 = vmor %vm3920_vm2, %vm3921_vm1  ;;  %v11542_v42 = vld [vmem:[#allocation189_spill] sm:$0xff] }
 0x859   :  { %v3889_v30 = vsel %vm3886_vm15, %v3888_v4, %v3884_v33  ;;  %v3903_v26 = vsel %vm3902_vm14, %v5281_v38, %v3899_v39  ;;  %v3917_v50 = vsub.f32 1.0, %v3916_v44  ;;  %v3927_v0 = vor.u32 1.1754944e-38, %v3926_v41  ;;  %v11543_v6 = vld [vmem:[#allocation25_spill] sm:$0xff]  ;;  %v11544_v4 = vld [vmem:[#allocation34_spill] sm:$0xff]  ;;  %v11545_v39 = vld [vmem:[#allocation68_spill] sm:$0xff] }
 0x85a   :  { %v3908_v40 = vsel %vm3905_vm0, %v3907_v25, %v3903_v26  ;;  %v3931_v59 = vmul.f32 %v5285_v17, %v3889_v30  ;;  %vm3925_vm4 = vcmp.eq.f32.partialorder %v3924_v5, 8.507059e+37  ;;  %v11536_v30 = vld [vmem:[#allocation183_spill] sm:$0xff]  ;;  %v11546_v44 = vld [vmem:[#allocation65_spill] sm:$0xff]  ;;  %v11548_v33 = vld [vmem:[#allocation48_spill] sm:$0xff] }
 0x85b   :  { %v3930_v54 = vmul.f32 %v3908_v40, %v9688_v14  ;;  %v3918_v49 = vmul.f32 %v5283_v36, %v3917_v50  ;;  %v11537_v14 = vld [vmem:[#allocation184_spill] sm:$0xff]  ;;  %v11540_v50 = vld [vmem:[#allocation187_spill] sm:$0xff]  ;;  %v11547_v25 = vld [vmem:[#allocation109_spill] sm:$0xff] }
 0x85c   :  { %v11549_v17 = vld [vmem:[#allocation46_spill] sm:$0xff]  ;;  %v11550_v26 = vld [vmem:[#allocation73_spill] sm:$0xff]  ;;  %v11551_v40 = vld [vmem:[#allocation44_spill] sm:$0xff] }
 0x85d   :  { %v9894_v60 = vadd.f32 %v3931_v59, %v3930_v54  ;;  %v3919_v9 = vadd.f32 %v5283_v36, %v3918_v49  ;;  %v11538_v54 = vld [vmem:[#allocation185_spill] sm:$0xff]  ;;  %v11539_v59 = vld [vmem:[#allocation186_spill] sm:$0xff]  ;;  %v11552_v49 = vld [vmem:[#allocation52_spill] sm:$0xff] }
 0x85e   :  { %v11554_v41 = vld [vmem:[#allocation78_spill] sm:$0xff] }
 0x85f   :  { %5286 = vtanh.f32 %v9894_v60  ;;  %v3923_v18 = vsel %vm3922_vm3, %v5283_v36, %v3919_v9  ;;  %v11541_v36 = vld [vmem:[#allocation188_spill] sm:$0xff]  ;;  %v11555_v5 = vld [vmem:[#allocation26_spill] sm:$0xff] }
 0x860   :  { %v3928_v38 = vsel %vm3925_vm4, %v3927_v0, %v3923_v18  ;;  %v11553_v9 = vld [vmem:[#allocation28_spill] sm:$0xff]  ;;  %v11557_v0 = vld [vmem:[#allocation105_spill] sm:$0xff] }
 0x861   :  { %v11556_v18 = vld [vmem:[#allocation76_spill] sm:$0xff] }
 0x865   :  { %v5287_v3 = vpop.eup %5286 }
 0x866   :  { %v9897_v58 = vmul.f32 %v5287_v3, %v3928_v38  ;;  %v11558_v3 = vld [vmem:[#allocation41_spill] sm:$0xff]  ;;  %v11559_v38 = vld [vmem:[#allocation83_spill] sm:$0xff] }
 0x868   :  { %11535 = vst [vmem:[#allocation40_spill] sm:$0xff] %v9897_v58  ;;  %3956 = vmatmul.f32.vlgmr.msrb.gmra.mxu0 %v9897_v58  ;;  %3976 = vmatmul.f32.vlgmr.msrb.gmra.mxu1 %v9897_v58 }
 0x869   :  { %3996 = vmatmul.f32.vlgmr.msrb.gmra.mxu2 %v9897_v58  ;;  %4016 = vmatmul.f32.vlgmr.msrb.gmra.mxu3 %v9897_v58  ;;  %v9965_v58 = vld [vmem:[#allocation14 + $0x10] sm:$0xff] }
 0x86a   :  { %4244 = vmatpush.msrb.mxu0 %v9697_v16  ;;  %4264 = vmatpush.msrb.mxu1 %v9700_v11  ;;  %11560 = vst [vmem:[#allocation47_spill] sm:$0xff] %v9965_v58 }
 0x86b   :  { %4284 = vmatpush.msrb.mxu2 %v9703_v45  ;;  %4304 = vmatpush.msrb.mxu3 %v9706_v28 }
 0x86c   :  { %4245 = vmatpush.msrb.mxu0 %v9709_v53  ;;  %4265 = vmatpush.msrb.mxu1 %v9712_v48 }
 0x86d   :  { %4285 = vmatpush.msrb.mxu2 %v9715_v8  ;;  %4305 = vmatpush.msrb.mxu3 %v9718_v61 }
 0x86e   :  { %4246 = vmatpush.msrb.mxu0 %v9721_v1  ;;  %4266 = vmatpush.msrb.mxu1 %v9724_v23 }
 0x86f   :  { %4286 = vmatpush.msrb.mxu2 %v9727_v20  ;;  %4306 = vmatpush.msrb.mxu3 %v9730_v46 }
 0x870   :  { %4247 = vmatpush.msrb.mxu0 %v9733_v43  ;;  %4267 = vmatpush.msrb.mxu1 %v9736_v13 }
 0x871   :  { %4287 = vmatpush.msrb.mxu2 %v9739_v52  ;;  %4307 = vmatpush.msrb.mxu3 %v9742_v19 }
 0x872   :  { %4248 = vmatpush.msrb.mxu0 %v9745_v21  ;;  %4268 = vmatpush.msrb.mxu1 %v9748_v57 }
 0x873   :  { %4288 = vmatpush.msrb.mxu2 %v9751_v22  ;;  %4308 = vmatpush.msrb.mxu3 %v9754_v10 }
 0x874   :  { %4249 = vmatpush.msrb.mxu0 %v9757_v12  ;;  %4269 = vmatpush.msrb.mxu1 %v9760_v27 }
 0x875   :  { %4289 = vmatpush.msrb.mxu2 %v9763_v31  ;;  %4309 = vmatpush.msrb.mxu3 %v9766_v2 }
 0x876   :  { %4250 = vmatpush.msrb.mxu0 %v9769_v34  ;;  %4270 = vmatpush.msrb.mxu1 %v9772_v35 }
 0x877   :  { %4290 = vmatpush.msrb.mxu2 %v9775_v15  ;;  %4310 = vmatpush.msrb.mxu3 %v9778_v29 }
 0x878   :  { %4251 = vmatpush.msrb.mxu0 %v9781_v55  ;;  %4271 = vmatpush.msrb.mxu1 %v9784_v32 }
 0x879   :  { %4291 = vmatpush.msrb.mxu2 %v9787_v7  ;;  %4311 = vmatpush.msrb.mxu3 %v9790_v47 }
 0x87a   :  { %4252 = vmatpush.msrb.mxu0 %v9793_v37  ;;  %4272 = vmatpush.msrb.mxu1 %v9796_v63 }
 0x87b   :  { %4292 = vmatpush.msrb.mxu2 %v9799_v24  ;;  %4312 = vmatpush.msrb.mxu3 %v9802_v51 }
 0x87c   :  { %4253 = vmatpush.msrb.mxu0 %v9805_v62  ;;  %4273 = vmatpush.msrb.mxu1 %v9808_v56 }
 0x87d   :  { %4293 = vmatpush.msrb.mxu2 %v11536_v30  ;;  %4313 = vmatpush.msrb.mxu3 %v11537_v14 }
 0x87e   :  { %4254 = vmatpush.msrb.mxu0 %v11538_v54  ;;  %4274 = vmatpush.msrb.mxu1 %v11539_v59 }
 0x87f   :  { %4294 = vmatpush.msrb.mxu2 %v11540_v50  ;;  %4314 = vmatpush.msrb.mxu3 %v11541_v36 }
 0x880   :  { %4255 = vmatpush.msrb.mxu0 %v11542_v42  ;;  %4275 = vmatpush.msrb.mxu1 %v11543_v6 }
 0x881   :  { %4295 = vmatpush.msrb.mxu2 %v11544_v4  ;;  %4315 = vmatpush.msrb.mxu3 %v11545_v39  ;;  %v11567_v39 = vld [vmem:[#allocation75_spill] sm:$0xff] }
 0x882   :  { %4256 = vmatpush.msrb.mxu0 %v11546_v44  ;;  %4276 = vmatpush.msrb.mxu1 %v11547_v25  ;;  %v11566_v44 = vld [vmem:[#allocation35_spill] sm:$0xff] }
 0x883   :  { %4296 = vmatpush.msrb.mxu2 %v11548_v33  ;;  %4316 = vmatpush.msrb.mxu3 %v11549_v17 }
 0x884   :  { %4257 = vmatpush.msrb.mxu0 %v11550_v26  ;;  %4277 = vmatpush.msrb.mxu1 %v11551_v40  ;;  %v9968_v40 = vld [vmem:[#allocation14 + $0x18] sm:$0xff]  ;;  %v11565_v26 = vld [vmem:[#allocation77_spill] sm:$0xff] }
 0x885   :  { %4297 = vmatpush.msrb.mxu2 %v11552_v49  ;;  %4317 = vmatpush.msrb.mxu3 %v11553_v9  ;;  %11561 = vst [vmem:[#allocation55_spill] sm:$0xff] %v9968_v40  ;;  %v11562_v9 = vld [vmem:[#allocation96_spill] sm:$0xff] }
 0x886   :  { %4258 = vmatpush.msrb.mxu0 %v11554_v41  ;;  %4278 = vmatpush.msrb.mxu1 %v11555_v5  ;;  %v11563_v41 = vld [vmem:[#allocation58_spill] sm:$0xff]  ;;  %v11564_v5 = vld [vmem:[#allocation81_spill] sm:$0xff] }
 0x887   :  { %4298 = vmatpush.msrb.mxu2 %v11556_v18  ;;  %4318 = vmatpush.msrb.mxu3 %v11557_v0  ;;  %v701_v49 = vadd.f32 %v11563_v41, %v11562_v9  ;;  %v742_v18 = vadd.f32 %v11565_v26, %v11564_v5 }
 0x888   :  { %4259 = vmatpush.msrb.mxu0 %v11558_v3  ;;  %4279 = vmatpush.msrb.mxu1 %v11559_v38 }
 0x889   :  { %4299 = vmatpush.msrb.mxu2 %v9965_v58  ;;  %4319 = vmatpush.msrb.mxu3 %v9968_v40  ;;  %v824_v58 = vadd.f32 %v11567_v39, %v11566_v44 }
 0x8e5   :  { %v3957_v17 = vpop.f32.mrf.mxu0  ;;  %v3977_v0 = vpop.f32.mrf.mxu1 }
 0x8e6   :  { %v4020_v33 = vadd.f32 %v3957_v17, %v701_v49  ;;  %v4021_v3 = vadd.f32 %v3977_v0, %v742_v18  ;;  %v11568_v49 = vld [vmem:[#allocation102_spill] sm:$0xff] }
 0x8e8   :  { %v4948_v25 = vmul.f32 -1.442695, %v4020_v33  ;;  %v4949_v38 = vmul.f32 -1.442695, %v4021_v3  ;;  %v11569_v33 = vld [vmem:[#allocation79_spill] sm:$0xff] }
 0x8e9   :  { %v783_v18 = vadd.f32 %v11569_v33, %v11568_v49 }
 0x8ea   :  { %5288 = vpow2.f32 %v4948_v25 }
 0x8eb   :  { %5290 = vpow2.f32 %v4949_v38 }
 0x8ec   :  { %v4017_v4 = vpop.f32.mrf.mxu3  ;;  %v3997_v26 = vpop.f32.mrf.mxu2 }
 0x8ed   :  { %v4023_v6 = vadd.f32 %v4017_v4, %v824_v58  ;;  %v4022_v3 = vadd.f32 %v3997_v26, %v783_v18 }
 0x8ef   :  { %v4950_v40 = vmul.f32 -1.442695, %v4023_v6 }
 0x8f0   :  { %v5289_v42 = vpop.eup %5288 }
 0x8f1   :  { %v5291_v36 = vpop.eup %5290  ;;  %v4027_v41 = vadd.f32 1.0, %v5289_v42  ;;  %5292 = vpow2.f32 %v4950_v40 }
 0x8f2   :  { %v4046_v9 = vadd.f32 1.0, %v5291_v36 }
 0x8f3   :  { %5294 = vrcp.f32 %v4027_v41  ;;  %v4039_v44 = vand.u32 2147483648, %v4027_v41  ;;  %v4037_v40 = vand.u32 2147483647, %v4027_v41  ;;  %vm4033_vm7 = vweird.f32 %v4027_v41 }
 0x8f4   :  { %5296 = vrcp.f32 %v4046_v9  ;;  %v4058_v42 = vand.u32 2147483648, %v4046_v9  ;;  %v4056_v50 = vand.u32 2147483647, %v4046_v9  ;;  %vm4052_vm8 = vweird.f32 %v4046_v9 }
 0x8f5   :  { %v4040_v26 = vor.u32 1.1754944e-38, %v4039_v44  ;;  %vm4038_vm11 = vcmp.eq.f32.partialorder %v4037_v40, 8.507059e+37 }
 0x8f6   :  { %vm4057_vm12 = vcmp.eq.f32.partialorder %v4056_v50, 8.507059e+37 }
 0x8f7   :  { %v5293_v17 = vpop.eup %5292 }
 0x8f8   :  { %v4066_v25 = vadd.f32 1.0, %v5293_v17 }
 0x8f9   :  { %v5295_v0 = vpop.eup %5294 }
 0x8fa   :  { %v5297_v39 = vpop.eup %5296  ;;  %v4029_v38 = vmul.f32 %v5295_v0, %v4027_v41  ;;  %5298 = vrcp.f32 %v4066_v25  ;;  %vm4034_vm5 = vweird.f32 %v5295_v0  ;;  %vm4072_vm14 = vweird.f32 %v4066_v25 }
 0x8fb   :  { %v4048_v58 = vmul.f32 %v5297_v39, %v4046_v9  ;;  %5300 = vtanh.f32 %v4022_v3  ;;  %vm4053_vm6 = vweird.f32 %v5297_v39  ;;  %vm4035_vm9 = vmor %vm4033_vm7, %vm4034_vm5  ;;  %v4078_v9 = vand.u32 2147483648, %v4066_v25 }
 0x8fc   :  { %v4030_v6 = vsub.f32 1.0, %v4029_v38  ;;  %vm4054_vm10 = vmor %vm4052_vm8, %vm4053_vm6  ;;  %v4059_v38 = vor.u32 1.1754944e-38, %v4058_v42 }
 0x8fd   :  { %v4049_v4 = vsub.f32 1.0, %v4048_v58  ;;  %v4079_v42 = vor.u32 1.1754944e-38, %v4078_v9  ;;  %v11589_v9 = vld [vmem:[#allocation78_spill] sm:$0xff] }
 0x8fe   :  { %v4031_v36 = vmul.f32 %v5295_v0, %v4030_v6 }
 0x8ff   :  { %v4050_v5 = vmul.f32 %v5297_v39, %v4049_v4 }
 0x900   :  { %v5299_v59 = vpop.eup %5298  ;;  %v4032_v33 = vadd.f32 %v5295_v0, %v4031_v36 }
 0x901   :  { %v4051_v17 = vadd.f32 %v5297_v39, %v4050_v5  ;;  %v4068_v18 = vmul.f32 %v5299_v59, %v4066_v25  ;;  %v5301_v3 = vpop.eup %5300  ;;  %vm4073_vm13 = vweird.f32 %v5299_v59  ;;  %v4076_v5 = vand.u32 2147483647, %v4066_v25  ;;  %v11577_v25 = vld [vmem:[#allocation189_spill] sm:$0xff] }
 0x902   :  { %v4036_v58 = vsel %vm4035_vm9, %v5295_v0, %v4032_v33  ;;  %vm4074_vm15 = vmor %vm4072_vm14, %vm4073_vm13  ;;  %v11578_v33 = vld [vmem:[#allocation25_spill] sm:$0xff] }
 0x903   :  { %v4041_v49 = vsel %vm4038_vm11, %v4040_v26, %v4036_v58  ;;  %v4055_v6 = vsel %vm4054_vm10, %v5297_v39, %v4051_v17  ;;  %v4069_v54 = vsub.f32 1.0, %v4068_v18  ;;  %vm4077_vm0 = vcmp.eq.f32.partialorder %v4076_v5, 8.507059e+37  ;;  %v11579_v26 = vld [vmem:[#allocation34_spill] sm:$0xff]  ;;  %v11580_v17 = vld [vmem:[#allocation68_spill] sm:$0xff]  ;;  %v11581_v18 = vld [vmem:[#allocation65_spill] sm:$0xff] }
 0x904   :  { %v4060_v4 = vsel %vm4057_vm12, %v4059_v38, %v4055_v6  ;;  %v4083_v14 = vmul.f32 %v5301_v3, %v4041_v49  ;;  %v11576_v49 = vld [vmem:[#allocation188_spill] sm:$0xff]  ;;  %v11582_v38 = vld [vmem:[#allocation109_spill] sm:$0xff]  ;;  %v11584_v3 = vld [vmem:[#allocation46_spill] sm:$0xff] }
 0x905   :  { %v4082_v30 = vmul.f32 %v4060_v4, %v9894_v60  ;;  %v4070_v36 = vmul.f32 %v5299_v59, %v4069_v54  ;;  %v11571_v60 = vld [vmem:[#allocation183_spill] sm:$0xff]  ;;  %v11574_v54 = vld [vmem:[#allocation186_spill] sm:$0xff]  ;;  %v11583_v58 = vld [vmem:[#allocation48_spill] sm:$0xff] }
 0x906   :  { %v11585_v6 = vld [vmem:[#allocation73_spill] sm:$0xff]  ;;  %v11586_v4 = vld [vmem:[#allocation44_spill] sm:$0xff]  ;;  %v11590_v5 = vld [vmem:[#allocation26_spill] sm:$0xff] }
 0x907   :  { %v9980_v41 = vadd.f32 %v4083_v14, %v4082_v30  ;;  %v4071_v44 = vadd.f32 %v5299_v59, %v4070_v36  ;;  %v11572_v30 = vld [vmem:[#allocation184_spill] sm:$0xff]  ;;  %v11573_v14 = vld [vmem:[#allocation185_spill] sm:$0xff] }
 0x908   :  { %v11587_v36 = vld [vmem:[#allocation52_spill] sm:$0xff] }
 0x909   :  { %5302 = vtanh.f32 %v9980_v41  ;;  %v4075_v0 = vsel %vm4074_vm15, %v5299_v59, %v4071_v44  ;;  %v11575_v59 = vld [vmem:[#allocation187_spill] sm:$0xff]  ;;  %v11588_v44 = vld [vmem:[#allocation28_spill] sm:$0xff] }
 0x90a   :  { %v4080_v39 = vsel %vm4077_vm0, %v4079_v42, %v4075_v0  ;;  %v11591_v0 = vld [vmem:[#allocation76_spill] sm:$0xff]  ;;  %v11592_v42 = vld [vmem:[#allocation105_spill] sm:$0xff] }
 0x90f   :  { %v5303_v50 = vpop.eup %5302 }
 0x910   :  { %v9983_v40 = vmul.f32 %v5303_v50, %v4080_v39  ;;  %v11593_v50 = vld [vmem:[#allocation41_spill] sm:$0xff]  ;;  %v11594_v39 = vld [vmem:[#allocation83_spill] sm:$0xff] }
 0x912   :  { %11570 = vst [vmem:[#allocation54_spill] sm:$0xff] %v9983_v40  ;;  %4108 = vmatmul.f32.vlgmr.msra.gmra.mxu0 %v9983_v40  ;;  %4128 = vmatmul.f32.vlgmr.msra.gmra.mxu1 %v9983_v40 }
 0x913   :  { %4148 = vmatmul.f32.vlgmr.msra.gmra.mxu2 %v9983_v40  ;;  %4168 = vmatmul.f32.vlgmr.msra.gmra.mxu3 %v9983_v40  ;;  %v11595_v40 = vld [vmem:[#allocation47_spill] sm:$0xff] }
 0x914   :  { %4396 = vmatpush.msra.mxu0 %v9697_v16  ;;  %4416 = vmatpush.msra.mxu1 %v9700_v11 }
 0x915   :  { %4436 = vmatpush.msra.mxu2 %v9703_v45  ;;  %4456 = vmatpush.msra.mxu3 %v9706_v28 }
 0x916   :  { %4397 = vmatpush.msra.mxu0 %v9709_v53  ;;  %4417 = vmatpush.msra.mxu1 %v9712_v48 }
 0x917   :  { %4437 = vmatpush.msra.mxu2 %v9715_v8  ;;  %4457 = vmatpush.msra.mxu3 %v9718_v61 }
 0x918   :  { %4398 = vmatpush.msra.mxu0 %v9721_v1  ;;  %4418 = vmatpush.msra.mxu1 %v9724_v23 }
 0x919   :  { %4438 = vmatpush.msra.mxu2 %v9727_v20  ;;  %4458 = vmatpush.msra.mxu3 %v9730_v46 }
 0x91a   :  { %4399 = vmatpush.msra.mxu0 %v9733_v43  ;;  %4419 = vmatpush.msra.mxu1 %v9736_v13 }
 0x91b   :  { %4439 = vmatpush.msra.mxu2 %v9739_v52  ;;  %4459 = vmatpush.msra.mxu3 %v9742_v19 }
 0x91c   :  { %4400 = vmatpush.msra.mxu0 %v9745_v21  ;;  %4420 = vmatpush.msra.mxu1 %v9748_v57 }
 0x91d   :  { %4440 = vmatpush.msra.mxu2 %v9751_v22  ;;  %4460 = vmatpush.msra.mxu3 %v9754_v10 }
 0x91e   :  { %4401 = vmatpush.msra.mxu0 %v9757_v12  ;;  %4421 = vmatpush.msra.mxu1 %v9760_v27 }
 0x91f   :  { %4441 = vmatpush.msra.mxu2 %v9763_v31  ;;  %4461 = vmatpush.msra.mxu3 %v9766_v2 }
 0x920   :  { %4402 = vmatpush.msra.mxu0 %v9769_v34  ;;  %4422 = vmatpush.msra.mxu1 %v9772_v35 }
 0x921   :  { %4442 = vmatpush.msra.mxu2 %v9775_v15  ;;  %4462 = vmatpush.msra.mxu3 %v9778_v29 }
 0x922   :  { %4403 = vmatpush.msra.mxu0 %v9781_v55  ;;  %4423 = vmatpush.msra.mxu1 %v9784_v32 }
 0x923   :  { %4443 = vmatpush.msra.mxu2 %v9787_v7  ;;  %4463 = vmatpush.msra.mxu3 %v9790_v47 }
 0x924   :  { %4404 = vmatpush.msra.mxu0 %v9793_v37  ;;  %4424 = vmatpush.msra.mxu1 %v9796_v63 }
 0x925   :  { %4444 = vmatpush.msra.mxu2 %v9799_v24  ;;  %4464 = vmatpush.msra.mxu3 %v9802_v51 }
 0x926   :  { %4405 = vmatpush.msra.mxu0 %v9805_v62  ;;  %4425 = vmatpush.msra.mxu1 %v9808_v56 }
 0x927   :  { %4445 = vmatpush.msra.mxu2 %v11571_v60  ;;  %4465 = vmatpush.msra.mxu3 %v11572_v30 }
 0x928   :  { %4406 = vmatpush.msra.mxu0 %v11573_v14  ;;  %4426 = vmatpush.msra.mxu1 %v11574_v54 }
 0x929   :  { %4446 = vmatpush.msra.mxu2 %v11575_v59  ;;  %4466 = vmatpush.msra.mxu3 %v11576_v49 }
 0x92a   :  { %4407 = vmatpush.msra.mxu0 %v11577_v25  ;;  %4427 = vmatpush.msra.mxu1 %v11578_v33 }
 0x92b   :  { %4447 = vmatpush.msra.mxu2 %v11579_v26  ;;  %4467 = vmatpush.msra.mxu3 %v11580_v17  ;;  %v11602_v26 = vld [vmem:[#allocation84_spill] sm:$0xff] }
 0x92c   :  { %4408 = vmatpush.msra.mxu0 %v11581_v18  ;;  %4428 = vmatpush.msra.mxu1 %v11582_v38 }
 0x92d   :  { %4448 = vmatpush.msra.mxu2 %v11583_v58  ;;  %4468 = vmatpush.msra.mxu3 %v11584_v3  ;;  %v11600_v58 = vld [vmem:[#allocation82_spill] sm:$0xff] }
 0x92e   :  { %4409 = vmatpush.msra.mxu0 %v11585_v6  ;;  %4429 = vmatpush.msra.mxu1 %v11586_v4  ;;  %v11596_v6 = vld [vmem:[#allocation55_spill] sm:$0xff]  ;;  %v11597_v4 = vld [vmem:[#allocation96_spill] sm:$0xff] }
 0x92f   :  { %4449 = vmatpush.msra.mxu2 %v11587_v36  ;;  %4469 = vmatpush.msra.mxu3 %v11588_v44  ;;  %v11598_v36 = vld [vmem:[#allocation59_spill] sm:$0xff]  ;;  %v11599_v44 = vld [vmem:[#allocation81_spill] sm:$0xff] }
 0x930   :  { %4410 = vmatpush.msra.mxu0 %v11589_v9  ;;  %4430 = vmatpush.msra.mxu1 %v11590_v5  ;;  %v704_v3 = vadd.f32 %v11598_v36, %v11597_v4  ;;  %v745_v9 = vadd.f32 %v11600_v58, %v11599_v44 }
 0x931   :  { %4450 = vmatpush.msra.mxu2 %v11591_v0  ;;  %4470 = vmatpush.msra.mxu3 %v11592_v42 }
 0x932   :  { %4411 = vmatpush.msra.mxu0 %v11593_v50  ;;  %4431 = vmatpush.msra.mxu1 %v11594_v39  ;;  %v11601_v50 = vld [vmem:[#allocation35_spill] sm:$0xff] }
 0x933   :  { %4451 = vmatpush.msra.mxu2 %v11595_v40  ;;  %4471 = vmatpush.msra.mxu3 %v11596_v6  ;;  %v827_v39 = vadd.f32 %v11602_v26, %v11601_v50 }
 0x98f   :  { %v4109_v38 = vpop.f32.mrf.mxu0  ;;  %v4129_v5 = vpop.f32.mrf.mxu1 }
 0x990   :  { %v4172_v18 = vadd.f32 %v4109_v38, %v704_v3  ;;  %v4173_v0 = vadd.f32 %v4129_v5, %v745_v9  ;;  %v11603_v3 = vld [vmem:[#allocation102_spill] sm:$0xff] }
 0x992   :  { %v4951_v17 = vmul.f32 -1.442695, %v4172_v18  ;;  %v4952_v42 = vmul.f32 -1.442695, %v4173_v0  ;;  %v11604_v18 = vld [vmem:[#allocation85_spill] sm:$0xff] }
 0x993   :  { %v786_v9 = vadd.f32 %v11604_v18, %v11603_v3 }
 0x994   :  { %5304 = vpow2.f32 %v4951_v17 }
 0x995   :  { %5306 = vpow2.f32 %v4952_v42 }
 0x996   :  { %v4169_v40 = vpop.f32.mrf.mxu3  ;;  %v4149_v58 = vpop.f32.mrf.mxu2 }
 0x997   :  { %v4175_v33 = vadd.f32 %v4169_v40, %v827_v39  ;;  %v4174_v0 = vadd.f32 %v4149_v58, %v786_v9 }
 0x999   :  { %v4953_v6 = vmul.f32 -1.442695, %v4175_v33 }
 0x99a   :  { %v5305_v25 = vpop.eup %5304 }
 0x99b   :  { %v5307_v49 = vpop.eup %5306  ;;  %v4179_v36 = vadd.f32 1.0, %v5305_v25  ;;  %5308 = vpow2.f32 %v4953_v6 }
 0x99c   :  { %v4198_v4 = vadd.f32 1.0, %v5307_v49 }
 0x99d   :  { %5310 = vrcp.f32 %v4179_v36  ;;  %v4191_v50 = vand.u32 2147483648, %v4179_v36  ;;  %v4189_v6 = vand.u32 2147483647, %v4179_v36  ;;  %vm4185_vm3 = vweird.f32 %v4179_v36 }
 0x99e   :  { %5312 = vrcp.f32 %v4198_v4  ;;  %v4210_v25 = vand.u32 2147483648, %v4198_v4  ;;  %v4208_v59 = vand.u32 2147483647, %v4198_v4  ;;  %vm4204_vm4 = vweird.f32 %v4198_v4 }
 0x99f   :  { %v4192_v58 = vor.u32 1.1754944e-38, %v4191_v50  ;;  %vm4190_vm7 = vcmp.eq.f32.partialorder %v4189_v6, 8.507059e+37 }
 0x9a0   :  { %vm4209_vm8 = vcmp.eq.f32.partialorder %v4208_v59, 8.507059e+37 }
 0x9a1   :  { %v5309_v38 = vpop.eup %5308 }
 0x9a2   :  { %v4218_v17 = vadd.f32 1.0, %v5309_v38 }
 0x9a3   :  { %v5311_v5 = vpop.eup %5310 }
 0x9a4   :  { %v5313_v26 = vpop.eup %5312  ;;  %v4181_v42 = vmul.f32 %v5311_v5, %v4179_v36  ;;  %5314 = vrcp.f32 %v4218_v17  ;;  %vm4186_vm1 = vweird.f32 %v5311_v5  ;;  %vm4224_vm10 = vweird.f32 %v4218_v17 }
 0x9a5   :  { %v4200_v40 = vmul.f32 %v5313_v26, %v4198_v4  ;;  %5316 = vtanh.f32 %v4174_v0  ;;  %vm4205_vm2 = vweird.f32 %v5313_v26  ;;  %vm4187_vm5 = vmor %vm4185_vm3, %vm4186_vm1  ;;  %v4228_v50 = vand.u32 2147483647, %v4218_v17 }
 0x9a6   :  { %v4182_v33 = vsub.f32 1.0, %v4181_v42  ;;  %vm4206_vm6 = vmor %vm4204_vm4, %vm4205_vm2  ;;  %v4211_v42 = vor.u32 1.1754944e-38, %v4210_v25 }
 0x9a7   :  { %v4201_v39 = vsub.f32 1.0, %v4200_v40  ;;  %vm4229_vm12 = vcmp.eq.f32.partialorder %v4228_v50, 8.507059e+37 }
 0x9a8   :  { %v4183_v49 = vmul.f32 %v5311_v5, %v4182_v33 }
 0x9a9   :  { %v4202_v44 = vmul.f32 %v5313_v26, %v4201_v39 }
 0x9aa   :  { %v5315_v54 = vpop.eup %5314  ;;  %v4184_v18 = vadd.f32 %v5311_v5, %v4183_v49 }
 0x9ab   :  { %v4203_v38 = vadd.f32 %v5313_v26, %v4202_v44  ;;  %v4220_v9 = vmul.f32 %v5315_v54, %v4218_v17  ;;  %v5317_v0 = vpop.eup %5316  ;;  %vm4225_vm9 = vweird.f32 %v5315_v54  ;;  %v4230_v44 = vand.u32 2147483648, %v4218_v17 }
 0x9ac   :  { %v4188_v40 = vsel %vm4187_vm5, %v5311_v5, %v4184_v18  ;;  %vm4226_vm11 = vmor %vm4224_vm10, %vm4225_vm9 }
 0x9ad   :  { %v4193_v3 = vsel %vm4190_vm7, %v4192_v58, %v4188_v40  ;;  %v4207_v33 = vsel %vm4206_vm6, %v5313_v26, %v4203_v38  ;;  %v4221_v14 = vsub.f32 1.0, %v4220_v9  ;;  %v4231_v25 = vor.u32 1.1754944e-38, %v4230_v44  ;;  %v11637_v40 = vld [vmem:[#allocation102_spill] sm:$0xff] }
 0x9ae   :  { %v4212_v39 = vsel %vm4209_vm8, %v4211_v42, %v4207_v33  ;;  %v4235_v30 = vmul.f32 %v5317_v0, %v4193_v3  ;;  %v11638_v0 = vld [vmem:[#allocation94_spill] sm:$0xff] }
 0x9af   :  { %v4234_v60 = vmul.f32 %v4212_v39, %v9980_v41  ;;  %v4222_v49 = vmul.f32 %v5315_v54, %v4221_v14  ;;  %v11635_v41 = vld [vmem:[#allocation35_spill] sm:$0xff]  ;;  %v789_v33 = vadd.f32 %v11638_v0, %v11637_v40  ;;  %v11641_v0 = vld [vmem:[#allocation89_spill] sm:$0xff] }
 0x9b1   :  { %v10062_v36 = vadd.f32 %v4235_v30, %v4234_v60  ;;  %v4223_v4 = vadd.f32 %v5315_v54, %v4222_v49  ;;  %v11636_v60 = vld [vmem:[#allocation90_spill] sm:$0xff] }
 0x9b2   :  { %v830_v30 = vadd.f32 %v11636_v60, %v11635_v41 }
 0x9b3   :  { %5318 = vtanh.f32 %v10062_v36  ;;  %v4227_v5 = vsel %vm4226_vm11, %v5315_v54, %v4223_v4 }
 0x9b4   :  { %v4232_v26 = vsel %vm4229_vm12, %v4231_v25, %v4227_v5 }
 0x9b9   :  { %v5319_v59 = vpop.eup %5318 }
 0x9ba   :  { %v10065_v6 = vmul.f32 %v5319_v59, %v4232_v26 }
 0x9bc   :  { %4260 = vmatmul.f32.vlgmr.msrb.gmra.mxu0 %v10065_v6  ;;  %4280 = vmatmul.f32.vlgmr.msrb.gmra.mxu1 %v10065_v6 }
 0x9bd   :  { %4300 = vmatmul.f32.vlgmr.msrb.gmra.mxu2 %v10065_v6  ;;  %4320 = vmatmul.f32.vlgmr.msrb.gmra.mxu3 %v10065_v6 }
 0x9be   :  { %4548 = vmatpush.msrb.mxu0 %v9697_v16  ;;  %4568 = vmatpush.msrb.mxu1 %v9700_v11  ;;  %v11605_v16 = vld [vmem:[#allocation183_spill] sm:$0xff]  ;;  %v11606_v11 = vld [vmem:[#allocation184_spill] sm:$0xff] }
 0x9bf   :  { %4588 = vmatpush.msrb.mxu2 %v9703_v45  ;;  %4608 = vmatpush.msrb.mxu3 %v9706_v28  ;;  %v11607_v45 = vld [vmem:[#allocation185_spill] sm:$0xff]  ;;  %v11608_v28 = vld [vmem:[#allocation186_spill] sm:$0xff] }
 0x9c0   :  { %4549 = vmatpush.msrb.mxu0 %v9709_v53  ;;  %4569 = vmatpush.msrb.mxu1 %v9712_v48  ;;  %v11609_v53 = vld [vmem:[#allocation187_spill] sm:$0xff]  ;;  %v11610_v48 = vld [vmem:[#allocation188_spill] sm:$0xff] }
 0x9c1   :  { %4589 = vmatpush.msrb.mxu2 %v9715_v8  ;;  %4609 = vmatpush.msrb.mxu3 %v9718_v61  ;;  %v11611_v8 = vld [vmem:[#allocation189_spill] sm:$0xff] }
 0x9c2   :  { %4550 = vmatpush.msrb.mxu0 %v9721_v1  ;;  %4570 = vmatpush.msrb.mxu1 %v9724_v23  ;;  %v11612_v61 = vld [vmem:[#allocation25_spill] sm:$0xff]  ;;  %v11613_v1 = vld [vmem:[#allocation34_spill] sm:$0xff]  ;;  %v11614_v23 = vld [vmem:[#allocation68_spill] sm:$0xff] }
 0x9c3   :  { %4590 = vmatpush.msrb.mxu2 %v9727_v20  ;;  %4610 = vmatpush.msrb.mxu3 %v9730_v46  ;;  %v11615_v20 = vld [vmem:[#allocation65_spill] sm:$0xff] }
 0x9c4   :  { %4551 = vmatpush.msrb.mxu0 %v9733_v43  ;;  %4571 = vmatpush.msrb.mxu1 %v9736_v13  ;;  %v11616_v46 = vld [vmem:[#allocation109_spill] sm:$0xff]  ;;  %v11617_v43 = vld [vmem:[#allocation48_spill] sm:$0xff]  ;;  %v11618_v13 = vld [vmem:[#allocation46_spill] sm:$0xff] }
 0x9c5   :  { %4591 = vmatpush.msrb.mxu2 %v9739_v52  ;;  %4611 = vmatpush.msrb.mxu3 %v9742_v19  ;;  %v11619_v52 = vld [vmem:[#allocation73_spill] sm:$0xff]  ;;  %v11620_v19 = vld [vmem:[#allocation44_spill] sm:$0xff] }
 0x9c6   :  { %4552 = vmatpush.msrb.mxu0 %v9745_v21  ;;  %4572 = vmatpush.msrb.mxu1 %v9748_v57  ;;  %v11621_v21 = vld [vmem:[#allocation52_spill] sm:$0xff] }
 0x9c7   :  { %4592 = vmatpush.msrb.mxu2 %v9751_v22  ;;  %4612 = vmatpush.msrb.mxu3 %v9754_v10  ;;  %v11622_v57 = vld [vmem:[#allocation28_spill] sm:$0xff]  ;;  %v11623_v22 = vld [vmem:[#allocation78_spill] sm:$0xff] }
 0x9c8   :  { %4553 = vmatpush.msrb.mxu0 %v9757_v12  ;;  %4573 = vmatpush.msrb.mxu1 %v9760_v27  ;;  %v11624_v10 = vld [vmem:[#allocation26_spill] sm:$0xff]  ;;  %v11625_v12 = vld [vmem:[#allocation76_spill] sm:$0xff]  ;;  %v11626_v27 = vld [vmem:[#allocation105_spill] sm:$0xff] }
 0x9c9   :  { %4593 = vmatpush.msrb.mxu2 %v9763_v31  ;;  %4613 = vmatpush.msrb.mxu3 %v9766_v2  ;;  %v11627_v31 = vld [vmem:[#allocation41_spill] sm:$0xff]  ;;  %v11628_v2 = vld [vmem:[#allocation83_spill] sm:$0xff] }
 0x9ca   :  { %4554 = vmatpush.msrb.mxu0 %v9769_v34  ;;  %4574 = vmatpush.msrb.mxu1 %v9772_v35  ;;  %v11629_v34 = vld [vmem:[#allocation47_spill] sm:$0xff] }
 0x9cb   :  { %4594 = vmatpush.msrb.mxu2 %v9775_v15  ;;  %4614 = vmatpush.msrb.mxu3 %v9778_v29  ;;  %v11630_v35 = vld [vmem:[#allocation55_spill] sm:$0xff]  ;;  %v11631_v15 = vld [vmem:[#allocation96_spill] sm:$0xff]  ;;  %v11632_v29 = vld [vmem:[#allocation62_spill] sm:$0xff] }
 0x9cc   :  { %4555 = vmatpush.msrb.mxu0 %v9781_v55  ;;  %4575 = vmatpush.msrb.mxu1 %v9784_v32  ;;  %v707_v55 = vadd.f32 %v11632_v29, %v11631_v15  ;;  %v11633_v32 = vld [vmem:[#allocation81_spill] sm:$0xff] }
 0x9cd   :  { %4595 = vmatpush.msrb.mxu2 %v9787_v7  ;;  %4615 = vmatpush.msrb.mxu3 %v9790_v47  ;;  %v11634_v7 = vld [vmem:[#allocation87_spill] sm:$0xff] }
 0x9ce   :  { %4556 = vmatpush.msrb.mxu0 %v9793_v37  ;;  %4576 = vmatpush.msrb.mxu1 %v9796_v63  ;;  %v748_v47 = vadd.f32 %v11634_v7, %v11633_v32 }
 0x9cf   :  { %4596 = vmatpush.msrb.mxu2 %v9799_v24  ;;  %4616 = vmatpush.msrb.mxu3 %v9802_v51 }
 0x9d0   :  { %4557 = vmatpush.msrb.mxu0 %v9805_v62  ;;  %4577 = vmatpush.msrb.mxu1 %v9808_v56 }
 0x9d1   :  { %4597 = vmatpush.msrb.mxu2 %v11605_v16  ;;  %4617 = vmatpush.msrb.mxu3 %v11606_v11 }
 0x9d2   :  { %4558 = vmatpush.msrb.mxu0 %v11607_v45  ;;  %4578 = vmatpush.msrb.mxu1 %v11608_v28 }
 0x9d3   :  { %4598 = vmatpush.msrb.mxu2 %v11609_v53  ;;  %4618 = vmatpush.msrb.mxu3 %v11610_v48 }
 0x9d4   :  { %4559 = vmatpush.msrb.mxu0 %v11611_v8  ;;  %4579 = vmatpush.msrb.mxu1 %v11612_v61 }
 0x9d5   :  { %4599 = vmatpush.msrb.mxu2 %v11613_v1  ;;  %4619 = vmatpush.msrb.mxu3 %v11614_v23 }
 0x9d6   :  { %4560 = vmatpush.msrb.mxu0 %v11615_v20  ;;  %4580 = vmatpush.msrb.mxu1 %v11616_v46 }
 0x9d7   :  { %4600 = vmatpush.msrb.mxu2 %v11617_v43  ;;  %4620 = vmatpush.msrb.mxu3 %v11618_v13 }
 0x9d8   :  { %4561 = vmatpush.msrb.mxu0 %v11619_v52  ;;  %4581 = vmatpush.msrb.mxu1 %v11620_v19 }
 0x9d9   :  { %4601 = vmatpush.msrb.mxu2 %v11621_v21  ;;  %4621 = vmatpush.msrb.mxu3 %v11622_v57 }
 0x9da   :  { %4562 = vmatpush.msrb.mxu0 %v11623_v22  ;;  %4582 = vmatpush.msrb.mxu1 %v11624_v10 }
 0x9db   :  { %4602 = vmatpush.msrb.mxu2 %v11625_v12  ;;  %4622 = vmatpush.msrb.mxu3 %v11626_v27 }
 0x9dc   :  { %4563 = vmatpush.msrb.mxu0 %v11627_v31  ;;  %4583 = vmatpush.msrb.mxu1 %v11628_v2 }
 0x9dd   :  { %4603 = vmatpush.msrb.mxu2 %v11629_v34  ;;  %4623 = vmatpush.msrb.mxu3 %v11630_v35 }
 0xa39   :  { %v4261_v37 = vpop.f32.mrf.mxu0  ;;  %v4281_v63 = vpop.f32.mrf.mxu1 }
 0xa3a   :  { %v4324_v24 = vadd.f32 %v4261_v37, %v707_v55  ;;  %v4325_v51 = vadd.f32 %v4281_v63, %v748_v47  ;;  %v4718_v47 = vld [vmem:[#allocation15 + $0x70] sm:$0xff]  ;;  %v4717_v37 = vld [vmem:[#allocation15 + $0x68] sm:$0xff]  ;;  %v4716_v63 = vld [vmem:[#allocation15 + $0x60] sm:$0xff] }
 0xa3c   :  { %v4954_v62 = vmul.f32 -1.442695, %v4324_v24  ;;  %v4955_v56 = vmul.f32 -1.442695, %v4325_v51  ;;  %v4715_v24 = vld [vmem:[#allocation15 + $0x58] sm:$0xff]  ;;  %v11639_v51 = vld [vmem:[#allocation72_spill] sm:$0xff] }
 0xa3e   :  { %5320 = vpow2.f32 %v4954_v62  ;;  %v710_v62 = vadd.f32 %v11639_v51, %v11631_v15 }
 0xa3f   :  { %5322 = vpow2.f32 %v4955_v56  ;;  %v11640_v56 = vld [vmem:[#allocation92_spill] sm:$0xff] }
 0xa40   :  { %v4321_v14 = vpop.f32.mrf.mxu3  ;;  %v4301_v9 = vpop.f32.mrf.mxu2  ;;  %v751_v60 = vadd.f32 %v11640_v56, %v11633_v32 }
 0xa41   :  { %v4327_v54 = vadd.f32 %v4321_v14, %v830_v30  ;;  %v4326_v4 = vadd.f32 %v4301_v9, %v789_v33  ;;  %v4712_v9 = vld [vmem:[#allocation15 + $0x40] sm:$0xff]  ;;  %v833_v33 = vadd.f32 %v11641_v0, %v11635_v41 }
 0xa43   :  { %v4956_v3 = vmul.f32 -1.442695, %v4327_v54  ;;  %v4714_v54 = vld [vmem:[#allocation15 + $0x50] sm:$0xff] }
 0xa44   :  { %v5321_v17 = vpop.eup %5320 }
 0xa45   :  { %v5323_v18 = vpop.eup %5322  ;;  %v4331_v58 = vadd.f32 1.0, %v5321_v17  ;;  %5324 = vpow2.f32 %v4956_v3 }
 0xa46   :  { %v4350_v38 = vadd.f32 1.0, %v5323_v18  ;;  %v4713_v18 = vld [vmem:[#allocation15 + $0x48] sm:$0xff] }
 0xa47   :  { %5326 = vrcp.f32 %v4331_v58  ;;  %v4343_v26 = vand.u32 2147483648, %v4331_v58  ;;  %v4341_v45 = vand.u32 2147483647, %v4331_v58  ;;  %vm4337_vm15 = vweird.f32 %v4331_v58 }
 0xa48   :  { %5328 = vrcp.f32 %v4350_v38  ;;  %v4362_v16 = vand.u32 2147483648, %v4350_v38  ;;  %v4360_v53 = vand.u32 2147483647, %v4350_v38  ;;  %vm4356_vm0 = vweird.f32 %v4350_v38 }
 0xa49   :  { %v4344_v61 = vor.u32 1.1754944e-38, %v4343_v26  ;;  %vm4342_vm3 = vcmp.eq.f32.partialorder %v4341_v45, 8.507059e+37  ;;  %v4706_v45 = vld [vmem:[#allocation15 + $0x10] sm:$0xff] }
 0xa4a   :  { %v4363_v20 = vor.u32 1.1754944e-38, %v4362_v16  ;;  %vm4361_vm4 = vcmp.eq.f32.partialorder %v4360_v53, 8.507059e+37 }
 0xa4b   :  { %v5325_v42 = vpop.eup %5324 }
 0xa4c   :  { %v4370_v39 = vadd.f32 1.0, %v5325_v42  ;;  %v4711_v42 = vld [vmem:[#allocation15 + $0x38] sm:$0xff] }
 0xa4d   :  { %v5327_v49 = vpop.eup %5326 }
 0xa4e   :  { %v5329_v44 = vpop.eup %5328  ;;  %v4333_v50 = vmul.f32 %v5327_v49, %v4331_v58  ;;  %5330 = vrcp.f32 %v4370_v39  ;;  %vm4338_vm13 = vweird.f32 %v5327_v49  ;;  %v4382_v31 = vand.u32 2147483648, %v4370_v39 }
 0xa4f   :  { %v4352_v5 = vmul.f32 %v5329_v44, %v4350_v38  ;;  %5332 = vtanh.f32 %v4326_v4  ;;  %vm4357_vm14 = vweird.f32 %v5329_v44  ;;  %vm4339_vm1 = vmor %vm4337_vm15, %vm4338_vm13  ;;  %vm4376_vm6 = vweird.f32 %v4370_v39 }
 0xa50   :  { %v4334_v25 = vsub.f32 1.0, %v4333_v50  ;;  %vm4358_vm2 = vmor %vm4356_vm0, %vm4357_vm14  ;;  %v4380_v2 = vand.u32 2147483647, %v4370_v39  ;;  %v4383_v35 = vor.u32 1.1754944e-38, %v4382_v31 }
 0xa51   :  { %v4353_v59 = vsub.f32 1.0, %v4352_v5  ;;  %v4708_v5 = vld [vmem:[#allocation15 + $0x20] sm:$0xff] }
 0xa52   :  { %v4335_v11 = vmul.f32 %v5327_v49, %v4334_v25  ;;  %vm4381_vm8 = vcmp.eq.f32.partialorder %v4380_v2, 8.507059e+37 }
 0xa53   :  { %v4354_v28 = vmul.f32 %v5329_v44, %v4353_v59 }
 0xa54   :  { %v5331_v48 = vpop.eup %5330  ;;  %v4336_v8 = vadd.f32 %v5327_v49, %v4335_v11  ;;  %v4707_v11 = vld [vmem:[#allocation15 + $0x18] sm:$0xff] }
 0xa55   :  { %v4355_v1 = vadd.f32 %v5329_v44, %v4354_v28  ;;  %v4372_v23 = vmul.f32 %v5331_v48, %v4370_v39  ;;  %v5333_v43 = vpop.eup %5332  ;;  %vm4377_vm5 = vweird.f32 %v5331_v48  ;;  %v4710_v39 = vld [vmem:[#allocation15 + $0x30] sm:$0xff]  ;;  %v4705_v28 = vld [vmem:[#allocation15 + $0x8] sm:$0xff] }
 0xa56   :  { %v4340_v46 = vsel %vm4339_vm1, %v5327_v49, %v4336_v8  ;;  %vm4378_vm7 = vmor %vm4376_vm6, %vm4377_vm5  ;;  %v11642_v8 = vld [vmem:[#allocation101_spill] sm:$0xff] }
 0xa57   :  { %v4345_v13 = vsel %vm4342_vm3, %v4344_v61, %v4340_v46  ;;  %v4359_v52 = vsel %vm4358_vm2, %v5329_v44, %v4355_v1  ;;  %v4373_v19 = vsub.f32 1.0, %v4372_v23  ;;  %v4709_v44 = vld [vmem:[#allocation15 + $0x28] sm:$0xff]  ;;  %v792_v61 = vadd.f32 %v11642_v8, %v11637_v40  ;;  %v4704_v1 = vld [vmem:[#allocation15] sm:$0xff] }
 0xa58   :  { %v4364_v21 = vsel %vm4361_vm4, %v4363_v20, %v4359_v52  ;;  %v4387_v57 = vmul.f32 %v5333_v43, %v4345_v13 }
 0xa59   :  { %v4386_v22 = vmul.f32 %v4364_v21, %v10062_v36  ;;  %v4374_v10 = vmul.f32 %v5331_v48, %v4373_v19  ;;  %v4719_v36 = vld [vmem:[#allocation15 + $0x78] sm:$0xff] }
 0xa5b   :  { %v10144_v12 = vadd.f32 %v4387_v57, %v4386_v22  ;;  %v4375_v27 = vadd.f32 %v5331_v48, %v4374_v10 }
 0xa5d   :  { %5334 = vtanh.f32 %v10144_v12  ;;  %v4379_v34 = vsel %vm4378_vm7, %v5331_v48, %v4375_v27 }
 0xa5e   :  { %v4384_v55 = vsel %vm4381_vm8, %v4383_v35, %v4379_v34 }
 0xa63   :  { %v5335_v29 = vpop.eup %5334 }
 0xa64   :  { %v10147_v7 = vmul.f32 %v5335_v29, %v4384_v55 }
 0xa66   :  { %4412 = vmatmul.f32.vlgmr.msra.gmra.mxu0 %v10147_v7  ;;  %4432 = vmatmul.f32.vlgmr.msra.gmra.mxu1 %v10147_v7 }
 0xa67   :  { %4452 = vmatmul.f32.vlgmr.msra.gmra.mxu2 %v10147_v7  ;;  %4472 = vmatmul.f32.vlgmr.msra.gmra.mxu3 %v10147_v7 }
 0xa68   :  { %4724 = vmatpush.msra.mxu0 %v4719_v36 }
 0xa6a   :  { %4725 = vmatpush.msra.mxu0 %v4718_v47 }
 0xa6c   :  { %4726 = vmatpush.msra.mxu0 %v4717_v37 }
 0xa6e   :  { %4727 = vmatpush.msra.mxu0 %v4716_v63 }
 0xa70   :  { %4728 = vmatpush.msra.mxu0 %v4715_v24 }
 0xa72   :  { %4729 = vmatpush.msra.mxu0 %v4714_v54 }
 0xa74   :  { %4730 = vmatpush.msra.mxu0 %v4713_v18 }
 0xa76   :  { %4731 = vmatpush.msra.mxu0 %v4712_v9 }
 0xa78   :  { %4732 = vmatpush.msra.mxu0 %v4711_v42 }
 0xa7a   :  { %4733 = vmatpush.msra.mxu0 %v4710_v39  ;;  %v11645_v39 = vld [vmem:[#allocation40_spill] sm:$0xff] }
 0xa7c   :  { %4734 = vmatpush.msra.mxu0 %v4709_v44 }
 0xa7e   :  { %4735 = vmatpush.msra.mxu0 %v4708_v5 }
 0xa80   :  { %4736 = vmatpush.msra.mxu0 %v4707_v11 }
 0xa82   :  { %4737 = vmatpush.msra.mxu0 %v4706_v45 }
 0xa84   :  { %4738 = vmatpush.msra.mxu0 %v4705_v28 }
 0xa86   :  { %4739 = vmatpush.msra.mxu0 %v4704_v1 }
 0xae3   :  { %v4413_v30 = vpop.f32.mrf.mxu0  ;;  %v4433_v14 = vpop.f32.mrf.mxu1 }
 0xae4   :  { %v4476_v3 = vadd.f32 %v4413_v30, %v710_v62  ;;  %v4477_v17 = vadd.f32 %v4433_v14, %v751_v60 }
 0xae6   :  { %v4957_v58 = vmul.f32 -1.442695, %v4476_v3  ;;  %v4958_v38 = vmul.f32 -1.442695, %v4477_v17 }
 0xae8   :  { %5336 = vpow2.f32 %v4957_v58 }
 0xae9   :  { %5338 = vpow2.f32 %v4958_v38 }
 0xaea   :  { %v4473_v49 = vpop.f32.mrf.mxu3  ;;  %v4453_v53 = vpop.f32.mrf.mxu2 }
 0xaeb   :  { %v4479_v4 = vadd.f32 %v4473_v49, %v833_v33  ;;  %v4478_v46 = vadd.f32 %v4453_v53, %v792_v61  ;;  %v11644_v33 = vld [vmem:[#allocation31_spill] sm:$0xff]  ;;  %v11646_v49 = vld [vmem:[#allocation54_spill] sm:$0xff] }
 0xaed   :  { %v4959_v50 = vmul.f32 -1.442695, %v4479_v4  ;;  %v11647_v4 = vld [vmem:[#allocation80_spill] sm:$0xff] }
 0xaee   :  { %v5337_v25 = vpop.eup %5336  ;;  %v713_v44 = vadd.f32 %v11647_v4, %v11631_v15 }
 0xaef   :  { %v5339_v59 = vpop.eup %5338  ;;  %v4483_v26 = vadd.f32 1.0, %v5337_v25  ;;  %5340 = vpow2.f32 %v4959_v50  ;;  %v11648_v50 = vld [vmem:[#allocation99_spill] sm:$0xff] }
 0xaf0   :  { %v4502_v16 = vadd.f32 1.0, %v5339_v59  ;;  %v754_v5 = vadd.f32 %v11648_v50, %v11633_v32 }
 0xaf1   :  { %5342 = vrcp.f32 %v4483_v26  ;;  %v4495_v57 = vand.u32 2147483648, %v4483_v26  ;;  %v4493_v27 = vand.u32 2147483647, %v4483_v26  ;;  %vm4489_vm11 = vweird.f32 %v4483_v26 }
 0xaf2   :  { %5344 = vrcp.f32 %v4502_v16  ;;  %v4514_v22 = vand.u32 2147483648, %v4502_v16  ;;  %v4512_v2 = vand.u32 2147483647, %v4502_v16  ;;  %vm4508_vm12 = vweird.f32 %v4502_v16 }
 0xaf3   :  { %v4496_v29 = vor.u32 1.1754944e-38, %v4495_v57  ;;  %vm4494_vm15 = vcmp.eq.f32.partialorder %v4493_v27, 8.507059e+37 }
 0xaf4   :  { %v4515_v47 = vor.u32 1.1754944e-38, %v4514_v22  ;;  %vm4513_vm0 = vcmp.eq.f32.partialorder %v4512_v2, 8.507059e+37 }
 0xaf5   :  { %v5341_v48 = vpop.eup %5340 }
 0xaf6   :  { %v4522_v23 = vadd.f32 1.0, %v5341_v48 }
 0xaf7   :  { %v5343_v20 = vpop.eup %5342 }
 0xaf8   :  { %v5345_v43 = vpop.eup %5344  ;;  %v4485_v13 = vmul.f32 %v5343_v20, %v4483_v26  ;;  %5346 = vrcp.f32 %v4522_v23  ;;  %vm4490_vm9 = vweird.f32 %v5343_v20  ;;  %v4534_v17 = vand.u32 2147483648, %v4522_v23 }
 0xaf9   :  { %v4504_v52 = vmul.f32 %v5345_v43, %v4502_v16  ;;  %5348 = vtanh.f32 %v4478_v46  ;;  %vm4509_vm10 = vweird.f32 %v5345_v43  ;;  %vm4491_vm13 = vmor %vm4489_vm11, %vm4490_vm9  ;;  %vm4528_vm2 = vweird.f32 %v4522_v23 }
 0xafa   :  { %v4486_v19 = vsub.f32 1.0, %v4485_v13  ;;  %vm4510_vm14 = vmor %vm4508_vm12, %vm4509_vm10  ;;  %v4532_v18 = vand.u32 2147483647, %v4522_v23  ;;  %v4535_v38 = vor.u32 1.1754944e-38, %v4534_v17 }
 0xafb   :  { %v4505_v21 = vsub.f32 1.0, %v4504_v52  ;;  %v11650_v52 = vld [vmem:[#allocation43_spill] sm:$0xff] }
 0xafc   :  { %v4487_v10 = vmul.f32 %v5343_v20, %v4486_v19  ;;  %vm4533_vm4 = vcmp.eq.f32.partialorder %v4532_v18, 8.507059e+37  ;;  %v795_v19 = vadd.f32 %v11650_v52, %v11637_v40 }
 0xafd   :  { %v4506_v31 = vmul.f32 %v5345_v43, %v4505_v21 }
 0xafe   :  { %v5347_v34 = vpop.eup %5346  ;;  %v4488_v35 = vadd.f32 %v5343_v20, %v4487_v10 }
 0xaff   :  { %v4507_v55 = vadd.f32 %v5345_v43, %v4506_v31  ;;  %v4524_v36 = vmul.f32 %v5347_v34, %v4522_v23  ;;  %v5349_v63 = vpop.eup %5348  ;;  %vm4529_vm1 = vweird.f32 %v5347_v34 }
 0xb00   :  { %v4492_v37 = vsel %vm4491_vm13, %v5343_v20, %v4488_v35  ;;  %vm4530_vm3 = vmor %vm4528_vm2, %vm4529_vm1 }
 0xb01   :  { %v4497_v24 = vsel %vm4494_vm15, %v4496_v29, %v4492_v37  ;;  %v4511_v51 = vsel %vm4510_vm14, %v5345_v43, %v4507_v55  ;;  %v4525_v62 = vsub.f32 1.0, %v4524_v36 }
 0xb02   :  { %v4516_v56 = vsel %vm4513_vm0, %v4515_v47, %v4511_v51  ;;  %v4539_v60 = vmul.f32 %v5349_v63, %v4497_v24 }
 0xb03   :  { %v4538_v30 = vmul.f32 %v4516_v56, %v10144_v12  ;;  %v4526_v14 = vmul.f32 %v5347_v34, %v4525_v62  ;;  %v11643_v12 = vld [vmem:[#allocation29_spill] sm:$0xff] }
 0xb05   :  { %v10162_v54 = vadd.f32 %v4539_v60, %v4538_v30  ;;  %v4527_v3 = vadd.f32 %v5347_v34, %v4526_v14 }
 0xb07   :  { %5350 = vtanh.f32 %v10162_v54  ;;  %v4531_v58 = vsel %vm4530_vm3, %v5347_v34, %v4527_v3 }
 0xb08   :  { %v4536_v42 = vsel %vm4533_vm4, %v4535_v38, %v4531_v58 }
 0xb0d   :  { %v5351_v9 = vpop.eup %5350 }
 0xb0e   :  { %v4542_v0 = vmul.f32 %v5351_v9, %v4536_v42 }
 0xb10   :  { %4564 = vmatmul.f32.vlgmr.msrb.gmra.mxu0 %v4542_v0  ;;  %4584 = vmatmul.f32.vlgmr.msrb.gmra.mxu1 %v4542_v0 }
 0xb11   :  { %4604 = vmatmul.f32.vlgmr.msrb.gmra.mxu2 %v4542_v0  ;;  %4624 = vmatmul.f32.vlgmr.msrb.gmra.mxu3 %v4542_v0 }
 0xb18   :  { %4740 = vmatmul.f32.vlgmr.msra.gmra.mxu0 %v11643_v12 }
 0xb20   :  { %4743 = vmatmul.f32.gmra.mxu0 %v11644_v33 }
 0xb28   :  { %4746 = vmatmul.f32.gmra.mxu0 %v11645_v39 }
 0xb30   :  { %4749 = vmatmul.f32.gmra.mxu0 %v11646_v49 }
 0xb38   :  { %4752 = vmatmul.f32.gmra.mxu0 %v10065_v6  ;;  %v10178_v6 = vld [vmem:[%s10211_s12] ss:$0 sm:$0xff]  ;;  %s6005_s12 = smov [#allocation17]  }
 0xb39   :  { %s4777_s16 = sshll.u32 %s6005_s12, 4  ;;  %s4778_s16 = int_to_ptr.vmem [resolvable:$true] %s4777_s16 }
 0xb40   :  { %4755 = vmatmul.f32.gmra.mxu0 %v10147_v7  ;;  %v11649_v7 = vld [vmem:[#allocation97_spill] sm:$0xff] }
 0xb41   :  { %v836_v28 = vadd.f32 %v11649_v7, %v11635_v41 }
 0xb48   :  { %4758 = vmatmul.f32.gmra.mxu0 %v4542_v0 }
 0xb8d   :  { %v4565_v25 = vpop.f32.mrf.mxu0  ;;  %v4585_v59 = vpop.f32.mrf.mxu1 }
 0xb8e   :  { %v4628_v26 = vadd.f32 %v4565_v25, %v713_v44  ;;  %v4629_v16 = vadd.f32 %v4585_v59, %v754_v5 }
 0xb90   :  { %v4960_v11 = vmul.f32 -1.442695, %v4628_v26  ;;  %v4961_v45 = vmul.f32 -1.442695, %v4629_v16 }
 0xb92   :  { %5352 = vpow2.f32 %v4960_v11 }
 0xb93   :  { %5354 = vpow2.f32 %v4961_v45 }
 0xb94   :  { %v4625_v15 = vpop.f32.mrf.mxu3  ;;  %v4605_v43 = vpop.f32.mrf.mxu2 }
 0xb95   :  { %v4631_v53 = vadd.f32 %v4625_v15, %v836_v28  ;;  %v4741_v48 = vpop.f32.mrf.mxu0  ;;  %v4630_v22 = vadd.f32 %v4605_v43, %v795_v19 }
 0xb96   :  { %v4742_v32 = vadd.f32 %v10178_v6, %v4741_v48 }
 0xb97   :  { %v4962_v8 = vmul.f32 -1.442695, %v4631_v53 }
 0xb98   :  { %v5353_v61 = vpop.eup %5352  ;;  %4765 = vst [vmem:[#allocation17] sm:$0xff] %v4742_v32 }
 0xb99   :  { %v5355_v1 = vpop.eup %5354  ;;  %v4635_v23 = vadd.f32 1.0, %v5353_v61  ;;  %5356 = vpow2.f32 %v4962_v8 }
 0xb9a   :  { %v4654_v20 = vadd.f32 1.0, %v5355_v1 }
 0xb9b   :  { %5358 = vrcp.f32 %v4635_v23  ;;  %v4645_v35 = vand.u32 2147483647, %v4635_v23  ;;  %v4647_v29 = vand.u32 2147483648, %v4635_v23  ;;  %vm4641_vm7 = vweird.f32 %v4635_v23 }
 0xb9c   :  { %5360 = vrcp.f32 %v4654_v20  ;;  %v4666_v36 = vand.u32 2147483648, %v4654_v20  ;;  %v4664_v63 = vand.u32 2147483647, %v4654_v20  ;;  %vm4660_vm8 = vweird.f32 %v4654_v20 }
 0xb9d   :  { %v4744_v46 = vpop.f32.mrf.mxu0  ;;  %v4648_v62 = vor.u32 1.1754944e-38, %v4647_v29  ;;  %vm4646_vm11 = vcmp.eq.f32.partialorder %v4645_v35, 8.507059e+37 }
 0xb9e   :  { %v4745_v13 = vadd.f32 %v10178_v6, %v4744_v46  ;;  %v4667_v30 = vor.u32 1.1754944e-38, %v4666_v36  ;;  %vm4665_vm12 = vcmp.eq.f32.partialorder %v4664_v63, 8.507059e+37 }
 0xb9f   :  { %v5357_v41 = vpop.eup %5356 }
 0xba0   :  { %v4674_v21 = vadd.f32 1.0, %v5357_v41  ;;  %4766 = vst [vmem:[#allocation17 + $0x8] sm:$0xff] %v4745_v13 }
 0xba1   :  { %v5359_v57 = vpop.eup %5358 }
 0xba2   :  { %v5361_v10 = vpop.eup %5360  ;;  %v4637_v27 = vmul.f32 %v5359_v57, %v4635_v23  ;;  %5362 = vrcp.f32 %v4674_v21  ;;  %vm4642_vm5 = vweird.f32 %v5359_v57  ;;  %v4686_v4 = vand.u32 2147483648, %v4674_v21 }
 0xba3   :  { %v4656_v31 = vmul.f32 %v5361_v10, %v4654_v20  ;;  %5364 = vtanh.f32 %v4630_v22  ;;  %vm4661_vm6 = vweird.f32 %v5361_v10  ;;  %vm4643_vm9 = vmor %vm4641_vm7, %vm4642_vm5  ;;  %vm4680_vm14 = vweird.f32 %v4674_v21 }
 0xba4   :  { %v4638_v2 = vsub.f32 1.0, %v4637_v27  ;;  %vm4662_vm10 = vmor %vm4660_vm8, %vm4661_vm6  ;;  %v4684_v44 = vand.u32 2147483647, %v4674_v21  ;;  %v4687_v25 = vor.u32 1.1754944e-38, %v4686_v4 }
 0xba5   :  { %v4657_v34 = vsub.f32 1.0, %v4656_v31  ;;  %v4747_v55 = vpop.f32.mrf.mxu0 }
 0xba6   :  { %v4639_v47 = vmul.f32 %v5359_v57, %v4638_v2  ;;  %v4748_v37 = vadd.f32 %v10178_v6, %v4747_v55  ;;  %vm4685_vm0 = vcmp.eq.f32.partialorder %v4684_v44, 8.507059e+37 }
 0xba7   :  { %v4658_v40 = vmul.f32 %v5361_v10, %v4657_v34 }
 0xba8   :  { %v5363_v24 = vpop.eup %5362  ;;  %v4640_v51 = vadd.f32 %v5359_v57, %v4639_v47  ;;  %4767 = vst [vmem:[#allocation17 + $0x10] sm:$0xff] %v4748_v37 }
 0xba9   :  { %v4659_v56 = vadd.f32 %v5361_v10, %v4658_v40  ;;  %v4676_v60 = vmul.f32 %v5363_v24, %v4674_v21  ;;  %v5365_v3 = vpop.eup %5364  ;;  %vm4681_vm13 = vweird.f32 %v5363_v24 }
 0xbaa   :  { %v4644_v14 = vsel %vm4643_vm9, %v5359_v57, %v4640_v51  ;;  %vm4682_vm15 = vmor %vm4680_vm14, %vm4681_vm13 }
 0xbab   :  { %v4649_v17 = vsel %vm4646_vm11, %v4648_v62, %v4644_v14  ;;  %v4663_v18 = vsel %vm4662_vm10, %v5361_v10, %v4659_v56  ;;  %v4677_v58 = vsub.f32 1.0, %v4676_v60 }
 0xbac   :  { %v4668_v38 = vsel %vm4665_vm12, %v4667_v30, %v4663_v18  ;;  %v4691_v9 = vmul.f32 %v5365_v3, %v4649_v17 }
 0xbad   :  { %v4690_v42 = vmul.f32 %v4668_v38, %v10162_v54  ;;  %v4750_v0 = vpop.f32.mrf.mxu0  ;;  %v4678_v12 = vmul.f32 %v5363_v24, %v4677_v58 }
 0xbae   :  { %v4751_v33 = vadd.f32 %v10178_v6, %v4750_v0 }
 0xbaf   :  { %v4692_v39 = vadd.f32 %v4691_v9, %v4690_v42  ;;  %v4679_v49 = vadd.f32 %v5363_v24, %v4678_v12 }
 0xbb0   :  { %4768 = vst [vmem:[#allocation17 + $0x18] sm:$0xff] %v4751_v33 }
 0xbb1   :  { %5366 = vtanh.f32 %v4692_v39  ;;  %v4683_v50 = vsel %vm4682_vm15, %v5363_v24, %v4679_v49 }
 0xbb2   :  { %v4688_v26 = vsel %vm4685_vm0, %v4687_v25, %v4683_v50 }
 0xbb5   :  { %v4753_v5 = vpop.f32.mrf.mxu0 }
 0xbb6   :  { %v4754_v59 = vadd.f32 %v10178_v6, %v4753_v5 }
 0xbb7   :  { %v5367_v54 = vpop.eup %5366 }
 0xbb8   :  { %4769 = vst [vmem:[#allocation17 + $0x20] sm:$0xff] %v4754_v59  ;;  %v4694_v16 = vmul.f32 %v5367_v54, %v4688_v26 }
 0xbba   :  { %4761 = vmatmul.f32.gmra.mxu0 %v4694_v16 }
 0xbbd   :  { %v4756_v11 = vpop.f32.mrf.mxu0 }
 0xbbe   :  { %v4757_v45 = vadd.f32 %v10178_v6, %v4756_v11 }
 0xbc0   :  { %4770 = vst [vmem:[#allocation17 + $0x28] sm:$0xff] %v4757_v45 }
 0xbc5   :  { %v4759_v7 = vpop.f32.mrf.mxu0 }
 0xbc6   :  { %v4760_v28 = vadd.f32 %v10178_v6, %v4759_v7 }
 0xbc8   :  { %4771 = vst [vmem:[#allocation17 + $0x30] sm:$0xff] %v4760_v28 }
 0xc37   :  { %v4762_v15 = vpop.f32.mrf.mxu0 }
 0xc38   :  { %v4763_v53 = vadd.f32 %v10178_v6, %v4762_v15 }
 0xc3a   :  { %4772 = vst [vmem:[#allocation17 + $0x38] sm:$0xff] %v4763_v53 }
 0xc3b   :  { %4785 = dma.vmem_to_hbm [thread:$0]  %s4778_s16, 1024, %s4780_s0, [#allocation8], %s6002_s20, %s6002_s20, %s6003_s21  }
 0xc3c   :  { %5992 = dma.done.wait [#allocation8], 1024  }
 0xc3d   :  { %5993 = vsyncadd [#allocation8], 4294966272 }
 0xc3e   :  { %4790 = vsyncpa [#allocation7], 1 }
 0xc3f   :  { %4791 = vsyncpa [#allocation10], 1 }
 0xc40   :  { %4792 = vsyncpa [#allocation13], 1 }
 0xc41   :  { %4793 = vsyncpa [#allocation16], 1 }
 0xc42   :  { %4794 = vsyncpa [#allocation8], 1 }

</bundles_post_ra>
